<compile_context>
chip_gen: v5e
topology: v5e:2x2
jax: 0.10.0
libtpu: 0.0.40
codegen_flags: <defaults>
</compile_context>

<pallas_src>
from functools import partial

import jax
import jax.numpy as jnp
from jax import lax
from jax.experimental import pallas as pl
from jax.experimental.pallas import tpu as pltpu


# --------------------------------- fused kernel ------------------------------------

def _image2sketch_kernel(
        x_ref,
        w1_ref, b1_ref, w2_ref, b2_ref, w3_ref, b3_ref,
        wih1_ref, whh1_ref, bl1_ref,
        wih2_ref, whh2_ref, bl2_ref,
        o_ref,
        pad1, pad2, pad3, gx1, enc, gx2,
        *, H, W, C0, H1, H2):
    T = H * W

    # ---------------- SharedConvLayers: 3x (3x3 conv + ReLU), all in VMEM ----------
    def conv3x3_relu(x_hwc, pad_scr, w_ref, b_ref, cin):
        # In-kernel zero halo: zero the scratch, place the tile in its interior.
        pad_scr[...] = jnp.zeros_like(pad_scr)
        pad_scr[1:H + 1, 1:W + 1, :] = x_hwc
        xp = pad_scr[...]
        taps = [xp[dy:dy + H, dx:dx + W, :].reshape(T, cin)
                for dy in range(3) for dx in range(3)]
        w = w_ref[...]                                    # (9*cin, cout), pre-reshaped
        if cin >= 64:
            # im2col: one (T, 9*cin) patch matrix -> single MXU matmul, K = 9*cin
            # (one accumulate; no per-tap MXU result round trips).
            patches = jnp.concatenate(taps, axis=1).astype(w.dtype)
            y = jnp.dot(patches, w, preferred_element_type=jnp.float32)
        else:
            # First layer: cin is tiny, a sub-64-lane concat buys nothing; just
            # accumulate the 9 taps (negligible FLOPs at this layer).
            y = jnp.zeros((T, w.shape[-1]), jnp.float32)
            for k, tap in enumerate(taps):
                y = y + jnp.dot(tap.astype(w.dtype), w[k * cin:(k + 1) * cin, :],
                                preferred_element_type=jnp.float32)
        return jnp.maximum(y + b_ref[...], 0.0)           # (T, cout) f32

    y1 = conv3x3_relu(x_ref[...], pad1, w1_ref, b1_ref, C0)              # (T, 64)
    y2 = conv3x3_relu(y1.reshape(H, W, 64), pad2, w2_ref, b2_ref, 64)    # (T, 128)
    y3 = conv3x3_relu(y2.reshape(H, W, 128), pad3, w3_ref, b3_ref, 128)  # (T, 256)

    # --------------- LSTM helper (gate-major weights (4, D, Hd) / (4, Hd, Hd)) ------
    def run_lstm(x_seq, wih_ref, whh_ref, b_ref, gx_scr, hidden, emit):
        # Hoisted input projection: one well-shaped matmul per gate over ALL T steps.
        xs = x_seq.astype(wih_ref.dtype)
        for g in range(4):                                 # PyTorch order: i, f, g, o
            gx_scr[:, g, :] = (
                jnp.dot(xs, wih_ref[g], preferred_element_type=jnp.float32)
                + b_ref[g])

        def step(t, carry):
            h, c = carry                                   # (1, hidden) f32, in vregs
            gt = gx_scr[t]                                 # (4, hidden)
            hq = h.astype(whh_ref.dtype)
            zi = gt[0:1] + jnp.dot(hq, whh_ref[0], preferred_element_type=jnp.float32)
            zf = gt[1:2] + jnp.dot(hq, whh_ref[1], preferred_element_type=jnp.float32)
            zg = gt[2:3] + jnp.dot(hq, whh_ref[2], preferred_element_type=jnp.float32)
            zo = gt[3:4] + jnp.dot(hq, whh_ref[3], preferred_element_type=jnp.float32)
            c = jax.nn.sigmoid(zf) * c + jax.nn.sigmoid(zi) * jnp.tanh(zg)
            h = jax.nn.sigmoid(zo) * jnp.tanh(c)
            emit(t, h)
            return h, c

        z = jnp.zeros((1, hidden), jnp.float32)
        lax.fori_loop(0, T, step, (z, z))

    def emit_enc(t, h):                                    # ReLU between the two LSTMs
        enc[pl.ds(t, 1), :] = jnp.maximum(h, 0.0)

    def emit_out(t, h):                                    # decoder output, raw
        o_ref[pl.ds(t, 1), :] = h

    run_lstm(y3, wih1_ref, whh1_ref, bl1_ref, gx1, H1, emit_enc)        # (T, 64) in VMEM
    run_lstm(enc[...], wih2_ref, whh2_ref, bl2_ref, gx2, H2, emit_out)  # -> o_ref (T, 256)


# --------------------------------- wrapper -----------------------------------------

def image2sketch_forward(params, x_nchw, *, compute_dtype=jnp.float32):
    """compute_dtype=jnp.bfloat16 enables bf16 MXU operands (f32 accumulation) on v6e/v7x."""
    x = jnp.transpose(x_nchw, (0, 2, 3, 1))                # NCHW -> NHWC (tiny input)
    N, H, W, C0 = x.shape
    T = H * W
    H1, H2 = 64, 256

    # One-time weight repacking into kernel-friendly layouts.
    def conv_w(name):
        w, b = params[name]
        cin, cout = w.shape[2], w.shape[3]
        return w.reshape(9 * cin, cout).astype(compute_dtype), b.reshape(1, cout)

    def lstm_w(name, d, h):
        w_ih, w_hh, b = params[name]
        wih = w_ih.reshape(d, 4, h).transpose(1, 0, 2).astype(compute_dtype)  # (4,d,h)
        whh = w_hh.reshape(h, 4, h).transpose(1, 0, 2).astype(compute_dtype)  # (4,h,h)
        return wih, whh, b.reshape(4, 1, h)

    w1, b1 = conv_w("conv1")
    w2, b2 = conv_w("conv2")
    w3, b3 = conv_w("conv3")
    wih1, whh1, bl1 = lstm_w("enc", 256, H1)
    wih2, whh2, bl2 = lstm_w("dec", H1, H2)

    kern = partial(_image2sketch_kernel, H=H, W=W, C0=C0, H1=H1, H2=H2)
    return pl.pallas_call(
        kern,
        out_shape=jax.ShapeDtypeStruct((N, T, H2), jnp.float32),
        grid=(N,),
        in_specs=[
            pl.BlockSpec((None, H, W, C0), lambda n: (n, 0, 0, 0)),
            pl.BlockSpec((9 * C0, 64), lambda n: (0, 0)),
            pl.BlockSpec((1, 64), lambda n: (0, 0)),
            pl.BlockSpec((9 * 64, 128), lambda n: (0, 0)),
            pl.BlockSpec((1, 128), lambda n: (0, 0)),
            pl.BlockSpec((9 * 128, 256), lambda n: (0, 0)),
            pl.BlockSpec((1, 256), lambda n: (0, 0)),
            pl.BlockSpec((4, 256, H1), lambda n: (0, 0, 0)),
            pl.BlockSpec((4, H1, H1), lambda n: (0, 0, 0)),
            pl.BlockSpec((4, 1, H1), lambda n: (0, 0, 0)),
            pl.BlockSpec((4, H1, H2), lambda n: (0, 0, 0)),
            pl.BlockSpec((4, H2, H2), lambda n: (0, 0, 0)),
            pl.BlockSpec((4, 1, H2), lambda n: (0, 0, 0)),
        ],
        out_specs=pl.BlockSpec((None, T, H2), lambda n: (n, 0, 0)),
        scratch_shapes=[
            pltpu.VMEM((H + 2, W + 2, C0), jnp.float32),   # conv1 halo
            pltpu.VMEM((H + 2, W + 2, 64), jnp.float32),   # conv2 halo
            pltpu.VMEM((H + 2, W + 2, 128), jnp.float32),  # conv3 halo
            pltpu.VMEM((T, 4, H1), jnp.float32),           # encoder hoisted gates
            pltpu.VMEM((T, H1), jnp.float32),              # encoder outputs (post-ReLU)
            pltpu.VMEM((T, 4, H2), jnp.float32),           # decoder hoisted gates
        ],
        compiler_params=pltpu.CompilerParams(
            dimension_semantics=("parallel",),
            vmem_limit_bytes=32 * 1024 * 1024),
    )(x, w1, b1, w2, b2, w3, b3, wih1, whh1, bl1, wih2, whh2, bl2)


# ------------------------------- params & reference --------------------------------

def init_params(key, in_channels):
    keys = jax.random.split(key, 5)

    def conv_p(k, cin, cout):
        k1, k2 = jax.random.split(k)
        w = jax.random.normal(k1, (3, 3, cin, cout), jnp.float32) / jnp.sqrt(9.0 * cin)
        b = jax.random.normal(k2, (cout,), jnp.float32) * 0.01
        return w, b

    def lstm_p(k, d, h):
        k1, k2, k3 = jax.random.split(k, 3)
        s = 1.0 / jnp.sqrt(jnp.float32(h))
        w_ih = jax.random.uniform(k1, (d, 4 * h), jnp.float32, -s, s)
        w_hh = jax.random.uniform(k2, (h, 4 * h), jnp.float32, -s, s)
        b = jax.random.uniform(k3, (4 * h,), jnp.float32, -s, s)   # b_ih + b_hh fused
        return w_ih, w_hh, b

    return {
        "conv1": conv_p(keys[0], in_channels, 64),
        "conv2": conv_p(keys[1], 64, 128),
        "conv3": conv_p(keys[2], 128, 256),
        "enc": lstm_p(keys[3], 256, 64),
        "dec": lstm_p(keys[4], 64, 256),
    }


def _ref_forward(params, x_nchw):
    x = jnp.transpose(x_nchw, (0, 2, 3, 1))
    for name in ("conv1", "conv2", "conv3"):
        w, b = params[name]
        x = jax.lax.conv_general_dilated(
            x, w, window_strides=(1, 1), padding="SAME",
            dimension_numbers=("NHWC", "HWIO", "NHWC"))
        x = jnp.maximum(x + b.reshape(1, 1, 1, -1), 0.0)
    N, H, W, C = x.shape
    seq = x.reshape(N, H * W, C)

    def run_lstm(x_ntd, w_ih, w_hh, b, hidden):
        Nb = x_ntd.shape[0]

        def step(carry, x_t):
            h, c = carry
            gates = x_t @ w_ih + h @ w_hh + b.reshape(1, -1)
            i = jax.nn.sigmoid(gates[:, :hidden])
            f = jax.nn.sigmoid(gates[:, hidden:2 * hidden])
            g = jnp.tanh(gates[:, 2 * hidden:3 * hidden])
            o = jax.nn.sigmoid(gates[:, 3 * hidden:])
            c = f * c + i * g
            h = o * jnp.tanh(c)
            return (h, c), h

        init = (jnp.zeros((Nb, hidden), jnp.float32),
                jnp.zeros((Nb, hidden), jnp.float32))
        _, hs = jax.lax.scan(step, init, jnp.swapaxes(x_ntd, 0, 1))
        return jnp.swapaxes(hs, 0, 1)

    enc = jnp.maximum(run_lstm(seq, *params["enc"], 64), 0.0)
    return run_lstm(enc, *params["dec"], 256)


if __name__ == "__main__":
    key = jax.random.PRNGKey(0)
    kx, kp = jax.random.split(key)
    N, Cin, H, W = 2, 4, 8, 8
    x = jax.random.normal(kx, (N, Cin, H, W), jnp.float32)
    params = init_params(kp, Cin)

    out = jax.block_until_ready(image2sketch_forward(params, x))
    ref = jax.block_until_ready(_ref_forward(params, x))

    assert out.shape == (N, H * W, 256), out.shape
    err = float(jnp.max(jnp.abs(out - ref)))
    assert jnp.allclose(out, ref, atol=2e-3, rtol=2e-3), f"max abs err {err}"
    print("KERNEL_OK")
</pallas_src>

<mosaic_0001>
module attributes {stable_mosaic.version = 11 : i64} {
  func.func @_image2sketch_kernel(%arg0: i32, %arg1: memref<1x8x8x4xf32, #tpu.memory_space<vmem>>, %arg2: memref<36x64xf32, #tpu.memory_space<vmem>>, %arg3: memref<1x64xf32, #tpu.memory_space<vmem>>, %arg4: memref<576x128xf32, #tpu.memory_space<vmem>>, %arg5: memref<1x128xf32, #tpu.memory_space<vmem>>, %arg6: memref<1152x256xf32, #tpu.memory_space<vmem>>, %arg7: memref<1x256xf32, #tpu.memory_space<vmem>>, %arg8: memref<4x256x64xf32, #tpu.memory_space<vmem>>, %arg9: memref<4x64x64xf32, #tpu.memory_space<vmem>>, %arg10: memref<4x1x64xf32, #tpu.memory_space<vmem>>, %arg11: memref<4x64x256xf32, #tpu.memory_space<vmem>>, %arg12: memref<4x256x256xf32, #tpu.memory_space<vmem>>, %arg13: memref<4x1x256xf32, #tpu.memory_space<vmem>>, %arg14: memref<1x64x256xf32, #tpu.memory_space<vmem>>, %arg15: memref<10x10x4xf32, #tpu.memory_space<vmem>>, %arg16: memref<10x10x64xf32, #tpu.memory_space<vmem>>, %arg17: memref<10x10x128xf32, #tpu.memory_space<vmem>>, %arg18: memref<64x4x64xf32, #tpu.memory_space<vmem>>, %arg19: memref<64x64xf32, #tpu.memory_space<vmem>>, %arg20: memref<64x4x256xf32, #tpu.memory_space<vmem>>) attributes {dimension_semantics = [#tpu.dimension_semantics<parallel>], iteration_bounds = array<i64: 2>, scalar_prefetch = 0 : i64, scratch_operands = 6 : i64, tpu.core_type = #tpu.core_type<tc>, window_params = [{transform_indices = @transform_0, window_bounds = array<i64: 1, 8, 8, 4>}, {pipeline_mode = #tpu.pipeline_mode<synchronous>, transform_indices = @transform_1, window_bounds = array<i64: 36, 64>}, {pipeline_mode = #tpu.pipeline_mode<synchronous>, transform_indices = @transform_2, window_bounds = array<i64: 1, 64>}, {pipeline_mode = #tpu.pipeline_mode<synchronous>, transform_indices = @transform_3, window_bounds = array<i64: 576, 128>}, {pipeline_mode = #tpu.pipeline_mode<synchronous>, transform_indices = @transform_4, window_bounds = array<i64: 1, 128>}, {pipeline_mode = #tpu.pipeline_mode<synchronous>, transform_indices = @transform_5, window_bounds = array<i64: 1152, 256>}, {pipeline_mode = #tpu.pipeline_mode<synchronous>, transform_indices = @transform_6, window_bounds = array<i64: 1, 256>}, {pipeline_mode = #tpu.pipeline_mode<synchronous>, transform_indices = @transform_7, window_bounds = array<i64: 4, 256, 64>}, {pipeline_mode = #tpu.pipeline_mode<synchronous>, transform_indices = @transform_8, window_bounds = array<i64: 4, 64, 64>}, {pipeline_mode = #tpu.pipeline_mode<synchronous>, transform_indices = @transform_9, window_bounds = array<i64: 4, 1, 64>}, {pipeline_mode = #tpu.pipeline_mode<synchronous>, transform_indices = @transform_10, window_bounds = array<i64: 4, 64, 256>}, {pipeline_mode = #tpu.pipeline_mode<synchronous>, transform_indices = @transform_11, window_bounds = array<i64: 4, 256, 256>}, {pipeline_mode = #tpu.pipeline_mode<synchronous>, transform_indices = @transform_12, window_bounds = array<i64: 4, 1, 256>}, {transform_indices = @transform_13, window_bounds = array<i64: 1, 64, 256>}]} {
    %c0 = arith.constant 0 : index
    %c0_0 = arith.constant 0 : index
    %c0_1 = arith.constant 0 : index
    %c0_2 = arith.constant 0 : index
    %0 = vector.load %arg1[%c0, %c0_0, %c0_1, %c0_2] : memref<1x8x8x4xf32, #tpu.memory_space<vmem>>, vector<1x8x8x4xf32>
    %1 = vector.shape_cast %0 : vector<1x8x8x4xf32> to vector<8x8x4xf32>
    %cst = arith.constant 0.000000e+00 : f32
    %2 = vector.broadcast %cst : f32 to vector<10x10x4xf32>
    %c0_3 = arith.constant 0 : index
    %c0_4 = arith.constant 0 : index
    %c0_5 = arith.constant 0 : index
    %3 = vector.load %arg15[%c0_3, %c0_4, %c0_5] : memref<10x10x4xf32, #tpu.memory_space<vmem>>, vector<10x10x4xf32>
    tpu.vector_store %arg15[%c0_3, %c0_4, %c0_5], %2 {strides = array<i32>} : memref<10x10x4xf32, #tpu.memory_space<vmem>>, vector<10x10x4xf32>,
    %c1 = arith.constant 1 : index
    %c1_6 = arith.constant 1 : index
    %c0_7 = arith.constant 0 : index
    %4 = vector.load %arg15[%c1, %c1_6, %c0_7] : memref<10x10x4xf32, #tpu.memory_space<vmem>>, vector<8x8x4xf32>
    tpu.vector_store %arg15[%c1, %c1_6, %c0_7], %1 {strides = array<i32>} : memref<10x10x4xf32, #tpu.memory_space<vmem>>, vector<8x8x4xf32>,
    %c0_8 = arith.constant 0 : index
    %c0_9 = arith.constant 0 : index
    %c0_10 = arith.constant 0 : index
    %5 = vector.load %arg15[%c0_8, %c0_9, %c0_10] : memref<10x10x4xf32, #tpu.memory_space<vmem>>, vector<10x10x4xf32>
    %6 = vector.extract_strided_slice %5 {offsets = [0, 0, 0], sizes = [8, 8, 4], strides = [1, 1, 1]} : vector<10x10x4xf32> to vector<8x8x4xf32>
    %7 = vector.shape_cast %6 : vector<8x8x4xf32> to vector<64x4xf32>
    %8 = vector.extract_strided_slice %5 {offsets = [0, 1, 0], sizes = [8, 8, 4], strides = [1, 1, 1]} : vector<10x10x4xf32> to vector<8x8x4xf32>
    %9 = vector.shape_cast %8 : vector<8x8x4xf32> to vector<64x4xf32>
    %10 = vector.extract_strided_slice %5 {offsets = [0, 2, 0], sizes = [8, 8, 4], strides = [1, 1, 1]} : vector<10x10x4xf32> to vector<8x8x4xf32>
    %11 = vector.shape_cast %10 : vector<8x8x4xf32> to vector<64x4xf32>
    %12 = vector.extract_strided_slice %5 {offsets = [1, 0, 0], sizes = [8, 8, 4], strides = [1, 1, 1]} : vector<10x10x4xf32> to vector<8x8x4xf32>
    %13 = vector.shape_cast %12 : vector<8x8x4xf32> to vector<64x4xf32>
    %14 = vector.extract_strided_slice %5 {offsets = [1, 1, 0], sizes = [8, 8, 4], strides = [1, 1, 1]} : vector<10x10x4xf32> to vector<8x8x4xf32>
    %15 = vector.shape_cast %14 : vector<8x8x4xf32> to vector<64x4xf32>
    %16 = vector.extract_strided_slice %5 {offsets = [1, 2, 0], sizes = [8, 8, 4], strides = [1, 1, 1]} : vector<10x10x4xf32> to vector<8x8x4xf32>
    %17 = vector.shape_cast %16 : vector<8x8x4xf32> to vector<64x4xf32>
    %18 = vector.extract_strided_slice %5 {offsets = [2, 0, 0], sizes = [8, 8, 4], strides = [1, 1, 1]} : vector<10x10x4xf32> to vector<8x8x4xf32>
    %19 = vector.shape_cast %18 : vector<8x8x4xf32> to vector<64x4xf32>
    %20 = vector.extract_strided_slice %5 {offsets = [2, 1, 0], sizes = [8, 8, 4], strides = [1, 1, 1]} : vector<10x10x4xf32> to vector<8x8x4xf32>
    %21 = vector.shape_cast %20 : vector<8x8x4xf32> to vector<64x4xf32>
    %22 = vector.extract_strided_slice %5 {offsets = [2, 2, 0], sizes = [8, 8, 4], strides = [1, 1, 1]} : vector<10x10x4xf32> to vector<8x8x4xf32>
    %23 = vector.shape_cast %22 : vector<8x8x4xf32> to vector<64x4xf32>
    %c0_11 = arith.constant 0 : index
    %c0_12 = arith.constant 0 : index
    %24 = vector.load %arg2[%c0_11, %c0_12] : memref<36x64xf32, #tpu.memory_space<vmem>>, vector<36x64xf32>
    %cst_13 = arith.constant 0.000000e+00 : f32
    %25 = vector.broadcast %cst_13 : f32 to vector<64x64xf32>
    %26 = vector.extract_strided_slice %24 {offsets = [0, 0], sizes = [4, 64], strides = [1, 1]} : vector<36x64xf32> to vector<4x64xf32>
    %cst_14 = arith.constant dense<0.000000e+00> : vector<64x64xf32>
    %27 = tpu.matmul %7, %26, %cst_14 {dimension_numbers = #tpu.dot_dimension_numbers<[1], [0], [0], [1], [0, 0, 1, 1], [], []>} : vector<64x4xf32>, vector<4x64xf32>, vector<64x64xf32> -> vector<64x64xf32>
    %28 = arith.addf %25, %27 : vector<64x64xf32>
    %29 = vector.extract_strided_slice %24 {offsets = [4, 0], sizes = [4, 64], strides = [1, 1]} : vector<36x64xf32> to vector<4x64xf32>
    %cst_15 = arith.constant dense<0.000000e+00> : vector<64x64xf32>
    %30 = tpu.matmul %9, %29, %cst_15 {dimension_numbers = #tpu.dot_dimension_numbers<[1], [0], [0], [1], [0, 0, 1, 1], [], []>} : vector<64x4xf32>, vector<4x64xf32>, vector<64x64xf32> -> vector<64x64xf32>
    %31 = arith.addf %28, %30 : vector<64x64xf32>
    %32 = vector.extract_strided_slice %24 {offsets = [8, 0], sizes = [4, 64], strides = [1, 1]} : vector<36x64xf32> to vector<4x64xf32>
    %cst_16 = arith.constant dense<0.000000e+00> : vector<64x64xf32>
    %33 = tpu.matmul %11, %32, %cst_16 {dimension_numbers = #tpu.dot_dimension_numbers<[1], [0], [0], [1], [0, 0, 1, 1], [], []>} : vector<64x4xf32>, vector<4x64xf32>, vector<64x64xf32> -> vector<64x64xf32>
    %34 = arith.addf %31, %33 : vector<64x64xf32>
    %35 = vector.extract_strided_slice %24 {offsets = [12, 0], sizes = [4, 64], strides = [1, 1]} : vector<36x64xf32> to vector<4x64xf32>
    %cst_17 = arith.constant dense<0.000000e+00> : vector<64x64xf32>
    %36 = tpu.matmul %13, %35, %cst_17 {dimension_numbers = #tpu.dot_dimension_numbers<[1], [0], [0], [1], [0, 0, 1, 1], [], []>} : vector<64x4xf32>, vector<4x64xf32>, vector<64x64xf32> -> vector<64x64xf32>
    %37 = arith.addf %34, %36 : vector<64x64xf32>
    %38 = vector.extract_strided_slice %24 {offsets = [16, 0], sizes = [4, 64], strides = [1, 1]} : vector<36x64xf32> to vector<4x64xf32>
    %cst_18 = arith.constant dense<0.000000e+00> : vector<64x64xf32>
    %39 = tpu.matmul %15, %38, %cst_18 {dimension_numbers = #tpu.dot_dimension_numbers<[1], [0], [0], [1], [0, 0, 1, 1], [], []>} : vector<64x4xf32>, vector<4x64xf32>, vector<64x64xf32> -> vector<64x64xf32>
    %40 = arith.addf %37, %39 : vector<64x64xf32>
    %41 = vector.extract_strided_slice %24 {offsets = [20, 0], sizes = [4, 64], strides = [1, 1]} : vector<36x64xf32> to vector<4x64xf32>
    %cst_19 = arith.constant dense<0.000000e+00> : vector<64x64xf32>
    %42 = tpu.matmul %17, %41, %cst_19 {dimension_numbers = #tpu.dot_dimension_numbers<[1], [0], [0], [1], [0, 0, 1, 1], [], []>} : vector<64x4xf32>, vector<4x64xf32>, vector<64x64xf32> -> vector<64x64xf32>
    %43 = arith.addf %40, %42 : vector<64x64xf32>
    %44 = vector.extract_strided_slice %24 {offsets = [24, 0], sizes = [4, 64], strides = [1, 1]} : vector<36x64xf32> to vector<4x64xf32>
    %cst_20 = arith.constant dense<0.000000e+00> : vector<64x64xf32>
    %45 = tpu.matmul %19, %44, %cst_20 {dimension_numbers = #tpu.dot_dimension_numbers<[1], [0], [0], [1], [0, 0, 1, 1], [], []>} : vector<64x4xf32>, vector<4x64xf32>, vector<64x64xf32> -> vector<64x64xf32>
    %46 = arith.addf %43, %45 : vector<64x64xf32>
    %47 = vector.extract_strided_slice %24 {offsets = [28, 0], sizes = [4, 64], strides = [1, 1]} : vector<36x64xf32> to vector<4x64xf32>
    %cst_21 = arith.constant dense<0.000000e+00> : vector<64x64xf32>
    %48 = tpu.matmul %21, %47, %cst_21 {dimension_numbers = #tpu.dot_dimension_numbers<[1], [0], [0], [1], [0, 0, 1, 1], [], []>} : vector<64x4xf32>, vector<4x64xf32>, vector<64x64xf32> -> vector<64x64xf32>
    %49 = arith.addf %46, %48 : vector<64x64xf32>
    %50 = vector.extract_strided_slice %24 {offsets = [32, 0], sizes = [4, 64], strides = [1, 1]} : vector<36x64xf32> to vector<4x64xf32>
    %cst_22 = arith.constant dense<0.000000e+00> : vector<64x64xf32>
    %51 = tpu.matmul %23, %50, %cst_22 {dimension_numbers = #tpu.dot_dimension_numbers<[1], [0], [0], [1], [0, 0, 1, 1], [], []>} : vector<64x4xf32>, vector<4x64xf32>, vector<64x64xf32> -> vector<64x64xf32>
    %52 = arith.addf %49, %51 : vector<64x64xf32>
    %c0_23 = arith.constant 0 : index
    %c0_24 = arith.constant 0 : index
    %53 = vector.load %arg3[%c0_23, %c0_24] : memref<1x64xf32, #tpu.memory_space<vmem>>, vector<1x64xf32>
    %54 = vector.broadcast %53 : vector<1x64xf32> to vector<64x64xf32>
    %55 = arith.addf %52, %54 : vector<64x64xf32>
    %cst_25 = arith.constant 0.000000e+00 : f32
    %56 = vector.broadcast %cst_25 : f32 to vector<64x64xf32>
    %57 = arith.maximumf %55, %56 : vector<64x64xf32>
    %58 = vector.shape_cast %57 : vector<64x64xf32> to vector<8x8x64xf32>
    %cst_26 = arith.constant 0.000000e+00 : f32
    %59 = vector.broadcast %cst_26 : f32 to vector<10x10x64xf32>
    %c0_27 = arith.constant 0 : index
    %c0_28 = arith.constant 0 : index
    %c0_29 = arith.constant 0 : index
    %60 = vector.load %arg16[%c0_27, %c0_28, %c0_29] : memref<10x10x64xf32, #tpu.memory_space<vmem>>, vector<10x10x64xf32>
    tpu.vector_store %arg16[%c0_27, %c0_28, %c0_29], %59 {strides = array<i32>} : memref<10x10x64xf32, #tpu.memory_space<vmem>>, vector<10x10x64xf32>,
    %c1_30 = arith.constant 1 : index
    %c1_31 = arith.constant 1 : index
    %c0_32 = arith.constant 0 : index
    %61 = vector.load %arg16[%c1_30, %c1_31, %c0_32] : memref<10x10x64xf32, #tpu.memory_space<vmem>>, vector<8x8x64xf32>
    tpu.vector_store %arg16[%c1_30, %c1_31, %c0_32], %58 {strides = array<i32>} : memref<10x10x64xf32, #tpu.memory_space<vmem>>, vector<8x8x64xf32>,
    %c0_33 = arith.constant 0 : index
    %c0_34 = arith.constant 0 : index
    %c0_35 = arith.constant 0 : index
    %62 = vector.load %arg16[%c0_33, %c0_34, %c0_35] : memref<10x10x64xf32, #tpu.memory_space<vmem>>, vector<10x10x64xf32>
    %63 = vector.extract_strided_slice %62 {offsets = [0, 0, 0], sizes = [8, 8, 64], strides = [1, 1, 1]} : vector<10x10x64xf32> to vector<8x8x64xf32>
    %64 = vector.shape_cast %63 : vector<8x8x64xf32> to vector<64x64xf32>
    %65 = vector.extract_strided_slice %62 {offsets = [0, 1, 0], sizes = [8, 8, 64], strides = [1, 1, 1]} : vector<10x10x64xf32> to vector<8x8x64xf32>
    %66 = vector.shape_cast %65 : vector<8x8x64xf32> to vector<64x64xf32>
    %67 = vector.extract_strided_slice %62 {offsets = [0, 2, 0], sizes = [8, 8, 64], strides = [1, 1, 1]} : vector<10x10x64xf32> to vector<8x8x64xf32>
    %68 = vector.shape_cast %67 : vector<8x8x64xf32> to vector<64x64xf32>
    %69 = vector.extract_strided_slice %62 {offsets = [1, 0, 0], sizes = [8, 8, 64], strides = [1, 1, 1]} : vector<10x10x64xf32> to vector<8x8x64xf32>
    %70 = vector.shape_cast %69 : vector<8x8x64xf32> to vector<64x64xf32>
    %71 = vector.extract_strided_slice %62 {offsets = [1, 1, 0], sizes = [8, 8, 64], strides = [1, 1, 1]} : vector<10x10x64xf32> to vector<8x8x64xf32>
    %72 = vector.shape_cast %71 : vector<8x8x64xf32> to vector<64x64xf32>
    %73 = vector.extract_strided_slice %62 {offsets = [1, 2, 0], sizes = [8, 8, 64], strides = [1, 1, 1]} : vector<10x10x64xf32> to vector<8x8x64xf32>
    %74 = vector.shape_cast %73 : vector<8x8x64xf32> to vector<64x64xf32>
    %75 = vector.extract_strided_slice %62 {offsets = [2, 0, 0], sizes = [8, 8, 64], strides = [1, 1, 1]} : vector<10x10x64xf32> to vector<8x8x64xf32>
    %76 = vector.shape_cast %75 : vector<8x8x64xf32> to vector<64x64xf32>
    %77 = vector.extract_strided_slice %62 {offsets = [2, 1, 0], sizes = [8, 8, 64], strides = [1, 1, 1]} : vector<10x10x64xf32> to vector<8x8x64xf32>
    %78 = vector.shape_cast %77 : vector<8x8x64xf32> to vector<64x64xf32>
    %79 = vector.extract_strided_slice %62 {offsets = [2, 2, 0], sizes = [8, 8, 64], strides = [1, 1, 1]} : vector<10x10x64xf32> to vector<8x8x64xf32>
    %80 = vector.shape_cast %79 : vector<8x8x64xf32> to vector<64x64xf32>
    %c0_36 = arith.constant 0 : index
    %c0_37 = arith.constant 0 : index
    %81 = vector.load %arg4[%c0_36, %c0_37] : memref<576x128xf32, #tpu.memory_space<vmem>>, vector<576x128xf32>
    %82 = tpu.concatenate %64, %66, %68, %70, %72, %74, %76, %78, %80 in 1 : vector<64x64xf32>, vector<64x64xf32>, vector<64x64xf32>, vector<64x64xf32>, vector<64x64xf32>, vector<64x64xf32>, vector<64x64xf32>, vector<64x64xf32>, vector<64x64xf32> -> vector<64x576xf32>
    %cst_38 = arith.constant dense<0.000000e+00> : vector<64x128xf32>
    %83 = tpu.matmul %82, %81, %cst_38 {dimension_numbers = #tpu.dot_dimension_numbers<[1], [0], [0], [1], [0, 0, 1, 1], [], []>} : vector<64x576xf32>, vector<576x128xf32>, vector<64x128xf32> -> vector<64x128xf32>
    %c0_39 = arith.constant 0 : index
    %c0_40 = arith.constant 0 : index
    %84 = vector.load %arg5[%c0_39, %c0_40] : memref<1x128xf32, #tpu.memory_space<vmem>>, vector<1x128xf32>
    %85 = vector.broadcast %84 : vector<1x128xf32> to vector<64x128xf32>
    %86 = arith.addf %83, %85 : vector<64x128xf32>
    %cst_41 = arith.constant 0.000000e+00 : f32
    %87 = vector.broadcast %cst_41 : f32 to vector<64x128xf32>
    %88 = arith.maximumf %86, %87 : vector<64x128xf32>
    %89 = vector.shape_cast %88 : vector<64x128xf32> to vector<8x8x128xf32>
    %cst_42 = arith.constant 0.000000e+00 : f32
    %90 = vector.broadcast %cst_42 : f32 to vector<10x10x128xf32>
    %c0_43 = arith.constant 0 : index
    %c0_44 = arith.constant 0 : index
    %c0_45 = arith.constant 0 : index
    %91 = vector.load %arg17[%c0_43, %c0_44, %c0_45] : memref<10x10x128xf32, #tpu.memory_space<vmem>>, vector<10x10x128xf32>
    tpu.vector_store %arg17[%c0_43, %c0_44, %c0_45], %90 {strides = array<i32>} : memref<10x10x128xf32, #tpu.memory_space<vmem>>, vector<10x10x128xf32>,
    %c1_46 = arith.constant 1 : index
    %c1_47 = arith.constant 1 : index
    %c0_48 = arith.constant 0 : index
    %92 = vector.load %arg17[%c1_46, %c1_47, %c0_48] : memref<10x10x128xf32, #tpu.memory_space<vmem>>, vector<8x8x128xf32>
    tpu.vector_store %arg17[%c1_46, %c1_47, %c0_48], %89 {strides = array<i32>} : memref<10x10x128xf32, #tpu.memory_space<vmem>>, vector<8x8x128xf32>,
    %c0_49 = arith.constant 0 : index
    %c0_50 = arith.constant 0 : index
    %c0_51 = arith.constant 0 : index
    %93 = vector.load %arg17[%c0_49, %c0_50, %c0_51] : memref<10x10x128xf32, #tpu.memory_space<vmem>>, vector<10x10x128xf32>
    %94 = vector.extract_strided_slice %93 {offsets = [0, 0, 0], sizes = [8, 8, 128], strides = [1, 1, 1]} : vector<10x10x128xf32> to vector<8x8x128xf32>
    %95 = vector.shape_cast %94 : vector<8x8x128xf32> to vector<64x128xf32>
    %96 = vector.extract_strided_slice %93 {offsets = [0, 1, 0], sizes = [8, 8, 128], strides = [1, 1, 1]} : vector<10x10x128xf32> to vector<8x8x128xf32>
    %97 = vector.shape_cast %96 : vector<8x8x128xf32> to vector<64x128xf32>
    %98 = vector.extract_strided_slice %93 {offsets = [0, 2, 0], sizes = [8, 8, 128], strides = [1, 1, 1]} : vector<10x10x128xf32> to vector<8x8x128xf32>
    %99 = vector.shape_cast %98 : vector<8x8x128xf32> to vector<64x128xf32>
    %100 = vector.extract_strided_slice %93 {offsets = [1, 0, 0], sizes = [8, 8, 128], strides = [1, 1, 1]} : vector<10x10x128xf32> to vector<8x8x128xf32>
    %101 = vector.shape_cast %100 : vector<8x8x128xf32> to vector<64x128xf32>
    %102 = vector.extract_strided_slice %93 {offsets = [1, 1, 0], sizes = [8, 8, 128], strides = [1, 1, 1]} : vector<10x10x128xf32> to vector<8x8x128xf32>
    %103 = vector.shape_cast %102 : vector<8x8x128xf32> to vector<64x128xf32>
    %104 = vector.extract_strided_slice %93 {offsets = [1, 2, 0], sizes = [8, 8, 128], strides = [1, 1, 1]} : vector<10x10x128xf32> to vector<8x8x128xf32>
    %105 = vector.shape_cast %104 : vector<8x8x128xf32> to vector<64x128xf32>
    %106 = vector.extract_strided_slice %93 {offsets = [2, 0, 0], sizes = [8, 8, 128], strides = [1, 1, 1]} : vector<10x10x128xf32> to vector<8x8x128xf32>
    %107 = vector.shape_cast %106 : vector<8x8x128xf32> to vector<64x128xf32>
    %108 = vector.extract_strided_slice %93 {offsets = [2, 1, 0], sizes = [8, 8, 128], strides = [1, 1, 1]} : vector<10x10x128xf32> to vector<8x8x128xf32>
    %109 = vector.shape_cast %108 : vector<8x8x128xf32> to vector<64x128xf32>
    %110 = vector.extract_strided_slice %93 {offsets = [2, 2, 0], sizes = [8, 8, 128], strides = [1, 1, 1]} : vector<10x10x128xf32> to vector<8x8x128xf32>
    %111 = vector.shape_cast %110 : vector<8x8x128xf32> to vector<64x128xf32>
    %c0_52 = arith.constant 0 : index
    %c0_53 = arith.constant 0 : index
    %112 = vector.load %arg6[%c0_52, %c0_53] : memref<1152x256xf32, #tpu.memory_space<vmem>>, vector<1152x256xf32>
    %113 = tpu.concatenate %95, %97, %99, %101, %103, %105, %107, %109, %111 in 1 : vector<64x128xf32>, vector<64x128xf32>, vector<64x128xf32>, vector<64x128xf32>, vector<64x128xf32>, vector<64x128xf32>, vector<64x128xf32>, vector<64x128xf32>, vector<64x128xf32> -> vector<64x1152xf32>
    %cst_54 = arith.constant dense<0.000000e+00> : vector<64x256xf32>
    %114 = tpu.matmul %113, %112, %cst_54 {dimension_numbers = #tpu.dot_dimension_numbers<[1], [0], [0], [1], [0, 0, 1, 1], [], []>} : vector<64x1152xf32>, vector<1152x256xf32>, vector<64x256xf32> -> vector<64x256xf32>
    %c0_55 = arith.constant 0 : index
    %c0_56 = arith.constant 0 : index
    %115 = vector.load %arg7[%c0_55, %c0_56] : memref<1x256xf32, #tpu.memory_space<vmem>>, vector<1x256xf32>
    %116 = vector.broadcast %115 : vector<1x256xf32> to vector<64x256xf32>
    %117 = arith.addf %114, %116 : vector<64x256xf32>
    %cst_57 = arith.constant 0.000000e+00 : f32
    %118 = vector.broadcast %cst_57 : f32 to vector<64x256xf32>
    %119 = arith.maximumf %117, %118 : vector<64x256xf32>
    %c0_58 = arith.constant 0 : index
    %c0_59 = arith.constant 0 : index
    %c0_60 = arith.constant 0 : index
    %120 = vector.load %arg8[%c0_58, %c0_59, %c0_60] : memref<4x256x64xf32, #tpu.memory_space<vmem>>, vector<1x256x64xf32>
    %121 = vector.shape_cast %120 : vector<1x256x64xf32> to vector<256x64xf32>
    %cst_61 = arith.constant dense<0.000000e+00> : vector<64x64xf32>
    %122 = tpu.matmul %119, %121, %cst_61 {dimension_numbers = #tpu.dot_dimension_numbers<[1], [0], [0], [1], [0, 0, 1, 1], [], []>} : vector<64x256xf32>, vector<256x64xf32>, vector<64x64xf32> -> vector<64x64xf32>
    %c0_62 = arith.constant 0 : index
    %c0_63 = arith.constant 0 : index
    %c0_64 = arith.constant 0 : index
    %123 = vector.load %arg10[%c0_62, %c0_63, %c0_64] : memref<4x1x64xf32, #tpu.memory_space<vmem>>, vector<1x1x64xf32>
    %124 = vector.shape_cast %123 : vector<1x1x64xf32> to vector<1x64xf32>
    %125 = vector.broadcast %124 : vector<1x64xf32> to vector<64x64xf32>
    %126 = arith.addf %122, %125 : vector<64x64xf32>
    %c0_65 = arith.constant 0 : index
    %c0_66 = arith.constant 0 : index
    %c0_67 = arith.constant 0 : index
    %127 = vector.load %arg18[%c0_65, %c0_66, %c0_67] : memref<64x4x64xf32, #tpu.memory_space<vmem>>, vector<64x1x64xf32>
    %128 = vector.shape_cast %127 : vector<64x1x64xf32> to vector<64x64xf32>
    %129 = vector.shape_cast %126 : vector<64x64xf32> to vector<64x1x64xf32>
    tpu.vector_store %arg18[%c0_65, %c0_66, %c0_67], %129 {strides = array<i32>} : memref<64x4x64xf32, #tpu.memory_space<vmem>>, vector<64x1x64xf32>,
    %c1_68 = arith.constant 1 : index
    %c0_69 = arith.constant 0 : index
    %c0_70 = arith.constant 0 : index
    %130 = vector.load %arg8[%c1_68, %c0_69, %c0_70] : memref<4x256x64xf32, #tpu.memory_space<vmem>>, vector<1x256x64xf32>
    %131 = vector.shape_cast %130 : vector<1x256x64xf32> to vector<256x64xf32>
    %cst_71 = arith.constant dense<0.000000e+00> : vector<64x64xf32>
    %132 = tpu.matmul %119, %131, %cst_71 {dimension_numbers = #tpu.dot_dimension_numbers<[1], [0], [0], [1], [0, 0, 1, 1], [], []>} : vector<64x256xf32>, vector<256x64xf32>, vector<64x64xf32> -> vector<64x64xf32>
    %c1_72 = arith.constant 1 : index
    %c0_73 = arith.constant 0 : index
    %c0_74 = arith.constant 0 : index
    %133 = vector.load %arg10[%c1_72, %c0_73, %c0_74] : memref<4x1x64xf32, #tpu.memory_space<vmem>>, vector<1x1x64xf32>
    %134 = vector.shape_cast %133 : vector<1x1x64xf32> to vector<1x64xf32>
    %135 = vector.broadcast %134 : vector<1x64xf32> to vector<64x64xf32>
    %136 = arith.addf %132, %135 : vector<64x64xf32>
    %c0_75 = arith.constant 0 : index
    %c1_76 = arith.constant 1 : index
    %c0_77 = arith.constant 0 : index
    %137 = vector.load %arg18[%c0_75, %c1_76, %c0_77] : memref<64x4x64xf32, #tpu.memory_space<vmem>>, vector<64x1x64xf32>
    %138 = vector.shape_cast %137 : vector<64x1x64xf32> to vector<64x64xf32>
    %139 = vector.shape_cast %136 : vector<64x64xf32> to vector<64x1x64xf32>
    tpu.vector_store %arg18[%c0_75, %c1_76, %c0_77], %139 {strides = array<i32>} : memref<64x4x64xf32, #tpu.memory_space<vmem>>, vector<64x1x64xf32>,
    %c2 = arith.constant 2 : index
    %c0_78 = arith.constant 0 : index
    %c0_79 = arith.constant 0 : index
    %140 = vector.load %arg8[%c2, %c0_78, %c0_79] : memref<4x256x64xf32, #tpu.memory_space<vmem>>, vector<1x256x64xf32>
    %141 = vector.shape_cast %140 : vector<1x256x64xf32> to vector<256x64xf32>
    %cst_80 = arith.constant dense<0.000000e+00> : vector<64x64xf32>
    %142 = tpu.matmul %119, %141, %cst_80 {dimension_numbers = #tpu.dot_dimension_numbers<[1], [0], [0], [1], [0, 0, 1, 1], [], []>} : vector<64x256xf32>, vector<256x64xf32>, vector<64x64xf32> -> vector<64x64xf32>
    %c2_81 = arith.constant 2 : index
    %c0_82 = arith.constant 0 : index
    %c0_83 = arith.constant 0 : index
    %143 = vector.load %arg10[%c2_81, %c0_82, %c0_83] : memref<4x1x64xf32, #tpu.memory_space<vmem>>, vector<1x1x64xf32>
    %144 = vector.shape_cast %143 : vector<1x1x64xf32> to vector<1x64xf32>
    %145 = vector.broadcast %144 : vector<1x64xf32> to vector<64x64xf32>
    %146 = arith.addf %142, %145 : vector<64x64xf32>
    %c0_84 = arith.constant 0 : index
    %c2_85 = arith.constant 2 : index
    %c0_86 = arith.constant 0 : index
    %147 = vector.load %arg18[%c0_84, %c2_85, %c0_86] : memref<64x4x64xf32, #tpu.memory_space<vmem>>, vector<64x1x64xf32>
    %148 = vector.shape_cast %147 : vector<64x1x64xf32> to vector<64x64xf32>
    %149 = vector.shape_cast %146 : vector<64x64xf32> to vector<64x1x64xf32>
    tpu.vector_store %arg18[%c0_84, %c2_85, %c0_86], %149 {strides = array<i32>} : memref<64x4x64xf32, #tpu.memory_space<vmem>>, vector<64x1x64xf32>,
    %c3 = arith.constant 3 : index
    %c0_87 = arith.constant 0 : index
    %c0_88 = arith.constant 0 : index
    %150 = vector.load %arg8[%c3, %c0_87, %c0_88] : memref<4x256x64xf32, #tpu.memory_space<vmem>>, vector<1x256x64xf32>
    %151 = vector.shape_cast %150 : vector<1x256x64xf32> to vector<256x64xf32>
    %cst_89 = arith.constant dense<0.000000e+00> : vector<64x64xf32>
    %152 = tpu.matmul %119, %151, %cst_89 {dimension_numbers = #tpu.dot_dimension_numbers<[1], [0], [0], [1], [0, 0, 1, 1], [], []>} : vector<64x256xf32>, vector<256x64xf32>, vector<64x64xf32> -> vector<64x64xf32>
    %c3_90 = arith.constant 3 : index
    %c0_91 = arith.constant 0 : index
    %c0_92 = arith.constant 0 : index
    %153 = vector.load %arg10[%c3_90, %c0_91, %c0_92] : memref<4x1x64xf32, #tpu.memory_space<vmem>>, vector<1x1x64xf32>
    %154 = vector.shape_cast %153 : vector<1x1x64xf32> to vector<1x64xf32>
    %155 = vector.broadcast %154 : vector<1x64xf32> to vector<64x64xf32>
    %156 = arith.addf %152, %155 : vector<64x64xf32>
    %c0_93 = arith.constant 0 : index
    %c3_94 = arith.constant 3 : index
    %c0_95 = arith.constant 0 : index
    %157 = vector.load %arg18[%c0_93, %c3_94, %c0_95] : memref<64x4x64xf32, #tpu.memory_space<vmem>>, vector<64x1x64xf32>
    %158 = vector.shape_cast %157 : vector<64x1x64xf32> to vector<64x64xf32>
    %159 = vector.shape_cast %156 : vector<64x64xf32> to vector<64x1x64xf32>
    tpu.vector_store %arg18[%c0_93, %c3_94, %c0_95], %159 {strides = array<i32>} : memref<64x4x64xf32, #tpu.memory_space<vmem>>, vector<64x1x64xf32>,
    %cst_96 = arith.constant 0.000000e+00 : f32
    %160 = vector.broadcast %cst_96 : f32 to vector<1x64xf32>
    %c0_i32 = arith.constant 0 : i32
    %c64_i32 = arith.constant 64 : i32
    %161 = arith.addi %c0_i32, %c64_i32 : i32
    %c1_i32 = arith.constant 1 : i32
    %162:2 = scf.for %arg21 = %c0_i32 to %161 step %c1_i32 iter_args(%arg22 = %160, %arg23 = %160) -> (vector<1x64xf32>, vector<1x64xf32>)  : i32 {
      %207 = arith.index_cast %arg21 : i32 to index
      %c0_145 = arith.constant 0 : index
      %c0_146 = arith.constant 0 : index
      %208 = vector.load %arg18[%207, %c0_145, %c0_146] : memref<64x4x64xf32, #tpu.memory_space<vmem>>, vector<1x4x64xf32>
      %209 = vector.shape_cast %208 : vector<1x4x64xf32> to vector<4x64xf32>
      %210 = vector.extract_strided_slice %209 {offsets = [0, 0], sizes = [1, 64], strides = [1, 1]} : vector<4x64xf32> to vector<1x64xf32>
      %c0_147 = arith.constant 0 : index
      %c0_148 = arith.constant 0 : index
      %c0_149 = arith.constant 0 : index
      %211 = vector.load %arg9[%c0_147, %c0_148, %c0_149] : memref<4x64x64xf32, #tpu.memory_space<vmem>>, vector<1x64x64xf32>
      %212 = vector.shape_cast %211 : vector<1x64x64xf32> to vector<64x64xf32>
      %cst_150 = arith.constant dense<0.000000e+00> : vector<1x64xf32>
      %213 = tpu.matmul %arg22, %212, %cst_150 {dimension_numbers = #tpu.dot_dimension_numbers<[1], [0], [0], [1], [0, 0, 1, 1], [], []>} : vector<1x64xf32>, vector<64x64xf32>, vector<1x64xf32> -> vector<1x64xf32>
      %214 = arith.addf %210, %213 : vector<1x64xf32>
      %215 = vector.extract_strided_slice %209 {offsets = [1, 0], sizes = [1, 64], strides = [1, 1]} : vector<4x64xf32> to vector<1x64xf32>
      %c1_151 = arith.constant 1 : index
      %c0_152 = arith.constant 0 : index
      %c0_153 = arith.constant 0 : index
      %216 = vector.load %arg9[%c1_151, %c0_152, %c0_153] : memref<4x64x64xf32, #tpu.memory_space<vmem>>, vector<1x64x64xf32>
      %217 = vector.shape_cast %216 : vector<1x64x64xf32> to vector<64x64xf32>
      %cst_154 = arith.constant dense<0.000000e+00> : vector<1x64xf32>
      %218 = tpu.matmul %arg22, %217, %cst_154 {dimension_numbers = #tpu.dot_dimension_numbers<[1], [0], [0], [1], [0, 0, 1, 1], [], []>} : vector<1x64xf32>, vector<64x64xf32>, vector<1x64xf32> -> vector<1x64xf32>
      %219 = arith.addf %215, %218 : vector<1x64xf32>
      %220 = vector.extract_strided_slice %209 {offsets = [2, 0], sizes = [1, 64], strides = [1, 1]} : vector<4x64xf32> to vector<1x64xf32>
      %c2_155 = arith.constant 2 : index
      %c0_156 = arith.constant 0 : index
      %c0_157 = arith.constant 0 : index
      %221 = vector.load %arg9[%c2_155, %c0_156, %c0_157] : memref<4x64x64xf32, #tpu.memory_space<vmem>>, vector<1x64x64xf32>
      %222 = vector.shape_cast %221 : vector<1x64x64xf32> to vector<64x64xf32>
      %cst_158 = arith.constant dense<0.000000e+00> : vector<1x64xf32>
      %223 = tpu.matmul %arg22, %222, %cst_158 {dimension_numbers = #tpu.dot_dimension_numbers<[1], [0], [0], [1], [0, 0, 1, 1], [], []>} : vector<1x64xf32>, vector<64x64xf32>, vector<1x64xf32> -> vector<1x64xf32>
      %224 = arith.addf %220, %223 : vector<1x64xf32>
      %225 = vector.extract_strided_slice %209 {offsets = [3, 0], sizes = [1, 64], strides = [1, 1]} : vector<4x64xf32> to vector<1x64xf32>
      %c3_159 = arith.constant 3 : index
      %c0_160 = arith.constant 0 : index
      %c0_161 = arith.constant 0 : index
      %226 = vector.load %arg9[%c3_159, %c0_160, %c0_161] : memref<4x64x64xf32, #tpu.memory_space<vmem>>, vector<1x64x64xf32>
      %227 = vector.shape_cast %226 : vector<1x64x64xf32> to vector<64x64xf32>
      %cst_162 = arith.constant dense<0.000000e+00> : vector<1x64xf32>
      %228 = tpu.matmul %arg22, %227, %cst_162 {dimension_numbers = #tpu.dot_dimension_numbers<[1], [0], [0], [1], [0, 0, 1, 1], [], []>} : vector<1x64xf32>, vector<64x64xf32>, vector<1x64xf32> -> vector<1x64xf32>
      %229 = arith.addf %225, %228 : vector<1x64xf32>
      %230 = arith.negf %219 : vector<1x64xf32>
      %231 = math.exp %230 : vector<1x64xf32>
      %cst_163 = arith.constant 1.000000e+00 : f32
      %232 = vector.broadcast %cst_163 : f32 to vector<1x64xf32>
      %233 = arith.addf %232, %231 : vector<1x64xf32>
      %234 = arith.divf %232, %233 : vector<1x64xf32>
      %235 = arith.mulf %234, %arg23 : vector<1x64xf32>
      %236 = arith.negf %214 : vector<1x64xf32>
      %237 = math.exp %236 : vector<1x64xf32>
      %cst_164 = arith.constant 1.000000e+00 : f32
      %238 = vector.broadcast %cst_164 : f32 to vector<1x64xf32>
      %239 = arith.addf %238, %237 : vector<1x64xf32>
      %240 = arith.divf %238, %239 : vector<1x64xf32>
      %241 = math.tanh %224 : vector<1x64xf32>
      %242 = arith.mulf %240, %241 : vector<1x64xf32>
      %243 = arith.addf %235, %242 : vector<1x64xf32>
      %244 = arith.negf %229 : vector<1x64xf32>
      %245 = math.exp %244 : vector<1x64xf32>
      %cst_165 = arith.constant 1.000000e+00 : f32
      %246 = vector.broadcast %cst_165 : f32 to vector<1x64xf32>
      %247 = arith.addf %246, %245 : vector<1x64xf32>
      %248 = arith.divf %246, %247 : vector<1x64xf32>
      %249 = math.tanh %243 : vector<1x64xf32>
      %250 = arith.mulf %248, %249 : vector<1x64xf32>
      %cst_166 = arith.constant 0.000000e+00 : f32
      %251 = vector.broadcast %cst_166 : f32 to vector<1x64xf32>
      %252 = arith.maximumf %250, %251 : vector<1x64xf32>
      %253 = arith.index_cast %arg21 : i32 to index
      %c0_167 = arith.constant 0 : index
      %254 = vector.load %arg19[%253, %c0_167] : memref<64x64xf32, #tpu.memory_space<vmem>>, vector<1x64xf32>
      tpu.vector_store %arg19[%253, %c0_167], %252 {strides = array<i32>} : memref<64x64xf32, #tpu.memory_space<vmem>>, vector<1x64xf32>,
      scf.yield %250, %243 : vector<1x64xf32>, vector<1x64xf32>
    }
    %c64_i32_97 = arith.constant 64 : i32
    %c0_98 = arith.constant 0 : index
    %c0_99 = arith.constant 0 : index
    %163 = vector.load %arg19[%c0_98, %c0_99] : memref<64x64xf32, #tpu.memory_space<vmem>>, vector<64x64xf32>
    %c0_100 = arith.constant 0 : index
    %c0_101 = arith.constant 0 : index
    %c0_102 = arith.constant 0 : index
    %164 = vector.load %arg11[%c0_100, %c0_101, %c0_102] : memref<4x64x256xf32, #tpu.memory_space<vmem>>, vector<1x64x256xf32>
    %165 = vector.shape_cast %164 : vector<1x64x256xf32> to vector<64x256xf32>
    %cst_103 = arith.constant dense<0.000000e+00> : vector<64x256xf32>
    %166 = tpu.matmul %163, %165, %cst_103 {dimension_numbers = #tpu.dot_dimension_numbers<[1], [0], [0], [1], [0, 0, 1, 1], [], []>} : vector<64x64xf32>, vector<64x256xf32>, vector<64x256xf32> -> vector<64x256xf32>
    %c0_104 = arith.constant 0 : index
    %c0_105 = arith.constant 0 : index
    %c0_106 = arith.constant 0 : index
    %167 = vector.load %arg13[%c0_104, %c0_105, %c0_106] : memref<4x1x256xf32, #tpu.memory_space<vmem>>, vector<1x1x256xf32>
    %168 = vector.shape_cast %167 : vector<1x1x256xf32> to vector<1x256xf32>
    %169 = vector.broadcast %168 : vector<1x256xf32> to vector<64x256xf32>
    %170 = arith.addf %166, %169 : vector<64x256xf32>
    %c0_107 = arith.constant 0 : index
    %c0_108 = arith.constant 0 : index
    %c0_109 = arith.constant 0 : index
    %171 = vector.load %arg20[%c0_107, %c0_108, %c0_109] : memref<64x4x256xf32, #tpu.memory_space<vmem>>, vector<64x1x256xf32>
    %172 = vector.shape_cast %171 : vector<64x1x256xf32> to vector<64x256xf32>
    %173 = vector.shape_cast %170 : vector<64x256xf32> to vector<64x1x256xf32>
    tpu.vector_store %arg20[%c0_107, %c0_108, %c0_109], %173 {strides = array<i32>} : memref<64x4x256xf32, #tpu.memory_space<vmem>>, vector<64x1x256xf32>,
    %c1_110 = arith.constant 1 : index
    %c0_111 = arith.constant 0 : index
    %c0_112 = arith.constant 0 : index
    %174 = vector.load %arg11[%c1_110, %c0_111, %c0_112] : memref<4x64x256xf32, #tpu.memory_space<vmem>>, vector<1x64x256xf32>
    %175 = vector.shape_cast %174 : vector<1x64x256xf32> to vector<64x256xf32>
    %cst_113 = arith.constant dense<0.000000e+00> : vector<64x256xf32>
    %176 = tpu.matmul %163, %175, %cst_113 {dimension_numbers = #tpu.dot_dimension_numbers<[1], [0], [0], [1], [0, 0, 1, 1], [], []>} : vector<64x64xf32>, vector<64x256xf32>, vector<64x256xf32> -> vector<64x256xf32>
    %c1_114 = arith.constant 1 : index
    %c0_115 = arith.constant 0 : index
    %c0_116 = arith.constant 0 : index
    %177 = vector.load %arg13[%c1_114, %c0_115, %c0_116] : memref<4x1x256xf32, #tpu.memory_space<vmem>>, vector<1x1x256xf32>
    %178 = vector.shape_cast %177 : vector<1x1x256xf32> to vector<1x256xf32>
    %179 = vector.broadcast %178 : vector<1x256xf32> to vector<64x256xf32>
    %180 = arith.addf %176, %179 : vector<64x256xf32>
    %c0_117 = arith.constant 0 : index
    %c1_118 = arith.constant 1 : index
    %c0_119 = arith.constant 0 : index
    %181 = vector.load %arg20[%c0_117, %c1_118, %c0_119] : memref<64x4x256xf32, #tpu.memory_space<vmem>>, vector<64x1x256xf32>
    %182 = vector.shape_cast %181 : vector<64x1x256xf32> to vector<64x256xf32>
    %183 = vector.shape_cast %180 : vector<64x256xf32> to vector<64x1x256xf32>
    tpu.vector_store %arg20[%c0_117, %c1_118, %c0_119], %183 {strides = array<i32>} : memref<64x4x256xf32, #tpu.memory_space<vmem>>, vector<64x1x256xf32>,
    %c2_120 = arith.constant 2 : index
    %c0_121 = arith.constant 0 : index
    %c0_122 = arith.constant 0 : index
    %184 = vector.load %arg11[%c2_120, %c0_121, %c0_122] : memref<4x64x256xf32, #tpu.memory_space<vmem>>, vector<1x64x256xf32>
    %185 = vector.shape_cast %184 : vector<1x64x256xf32> to vector<64x256xf32>
    %cst_123 = arith.constant dense<0.000000e+00> : vector<64x256xf32>
    %186 = tpu.matmul %163, %185, %cst_123 {dimension_numbers = #tpu.dot_dimension_numbers<[1], [0], [0], [1], [0, 0, 1, 1], [], []>} : vector<64x64xf32>, vector<64x256xf32>, vector<64x256xf32> -> vector<64x256xf32>
    %c2_124 = arith.constant 2 : index
    %c0_125 = arith.constant 0 : index
    %c0_126 = arith.constant 0 : index
    %187 = vector.load %arg13[%c2_124, %c0_125, %c0_126] : memref<4x1x256xf32, #tpu.memory_space<vmem>>, vector<1x1x256xf32>
    %188 = vector.shape_cast %187 : vector<1x1x256xf32> to vector<1x256xf32>
    %189 = vector.broadcast %188 : vector<1x256xf32> to vector<64x256xf32>
    %190 = arith.addf %186, %189 : vector<64x256xf32>
    %c0_127 = arith.constant 0 : index
    %c2_128 = arith.constant 2 : index
    %c0_129 = arith.constant 0 : index
    %191 = vector.load %arg20[%c0_127, %c2_128, %c0_129] : memref<64x4x256xf32, #tpu.memory_space<vmem>>, vector<64x1x256xf32>
    %192 = vector.shape_cast %191 : vector<64x1x256xf32> to vector<64x256xf32>
    %193 = vector.shape_cast %190 : vector<64x256xf32> to vector<64x1x256xf32>
    tpu.vector_store %arg20[%c0_127, %c2_128, %c0_129], %193 {strides = array<i32>} : memref<64x4x256xf32, #tpu.memory_space<vmem>>, vector<64x1x256xf32>,
    %c3_130 = arith.constant 3 : index
    %c0_131 = arith.constant 0 : index
    %c0_132 = arith.constant 0 : index
    %194 = vector.load %arg11[%c3_130, %c0_131, %c0_132] : memref<4x64x256xf32, #tpu.memory_space<vmem>>, vector<1x64x256xf32>
    %195 = vector.shape_cast %194 : vector<1x64x256xf32> to vector<64x256xf32>
    %cst_133 = arith.constant dense<0.000000e+00> : vector<64x256xf32>
    %196 = tpu.matmul %163, %195, %cst_133 {dimension_numbers = #tpu.dot_dimension_numbers<[1], [0], [0], [1], [0, 0, 1, 1], [], []>} : vector<64x64xf32>, vector<64x256xf32>, vector<64x256xf32> -> vector<64x256xf32>
    %c3_134 = arith.constant 3 : index
    %c0_135 = arith.constant 0 : index
    %c0_136 = arith.constant 0 : index
    %197 = vector.load %arg13[%c3_134, %c0_135, %c0_136] : memref<4x1x256xf32, #tpu.memory_space<vmem>>, vector<1x1x256xf32>
    %198 = vector.shape_cast %197 : vector<1x1x256xf32> to vector<1x256xf32>
    %199 = vector.broadcast %198 : vector<1x256xf32> to vector<64x256xf32>
    %200 = arith.addf %196, %199 : vector<64x256xf32>
    %c0_137 = arith.constant 0 : index
    %c3_138 = arith.constant 3 : index
    %c0_139 = arith.constant 0 : index
    %201 = vector.load %arg20[%c0_137, %c3_138, %c0_139] : memref<64x4x256xf32, #tpu.memory_space<vmem>>, vector<64x1x256xf32>
    %202 = vector.shape_cast %201 : vector<64x1x256xf32> to vector<64x256xf32>
    %203 = vector.shape_cast %200 : vector<64x256xf32> to vector<64x1x256xf32>
    tpu.vector_store %arg20[%c0_137, %c3_138, %c0_139], %203 {strides = array<i32>} : memref<64x4x256xf32, #tpu.memory_space<vmem>>, vector<64x1x256xf32>,
    %cst_140 = arith.constant 0.000000e+00 : f32
    %204 = vector.broadcast %cst_140 : f32 to vector<1x256xf32>
    %c0_i32_141 = arith.constant 0 : i32
    %c64_i32_142 = arith.constant 64 : i32
    %205 = arith.addi %c0_i32_141, %c64_i32_142 : i32
    %c1_i32_143 = arith.constant 1 : i32
    %206:2 = scf.for %arg21 = %c0_i32_141 to %205 step %c1_i32_143 iter_args(%arg22 = %204, %arg23 = %204) -> (vector<1x256xf32>, vector<1x256xf32>)  : i32 {
      %207 = arith.index_cast %arg21 : i32 to index
      %c0_145 = arith.constant 0 : index
      %c0_146 = arith.constant 0 : index
      %208 = vector.load %arg20[%207, %c0_145, %c0_146] : memref<64x4x256xf32, #tpu.memory_space<vmem>>, vector<1x4x256xf32>
      %209 = vector.shape_cast %208 : vector<1x4x256xf32> to vector<4x256xf32>
      %210 = vector.extract_strided_slice %209 {offsets = [0, 0], sizes = [1, 256], strides = [1, 1]} : vector<4x256xf32> to vector<1x256xf32>
      %c0_147 = arith.constant 0 : index
      %c0_148 = arith.constant 0 : index
      %c0_149 = arith.constant 0 : index
      %211 = vector.load %arg12[%c0_147, %c0_148, %c0_149] : memref<4x256x256xf32, #tpu.memory_space<vmem>>, vector<1x256x256xf32>
      %212 = vector.shape_cast %211 : vector<1x256x256xf32> to vector<256x256xf32>
      %cst_150 = arith.constant dense<0.000000e+00> : vector<1x256xf32>
      %213 = tpu.matmul %arg22, %212, %cst_150 {dimension_numbers = #tpu.dot_dimension_numbers<[1], [0], [0], [1], [0, 0, 1, 1], [], []>} : vector<1x256xf32>, vector<256x256xf32>, vector<1x256xf32> -> vector<1x256xf32>
      %214 = arith.addf %210, %213 : vector<1x256xf32>
      %215 = vector.extract_strided_slice %209 {offsets = [1, 0], sizes = [1, 256], strides = [1, 1]} : vector<4x256xf32> to vector<1x256xf32>
      %c1_151 = arith.constant 1 : index
      %c0_152 = arith.constant 0 : index
      %c0_153 = arith.constant 0 : index
      %216 = vector.load %arg12[%c1_151, %c0_152, %c0_153] : memref<4x256x256xf32, #tpu.memory_space<vmem>>, vector<1x256x256xf32>
      %217 = vector.shape_cast %216 : vector<1x256x256xf32> to vector<256x256xf32>
      %cst_154 = arith.constant dense<0.000000e+00> : vector<1x256xf32>
      %218 = tpu.matmul %arg22, %217, %cst_154 {dimension_numbers = #tpu.dot_dimension_numbers<[1], [0], [0], [1], [0, 0, 1, 1], [], []>} : vector<1x256xf32>, vector<256x256xf32>, vector<1x256xf32> -> vector<1x256xf32>
      %219 = arith.addf %215, %218 : vector<1x256xf32>
      %220 = vector.extract_strided_slice %209 {offsets = [2, 0], sizes = [1, 256], strides = [1, 1]} : vector<4x256xf32> to vector<1x256xf32>
      %c2_155 = arith.constant 2 : index
      %c0_156 = arith.constant 0 : index
      %c0_157 = arith.constant 0 : index
      %221 = vector.load %arg12[%c2_155, %c0_156, %c0_157] : memref<4x256x256xf32, #tpu.memory_space<vmem>>, vector<1x256x256xf32>
      %222 = vector.shape_cast %221 : vector<1x256x256xf32> to vector<256x256xf32>
      %cst_158 = arith.constant dense<0.000000e+00> : vector<1x256xf32>
      %223 = tpu.matmul %arg22, %222, %cst_158 {dimension_numbers = #tpu.dot_dimension_numbers<[1], [0], [0], [1], [0, 0, 1, 1], [], []>} : vector<1x256xf32>, vector<256x256xf32>, vector<1x256xf32> -> vector<1x256xf32>
      %224 = arith.addf %220, %223 : vector<1x256xf32>
      %225 = vector.extract_strided_slice %209 {offsets = [3, 0], sizes = [1, 256], strides = [1, 1]} : vector<4x256xf32> to vector<1x256xf32>
      %c3_159 = arith.constant 3 : index
      %c0_160 = arith.constant 0 : index
      %c0_161 = arith.constant 0 : index
      %226 = vector.load %arg12[%c3_159, %c0_160, %c0_161] : memref<4x256x256xf32, #tpu.memory_space<vmem>>, vector<1x256x256xf32>
      %227 = vector.shape_cast %226 : vector<1x256x256xf32> to vector<256x256xf32>
      %cst_162 = arith.constant dense<0.000000e+00> : vector<1x256xf32>
      %228 = tpu.matmul %arg22, %227, %cst_162 {dimension_numbers = #tpu.dot_dimension_numbers<[1], [0], [0], [1], [0, 0, 1, 1], [], []>} : vector<1x256xf32>, vector<256x256xf32>, vector<1x256xf32> -> vector<1x256xf32>
      %229 = arith.addf %225, %228 : vector<1x256xf32>
      %230 = arith.negf %219 : vector<1x256xf32>
      %231 = math.exp %230 : vector<1x256xf32>
      %cst_163 = arith.constant 1.000000e+00 : f32
      %232 = vector.broadcast %cst_163 : f32 to vector<1x256xf32>
      %233 = arith.addf %232, %231 : vector<1x256xf32>
      %234 = arith.divf %232, %233 : vector<1x256xf32>
      %235 = arith.mulf %234, %arg23 : vector<1x256xf32>
      %236 = arith.negf %214 : vector<1x256xf32>
      %237 = math.exp %236 : vector<1x256xf32>
      %cst_164 = arith.constant 1.000000e+00 : f32
      %238 = vector.broadcast %cst_164 : f32 to vector<1x256xf32>
      %239 = arith.addf %238, %237 : vector<1x256xf32>
      %240 = arith.divf %238, %239 : vector<1x256xf32>
      %241 = math.tanh %224 : vector<1x256xf32>
      %242 = arith.mulf %240, %241 : vector<1x256xf32>
      %243 = arith.addf %235, %242 : vector<1x256xf32>
      %244 = arith.negf %229 : vector<1x256xf32>
      %245 = math.exp %244 : vector<1x256xf32>
      %cst_165 = arith.constant 1.000000e+00 : f32
      %246 = vector.broadcast %cst_165 : f32 to vector<1x256xf32>
      %247 = arith.addf %246, %245 : vector<1x256xf32>
      %248 = arith.divf %246, %247 : vector<1x256xf32>
      %249 = math.tanh %243 : vector<1x256xf32>
      %250 = arith.mulf %248, %249 : vector<1x256xf32>
      %c0_166 = arith.constant 0 : index
      %251 = arith.index_cast %arg21 : i32 to index
      %c0_167 = arith.constant 0 : index
      %252 = vector.load %arg14[%c0_166, %251, %c0_167] : memref<1x64x256xf32, #tpu.memory_space<vmem>>, vector<1x1x256xf32>
      %253 = vector.shape_cast %252 : vector<1x1x256xf32> to vector<1x256xf32>
      %254 = vector.shape_cast %250 : vector<1x256xf32> to vector<1x1x256xf32>
      tpu.vector_store %arg14[%c0_166, %251, %c0_167], %254 {strides = array<i32>} : memref<1x64x256xf32, #tpu.memory_space<vmem>>, vector<1x1x256xf32>,
      scf.yield %250, %243 : vector<1x256xf32>, vector<1x256xf32>
    }
    %c64_i32_144 = arith.constant 64 : i32
    return
  }
  func.func @transform_0(%arg0: i32) -> (i32, i32, i32, i32) {
    %c0_i32 = arith.constant 0 : i32
    %c0_i32_0 = arith.constant 0 : i32
    %c0_i32_1 = arith.constant 0 : i32
    %c0_i32_2 = arith.constant 0 : i32
    return %arg0, %c0_i32, %c0_i32_0, %c0_i32_1 : i32, i32, i32, i32
  }
  func.func @transform_1(%arg0: i32) -> (i32, i32) {
    %c0_i32 = arith.constant 0 : i32
    %c0_i32_0 = arith.constant 0 : i32
    %c0_i32_1 = arith.constant 0 : i32
    return %c0_i32, %c0_i32_0 : i32, i32
  }
  func.func @transform_2(%arg0: i32) -> (i32, i32) {
    %c0_i32 = arith.constant 0 : i32
    %c0_i32_0 = arith.constant 0 : i32
    %c0_i32_1 = arith.constant 0 : i32
    return %c0_i32, %c0_i32_0 : i32, i32
  }
  func.func @transform_3(%arg0: i32) -> (i32, i32) {
    %c0_i32 = arith.constant 0 : i32
    %c0_i32_0 = arith.constant 0 : i32
    %c0_i32_1 = arith.constant 0 : i32
    return %c0_i32, %c0_i32_0 : i32, i32
  }
  func.func @transform_4(%arg0: i32) -> (i32, i32) {
    %c0_i32 = arith.constant 0 : i32
    %c0_i32_0 = arith.constant 0 : i32
    %c0_i32_1 = arith.constant 0 : i32
    return %c0_i32, %c0_i32_0 : i32, i32
  }
  func.func @transform_5(%arg0: i32) -> (i32, i32) {
    %c0_i32 = arith.constant 0 : i32
    %c0_i32_0 = arith.constant 0 : i32
    %c0_i32_1 = arith.constant 0 : i32
    return %c0_i32, %c0_i32_0 : i32, i32
  }
  func.func @transform_6(%arg0: i32) -> (i32, i32) {
    %c0_i32 = arith.constant 0 : i32
    %c0_i32_0 = arith.constant 0 : i32
    %c0_i32_1 = arith.constant 0 : i32
    return %c0_i32, %c0_i32_0 : i32, i32
  }
  func.func @transform_7(%arg0: i32) -> (i32, i32, i32) {
    %c0_i32 = arith.constant 0 : i32
    %c0_i32_0 = arith.constant 0 : i32
    %c0_i32_1 = arith.constant 0 : i32
    %c0_i32_2 = arith.constant 0 : i32
    return %c0_i32, %c0_i32_0, %c0_i32_1 : i32, i32, i32
  }
  func.func @transform_8(%arg0: i32) -> (i32, i32, i32) {
    %c0_i32 = arith.constant 0 : i32
    %c0_i32_0 = arith.constant 0 : i32
    %c0_i32_1 = arith.constant 0 : i32
    %c0_i32_2 = arith.constant 0 : i32
    return %c0_i32, %c0_i32_0, %c0_i32_1 : i32, i32, i32
  }
  func.func @transform_9(%arg0: i32) -> (i32, i32, i32) {
    %c0_i32 = arith.constant 0 : i32
    %c0_i32_0 = arith.constant 0 : i32
    %c0_i32_1 = arith.constant 0 : i32
    %c0_i32_2 = arith.constant 0 : i32
    return %c0_i32, %c0_i32_0, %c0_i32_1 : i32, i32, i32
  }
  func.func @transform_10(%arg0: i32) -> (i32, i32, i32) {
    %c0_i32 = arith.constant 0 : i32
    %c0_i32_0 = arith.constant 0 : i32
    %c0_i32_1 = arith.constant 0 : i32
    %c0_i32_2 = arith.constant 0 : i32
    return %c0_i32, %c0_i32_0, %c0_i32_1 : i32, i32, i32
  }
  func.func @transform_11(%arg0: i32) -> (i32, i32, i32) {
    %c0_i32 = arith.constant 0 : i32
    %c0_i32_0 = arith.constant 0 : i32
    %c0_i32_1 = arith.constant 0 : i32
    %c0_i32_2 = arith.constant 0 : i32
    return %c0_i32, %c0_i32_0, %c0_i32_1 : i32, i32, i32
  }
  func.func @transform_12(%arg0: i32) -> (i32, i32, i32) {
    %c0_i32 = arith.constant 0 : i32
    %c0_i32_0 = arith.constant 0 : i32
    %c0_i32_1 = arith.constant 0 : i32
    %c0_i32_2 = arith.constant 0 : i32
    return %c0_i32, %c0_i32_0, %c0_i32_1 : i32, i32, i32
  }
  func.func @transform_13(%arg0: i32) -> (i32, i32, i32) {
    %c0_i32 = arith.constant 0 : i32
    %c0_i32_0 = arith.constant 0 : i32
    %c0_i32_1 = arith.constant 0 : i32
    return %arg0, %c0_i32, %c0_i32_0 : i32, i32, i32
  }
}

</mosaic_0001>

<bundles_post_ra>
// kernel: tpu_custom_call.1
= control target key start
LH: loop header
LB: loop body
LE: loop exit
PB: predicated region body
PF: predicated region fallthrough
CT: control target
= control target key end

     0   :  { %s11595_s0 = inlined_call_operand.vmem [shape: f32[2,8,8,4], index: 0, kind: input, shape index: {}]   ;;  %s11596_s1 = inlined_call_operand.hbm [shape: f32[36,64], index: 1, kind: input, shape index: {}]   ;;  %s11597_s2 = inlined_call_operand.hbm [shape: f32[1,64], index: 2, kind: input, shape index: {}]   ;;  %s11598_s3 = inlined_call_operand.hbm [shape: f32[576,128], index: 3, kind: input, shape index: {}]   ;;  %s11599_s4 = inlined_call_operand.hbm [shape: f32[1,128], index: 4, kind: input, shape index: {}]   ;;  %s11600_s5 = inlined_call_operand.hbm [shape: f32[1152,256], index: 5, kind: input, shape index: {}]   ;;  %s11601_s6 = inlined_call_operand.hbm [shape: f32[1,256], index: 6, kind: input, shape index: {}]   ;;  %s11602_s7 = inlined_call_operand.vmem [shape: f32[4,256,64], index: 7, kind: input, shape index: {}]   ;;  %s11603_s8 = inlined_call_operand.hbm [shape: f32[4,64,64], index: 8, kind: input, shape index: {}]   ;;  %s11604_s9 = inlined_call_operand.hbm [shape: f32[4,1,64], index: 9, kind: input, shape index: {}]   ;;  %s11605_s10 = inlined_call_operand.hbm [shape: f32[4,64,256], index: 10, kind: input, shape index: {}]   ;;  %s11606_s11 = inlined_call_operand.hbm [shape: f32[4,256,256], index: 11, kind: input, shape index: {}]   ;;  %s11607_s12 = inlined_call_operand.hbm [shape: f32[4,1,256], index: 12, kind: input, shape index: {}]   ;;  %s11608_s13 = inlined_call_operand.hbm [shape: f32[2,64,256], index: 13, kind: output, shape index: {}]  }
   0x1   :  { %11618 = sst [smem:[#allocation44_spill]] %s11596_s1 }
   0x2   :  { %11619 = sst [smem:[#allocation45_spill]] %s11597_s2 }
   0x3   :  { %11620 = sst [smem:[#allocation46_spill]] %s11598_s3 }
   0x4   :  { %11621 = sst [smem:[#allocation47_spill]] %s11599_s4 }
   0x5   :  { %11622 = sst [smem:[#allocation48_spill]] %s11601_s6 }
   0x6   :  { %11623 = sst [smem:[#allocation49_spill]] %s11604_s9 }
   0x7   :  { %18 = vsyncpa [#allocation9], 0 }
   0x8   :  { %19 = vsyncpa [#allocation12], 0 }
   0x9   :  { %20 = vsyncpa [#allocation15], 0 }
   0xa   :  { %21 = vsyncpa [#allocation18], 0 }
   0xb   :  { %22 = vsyncpa [#allocation21], 0 }
   0xc   :  { %23 = vsyncpa [#allocation24], 0 }
   0xd   :  { %24 = vsyncpa [#allocation10], 0 }
   0xe   :  { %26 = vsyncpa [#allocation10 + $0x1], 0  ;;  %s8378_s25 = smov 0   ;;  %s8380_s26 = smov 0  }
   0xf   :  { %s8382_s27 = smov 0   ;;  %s8384_s28 = smov 0  }
  0x10 LB: > { %11624 = sst [smem:[#allocation34_spill]] %s8248_s25  ;;  %s8399_s29 = sadd.s32 4294967295, %s8260_s28   ;;  %s8260_s28 = sphi %s8384_s28, %s11654_s28   ;;  %s8256_s27 = sphi %s8382_s27, %s11656_s27   ;;  %s8252_s26 = sphi %s8380_s26, %s11658_s26   ;;  %s8248_s25 = sphi %s8378_s25, %s11657_s25  }
  0x11   : > { %11625 = sst [smem:[#allocation35_spill]] %s8256_s27  ;;  %s7215_s30 = sadd.s32 4294967294, %s8260_s28  }
  0x12   : > { %s8403_s14 = sadd.s32 1, %s8260_s28   ;;  %s317_s15 = sadd.s32 1, %s8256_s27 }
  0x13   : > { %11626 = sst [smem:[#allocation36_spill]] %s8403_s14  ;;  %s314_s16 = ssub.s32 %s8260_s28, %s8403_s14 }
  0x14   : > { %p327_p0 = scmp.ne.s32.totalorder %s8256_s27, %s8252_s26  ;;  %p315_p1 = scmp.eq.s32.totalorder %s314_s16, 0 }
  0x15   : > { %p328_p2 = scmp.eq.s32.totalorder %s8399_s29, 1  ;;  %p333_p3 = scmp.ne.s32.totalorder %s8252_s26, %s8248_s25 }
  0x16   : > { %p334_p4 = scmp.eq.s32.totalorder %s7215_s30, 1  ;;  %p7216_p7 = scmp.ge.s32.totalorder %s8260_s28, 1 }
  0x17   : > { %s8414_s17 = scalar_select %p315_p1, %s8256_s27, %s317_s15  }
  0x18   : > { %p8416_p5 = por %p328_p2, %p327_p0  ;;  %p8420_p6 = por %p334_p4, %p333_p3 }
  0x19   : > { %11627 = sst [smem:[#allocation37_spill]] %s8414_s17  ;;  %p341_p8 = scmp.lt.s32.totalorder %s8260_s28, 3 }
  0x1a   : > { %s11629_s19 = scalar_select %p8420_p6, 1, 0 }
  0x1b   : > { %p7602_p9 = scmp.eq.s32.totalorder %s8399_s29, 0  ;;  %p8427_p10 = pnand %p7216_p7, %p341_p8 }
  0x1c   : > { %11630 = sst [smem:[#allocation38_spill]] %s11629_s19  ;;  %s8286_s24 = smov [#allocation11]  }
  0x1d   : > { %s11632_s2 = sld [smem:[#allocation45_spill]]  ;;  %p7564_p11 = pneg %p8427_p10 }
  0x1e   : > { %s369_s30 = sshll.u32 %s8286_s24, 4  ;;  %s11633_s4 = sld [smem:[#allocation47_spill]]  ;;  %s370_s30 = int_to_ptr.vmem [resolvable:$true] %s369_s30 }
  0x1f   : > { %p8441_p12 = pnand %p7602_p9, %p7564_p11  ;;  %s11635_s6 = sld [smem:[#allocation48_spill]] }
  0x20   : > { %s8287_s14 = smov [#allocation14]   ;;  %s8288_s15 = smov [#allocation17]  }
  0x21   : > { %s395_s24 = sshll.u32 %s8287_s14, 4  ;;  %s421_s16 = sshll.u32 %s8288_s15, 4  ;;  %s396_s24 = int_to_ptr.vmem [resolvable:$true] %s395_s24  ;;  %s422_s16 = int_to_ptr.vmem [resolvable:$true] %s421_s16 }
  0x22   : > { %s11636_s9 = sld [smem:[#allocation49_spill]]  ;;  %s8289_s21 = smov [#allocation20]  }
  0x23   : > { %s367_s23 = sshll.u32 %s11632_s2, 4  ;;  %s449_s14 = sshll.u32 %s8289_s21, 4  ;;  %s368_s23 = int_to_ptr.hbm [resolvable:$true] %s367_s23  ;;  %s450_s14 = int_to_ptr.vmem [resolvable:$true] %s449_s14 }
  0x24   : > { %s393_s17 = sshll.u32 %s11633_s4, 4  ;;  %s475_s22 = sshll.u32 %s11606_s11, 4  ;;  %s394_s17 = int_to_ptr.hbm [resolvable:$true] %s393_s17  ;;  %s476_s22 = int_to_ptr.hbm [resolvable:$true] %s475_s22 }
  0x25   : > { %s419_s2 = sshll.u32 %s11635_s6, 4  ;;  %s8290_s6 = smov 16   ;;  %s420_s2 = int_to_ptr.hbm [resolvable:$true] %s419_s2 }
  0x26   : > { %7570 = dma.hbm_to_vmem [thread:$0]  (!%p8441_p12), %s368_s23, 16, %s370_s30, [#allocation12]  }
  0x27   : > { %7576 = dma.hbm_to_vmem [thread:$0]  (!%p8441_p12), %s394_s17, 16, %s396_s24, [#allocation15]  }
  0x28   : > { %s447_s25 = sshll.u32 %s11636_s9, 4  ;;  %s8291_s17 = smov 1   ;;  %s448_s25 = int_to_ptr.hbm [resolvable:$true] %s447_s25 }
  0x29   : > { %7582 = dma.hbm_to_vmem [thread:$0]  (!%p8441_p12), %s420_s2, 32, %s422_s16, [#allocation18]  }
  0x2a   : > { %7588 = dma.hbm_to_vmem [thread:$0]  (!%p8441_p12), %s448_s25, 64, %s450_s14, [#allocation21], %s8290_s6, %s8290_s6, %s8291_s17  }
  0x2b   : > { %s8292_s4 = smov [#allocation23]   ;;  %s11637_s1 = sld [smem:[#allocation44_spill]] }
  0x2c   : > { %s477_s19 = sshll.u32 %s8292_s4, 4  ;;  %s11614_s16 = smov 256   ;;  %s478_s19 = int_to_ptr.vmem [resolvable:$true] %s477_s19 }
  0x2d   : > { %7594 = dma.hbm_to_vmem [thread:$0]  (!%p8441_p12), %s476_s22, 32768, %s478_s19, [#allocation24], %s11614_s16, %s11614_s16, %s8290_s6  }
  0x2e   : > { %s8294_s21 = smov [#allocation8]   ;;  %s11638_s3 = sld [smem:[#allocation46_spill]] }
  0x2f   : > { %s354_s23 = sshll.u32 %s8294_s21, 4  ;;  %s8295_s17 = smov 128   ;;  %s355_s23 = int_to_ptr.vmem [resolvable:$true] %s354_s23 }
  0x30   : > { %s8296_s4 = smov 8   ;;  %s8297_s24 = smov [#allocation13]  }
  0x31   : > { %s352_s2 = sshll.u32 %s11637_s1, 4  ;;  %s380_s15 = sshll.u32 %s8297_s24, 4  ;;  %s353_s2 = int_to_ptr.hbm [resolvable:$true] %s352_s2  ;;  %s381_s15 = int_to_ptr.vmem [resolvable:$true] %s380_s15 }
  0x32   : > { %7567 = dma.hbm_to_vmem [thread:$0]  (!%p8441_p12), %s353_s2, 640, %s355_s23, [#allocation9], %s8295_s17, %s8295_s17, %s8296_s4  }
  0x33   : > { %s404_s22 = sshll.u32 %s11600_s5, 4  ;;  %s433_s25 = sshll.u32 %s11603_s8, 4  ;;  %s405_s22 = int_to_ptr.hbm [resolvable:$true] %s404_s22  ;;  %s434_s25 = int_to_ptr.hbm [resolvable:$true] %s433_s25 }
  0x34   : > { %s378_s30 = sshll.u32 %s11638_s3, 4  ;;  %s8298_s14 = smov [#allocation16]   ;;  %s379_s30 = int_to_ptr.hbm [resolvable:$true] %s378_s30 }
  0x35   : > { %7573 = dma.hbm_to_vmem [thread:$0]  (!%p8441_p12), %s379_s30, 9216, %s381_s15, [#allocation12], %s8295_s17, %s8295_s17, %s8296_s4  }
  0x36   : > { %s406_s16 = sshll.u32 %s8298_s14, 4  ;;  %s11639_s2 = smov 256   ;;  %s407_s16 = int_to_ptr.vmem [resolvable:$true] %s406_s16 }
  0x37   : > { %7579 = dma.hbm_to_vmem [thread:$0]  (!%p8441_p12), %s405_s22, 36864, %s407_s16, [#allocation15], %s11639_s2, %s11639_s2, %s8290_s6  }
  0x38   : > { %s8299_s1 = smov [#allocation19]   ;;  %s461_s30 = sshll.u32 %s11605_s10, 4  ;;  %s462_s30 = int_to_ptr.hbm [resolvable:$true] %s461_s30 }
  0x39   : > { %s435_s9 = sshll.u32 %s8299_s1, 4  ;;  %s489_s21 = sshll.u32 %s11607_s12, 4  ;;  %s436_s9 = int_to_ptr.vmem [resolvable:$true] %s435_s9  ;;  %s490_s21 = int_to_ptr.hbm [resolvable:$true] %s489_s21 }
  0x3a   : > { %7585 = dma.hbm_to_vmem [thread:$0]  (!%p8441_p12), %s434_s25, 4096, %s436_s9, [#allocation18], %s8295_s17, %s8295_s17, %s8296_s4  }
  0x3b   : > { %s8300_s14 = smov [#allocation22]   ;;  %s8301_s16 = smov [#allocation25]  }
  0x3c   : > { %s463_s3 = sshll.u32 %s8300_s14, 4  ;;  %s491_s22 = sshll.u32 %s8301_s16, 4  ;;  %s464_s3 = int_to_ptr.vmem [resolvable:$true] %s463_s3  ;;  %s492_s22 = int_to_ptr.vmem [resolvable:$true] %s491_s22 }
  0x3d   : > { %7591 = dma.hbm_to_vmem [thread:$0]  (!%p8441_p12), %s462_s30, 8192, %s464_s3, [#allocation21], %s11639_s2, %s11639_s2, %s8290_s6  }
  0x3e   : > { %s8302_s1 = smov 32   ;;  %s8303_s23 = smov 2  }
  0x3f   : > { %7597 = dma.hbm_to_vmem [thread:$0]  (!%p8441_p12), %s490_s21, 128, %s492_s22, [#allocation24], %s8302_s1, %s8302_s1, %s8303_s23  }
  0x40   : > { %515 = sbr.rel (%p8427_p10) target bundleno = 2386 (0x952), region = 72 }
  0x45   : > { %8219 = dma.done.wait (%p7602_p9), [#allocation9], 640  }
  0x46   : > { %8221 = vsyncadd (%p7602_p9), [#allocation9], 4294966656 }
  0x47   : > { %8223 = dma.done.wait (%p7602_p9), [#allocation12], 9232  }
  0x48   : > { %8225 = vsyncadd (%p7602_p9), [#allocation12], 4294958064 }
  0x49   : > { %8227 = dma.done.wait (%p7602_p9), [#allocation15], 36880  }
  0x4a   : > { %8229 = vsyncadd (%p7602_p9), [#allocation15], 4294930416 }
  0x4b   : > { %8231 = dma.done.wait (%p7602_p9), [#allocation18], 4128  }
  0x4c   : > { %8233 = vsyncadd (%p7602_p9), [#allocation18], 4294963168 }
  0x4d   : > { %8235 = dma.done.wait (%p7602_p9), [#allocation21], 8256  }
  0x4e   : > { %8237 = vsyncadd (%p7602_p9), [#allocation21], 4294959040 }
  0x4f   : > { %8239 = dma.done.wait (%p7602_p9), [#allocation24], 32896  }
  0x50   : > { %8241 = vsyncadd (%p7602_p9), [#allocation24], 4294934400  ;;  %s607_s3 = sand.u32 1, %s8252_s26   ;;  %vm623_vm0 = vcmask 31744   ;;  %v8304_v0 = vmov 0.0   ;;  %vm625_vm1 = vcmask 25600  }
  0x51   : > { %s8534_s6 = sshll.u32 %s607_s3, 7  ;;  %624 = vst.msk [vmem:[#allocation2] sm:$0xff] %vm623_vm0, %v8304_v0  ;;  %vm779_vm2 = vcmask 1043456   ;;  %v756_v1 = vld [vmem:[#allocation8] sm:$0xff]  ;;  %v757_v2 = vld [vmem:[#allocation8 + $0x8] sm:$0xff]  ;;  %vm690_vm3 = vcmask 1046528  }
  0x52   : > { %626 = vst.msk [vmem:[#allocation2 + $0x8] sm:$0x3] %vm625_vm1, %v8304_v0  ;;  %vm715_vm4 = vcmask 1045504   ;;  %v762_v3 = vrot.slane %v756_v1, 4  ;;  %7253 = vmatpush.msk.msra.mxu1 %vm779_vm2, %v756_v1  ;;  %7262 = vmatpush.msk.msra.mxu2 %vm779_vm2, %v757_v2  ;;  %v758_v5 = vld [vmem:[#allocation8 + $0x10] sm:$0xff]  ;;  %v950_v6 = vrot.slane %v757_v2, 4 }
  0x53   : > { %627 = vst.msk [vmem:[#allocation2 + $0x10] sm:$0xff] %vm623_vm0, %v8304_v0  ;;  %v1058_v10 = vrot.slane %v758_v5, 4  ;;  %p610_p13 = scmp.lt.s32.totalorder %s8399_s29, 1  ;;  %v759_v47 = vld [vmem:[#allocation8 + $0x18] sm:$0xff]  ;;  %v760_v59 = vld [vmem:[#allocation8 + $0x20] sm:$0xf] }
  0x54   : > { %628 = vst.msk [vmem:[#allocation2 + $0x18] sm:$0x3] %vm625_vm1, %v8304_v0  ;;  %7244 = vmatpush.msk.msra.mxu0 %vm779_vm2, %v762_v3  ;;  %7271 = vmatpush.msk.msra.mxu3 %vm779_vm2, %v950_v6  ;;  %v1166_v50 = vrot.slane %v759_v47, 4  ;;  %vm1294_vm5 = vcmask 523264   ;;  %vm1296_vm6 = vcmask 517120   ;;  %s8305_s2 = smov 64  }
  0x55   : > { %629 = vst.msk [vmem:[#allocation2 + $0x20] sm:$0xff] %vm623_vm0, %v8304_v0  ;;  %7289 = vmatpush.msk.msrb.mxu1 %vm779_vm2, %v1058_v10  ;;  %s611_s27 = scalar_select %p610_p13, %s8399_s29, 1  ;;  %7298 = vmatpush.msk.msrb.mxu2 %vm779_vm2, %v759_v47  ;;  %vm3285_vm7 = vcmask 516096  }
  0x56   : > { %630 = vst.msk [vmem:[#allocation2 + $0x28] sm:$0x3] %vm625_vm1, %v8304_v0  ;;  %7280 = vmatpush.msk.msrb.mxu0 %vm779_vm2, %v758_v5  ;;  %7307 = vmatpush.msk.msrb.mxu3 %vm779_vm2, %v1166_v50  ;;  %s609_s24 = scalar_lea.vmem [#allocation26], %s8534_s6  ;;  %s10535_s30 = smov 0  }
  0x57   : > { %631 = vst.msk [vmem:[#allocation2 + $0x30] sm:$0xff] %vm623_vm0, %v8304_v0  ;;  %s7514_s20 = sshll.u32 %s611_s27, 6 }
  0x58   : > { %v654_v4 = vld [vmem:[#allocation2] sm:$0xff]  ;;  %632 = vst.msk [vmem:[#allocation2 + $0x38] sm:$0x3] %vm625_vm1, %v8304_v0  ;;  %s8607_s25 = scalar_lea.vmem %s11595_s0, %s7514_s20 }
  0x59   : > { %v655_v7 = vld [vmem:[#allocation2 + $0x8] sm:$0x3]  ;;  %v691_v8 = vrot.slane %v654_v4, 1  ;;  %633 = vst.msk [vmem:[#allocation2 + $0x40] sm:$0xff] %vm623_vm0, %v8304_v0  ;;  %7254 = vmatmul.msk.f32.vlgmr.msra.gmra.mxu1 %vm623_vm0, %v654_v4  ;;  %v716_v9 = vrot.slane %v654_v4, 2  ;;  %v615_v15 = vld [vmem:[%s8607_s25] sm:$0xff] }
  0x5a   : > { %v692_v11 = vrot.slane %v655_v7, 1  ;;  %634 = vst.msk [vmem:[#allocation2 + $0x48] sm:$0x3] %vm625_vm1, %v8304_v0  ;;  %v717_v12 = vrot.slane %v655_v7, 2  ;;  %v616_v16 = vld [vmem:[%s8607_s25 + $0x8] sm:$0xff]  ;;  %v617_v17 = vld [vmem:[%s8607_s25 + $0x10] sm:$0xff] }
  0x5b   : > { %635 = vst.msk [vmem:[#allocation2 + $0x50] sm:$0xff] %vm623_vm0, %v8304_v0  ;;  %v618_v18 = vld [vmem:[%s8607_s25 + $0x18] sm:$0xff]  ;;  %v619_v19 = vld [vmem:[%s8607_s25 + $0x20] sm:$0xff]  ;;  %v620_v22 = vld [vmem:[%s8607_s25 + $0x28] sm:$0xff] }
  0x5c   : > { %v693_v13 = vsel %vm690_vm3, %v691_v8, %v692_v11  ;;  %636 = vst.msk [vmem:[#allocation2 + $0x58] sm:$0x3] %vm625_vm1, %v8304_v0  ;;  %v718_v14 = vsel %vm715_vm4, %v716_v9, %v717_v12  ;;  %v621_v35 = vld [vmem:[%s8607_s25 + $0x30] sm:$0xff]  ;;  %v622_v44 = vld [vmem:[%s8607_s25 + $0x38] sm:$0xff] }
  0x5d   : > { %7245 = vmatmul.msk.f32.vlgmr.msra.gmra.mxu0 %vm623_vm0, %v693_v13  ;;  %637 = vst.msk [vmem:[#allocation2 + $0x60] sm:$0xff] %vm623_vm0, %v8304_v0  ;;  %7263 = vmatmul.msk.f32.vlgmr.msra.gmra.mxu2 %vm623_vm0, %v718_v14 }
  0x5e   : > { %638 = vst.msk [vmem:[#allocation2 + $0x68] sm:$0x3] %vm625_vm1, %v8304_v0  ;;  %7316 = vmatpush.msk.msra.mxu0 %vm779_vm2, %v760_v59 }
  0x5f   : > { %639 = vst.msk [vmem:[#allocation2 + $0x70] sm:$0xff] %vm623_vm0, %v8304_v0 }
  0x60   : > { %640 = vst.msk [vmem:[#allocation2 + $0x78] sm:$0x3] %vm625_vm1, %v8304_v0 }
  0x61   : > { %641 = vst.msk [vmem:[#allocation2 + $0x80] sm:$0xff] %vm623_vm0, %v8304_v0 }
  0x62   : > { %642 = vst.msk [vmem:[#allocation2 + $0x88] sm:$0x3] %vm625_vm1, %v8304_v0 }
  0x63   : > { %643 = vst.msk [vmem:[#allocation2 + $0x90] sm:$0xff] %vm623_vm0, %v8304_v0 }
  0x64   : > { %644 = vst.msk [vmem:[#allocation2 + $0x98] sm:$0x3] %vm625_vm1, %v8304_v0 }
  0x65   : > { %1850 = vst [vmem:[#allocation4] sm:$0xff] %v8304_v0 }
  0x66   : > { %1851 = vst [vmem:[#allocation4 + $0x8] sm:$0x3] %v8304_v0 }
  0x67   : > { %1852 = vst [vmem:[#allocation4 + $0x10] sm:$0xff] %v8304_v0 }
  0x68   : > { %1853 = vst [vmem:[#allocation4 + $0x18] sm:$0x3] %v8304_v0 }
  0x69   : > { %1854 = vst [vmem:[#allocation4 + $0x20] sm:$0xff] %v8304_v0 }
  0x6a   : > { %1855 = vst [vmem:[#allocation4 + $0x28] sm:$0x3] %v8304_v0 }
  0x6b   : > { %1856 = vst [vmem:[#allocation4 + $0x30] sm:$0xff] %v8304_v0 }
  0x6c   : > { %1857 = vst [vmem:[#allocation4 + $0x38] sm:$0x3] %v8304_v0 }
  0x6d   : > { %1858 = vst [vmem:[#allocation4 + $0x40] sm:$0xff] %v8304_v0 }
  0x6e   : > { %1859 = vst [vmem:[#allocation4 + $0x48] sm:$0x3] %v8304_v0 }
  0x6f   : > { %1860 = vst [vmem:[#allocation4 + $0x50] sm:$0xff] %v8304_v0 }
  0x70   : > { %1861 = vst [vmem:[#allocation4 + $0x58] sm:$0x3] %v8304_v0 }
  0x71   : > { %1862 = vst [vmem:[#allocation4 + $0x60] sm:$0xff] %v8304_v0 }
  0x72   : > { %1863 = vst [vmem:[#allocation4 + $0x68] sm:$0x3] %v8304_v0 }
  0x73   : > { %1864 = vst [vmem:[#allocation4 + $0x70] sm:$0xff] %v8304_v0 }
  0x74   : > { %1865 = vst [vmem:[#allocation4 + $0x78] sm:$0x3] %v8304_v0 }
  0x75   : > { %1866 = vst [vmem:[#allocation4 + $0x80] sm:$0xff] %v8304_v0 }
  0x76   : > { %1867 = vst [vmem:[#allocation4 + $0x88] sm:$0x3] %v8304_v0 }
  0x77   : > { %1869 = vst [vmem:[#allocation4 + $0x98] sm:$0x3] %v8304_v0 }
  0x78   : > { %646 = vst.msk [vmem:[#allocation2 + $0x11] sm:$0xff] %vm623_vm0, %v615_v15 }
  0x79   : > { %647 = vst.msk [vmem:[#allocation2 + $0x21] sm:$0xff] %vm623_vm0, %v616_v16 }
  0x7a   : > { %648 = vst.msk [vmem:[#allocation2 + $0x31] sm:$0xff] %vm623_vm0, %v617_v17 }
  0x7b   : > { %649 = vst.msk [vmem:[#allocation2 + $0x41] sm:$0xff] %vm623_vm0, %v618_v18 }
  0x7c   : > { %650 = vst.msk [vmem:[#allocation2 + $0x51] sm:$0xff] %vm623_vm0, %v619_v19 }
  0x7d   : > { %651 = vst.msk [vmem:[#allocation2 + $0x61] sm:$0xff] %vm623_vm0, %v620_v22 }
  0x7e   : > { %652 = vst.msk [vmem:[#allocation2 + $0x71] sm:$0xff] %vm623_vm0, %v621_v35 }
  0x7f   : > { %v656_v20 = vld [vmem:[#allocation2 + $0x10] sm:$0xff]  ;;  %v657_v21 = vld [vmem:[#allocation2 + $0x18] sm:$0x3]  ;;  %653 = vst.msk [vmem:[#allocation2 + $0x81] sm:$0xff] %vm623_vm0, %v622_v44 }
  0x80   : > { %7272 = vmatmul.msk.f32.vlgmr.msra.gmra.mxu3 %vm623_vm0, %v656_v20  ;;  %v694_v23 = vrot.slane %v656_v20, 1  ;;  %v695_v24 = vrot.slane %v657_v21, 1  ;;  %7255 = vmatmul.msk.f32.gmra.mxu1 %vm623_vm0, %v656_v20  ;;  %v719_v25 = vrot.slane %v656_v20, 2  ;;  %v720_v26 = vrot.slane %v657_v21, 2  ;;  %v8627_v27 = vld [vmem:[#allocation2 + $0x20] sm:$0xff]  ;;  %1298 = vst.msk [vmem:[#allocation3 + $0x10] sm:$0xff] %vm1294_vm5, %v8304_v0 }
  0x81   : > { %v659_v28 = vld [vmem:[#allocation2 + $0x28] sm:$0x3]  ;;  %v697_v31 = vrot.slane %v8627_v27, 1  ;;  %v722_v33 = vrot.slane %v8627_v27, 2  ;;  %v8653_v38 = vld [vmem:[#allocation2 + $0x30] sm:$0xff]  ;;  %1295 = vst.msk [vmem:[#allocation3] sm:$0xff] %vm1294_vm5, %v8304_v0 }
  0x82   : > { %v8630_v29 = vsel %vm690_vm3, %v694_v23, %v695_v24  ;;  %v8633_v30 = vsel %vm715_vm4, %v719_v25, %v720_v26  ;;  %v698_v32 = vrot.slane %v659_v28, 1  ;;  %v723_v34 = vrot.slane %v659_v28, 2  ;;  %v661_v39 = vld [vmem:[#allocation2 + $0x38] sm:$0x3]  ;;  %v8673_v48 = vld [vmem:[#allocation2 + $0x40] sm:$0xff]  ;;  %1300 = vst.msk [vmem:[#allocation3 + $0x20] sm:$0xff] %vm1294_vm5, %v8304_v0 }
  0x83   : > { %7246 = vmatmul.msk.f32.gmra.mxu0 %vm623_vm0, %v8630_v29  ;;  %7264 = vmatmul.msk.f32.gmra.mxu2 %vm623_vm0, %v8633_v30  ;;  %v700_v40 = vrot.slane %v8653_v38, 1  ;;  %v701_v41 = vrot.slane %v661_v39, 1  ;;  %v725_v42 = vrot.slane %v8653_v38, 2  ;;  %v726_v43 = vrot.slane %v661_v39, 2  ;;  %v663_v49 = vld [vmem:[#allocation2 + $0x48] sm:$0x3] }
  0x84   : > { %v8645_v36 = vsel %vm690_vm3, %v697_v31, %v698_v32  ;;  %v8650_v37 = vsel %vm715_vm4, %v722_v33, %v723_v34  ;;  %v703_v51 = vrot.slane %v8673_v48, 1  ;;  %v704_v52 = vrot.slane %v663_v49, 1  ;;  %v664_v57 = vld [vmem:[#allocation2 + $0x50] sm:$0xff]  ;;  %v665_v58 = vld [vmem:[#allocation2 + $0x58] sm:$0x3]  ;;  %v666_v3 = vld [vmem:[#allocation2 + $0x60] sm:$0xff] }
  0x85   : > { %v8665_v45 = vsel %vm690_vm3, %v700_v40, %v701_v41  ;;  %v8670_v46 = vsel %vm715_vm4, %v725_v42, %v726_v43  ;;  %v728_v53 = vrot.slane %v8673_v48, 2  ;;  %v729_v54 = vrot.slane %v663_v49, 2  ;;  %v667_v4 = vld [vmem:[#allocation2 + $0x68] sm:$0x3]  ;;  %v668_v11 = vld [vmem:[#allocation2 + $0x70] sm:$0xff]  ;;  %1302 = vst.msk [vmem:[#allocation3 + $0x30] sm:$0xff] %vm1294_vm5, %v8304_v0 }
  0x86   : > { %v705_v55 = vsel %vm690_vm3, %v703_v51, %v704_v52  ;;  %v706_v60 = vrot.slane %v664_v57, 1  ;;  %v707_v61 = vrot.slane %v665_v58, 1  ;;  %v731_v62 = vrot.slane %v664_v57, 2  ;;  %v669_v12 = vld [vmem:[#allocation2 + $0x78] sm:$0x3]  ;;  %v670_v19 = vld [vmem:[#allocation2 + $0x80] sm:$0xff] }
  0x87   : > { %v8689_v56 = vsel %vm715_vm4, %v728_v53, %v729_v54  ;;  %v732_v63 = vrot.slane %v665_v58, 2  ;;  %v709_v5 = vrot.slane %v666_v3, 1  ;;  %v710_v6 = vrot.slane %v667_v4, 1  ;;  %v671_v20 = vld [vmem:[#allocation2 + $0x88] sm:$0x3]  ;;  %1304 = vst.msk [vmem:[#allocation3 + $0x40] sm:$0xff] %vm1294_vm5, %v8304_v0 }
  0x88   : > { %7273 = vmatmul.msk.f32.gmra.mxu3 %vm623_vm0, %v8627_v27  ;;  %7256 = vmatmul.msk.f32.gmra.mxu1 %vm623_vm0, %v8627_v27  ;;  %v708_v1 = vsel %vm690_vm3, %v706_v60, %v707_v61  ;;  %v734_v7 = vrot.slane %v666_v3, 2  ;;  %v735_v8 = vrot.slane %v667_v4, 2  ;;  %v712_v13 = vrot.slane %v668_v11, 1  ;;  %v673_v28 = vld [vmem:[#allocation2 + $0x98] sm:$0x3]  ;;  %1306 = vst.msk [vmem:[#allocation3 + $0x50] sm:$0xff] %vm1294_vm5, %v8304_v0 }
  0x89   : > { %v8699_v2 = vsel %vm715_vm4, %v731_v62, %v732_v63  ;;  %v711_v9 = vsel %vm690_vm3, %v709_v5, %v710_v6  ;;  %v713_v14 = vrot.slane %v669_v12, 1  ;;  %v737_v15 = vrot.slane %v668_v11, 2  ;;  %1299 = vst.msk [vmem:[#allocation3 + $0x18] sm:$0x3] %vm1296_vm6, %v8304_v0 }
  0x8a   : > { %v8708_v10 = vsel %vm715_vm4, %v734_v7, %v735_v8  ;;  %v738_v16 = vrot.slane %v669_v12, 2  ;;  %v742_v21 = vrot.slane %v670_v19, 1  ;;  %v743_v22 = vrot.slane %v671_v20, 1  ;;  %1297 = vst.msk [vmem:[#allocation3 + $0x8] sm:$0x3] %vm1296_vm6, %v8304_v0 }
  0x8b   : > { %7247 = vmatmul.msk.f32.gmra.mxu0 %vm623_vm0, %v8645_v36  ;;  %7265 = vmatmul.msk.f32.gmra.mxu2 %vm623_vm0, %v8650_v37  ;;  %v714_v17 = vsel %vm690_vm3, %v712_v13, %v713_v14  ;;  %v745_v23 = vrot.slane %v670_v19, 2  ;;  %v746_v24 = vrot.slane %v671_v20, 2  ;;  %v754_v49 = vrot.slane %v673_v28, 2  ;;  %1301 = vst.msk [vmem:[#allocation3 + $0x28] sm:$0x3] %vm1296_vm6, %v8304_v0 }
  0x8c   : > { %v8717_v18 = vsel %vm715_vm4, %v737_v15, %v738_v16  ;;  %v744_v25 = vsel %vm690_vm3, %v742_v21, %v743_v22  ;;  %1303 = vst.msk [vmem:[#allocation3 + $0x38] sm:$0x3] %vm1296_vm6, %v8304_v0 }
  0x8d   : > { %v747_v26 = vsel %vm715_vm4, %v745_v23, %v746_v24  ;;  %1305 = vst.msk [vmem:[#allocation3 + $0x48] sm:$0x3] %vm1296_vm6, %v8304_v0 }
  0x8e   : > { %1307 = vst.msk [vmem:[#allocation3 + $0x58] sm:$0x3] %vm1296_vm6, %v8304_v0 }
  0x8f   : > { %1308 = vst.msk [vmem:[#allocation3 + $0x60] sm:$0xff] %vm1294_vm5, %v8304_v0 }
  0x90   : > { %7274 = vmatmul.msk.f32.gmra.mxu3 %vm623_vm0, %v8653_v38  ;;  %7257 = vmatmul.msk.f32.gmra.mxu1 %vm623_vm0, %v8653_v38  ;;  %1309 = vst.msk [vmem:[#allocation3 + $0x68] sm:$0x3] %vm1296_vm6, %v8304_v0 }
  0x91   : > { %v8884_v12 = vld [vmem:[#allocation3 + $0x8] sm:$0x3]  ;;  %1310 = vst.msk [vmem:[#allocation3 + $0x70] sm:$0xff] %vm1294_vm5, %v8304_v0 }
  0x92   : > { %v1362_v14 = vrot.slane %v8884_v12, 1  ;;  %1311 = vst.msk [vmem:[#allocation3 + $0x78] sm:$0x3] %vm1296_vm6, %v8304_v0 }
  0x93   : > { %7248 = vmatmul.msk.f32.gmra.mxu0 %vm623_vm0, %v8665_v45  ;;  %7266 = vmatmul.msk.f32.gmra.mxu2 %vm623_vm0, %v8670_v46  ;;  %1312 = vst.msk [vmem:[#allocation3 + $0x80] sm:$0xff] %vm1294_vm5, %v8304_v0 }
  0x94   : > { %1313 = vst.msk [vmem:[#allocation3 + $0x88] sm:$0x3] %vm1296_vm6, %v8304_v0 }
  0x95   : > { %1314 = vst.msk [vmem:[#allocation3 + $0x90] sm:$0xff] %vm1294_vm5, %v8304_v0 }
  0x96   : > { %1315 = vst.msk [vmem:[#allocation3 + $0x98] sm:$0x3] %vm1296_vm6, %v8304_v0 }
  0x98   : > { %7275 = vmatmul.msk.f32.gmra.mxu3 %vm623_vm0, %v8673_v48  ;;  %7258 = vmatmul.msk.f32.gmra.mxu1 %vm623_vm0, %v8673_v48 }
  0x9b   : > { %7249 = vmatmul.msk.f32.gmra.mxu0 %vm623_vm0, %v705_v55  ;;  %7267 = vmatmul.msk.f32.gmra.mxu2 %vm623_vm0, %v8689_v56 }
  0xa0   : > { %7276 = vmatmul.msk.f32.gmra.mxu3 %vm623_vm0, %v664_v57  ;;  %7259 = vmatmul.msk.f32.gmra.mxu1 %vm623_vm0, %v664_v57 }
  0xa3   : > { %7250 = vmatmul.msk.f32.gmra.mxu0 %vm623_vm0, %v708_v1  ;;  %7268 = vmatmul.msk.f32.gmra.mxu2 %vm623_vm0, %v8699_v2 }
  0xa8   : > { %7277 = vmatmul.msk.f32.gmra.mxu3 %vm623_vm0, %v666_v3  ;;  %7260 = vmatmul.msk.f32.gmra.mxu1 %vm623_vm0, %v666_v3 }
  0xab   : > { %7251 = vmatmul.msk.f32.gmra.mxu0 %vm623_vm0, %v711_v9  ;;  %7269 = vmatmul.msk.f32.gmra.mxu2 %vm623_vm0, %v8708_v10 }
  0xb0   : > { %7278 = vmatmul.msk.f32.gmra.mxu3 %vm623_vm0, %v668_v11  ;;  %7261 = vmatmul.msk.f32.gmra.mxu1 %vm623_vm0, %v668_v11 }
  0xb3   : > { %7252 = vmatmul.msk.f32.gmra.mxu0 %vm623_vm0, %v714_v17  ;;  %7270 = vmatmul.msk.f32.gmra.mxu2 %vm623_vm0, %v8717_v18 }
  0xb8   : > { %7279 = vmatmul.msk.f32.gmra.mxu3 %vm623_vm0, %v670_v19  ;;  %7290 = vmatmul.msk.f32.vlgmr.msrb.gmra.mxu1 %vm623_vm0, %v8633_v30  ;;  %v751_v30 = vrot.slane %v673_v28, 1 }
  0xbb   : > { %7281 = vmatmul.msk.f32.vlgmr.msrb.gmra.mxu0 %vm623_vm0, %v8630_v29  ;;  %7299 = vmatmul.msk.f32.vlgmr.msrb.gmra.mxu2 %vm623_vm0, %v8627_v27  ;;  %v672_v27 = vld [vmem:[#allocation2 + $0x90] sm:$0xff] }
  0xbc   : > { %v750_v29 = vrot.slane %v672_v27, 1 }
  0xbe   : > { %v752_v31 = vsel %vm690_vm3, %v750_v29, %v751_v30 }
  0xc0   : > { %7308 = vmatmul.msk.f32.vlgmr.msrb.gmra.mxu3 %vm623_vm0, %v8645_v36  ;;  %7291 = vmatmul.msk.f32.gmra.mxu1 %vm623_vm0, %v8650_v37 }
  0xc3   : > { %7282 = vmatmul.msk.f32.gmra.mxu0 %vm623_vm0, %v8645_v36  ;;  %7300 = vmatmul.msk.f32.gmra.mxu2 %vm623_vm0, %v8653_v38 }
  0xc8   : > { %7309 = vmatmul.msk.f32.gmra.mxu3 %vm623_vm0, %v8665_v45  ;;  %7292 = vmatmul.msk.f32.gmra.mxu1 %vm623_vm0, %v8670_v46 }
  0xcb   : > { %7283 = vmatmul.msk.f32.gmra.mxu0 %vm623_vm0, %v8665_v45  ;;  %7301 = vmatmul.msk.f32.gmra.mxu2 %vm623_vm0, %v8673_v48  ;;  %v753_v48 = vrot.slane %v672_v27, 2 }
  0xcd   : > { %v755_v51 = vsel %vm715_vm4, %v753_v48, %v754_v49 }
  0xd0   : > { %7310 = vmatmul.msk.f32.gmra.mxu3 %vm623_vm0, %v705_v55  ;;  %7293 = vmatmul.msk.f32.gmra.mxu1 %vm623_vm0, %v8689_v56 }
  0xd3   : > { %7284 = vmatmul.msk.f32.gmra.mxu0 %vm623_vm0, %v705_v55  ;;  %7302 = vmatmul.msk.f32.gmra.mxu2 %vm623_vm0, %v664_v57 }
  0xd6   : > { %v8787_v36 = vpop.f32.mrf.mxu1 }
  0xd8   : > { %7311 = vmatmul.msk.f32.gmra.mxu3 %vm623_vm0, %v708_v1  ;;  %7294 = vmatmul.msk.f32.gmra.mxu1 %vm623_vm0, %v8699_v2 }
  0xda   : > { %v8772_v32 = vpop.f32.mrf.mxu0 }
  0xdb   : > { %7285 = vmatmul.msk.f32.gmra.mxu0 %vm623_vm0, %v708_v1  ;;  %7303 = vmatmul.msk.f32.gmra.mxu2 %vm623_vm0, %v666_v3 }
  0xe0   : > { %7312 = vmatmul.msk.f32.gmra.mxu3 %vm623_vm0, %v711_v9  ;;  %7295 = vmatmul.msk.f32.gmra.mxu1 %vm623_vm0, %v8708_v10  ;;  %v8791_v38 = vpop.f32.mrf.mxu2 }
  0xe3   : > { %7286 = vmatmul.msk.f32.gmra.mxu0 %vm623_vm0, %v711_v9  ;;  %7304 = vmatmul.msk.f32.gmra.mxu2 %vm623_vm0, %v668_v11 }
  0xe8   : > { %7313 = vmatmul.msk.f32.gmra.mxu3 %vm623_vm0, %v714_v17  ;;  %7296 = vmatmul.msk.f32.gmra.mxu1 %vm623_vm0, %v8717_v18 }
  0xeb   : > { %7287 = vmatmul.msk.f32.gmra.mxu0 %vm623_vm0, %v714_v17  ;;  %7305 = vmatmul.msk.f32.gmra.mxu2 %vm623_vm0, %v670_v19  ;;  %v859_v19 = vadd.f32 %v8787_v36, %v8772_v32 }
  0xed   : > { %v942_v20 = vadd.f32 %v8791_v38, %v859_v19  ;;  %v8920_v38 = vld [vmem:[#allocation11] ss:$0 sm:$0xff] }
  0xf0   : > { %7314 = vmatmul.msk.f32.gmra.mxu3 %vm623_vm0, %v744_v25  ;;  %7297 = vmatmul.msk.f32.gmra.mxu1 %vm623_vm0, %v747_v26 }
  0xf3   : > { %7288 = vmatmul.msk.f32.gmra.mxu0 %vm623_vm0, %v744_v25  ;;  %7306 = vmatmul.msk.f32.gmra.mxu2 %vm623_vm0, %v672_v27 }
  0xf8   : > { %7315 = vmatmul.msk.f32.gmra.mxu3 %vm623_vm0, %v752_v31 }
  0xfb   : > { %7317 = vmatmul.msk.f32.vlgmr.msra.gmra.mxu0 %vm623_vm0, %v8650_v37 }
  0xfd   : > { %v8799_v40 = vpop.f32.mrf.mxu1 }
 0x100   : > { %v8777_v33 = vpop.f32.mrf.mxu0 }
 0x101   : > { %v862_v27 = vadd.f32 %v8799_v40, %v8777_v33 }
 0x103   : > { %7318 = vmatmul.msk.f32.gmra.mxu0 %vm623_vm0, %v8670_v46  ;;  %v8793_v37 = vpop.f32.mrf.mxu3 }
 0x104   : > { %v996_v22 = vadd.f32 %v8793_v37, %v942_v20 }
 0x105   : > { %v8809_v44 = vpop.f32.mrf.mxu1 }
 0x106   : > { %v8801_v41 = vpop.f32.mrf.mxu2 }
 0x107   : > { %v943_v28 = vadd.f32 %v8801_v41, %v862_v27 }
 0x108   : > { %v8781_v34 = vpop.f32.mrf.mxu0 }
 0x109   : > { %v865_v49 = vadd.f32 %v8809_v44, %v8781_v34 }
 0x10b   : > { %7319 = vmatmul.msk.f32.gmra.mxu0 %vm623_vm0, %v8689_v56  ;;  %v8803_v42 = vpop.f32.mrf.mxu3 }
 0x10c   : > { %v997_v30 = vadd.f32 %v8803_v42, %v943_v28 }
 0x10d   : > { %v8821_v52 = vpop.f32.mrf.mxu1 }
 0x10e   : > { %v8811_v45 = vpop.f32.mrf.mxu2 }
 0x10f   : > { %v944_v33 = vadd.f32 %v8811_v45, %v865_v49 }
 0x110   : > { %v8785_v35 = vpop.f32.mrf.mxu0 }
 0x111   : > { %v868_v34 = vadd.f32 %v8821_v52, %v8785_v35 }
 0x113   : > { %7320 = vmatmul.msk.f32.gmra.mxu0 %vm623_vm0, %v8699_v2  ;;  %v8815_v47 = vpop.f32.mrf.mxu3 }
 0x114   : > { %v998_v42 = vadd.f32 %v8815_v47, %v944_v33 }
 0x115   : > { %v8828_v56 = vpop.f32.mrf.mxu1 }
 0x116   : > { %v8823_v53 = vpop.f32.mrf.mxu2 }
 0x117   : > { %v945_v45 = vadd.f32 %v8823_v53, %v868_v34 }
 0x118   : > { %v8795_v39 = vpop.f32.mrf.mxu0 }
 0x119   : > { %v871_v28 = vadd.f32 %v8828_v56, %v8795_v39 }
 0x11b   : > { %7321 = vmatmul.msk.f32.gmra.mxu0 %vm623_vm0, %v8708_v10  ;;  %v8826_v54 = vpop.f32.mrf.mxu3  ;;  %v8880_v10 = vld [vmem:[#allocation3] sm:$0xff] }
 0x11c   : > { %v1361_v13 = vrot.slane %v8880_v10, 1 }
 0x11d   : > { %v8834_v60 = vpop.f32.mrf.mxu1 }
 0x11e   : > { %v8830_v57 = vpop.f32.mrf.mxu2  ;;  %v1363_v16 = vsel %vm690_vm3, %v1361_v13, %v1362_v14 }
 0x11f   : > { %1513 = vrot.lane.b32.xlu0 %v1363_v16, %s8305_s2 }
 0x120   : > { %v8805_v43 = vpop.f32.mrf.mxu0 }
 0x123   : > { %7322 = vmatmul.msk.f32.gmra.mxu0 %vm623_vm0, %v8717_v18  ;;  %v8832_v58 = vpop.f32.mrf.mxu3 }
 0x125   : > { %v8842_v1 = vpop.f32.mrf.mxu1 }
 0x126   : > { %v8836_v61 = vpop.f32.mrf.mxu2 }
 0x128   : > { %v8813_v46 = vpop.f32.mrf.mxu0 }
 0x12b   : > { %7323 = vmatmul.msk.f32.gmra.mxu0 %vm623_vm0, %v747_v26  ;;  %v8838_v62 = vpop.f32.mrf.mxu3 }
 0x12d   : > { %v8856_v6 = vpop.f32.mrf.mxu1 }
 0x12e   : > { %v8844_v2 = vpop.f32.mrf.mxu2 }
 0x130   : > { %v8818_v50 = vpop.f32.mrf.mxu0 }
 0x133   : > { %7324 = vmatmul.msk.f32.gmra.mxu0 %vm623_vm0, %v755_v51  ;;  %v8848_v4 = vpop.f32.mrf.mxu3 }
 0x135   : > { %v1080_v11 = vpop.f32.mrf.mxu1 }
 0x136   : > { %v8858_v7 = vpop.f32.mrf.mxu2 }
 0x138   : > { %v1026_v55 = vpop.f32.mrf.mxu0 }
 0x139   : > { %v1050_v24 = vadd.f32 %v1026_v55, %v996_v22 }
 0x13b   : > { %v8864_v8 = vpop.f32.mrf.mxu3  ;;  %v1104_v29 = vadd.f32 %v1080_v11, %v1050_v24 }
 0x13d   : > { %v1083_v21 = vpop.f32.mrf.mxu1 }
 0x13e   : > { %v1134_v15 = vpop.f32.mrf.mxu2 }
 0x13f   : > { %v1158_v31 = vadd.f32 %v1134_v15, %v1104_v29 }
 0x140   : > { %v1029_v59 = vpop.f32.mrf.mxu0 }
 0x141   : > { %v1051_v36 = vadd.f32 %v1029_v59, %v997_v30 }
 0x143   : > { %v1188_v17 = vpop.f32.mrf.mxu3  ;;  %v1105_v40 = vadd.f32 %v1083_v21, %v1051_v36  ;;  %v999_v21 = vadd.f32 %v8826_v54, %v945_v45 }
 0x144   : > { %v1212_v0 = vadd.f32 %v1188_v17, %v1158_v31 }
 0x145   : > { %v1086_v32 = vpop.f32.mrf.mxu1 }
 0x146   : > { %v1137_v23 = vpop.f32.mrf.mxu2 }
 0x147   : > { %v1159_v11 = vadd.f32 %v1137_v23, %v1105_v40 }
 0x148   : > { %v8840_v63 = vpop.f32.mrf.mxu0 }
 0x149   : > { %v1052_v59 = vadd.f32 %v8840_v63, %v998_v42 }
 0x14b   : > { %v1191_v25 = vpop.f32.mrf.mxu3  ;;  %v1106_v19 = vadd.f32 %v1086_v32, %v1052_v59 }
 0x14c   : > { %v1213_v14 = vadd.f32 %v1191_v25, %v1159_v11 }
 0x14d   : > { %v1089_v15 = vpop.f32.mrf.mxu1 }
 0x14e   : > { %v1140_v37 = vpop.f32.mrf.mxu2 }
 0x14f   : > { %v1160_v22 = vadd.f32 %v1140_v37, %v1106_v19 }
 0x150   : > { %v8846_v3 = vpop.f32.mrf.mxu0 }
 0x151   : > { %v1053_v25 = vadd.f32 %v8846_v3, %v999_v21  ;;  %v946_v3 = vadd.f32 %v8830_v57, %v871_v28 }
 0x153   : > { %v1194_v55 = vpop.f32.mrf.mxu3  ;;  %v1107_v31 = vadd.f32 %v1089_v15, %v1053_v25 }
 0x154   : > { %v1214_v27 = vadd.f32 %v1194_v55, %v1160_v22 }
 0x155   : > { %v1092_v30 = vpop.f32.mrf.mxu1 }
 0x156   : > { %v1143_v17 = vpop.f32.mrf.mxu2 }
 0x157   : > { %v1161_v37 = vadd.f32 %v1143_v17, %v1107_v31 }
 0x158   : > { %v8850_v5 = vpop.f32.mrf.mxu0 }
 0x15b   : > { %v1197_v47 = vpop.f32.mrf.mxu3 }
 0x15c   : > { %v1215_v55 = vadd.f32 %v1197_v47, %v1161_v37 }
 0x15d   : > { %v1095_v59 = vpop.f32.mrf.mxu1 }
 0x15e   : > { %v1146_v36 = vpop.f32.mrf.mxu2 }
 0x160   : > { %v8874_v9 = vpop.f32.mrf.mxu0 }
 0x163   : > { %v1200_v49 = vpop.f32.mrf.mxu3 }
 0x166   : > { %v1149_v34 = vpop.f32.mrf.mxu2 }
 0x168   : > { %v8900_v18 = vpop.f32.mrf.mxu0 }
 0x16b   : > { %v1203_v19 = vpop.f32.mrf.mxu3 }
 0x16e   : > { %v1152_v31 = vpop.f32.mrf.mxu2 }
 0x170   : > { %v8914_v26 = vpop.f32.mrf.mxu0 }
 0x173   : > { %v1206_v37 = vpop.f32.mrf.mxu3 }
 0x178   : > { %v1242_v48 = vpop.f32.mrf.mxu0 }
 0x179   : > { %v1266_v51 = vadd.f32 %v1242_v48, %v1212_v0  ;;  %v1000_v0 = vadd.f32 %v8832_v58, %v946_v3  ;;  %v874_v58 = vadd.f32 %v8834_v60, %v8805_v43 }
 0x17b   : > { %v1278_v41 = vadd.f32 %v8920_v38, %v1266_v51  ;;  %v1054_v51 = vadd.f32 %v8850_v5, %v1000_v0  ;;  %v947_v5 = vadd.f32 %v8836_v61, %v874_v58 }
 0x17d   : > { %v1286_v13 = vmax.f32 %v1278_v41, 0.0  ;;  %v1108_v11 = vadd.f32 %v1092_v30, %v1054_v51 }
 0x17f   : > { %1317 = vst.msk [vmem:[#allocation3 + $0x11] sm:$0xff] %vm1294_vm5, %v1286_v13  ;;  %v1162_v15 = vadd.f32 %v1146_v36, %v1108_v11 }
 0x180   : > { %v1245_v16 = vpop.f32.mrf.mxu0 }
 0x181   : > { %v1267_v44 = vadd.f32 %v1245_v16, %v1213_v14  ;;  %v1001_v14 = vadd.f32 %v8838_v62, %v947_v5  ;;  %v1216_v17 = vadd.f32 %v1200_v49, %v1162_v15  ;;  %v877_v62 = vadd.f32 %v8842_v1, %v8813_v46  ;;  %v1098_v46 = vpop.f32.mrf.mxu1 }
 0x183   : > { %v1279_v20 = vadd.f32 %v8920_v38, %v1267_v44  ;;  %v1055_v60 = vadd.f32 %v8874_v9, %v1001_v14  ;;  %v1456_v9 = vld [vmem:[#allocation13 + $0x78] sm:$0xff]  ;;  %v948_v22 = vadd.f32 %v8844_v2, %v877_v62  ;;  %v1449_v62 = vld [vmem:[#allocation13 + $0x40] sm:$0xff] }
 0x184   : > { %1637 = vmatpush.msra.mxu1 %v1456_v9 }
 0x185   : > { %v1287_v63 = vmax.f32 %v1279_v20, 0.0 }
 0x186   : > { %v8934_v23 = vld [vmem:[#allocation3 + $0x10] sm:$0xff]  ;;  %v8936_v24 = vld [vmem:[#allocation3 + $0x18] sm:$0x3] }
 0x187   : > { %1318 = vst.msk [vmem:[#allocation3 + $0x21] sm:$0xff] %vm1294_vm5, %v1287_v63  ;;  %v1364_v35 = vrot.slane %v8934_v23, 1  ;;  %v1365_v52 = vrot.slane %v8936_v24, 1  ;;  %v1109_v63 = vadd.f32 %v1095_v59, %v1055_v60 }
 0x188   : > { %v1248_v53 = vpop.f32.mrf.mxu0 }
 0x189   : > { %v1268_v54 = vadd.f32 %v1248_v53, %v1214_v27  ;;  %v8945_v29 = vsel %vm690_vm3, %v1364_v35, %v1365_v52  ;;  %v1455_v27 = vld [vmem:[#allocation13 + $0x70] sm:$0xff]  ;;  %v1002_v35 = vadd.f32 %v8848_v4, %v948_v22  ;;  %v1163_v52 = vadd.f32 %v1149_v34, %v1109_v63  ;;  %v1155_v34 = vpop.f32.mrf.mxu2  ;;  %v1504_v22 = vld [vmem:[#allocation13 + $0x1f8] sm:$0xff] }
 0x18a   : > { %1515 = vrot.lane.b32.xlu0 %v8945_v29, %s8305_s2  ;;  %1638 = vmatpush.msra.mxu1 %v1455_v27  ;;  %v880_v4 = vadd.f32 %v8856_v6, %v8818_v50 }
 0x18b   : > { %v1280_v32 = vadd.f32 %v8920_v38, %v1268_v54  ;;  %v1056_v54 = vadd.f32 %v8900_v18, %v1002_v35  ;;  %v1217_v30 = vadd.f32 %v1203_v19, %v1163_v52  ;;  %v1454_v18 = vld [vmem:[#allocation13 + $0x68] sm:$0xff]  ;;  %1760 = vmatpush.msrb.mxu0 %v1504_v22  ;;  %v1487_v22 = vld [vmem:[#allocation13 + $0x170] sm:$0xff] }
 0x18c   : > { %1639 = vmatpush.msra.mxu1 %v1454_v18 }
 0x18d   : > { %v1288_v48 = vmax.f32 %v1280_v32, 0.0  ;;  %v1110_v49 = vadd.f32 %v1098_v46, %v1056_v54  ;;  %v1503_v46 = vld [vmem:[#allocation13 + $0x1f0] sm:$0xff]  ;;  %v1502_v54 = vld [vmem:[#allocation13 + $0x1e8] sm:$0xff] }
 0x18e   : > { %v8952_v39 = vld [vmem:[#allocation3 + $0x20] sm:$0xff]  ;;  %v8954_v56 = vld [vmem:[#allocation3 + $0x28] sm:$0x3]  ;;  %1761 = vmatpush.msrb.mxu0 %v1503_v46 }
 0x18f   : > { %1319 = vst.msk [vmem:[#allocation3 + $0x31] sm:$0xff] %vm1294_vm5, %v1288_v48  ;;  %v1367_v57 = vrot.slane %v8952_v39, 1  ;;  %v1368_v33 = vrot.slane %v8954_v56, 1  ;;  %v949_v48 = vadd.f32 %v8858_v7, %v880_v4  ;;  %v1164_v50 = vadd.f32 %v1152_v31, %v1110_v49  ;;  %v1447_v4 = vld [vmem:[#allocation13 + $0x30] sm:$0xff] }
 0x190   : > { %v1251_v40 = vpop.f32.mrf.mxu0  ;;  %1762 = vmatpush.msrb.mxu0 %v1502_v54  ;;  %v1495_v46 = vld [vmem:[#allocation13 + $0x1b0] sm:$0xff] }
 0x191   : > { %v1269_v41 = vadd.f32 %v1251_v40, %v1215_v55  ;;  %v8963_v42 = vsel %vm690_vm3, %v1367_v57, %v1368_v33  ;;  %v1453_v55 = vld [vmem:[#allocation13 + $0x60] sm:$0xff]  ;;  %v1452_v57 = vld [vmem:[#allocation13 + $0x58] sm:$0xff]  ;;  %v1003_v33 = vadd.f32 %v8864_v8, %v949_v48  ;;  %v1218_v5 = vadd.f32 %v1206_v37, %v1164_v50 }
 0x192   : > { %1517 = vrot.lane.b32.xlu1 %v8963_v42, %s8305_s2  ;;  %1640 = vmatpush.msra.mxu1 %v1453_v55  ;;  %v1392_v8 = vrot.slane %v8954_v56, 2  ;;  %v1472_v37 = vld [vmem:[#allocation13 + $0xf8] sm:$0xff]  ;;  %v1446_v55 = vld [vmem:[#allocation13 + $0x28] sm:$0xff] }
 0x193   : > { %v1281_v13 = vadd.f32 %v8920_v38, %v1269_v41  ;;  %v1057_v41 = vadd.f32 %v8914_v26, %v1003_v33  ;;  %1678 = vmatpush.msra.mxu2 %v1472_v37  ;;  %v1389_v33 = vrot.slane %v8936_v24, 2 }
 0x194   : > { %1641 = vmatpush.msra.mxu1 %v1452_v57  ;;  %v1500_v57 = vld [vmem:[#allocation13 + $0x1d8] sm:$0xff] }
 0x195   : > { %v1289_v16 = vmax.f32 %v1281_v13, 0.0  ;;  %v1101_v13 = vpop.f32.mrf.mxu1 }
 0x196   : > { %v8970_v44 = vld [vmem:[#allocation3 + $0x30] sm:$0xff]  ;;  %v8972_v43 = vld [vmem:[#allocation3 + $0x38] sm:$0x3]  ;;  %v1111_v26 = vadd.f32 %v1101_v13, %v1057_v41 }
 0x197   : > { %1320 = vst.msk [vmem:[#allocation3 + $0x41] sm:$0xff] %vm1294_vm5, %v1289_v16  ;;  %v1370_v61 = vrot.slane %v8970_v44, 1  ;;  %v1371_v45 = vrot.slane %v8972_v43, 1  ;;  %v1391_v16 = vrot.slane %v8952_v39, 2  ;;  %v1395_v18 = vrot.slane %v8972_v43, 2 }
 0x198   : > { %v1254_v20 = vpop.f32.mrf.mxu0  ;;  %v1165_v19 = vadd.f32 %v1155_v34, %v1111_v26  ;;  %v1394_v49 = vrot.slane %v8970_v44, 2  ;;  %v1388_v43 = vrot.slane %v8934_v23, 2  ;;  %v1471_v34 = vld [vmem:[#allocation13 + $0xf0] sm:$0xff] }
 0x199   : > { %v1270_v47 = vadd.f32 %v1254_v20, %v1216_v17  ;;  %v8981_v21 = vsel %vm690_vm3, %v1370_v61, %v1371_v45  ;;  %v1209_v17 = vpop.f32.mrf.mxu3  ;;  %v1451_v61 = vld [vmem:[#allocation13 + $0x50] sm:$0xff]  ;;  %v1450_v45 = vld [vmem:[#allocation13 + $0x48] sm:$0xff]  ;;  %v9023_v56 = vsel %vm715_vm4, %v1391_v16, %v1392_v8  ;;  %1679 = vmatpush.msra.mxu2 %v1471_v34 }
 0x19a   : > { %1519 = vrot.lane.b32.xlu1 %v8981_v21, %s8305_s2  ;;  %1642 = vmatpush.msra.mxu1 %v1451_v61  ;;  %v1219_v63 = vadd.f32 %v1209_v17, %v1165_v19  ;;  %v7737_v52 = vpack.i.bf16 %v9023_v56, %v8952_v39  ;;  %v1498_v8 = vld [vmem:[#allocation13 + $0x1c8] sm:$0xff]  ;;  %v9067_v16 = vsel %vm715_vm4, %v1388_v43, %v1389_v33  ;;  %v1443_v17 = vld [vmem:[#allocation13 + $0x10] sm:$0xff]  ;;  %v1497_v61 = vld [vmem:[#allocation13 + $0x1c0] sm:$0xff] }
 0x19b   : > { %v1282_v25 = vadd.f32 %v8920_v38, %v1270_v47 }
 0x19c   : > { %1643 = vmatpush.msra.mxu1 %v1450_v45 }
 0x19d   : > { %v1290_v53 = vmax.f32 %v1282_v25, 0.0 }
 0x19e   : > { %v8988_v1 = vld [vmem:[#allocation3 + $0x40] sm:$0xff]  ;;  %v8990_v28 = vld [vmem:[#allocation3 + $0x48] sm:$0x3]  ;;  %1644 = vmatpush.msra.mxu1 %v1449_v62 }
 0x19f   : > { %1321 = vst.msk [vmem:[#allocation3 + $0x51] sm:$0xff] %vm1294_vm5, %v1290_v53  ;;  %v1373_v2 = vrot.slane %v8988_v1, 1  ;;  %v1374_v3 = vrot.slane %v8990_v28, 1  ;;  %v1448_v53 = vld [vmem:[#allocation13 + $0x38] sm:$0xff]  ;;  %v1398_v45 = vrot.slane %v8990_v28, 2  ;;  %v1397_v62 = vrot.slane %v8988_v1, 2 }
 0x1a0   : > { %v1257_v32 = vpop.f32.mrf.mxu0  ;;  %1645 = vmatpush.msra.mxu1 %v1448_v53  ;;  %v1486_v28 = vld [vmem:[#allocation13 + $0x168] sm:$0xff] }
 0x1a1   : > { %v1271_v36 = vadd.f32 %v1257_v32, %v1217_v30  ;;  %v8999_v0 = vsel %vm690_vm3, %v1373_v2, %v1374_v3 }
 0x1a2   : > { %1521 = vrot.lane.b32.xlu2 %v8999_v0, %s8305_s2  ;;  %1646 = vmatpush.msra.mxu1 %v1447_v4  ;;  %v1494_v4 = vld [vmem:[#allocation13 + $0x1a8] sm:$0xff] }
 0x1a3   : > { %v1283_v51 = vadd.f32 %v8920_v38, %v1271_v36  ;;  %v1501_v36 = vld [vmem:[#allocation13 + $0x1e0] sm:$0xff] }
 0x1a4   : > { %1763 = vmatpush.msrb.mxu0 %v1501_v36  ;;  %1647 = vmatpush.msra.mxu1 %v1446_v55 }
 0x1a5   : > { %v1291_v6 = vmax.f32 %v1283_v51, 0.0  ;;  %v1488_v51 = vld [vmem:[#allocation13 + $0x178] sm:$0xff] }
 0x1a6   : > { %v9006_v40 = vld [vmem:[#allocation3 + $0x50] sm:$0xff]  ;;  %v9008_v58 = vld [vmem:[#allocation3 + $0x58] sm:$0x3]  ;;  %1719 = vmatpush.msra.mxu3 %v1488_v51  ;;  %1764 = vmatpush.msrb.mxu0 %v1500_v57 }
 0x1a7   : > { %1322 = vst.msk [vmem:[#allocation3 + $0x61] sm:$0xff] %vm1294_vm5, %v1291_v6  ;;  %v1376_v7 = vrot.slane %v9006_v40, 1  ;;  %v1377_v11 = vrot.slane %v9008_v58, 1  ;;  %v1401_v30 = vrot.slane %v9008_v58, 2  ;;  %v1400_v31 = vrot.slane %v9006_v40, 2 }
 0x1a8   : > { %v1260_v59 = vpop.f32.mrf.mxu0  ;;  %1720 = vmatpush.msra.mxu3 %v1487_v22  ;;  %v1483_v22 = vld [vmem:[#allocation13 + $0x150] sm:$0xff] }
 0x1a9   : > { %v1272_v14 = vadd.f32 %v1260_v59, %v1218_v5  ;;  %v9016_v15 = vsel %vm690_vm3, %v1376_v7, %v1377_v11  ;;  %v9048_v6 = vsel %vm715_vm4, %v1400_v31, %v1401_v30  ;;  %v1499_v5 = vld [vmem:[#allocation13 + $0x1d0] sm:$0xff]  ;;  %v9057_v7 = vsel %vm715_vm4, %v1394_v49, %v1395_v18  ;;  %v1444_v59 = vld [vmem:[#allocation13 + $0x18] sm:$0xff] }
 0x1aa   : > { %1523 = vrot.lane.b32.xlu2 %v9016_v15, %s8305_s2  ;;  %v7752_v13 = vpack.i.bf16 %v9048_v6, %v9006_v40  ;;  %1765 = vmatpush.msrb.mxu0 %v1499_v5  ;;  %v7742_v26 = vpack.i.bf16 %v9057_v7, %v8970_v44  ;;  %v9087_v31 = vsel %vm715_vm4, %v1397_v62, %v1398_v45  ;;  %v9117_v5 = vld [vmem:[#allocation3 + $0x90] sm:$0xff]  ;;  %v1467_v45 = vld [vmem:[#allocation13 + $0xd0] sm:$0xff] }
 0x1ab   : > { %v1284_v60 = vadd.f32 %v8920_v38, %v1272_v14  ;;  %1721 = vmatpush.msra.mxu3 %v1486_v28  ;;  %v7747_v18 = vpack.i.bf16 %v9087_v31, %v8988_v1  ;;  %v1489_v62 = vld [vmem:[#allocation13 + $0x180] sm:$0xff] }
 0x1ac   : > { %1766 = vmatpush.msrb.mxu0 %v1498_v8  ;;  %v1485_v8 = vld [vmem:[#allocation13 + $0x160] sm:$0xff] }
 0x1ad   : > { %v1292_v20 = vmax.f32 %v1284_v60, 0.0  ;;  %1722 = vmatpush.msra.mxu3 %v1485_v8  ;;  %v1481_v28 = vld [vmem:[#allocation13 + $0x140] sm:$0xff]  ;;  %v1474_v8 = vld [vmem:[#allocation13 + $0x108] sm:$0xff] }
 0x1ae   : > { %v9025_v47 = vld [vmem:[#allocation3 + $0x60] sm:$0xff]  ;;  %v9027_v9 = vld [vmem:[#allocation3 + $0x68] sm:$0x3]  ;;  %1767 = vmatpush.msrb.mxu0 %v1497_v61 }
 0x1af   : > { %1323 = vst.msk [vmem:[#allocation3 + $0x71] sm:$0xff] %vm1294_vm5, %v1292_v20  ;;  %v1379_v25 = vrot.slane %v9025_v47, 1  ;;  %v1380_v27 = vrot.slane %v9027_v9, 1  ;;  %v1403_v19 = vrot.slane %v9025_v47, 2  ;;  %v1404_v20 = vrot.slane %v9027_v9, 2  ;;  %v1484_v61 = vld [vmem:[#allocation13 + $0x158] sm:$0xff] }
 0x1b0   : > { %v1263_v35 = vpop.f32.mrf.mxu0  ;;  %1723 = vmatpush.msra.mxu3 %v1484_v61 }
 0x1b1   : > { %v1273_v2 = vadd.f32 %v1263_v35, %v1219_v63  ;;  %v9036_v3 = vsel %vm690_vm3, %v1379_v25, %v1380_v27  ;;  %v1470_v63 = vld [vmem:[#allocation13 + $0xe8] sm:$0xff]  ;;  %v1496_v27 = vld [vmem:[#allocation13 + $0x1b8] sm:$0xff]  ;;  %v1441_v35 = vld [vmem:[#allocation13] sm:$0xff] }
 0x1b2   : > { %7738 = vrot.lane.b32.xlu2 %v7737_v52, %s8305_s2  ;;  %v7727_v32 = vpack.i.bf16 %v8934_v23, %v9036_v3  ;;  %v1442_v25 = vld [vmem:[#allocation13 + $0x8] sm:$0xff]  ;;  %v1469_v52 = vld [vmem:[#allocation13 + $0xe0] sm:$0xff]  ;;  %1680 = vmatpush.msra.mxu2 %v1470_v63 }
 0x1b3   : > { %v1285_v48 = vadd.f32 %v8920_v38, %v1273_v2  ;;  %v1445_v38 = vld [vmem:[#allocation13 + $0x20] sm:$0xff]  ;;  %v9084_v2 = vsel %vm715_vm4, %v1403_v19, %v1404_v20  ;;  %1768 = vmatpush.msrb.mxu0 %v1496_v27  ;;  %v1511_v19 = vld [vmem:[#allocation13 + $0x230] sm:$0xff]  ;;  %v1490_v20 = vld [vmem:[#allocation13 + $0x188] sm:$0xff]  ;;  %1724 = vmatpush.msra.mxu3 %v1483_v22 }
 0x1b4   : > { %7728 = vrot.lane.b32.xlu0 %v7727_v32, %s8305_s2  ;;  %1648 = vmatpush.msra.mxu1 %v1445_v38  ;;  %v1512_v32 = vld [vmem:[#allocation13 + $0x238] sm:$0xff]  ;;  %v7757_v37 = vpack.i.bf16 %v9084_v2, %v9025_v47  ;;  %v1514_v38 = vpop.permute.xlu0 %1513  ;;  %v1466_v63 = vld [vmem:[#allocation13 + $0xc8] sm:$0xff]  ;;  %v1465_v27 = vld [vmem:[#allocation13 + $0xc0] sm:$0xff] }
 0x1b5   : > { %v1293_v50 = vmax.f32 %v1285_v48, 0.0  ;;  %1681 = vmatpush.msra.mxu2 %v1469_v52  ;;  %1769 = vmatpush.msrb.mxu0 %v1495_v46  ;;  %v1464_v52 = vld [vmem:[#allocation13 + $0xb8] sm:$0xff]  ;;  %v1463_v46 = vld [vmem:[#allocation13 + $0xb0] sm:$0xff] }
 0x1b6   : > { %v9051_v58 = vld [vmem:[#allocation3 + $0x70] sm:$0xff]  ;;  %v9053_v41 = vld [vmem:[#allocation3 + $0x78] sm:$0x3]  ;;  %1649 = vmatpush.msra.mxu1 %v1444_v59 }
 0x1b7   : > { %1324 = vst.msk [vmem:[#allocation3 + $0x81] sm:$0xff] %vm1294_vm5, %v1293_v50  ;;  %v1382_v24 = vrot.slane %v9051_v58, 1  ;;  %v1383_v11 = vrot.slane %v9053_v41, 1  ;;  %v1406_v49 = vrot.slane %v9051_v58, 2  ;;  %v1407_v51 = vrot.slane %v9053_v41, 2  ;;  %1770 = vmatpush.msrb.mxu0 %v1494_v4  ;;  %v1478_v4 = vld [vmem:[#allocation13 + $0x128] sm:$0xff] }
 0x1b8   : > { %1650 = vmatpush.msra.mxu1 %v1443_v17  ;;  %v1591_v41 = vsel %vm1294_vm5, %v8880_v10, %v1514_v38  ;;  %v1491_v17 = vld [vmem:[#allocation13 + $0x190] sm:$0xff] }
 0x1b9   : > { %v9064_v14 = vsel %vm690_vm3, %v1382_v24, %v1383_v11  ;;  %v9104_v57 = vsel %vm715_vm4, %v1406_v49, %v1407_v51  ;;  %v9119_v24 = vld [vmem:[#allocation3 + $0x98] sm:$0x3]  ;;  %v1493_v11 = vld [vmem:[#allocation13 + $0x1a0] sm:$0xff]  ;;  %v1507_v38 = vld [vmem:[#allocation13 + $0x210] sm:$0xff] }
 0x1ba   : > { %7753 = vrot.lane.b32.xlu2 %v7752_v13, %s8305_s2  ;;  %v7732_v60 = vpack.i.bf16 %v9064_v14, %v9067_v16  ;;  %1651 = vmatpush.msra.mxu1 %v1442_v25  ;;  %v7762_v50 = vpack.i.bf16 %v9104_v57, %v9051_v58  ;;  %v1435_v13 = vrot.slane %v9117_v5, 1  ;;  %v1436_v59 = vrot.slane %v9119_v24, 1  ;;  %v1482_v25 = vld [vmem:[#allocation13 + $0x148] sm:$0xff]  ;;  %v1477_v51 = vld [vmem:[#allocation13 + $0x120] sm:$0xff] }
 0x1bb   : > { %1771 = vmatpush.msrb.mxu0 %v1493_v11  ;;  %1725 = vmatpush.msra.mxu3 %v1482_v25 }
 0x1bc   : > { %7743 = vrot.lane.b32.xlu0 %v7742_v26, %s8305_s2  ;;  %7733 = vrot.lane.b32.xlu1 %v7732_v60, %s8305_s2  ;;  %v1437_v34 = vsel %vm690_vm3, %v1435_v13, %v1436_v59  ;;  %v1492_v26 = vld [vmem:[#allocation13 + $0x198] sm:$0xff]  ;;  %v1457_v59 = vld [vmem:[#allocation13 + $0x80] sm:$0xff] }
 0x1bd   : > { %1652 = vmatpush.msra.mxu1 %v1441_v35  ;;  %v1468_v60 = vld [vmem:[#allocation13 + $0xd8] sm:$0xff]  ;;  %1772 = vmatpush.msrb.mxu0 %v1492_v26  ;;  %v1510_v35 = vld [vmem:[#allocation13 + $0x228] sm:$0xff]  ;;  %v1473_v26 = vld [vmem:[#allocation13 + $0x100] sm:$0xff] }
 0x1be   : > { %v9080_v53 = vld [vmem:[#allocation3 + $0x80] sm:$0xff]  ;;  %v1342_v9 = vld [vmem:[#allocation3 + $0x88] sm:$0x3]  ;;  %1653 = vmatmul.f32.vlgmr.msra.gmra.mxu1 %v1591_v41  ;;  %1682 = vmatpush.msra.mxu2 %v1468_v60 }
 0x1bf   : > { %v1419_v54 = vrot.slane %v9080_v53, 1  ;;  %v1420_v30 = vrot.slane %v1342_v9, 1  ;;  %1809 = vmatpush.msrb.mxu1 %v1512_v32  ;;  %v1431_v48 = vrot.slane %v1342_v9, 2  ;;  %v1430_v55 = vrot.slane %v9080_v53, 2  ;;  %1773 = vmatpush.msrb.mxu0 %v1491_v17  ;;  %v1480_v9 = vld [vmem:[#allocation13 + $0x138] sm:$0xff]  ;;  %v1462_v32 = vld [vmem:[#allocation13 + $0xa8] sm:$0xff] }
 0x1c0   : > { %1683 = vmatpush.msra.mxu2 %v1467_v45  ;;  %1726 = vmatpush.msra.mxu3 %v1481_v28  ;;  %v1475_v41 = vld [vmem:[#allocation13 + $0x110] sm:$0xff] }
 0x1c1   : > { %v9090_v36 = vsel %vm690_vm3, %v1419_v54, %v1420_v30  ;;  %v9107_v33 = vsel %vm715_vm4, %v1430_v55, %v1431_v48  ;;  %1810 = vmatpush.msrb.mxu1 %v1511_v19  ;;  %1774 = vmatpush.msrb.mxu0 %v1490_v20  ;;  %v1509_v54 = vld [vmem:[#allocation13 + $0x220] sm:$0xff]  ;;  %v1479_v30 = vld [vmem:[#allocation13 + $0x130] sm:$0xff]  ;;  %v1460_v55 = vld [vmem:[#allocation13 + $0x98] sm:$0xff] }
 0x1c2   : > { %1585 = vrot.lane.b32.xlu2 %v9090_v36, %s8305_s2  ;;  %v7767_v43 = vpack.i.bf16 %v9107_v33, %v9080_v53  ;;  %1684 = vmatpush.msra.mxu2 %v1466_v63 }
 0x1c3   : > { %1775 = vmatpush.msrb.mxu0 %v1489_v62  ;;  %1811 = vmatpush.msrb.mxu1 %v1510_v35  ;;  %v1385_v62 = vrot.slane %v8880_v10, 2 }
 0x1c4   : > { %7758 = vrot.lane.b32.xlu0 %v7757_v37, %s8305_s2  ;;  %7748 = vrot.lane.b32.xlu1 %v7747_v18, %s8305_s2  ;;  %v1461_v37 = vld [vmem:[#allocation13 + $0xa0] sm:$0xff]  ;;  %v1508_v18 = vld [vmem:[#allocation13 + $0x218] sm:$0xff] }
 0x1c5   : > { %1685 = vmatpush.msra.mxu2 %v1465_v27  ;;  %1812 = vmatpush.msrb.mxu1 %v1509_v54 }
 0x1c6   : > { %1727 = vmatpush.msra.mxu3 %v1480_v9 }
 0x1c7   : > { %1686 = vmatpush.msra.mxu2 %v1464_v52  ;;  %1813 = vmatpush.msrb.mxu1 %v1508_v18 }
 0x1c8   : > { %1728 = vmatpush.msra.mxu3 %v1479_v30 }
 0x1c9   : > { %1687 = vmatpush.msra.mxu2 %v1463_v46  ;;  %1814 = vmatpush.msrb.mxu1 %v1507_v38 }
 0x1ca   : > { %1729 = vmatpush.msra.mxu3 %v1478_v4 }
 0x1cb   : > { %1688 = vmatpush.msra.mxu2 %v1462_v32 }
 0x1cc   : > { %7763 = vrot.lane.b32.xlu1 %v7762_v50, %s8305_s2  ;;  %7768 = vrot.lane.b32.xlu0 %v7767_v43, %s8305_s2  ;;  %v1476_v50 = vld [vmem:[#allocation13 + $0x118] sm:$0xff]  ;;  %v1459_v43 = vld [vmem:[#allocation13 + $0x90] sm:$0xff] }
 0x1cd   : > { %1689 = vmatpush.msra.mxu2 %v1461_v37  ;;  %1730 = vmatpush.msra.mxu3 %v1477_v51 }
 0x1cf   : > { %1690 = vmatpush.msra.mxu2 %v1460_v55  ;;  %1731 = vmatpush.msra.mxu3 %v1476_v50 }
 0x1d1   : > { %1691 = vmatpush.msra.mxu2 %v1459_v43  ;;  %1732 = vmatpush.msra.mxu3 %v1475_v41 }
 0x1d3   : > { %1733 = vmatpush.msra.mxu3 %v1474_v8 }
 0x1d4   : > { %1587 = vrot.lane.b32.xlu1 %v1437_v34, %s8305_s2  ;;  %v1506_v34 = vld [vmem:[#allocation13 + $0x208] sm:$0xff] }
 0x1d5   : > { %1815 = vmatpush.msrb.mxu1 %v1506_v34  ;;  %1734 = vmatpush.msra.mxu3 %v1473_v26 }
 0x1fc   : > { %v1516_v48 = vpop.permute.xlu0 %1515  ;;  %v1522_v61 = vpop.permute.xlu2 %1521 }
 0x1fd   : > { %v1592_v49 = vsel %vm1294_vm5, %v8934_v23, %v1516_v48  ;;  %v1458_v23 = vld [vmem:[#allocation13 + $0x88] sm:$0xff]  ;;  %v1595_v45 = vsel %vm1294_vm5, %v8988_v1, %v1522_v61 }
 0x1fe   : > { %1656 = vmatmul.f32.gmra.mxu1 %v1592_v49  ;;  %1692 = vmatpush.msra.mxu2 %v1458_v23 }
 0x200   : > { %1693 = vmatpush.msra.mxu2 %v1457_v59 }
 0x204   : > { %v1518_v11 = vpop.permute.xlu1 %1517  ;;  %v1524_v19 = vpop.permute.xlu2 %1523 }
 0x205   : > { %v1593_v13 = vsel %vm1294_vm5, %v8952_v39, %v1518_v11  ;;  %v1505_v39 = vld [vmem:[#allocation13 + $0x200] sm:$0xff]  ;;  %v1596_v20 = vsel %vm1294_vm5, %v9006_v40, %v1524_v19 }
 0x206   : > { %1659 = vmatmul.f32.gmra.mxu1 %v1593_v13  ;;  %1776 = vmatmul.f32.vlgmr.msrb.gmra.mxu0 %v1593_v13 }
 0x207   : > { %1816 = vmatpush.msrb.mxu1 %v1505_v39  ;;  %v2025_v39 = vld [vmem:[#allocation16 + $0xd0] sm:$0xff] }
 0x20c   : > { %v1520_v60 = vpop.permute.xlu1 %1519  ;;  %v7739_v22 = vpop.permute.xlu2 %7738 }
 0x20d   : > { %v1594_v17 = vsel %vm1294_vm5, %v8970_v44, %v1520_v60  ;;  %v1386_v44 = vrot.slane %v8884_v12, 2  ;;  %v7740_v40 = vunpack.i.l.bf16 %v7739_v22  ;;  %v7741_v4 = vunpack.i.h.bf16 %v7739_v22  ;;  %v2021_v22 = vld [vmem:[#allocation16 + $0xb0] sm:$0xff] }
 0x20e   : > { %1662 = vmatmul.f32.gmra.mxu1 %v1594_v17  ;;  %1779 = vmatmul.f32.gmra.mxu0 %v1594_v17 }
 0x20f   : > { %v1387_v25 = vsel %vm715_vm4, %v1385_v62, %v1386_v44  ;;  %v1600_v54 = vsel %vm1294_vm5, %v9067_v16, %v7740_v40  ;;  %v2023_v62 = vld [vmem:[#allocation16 + $0xc0] sm:$0xff]  ;;  %v2013_v40 = vld [vmem:[#allocation16 + $0x70] sm:$0xff] }
 0x210   : > { %v2055_v44 = vld [vmem:[#allocation16 + $0x1c0] sm:$0xff] }
 0x214   : > { %v7754_v52 = vpop.permute.xlu2 %7753 }
 0x215   : > { %v7756_v41 = vunpack.i.h.bf16 %v7754_v52 }
 0x216   : > { %1665 = vmatmul.f32.gmra.mxu1 %v1595_v45  ;;  %1782 = vmatmul.f32.gmra.mxu0 %v1595_v45  ;;  %v2057_v45 = vld [vmem:[#allocation16 + $0x1d0] sm:$0xff] }
 0x217   : > { %v1611_v13 = vsel %vm1294_vm5, %v9016_v15, %v7756_v41  ;;  %v2029_v15 = vld [vmem:[#allocation16 + $0xf0] sm:$0xff]  ;;  %v2003_v41 = vld [vmem:[#allocation16 + $0x20] sm:$0xff] }
 0x218   : > { %2293 = vmatpush.msrb.mxu2 %v2029_v15  ;;  %v1999_v15 = vld [vmem:[#allocation16] sm:$0xff] }
 0x21c   : > { %v1586_v37 = vpop.permute.xlu2 %1585 }
 0x21d   : > { %v1615_v16 = vsel %vm1294_vm5, %v9080_v53, %v1586_v37  ;;  %v2041_v37 = vld [vmem:[#allocation16 + $0x150] sm:$0xff] }
 0x21e   : > { %1668 = vmatmul.f32.gmra.mxu1 %v1596_v20  ;;  %1785 = vmatmul.f32.gmra.mxu0 %v1596_v20 }
 0x226   : > { %v7729_v63 = vpop.permute.xlu0 %7728 }
 0x227   : > { %v7731_v27 = vunpack.i.h.bf16 %v7729_v63  ;;  %v7730_v35 = vunpack.i.l.bf16 %v7729_v63  ;;  %v2053_v63 = vld [vmem:[#allocation16 + $0x1b0] sm:$0xff] }
 0x229   : > { %v1597_v1 = vsel %vm1294_vm5, %v9025_v47, %v7730_v35  ;;  %v1599_v28 = vsel %vm1294_vm5, %v1387_v25, %v7731_v27  ;;  %v2017_v35 = vld [vmem:[#allocation16 + $0x90] sm:$0xff] }
 0x22a   : > { %1671 = vmatmul.f32.gmra.mxu1 %v1597_v1  ;;  %1694 = vmatmul.f32.vlgmr.msra.gmra.mxu2 %v1599_v28  ;;  %v2047_v28 = vld [vmem:[#allocation16 + $0x180] sm:$0xff] }
 0x22b   : > { %1788 = vmatmul.f32.gmra.mxu0 %v1597_v1  ;;  %v2015_v1 = vld [vmem:[#allocation16 + $0x80] sm:$0xff] }
 0x22e   : > { %v7734_v9 = vpop.permute.xlu1 %7733  ;;  %v7744_v47 = vpop.permute.xlu0 %7743 }
 0x22f   : > { %v7736_v10 = vunpack.i.h.bf16 %v7734_v9  ;;  %v7735_v46 = vunpack.i.l.bf16 %v7734_v9  ;;  %v7745_v32 = vunpack.i.l.bf16 %v7744_v47  ;;  %v7746_v49 = vunpack.i.h.bf16 %v7744_v47  ;;  %v2093_v9 = vld [vmem:[#allocation16 + $0x2f0] sm:$0xff] }
 0x230   : > { %2375 = vmatpush.msra.mxu0 %v2093_v9  ;;  %v2125_v47 = vld [vmem:[#allocation16 + $0x3f0] sm:$0xff]  ;;  %v2187_v9 = vld [vmem:[#allocation16 + $0x5e0] sm:$0xff] }
 0x231   : > { %v1598_v12 = vsel %vm1294_vm5, %v9051_v58, %v7736_v10  ;;  %v1607_v30 = vsel %vm1294_vm5, %v8945_v29, %v7735_v46  ;;  %v1601_v18 = vsel %vm1294_vm5, %v9023_v56, %v7745_v32  ;;  %v1608_v58 = vsel %vm1294_vm5, %v8963_v42, %v7741_v4  ;;  %v2011_v10 = vld [vmem:[#allocation16 + $0x60] sm:$0xff]  ;;  %v2009_v32 = vld [vmem:[#allocation16 + $0x50] sm:$0xff]  ;;  %2416 = vmatpush.msra.mxu1 %v2125_v47 }
 0x232   : > { %1674 = vmatmul.f32.gmra.mxu1 %v1598_v12  ;;  %1697 = vmatmul.f32.gmra.mxu2 %v1600_v54  ;;  %v1609_v55 = vsel %vm1294_vm5, %v8981_v21, %v7746_v49  ;;  %v7755_v42 = vunpack.i.l.bf16 %v7754_v52  ;;  %v2045_v52 = vld [vmem:[#allocation16 + $0x170] sm:$0xff]  ;;  %v2091_v46 = vld [vmem:[#allocation16 + $0x2e0] sm:$0xff] }
 0x233   : > { %1735 = vmatmul.f32.vlgmr.msra.gmra.mxu3 %v1607_v30  ;;  %1791 = vmatmul.f32.gmra.mxu0 %v1598_v12  ;;  %v2043_v12 = vld [vmem:[#allocation16 + $0x160] sm:$0xff]  ;;  %v2089_v54 = vld [vmem:[#allocation16 + $0x2d0] sm:$0xff] }
 0x234   : > { %2376 = vmatpush.msra.mxu0 %v2091_v46  ;;  %v2087_v4 = vld [vmem:[#allocation16 + $0x2c0] sm:$0xff]  ;;  %v2153_v47 = vld [vmem:[#allocation16 + $0x4d0] sm:$0xff] }
 0x236   : > { %v7749_v48 = vpop.permute.xlu1 %7748  ;;  %v7759_v43 = vpop.permute.xlu0 %7758  ;;  %2377 = vmatpush.msra.mxu0 %v2089_v54 }
 0x237   : > { %v7750_v29 = vunpack.i.l.bf16 %v7749_v48  ;;  %v7751_v53 = vunpack.i.h.bf16 %v7749_v48  ;;  %v7760_v21 = vunpack.i.l.bf16 %v7759_v43  ;;  %v7761_v23 = vunpack.i.h.bf16 %v7759_v43  ;;  %v2085_v48 = vld [vmem:[#allocation16 + $0x2b0] sm:$0xff] }
 0x238   : > { %2378 = vmatpush.msra.mxu0 %v2087_v4  ;;  %v2037_v43 = vld [vmem:[#allocation16 + $0x130] sm:$0xff]  ;;  %v2151_v4 = vld [vmem:[#allocation16 + $0x4c0] sm:$0xff] }
 0x239   : > { %v1602_v51 = vsel %vm1294_vm5, %v9057_v7, %v7750_v29  ;;  %v1610_v38 = vsel %vm1294_vm5, %v8999_v0, %v7751_v53  ;;  %v1612_v34 = vsel %vm1294_vm5, %v9036_v3, %v7761_v23  ;;  %v2027_v3 = vld [vmem:[#allocation16 + $0xe0] sm:$0xff]  ;;  %v2117_v53 = vld [vmem:[#allocation16 + $0x3b0] sm:$0xff] }
 0x23a   : > { %1700 = vmatmul.f32.gmra.mxu2 %v1601_v18  ;;  %7325 = vmatmul.msk.f32.vlgmr.msrb.gmra.mxu1 %vm1294_vm5, %v9023_v56  ;;  %v1603_v56 = vsel %vm1294_vm5, %v9087_v31, %v7755_v42  ;;  %v2123_v18 = vld [vmem:[#allocation16 + $0x3e0] sm:$0xff]  ;;  %v2081_v42 = vld [vmem:[#allocation16 + $0x290] sm:$0xff] }
 0x23b   : > { %1738 = vmatmul.f32.gmra.mxu3 %v1608_v58  ;;  %1794 = vmatmul.f32.gmra.mxu0 %v1615_v16  ;;  %v9194_v27 = vpop.f32.mrf.mxu1  ;;  %v2007_v58 = vld [vmem:[#allocation16 + $0x40] sm:$0xff]  ;;  %v2121_v16 = vld [vmem:[#allocation16 + $0x3d0] sm:$0xff] }
 0x23c   : > { %2294 = vmatpush.msrb.mxu2 %v2027_v3  ;;  %2417 = vmatpush.msra.mxu1 %v2123_v18  ;;  %v2083_v29 = vld [vmem:[#allocation16 + $0x2a0] sm:$0xff]  ;;  %v1880_v3 = vld [vmem:[#allocation4 + $0x8] sm:$0x3] }
 0x23d   : > { %2379 = vmatpush.msra.mxu0 %v2085_v48  ;;  %v2035_v23 = vld [vmem:[#allocation16 + $0x120] sm:$0xff] }
 0x23e   : > { %v7764_v50 = vpop.permute.xlu1 %7763  ;;  %v7769_v8 = vpop.permute.xlu0 %7768  ;;  %2295 = vmatpush.msrb.mxu2 %v2025_v39  ;;  %2418 = vmatpush.msra.mxu1 %v2121_v16  ;;  %v2105_v39 = vld [vmem:[#allocation16 + $0x350] sm:$0xff] }
 0x23f   : > { %v7770_v26 = vunpack.i.l.bf16 %v7769_v8  ;;  %v7766_v60 = vunpack.i.h.bf16 %v7764_v50  ;;  %v7771_v19 = vunpack.i.h.bf16 %v7769_v8  ;;  %2380 = vmatpush.msra.mxu0 %v2083_v29  ;;  %v2109_v8 = vld [vmem:[#allocation16 + $0x370] sm:$0xff] }
 0x240   : > { %2296 = vmatpush.msrb.mxu2 %v2023_v62 }
 0x241   : > { %v1606_v17 = vsel %vm1294_vm5, %v9104_v57, %v7770_v26  ;;  %v1613_v61 = vsel %vm1294_vm5, %v9064_v14, %v7766_v60  ;;  %v1614_v20 = vsel %vm1294_vm5, %v9090_v36, %v7771_v19  ;;  %v1438_v14 = vrot.slane %v9117_v5, 2  ;;  %v2019_v36 = vld [vmem:[#allocation16 + $0xa0] sm:$0xff]  ;;  %2381 = vmatpush.msra.mxu0 %v2081_v42  ;;  %v9205_v60 = vld [vmem:[#allocation4] sm:$0xff] }
 0x242   : > { %1703 = vmatmul.f32.gmra.mxu2 %v1602_v51  ;;  %7326 = vmatmul.msk.f32.gmra.mxu1 %vm1294_vm5, %v9057_v7  ;;  %v1604_v7 = vsel %vm1294_vm5, %v9048_v6, %v7760_v21  ;;  %v2119_v51 = vld [vmem:[#allocation16 + $0x3c0] sm:$0xff]  ;;  %v2077_v21 = vld [vmem:[#allocation16 + $0x270] sm:$0xff] }
 0x243   : > { %1741 = vmatmul.f32.gmra.mxu3 %v1609_v55  ;;  %2297 = vmatpush.msrb.mxu2 %v2021_v22  ;;  %v2039_v55 = vld [vmem:[#allocation16 + $0x140] sm:$0xff]  ;;  %v2101_v22 = vld [vmem:[#allocation16 + $0x330] sm:$0xff] }
 0x244   : > { %2419 = vmatpush.msra.mxu1 %v2119_v51  ;;  %v2107_v26 = vld [vmem:[#allocation16 + $0x360] sm:$0xff]  ;;  %v2149_v42 = vld [vmem:[#allocation16 + $0x4b0] sm:$0xff] }
 0x245   : > { %2298 = vmatpush.msrb.mxu2 %v2019_v36  ;;  %v2067_v19 = vld [vmem:[#allocation16 + $0x220] sm:$0xff] }
 0x246   : > { %v1588_v11 = vpop.permute.xlu1 %1587  ;;  %2420 = vmatpush.msra.mxu1 %v2117_v53  ;;  %v2181_v53 = vld [vmem:[#allocation16 + $0x5b0] sm:$0xff] }
 0x247   : > { %v1616_v0 = vsel %vm1294_vm5, %v9117_v5, %v1588_v11  ;;  %v2049_v5 = vld [vmem:[#allocation16 + $0x190] sm:$0xff]  ;;  %2299 = vmatpush.msrb.mxu2 %v2017_v35  ;;  %v2075_v11 = vld [vmem:[#allocation16 + $0x260] sm:$0xff] }
 0x248   : > { %1797 = vmatmul.f32.gmra.mxu0 %v1616_v0  ;;  %v2111_v0 = vld [vmem:[#allocation16 + $0x380] sm:$0xff]  ;;  %v2097_v35 = vld [vmem:[#allocation16 + $0x310] sm:$0xff] }
 0x249   : > { %2300 = vmatpush.msrb.mxu2 %v2015_v1 }
 0x24a   : > { %1706 = vmatmul.f32.gmra.mxu2 %v1603_v56  ;;  %7327 = vmatmul.msk.f32.gmra.mxu1 %vm1294_vm5, %v9087_v31  ;;  %v7765_v31 = vunpack.i.l.bf16 %v7764_v50  ;;  %v2005_v50 = vld [vmem:[#allocation16 + $0x30] sm:$0xff]  ;;  %v2079_v56 = vld [vmem:[#allocation16 + $0x280] sm:$0xff] }
 0x24b   : > { %1744 = vmatmul.f32.gmra.mxu3 %v1610_v38  ;;  %2301 = vmatpush.msrb.mxu2 %v2013_v40  ;;  %v2115_v38 = vld [vmem:[#allocation16 + $0x3a0] sm:$0xff]  ;;  %v2189_v40 = vld [vmem:[#allocation16 + $0x5f0] sm:$0xff] }
 0x24c   : > { %v1605_v59 = vsel %vm1294_vm5, %v9084_v2, %v7765_v31  ;;  %2382 = vmatpush.msra.mxu0 %v2079_v56  ;;  %2421 = vmatpush.msra.mxu1 %v2115_v38  ;;  %v2073_v31 = vld [vmem:[#allocation16 + $0x250] sm:$0xff]  ;;  %v2179_v56 = vld [vmem:[#allocation16 + $0x5a0] sm:$0xff] }
 0x24d   : > { %2302 = vmatpush.msrb.mxu2 %v2011_v10 }
 0x24e   : > { %2383 = vmatpush.msra.mxu0 %v2077_v21 }
 0x24f   : > { %2303 = vmatpush.msrb.mxu2 %v2009_v32  ;;  %v2185_v32 = vld [vmem:[#allocation16 + $0x5d0] sm:$0xff] }
 0x250   : > { %2384 = vmatpush.msra.mxu0 %v2075_v11 }
 0x251   : > { %2304 = vmatpush.msrb.mxu2 %v2007_v58 }
 0x252   : > { %1709 = vmatmul.f32.gmra.mxu2 %v1604_v7  ;;  %7328 = vmatmul.msk.f32.gmra.mxu1 %vm1294_vm5, %v9048_v6  ;;  %v2061_v6 = vld [vmem:[#allocation16 + $0x1f0] sm:$0xff] }
 0x253   : > { %1747 = vmatmul.f32.gmra.mxu3 %v1611_v13  ;;  %2305 = vmatpush.msrb.mxu2 %v2005_v50  ;;  %v2113_v7 = vld [vmem:[#allocation16 + $0x390] sm:$0xff]  ;;  %v2147_v50 = vld [vmem:[#allocation16 + $0x4a0] sm:$0xff] }
 0x254   : > { %2334 = vmatpush.msrb.mxu3 %v2061_v6  ;;  %2422 = vmatpush.msra.mxu1 %v2113_v7  ;;  %v2033_v6 = vld [vmem:[#allocation16 + $0x110] sm:$0xff] }
 0x255   : > { %2306 = vmatpush.msrb.mxu2 %v2003_v41  ;;  %2385 = vmatpush.msra.mxu0 %v2073_v31 }
 0x256   : > { %2423 = vmatpush.msra.mxu1 %v2111_v0 }
 0x258   : > { %2424 = vmatpush.msra.mxu1 %v2109_v8  ;;  %v2143_v8 = vld [vmem:[#allocation16 + $0x480] sm:$0xff] }
 0x25a   : > { %1712 = vmatmul.f32.gmra.mxu2 %v1605_v59  ;;  %7329 = vmatmul.msk.f32.gmra.mxu1 %vm1294_vm5, %v9084_v2  ;;  %v2059_v2 = vld [vmem:[#allocation16 + $0x1e0] sm:$0xff]  ;;  %v2001_v59 = vld [vmem:[#allocation16 + $0x10] sm:$0xff] }
 0x25b   : > { %1750 = vmatmul.f32.gmra.mxu3 %v1612_v34  ;;  %2307 = vmatpush.msrb.mxu2 %v2001_v59  ;;  %v2071_v34 = vld [vmem:[#allocation16 + $0x240] sm:$0xff]  ;;  %v2177_v59 = vld [vmem:[#allocation16 + $0x590] sm:$0xff] }
 0x25c   : > { %2335 = vmatpush.msrb.mxu3 %v2059_v2  ;;  %2386 = vmatpush.msra.mxu0 %v2071_v34  ;;  %v2031_v2 = vld [vmem:[#allocation16 + $0x100] sm:$0xff] }
 0x25d   : > { %2308 = vmatpush.msrb.mxu2 %v1999_v15  ;;  %2425 = vmatpush.msra.mxu1 %v2107_v26  ;;  %v2175_v15 = vld [vmem:[#allocation16 + $0x580] sm:$0xff] }
 0x25e   : > { %2336 = vmatpush.msrb.mxu3 %v2057_v45  ;;  %v1916_v45 = vrot.slane %v1880_v3, 1 }
 0x25f   : > { %2426 = vmatpush.msra.mxu1 %v2105_v39 }
 0x260   : > { %2337 = vmatpush.msrb.mxu3 %v2055_v44  ;;  %v1947_v44 = vrot.slane %v9205_v60, 2 }
 0x262   : > { %1715 = vmatmul.f32.gmra.mxu2 %v1606_v17  ;;  %7330 = vmatmul.msk.f32.gmra.mxu1 %vm1294_vm5, %v9104_v57  ;;  %v1439_v57 = vrot.slane %v9119_v24, 2  ;;  %v1915_v17 = vrot.slane %v9205_v60, 1 }
 0x263   : > { %1753 = vmatmul.f32.gmra.mxu3 %v1613_v61  ;;  %v2069_v61 = vld [vmem:[#allocation16 + $0x230] sm:$0xff] }
 0x264   : > { %v1440_v25 = vsel %vm715_vm4, %v1438_v14, %v1439_v57  ;;  %2338 = vmatpush.msrb.mxu3 %v2053_v63  ;;  %2387 = vmatpush.msra.mxu0 %v2069_v61  ;;  %v2103_v14 = vld [vmem:[#allocation16 + $0x340] sm:$0xff]  ;;  %v2065_v57 = vld [vmem:[#allocation16 + $0x210] sm:$0xff]  ;;  %v1948_v63 = vrot.slane %v1880_v3, 2 }
 0x265   : > { %2427 = vmatpush.msra.mxu1 %v2103_v14  ;;  %v2221_v61 = vld [vmem:[#allocation16 + $0x6f0] sm:$0xff] }
 0x266   : > { %2388 = vmatpush.msra.mxu0 %v2067_v19  ;;  %v9219_v36 = vsel %vm715_vm4, %v1947_v44, %v1948_v63 }
 0x267   : > { %2428 = vmatpush.msra.mxu1 %v2101_v22 }
 0x268   : > { %2389 = vmatpush.msra.mxu0 %v2065_v57 }
 0x26a   : > { %7331 = vmatmul.msk.f32.gmra.mxu1 %vm1294_vm5, %v9107_v33  ;;  %v2051_v33 = vld [vmem:[#allocation16 + $0x1a0] sm:$0xff]  ;;  %2309 = vmatmul.f32.vlgmr.msrb.gmra.mxu2 %v9205_v60  ;;  %v2142_v60 = vld [vmem:[#allocation16 + $0x478] sm:$0xff] }
 0x26b   : > { %1756 = vmatmul.f32.gmra.mxu3 %v1614_v20  ;;  %v9212_v20 = vsel %vm690_vm3, %v1915_v17, %v1916_v45  ;;  %v2219_v45 = vld [vmem:[#allocation16 + $0x6e0] sm:$0xff] }
 0x26c   : > { %2339 = vmatpush.msrb.mxu3 %v2051_v33  ;;  %v2099_v33 = vld [vmem:[#allocation16 + $0x320] sm:$0xff] }
 0x26d   : > { %2429 = vmatpush.msra.mxu1 %v2099_v33  ;;  %v2141_v33 = vld [vmem:[#allocation16 + $0x470] sm:$0xff] }
 0x26e   : > { %2340 = vmatpush.msrb.mxu3 %v2049_v5  ;;  %v2095_v5 = vld [vmem:[#allocation16 + $0x300] sm:$0xff] }
 0x26f   : > { %2430 = vmatpush.msra.mxu1 %v2097_v35  ;;  %v2173_v35 = vld [vmem:[#allocation16 + $0x570] sm:$0xff] }
 0x270   : > { %2341 = vmatpush.msrb.mxu3 %v2047_v28  ;;  %v2157_v28 = vld [vmem:[#allocation16 + $0x4f0] sm:$0xff] }
 0x271   : > { %2431 = vmatpush.msra.mxu1 %v2095_v5  ;;  %2457 = vmatpush.msra.mxu2 %v2157_v28  ;;  %v2139_v28 = vld [vmem:[#allocation16 + $0x460] sm:$0xff] }
 0x272   : > { %7332 = vmatmul.msk.f32.gmra.mxu1 %vm1294_vm5, %v1440_v25  ;;  %2342 = vmatpush.msrb.mxu3 %v2045_v52  ;;  %v2063_v25 = vld [vmem:[#allocation16 + $0x200] sm:$0xff] }
 0x273   : > { %2390 = vmatpush.msra.mxu0 %v2063_v25  ;;  %v2155_v52 = vld [vmem:[#allocation16 + $0x4e0] sm:$0xff] }
 0x274   : > { %2343 = vmatpush.msrb.mxu3 %v2043_v12  ;;  %2391 = vmatmul.f32.vlgmr.msra.gmra.mxu0 %v9219_v36  ;;  %v9224_v12 = vld [vmem:[#allocation14] ss:$0 sm:$0xff] }
 0x275   : > { %2458 = vmatpush.msra.mxu2 %v2155_v52  ;;  %v1655_v18 = vadd.f32 %v9224_v12, %v9194_v27  ;;  %2539 = vmatpush.msrb.mxu0 %v2221_v61  ;;  %v2217_v52 = vld [vmem:[#allocation16 + $0x6d0] sm:$0xff] }
 0x276   : > { %2344 = vmatpush.msrb.mxu3 %v2041_v37  ;;  %v2183_v37 = vld [vmem:[#allocation16 + $0x5c0] sm:$0xff] }
 0x277   : > { %2459 = vmatpush.msra.mxu2 %v2153_v47  ;;  %2540 = vmatpush.msrb.mxu0 %v2219_v45  ;;  %v2215_v47 = vld [vmem:[#allocation16 + $0x6c0] sm:$0xff] }
 0x278   : > { %2345 = vmatpush.msrb.mxu3 %v2039_v55 }
 0x279   : > { %2460 = vmatpush.msra.mxu2 %v2151_v4  ;;  %2541 = vmatpush.msrb.mxu0 %v2217_v52  ;;  %v2131_v52 = vld [vmem:[#allocation16 + $0x420] sm:$0xff] }
 0x27a   : > { %2346 = vmatpush.msrb.mxu3 %v2037_v43 }
 0x27b   : > { %v9197_v24 = vpop.f32.mrf.mxu1  ;;  %2461 = vmatpush.msra.mxu2 %v2149_v42  ;;  %2542 = vmatpush.msrb.mxu0 %v2215_v47 }
 0x27c   : > { %2347 = vmatpush.msrb.mxu3 %v2035_v23  ;;  %v1658_v38 = vadd.f32 %v9224_v12, %v9197_v24  ;;  %v2145_v23 = vld [vmem:[#allocation16 + $0x490] sm:$0xff] }
 0x27d   : > { %2462 = vmatpush.msra.mxu2 %v2147_v50 }
 0x27e   : > { %2348 = vmatpush.msrb.mxu3 %v2033_v6 }
 0x27f   : > { %2463 = vmatpush.msra.mxu2 %v2145_v23 }
 0x280   : > { %2349 = vmatpush.msrb.mxu3 %v2031_v2 }
 0x281   : > { %2350 = vmatmul.f32.vlgmr.msrb.gmra.mxu3 %v9212_v20  ;;  %2464 = vmatpush.msra.mxu2 %v2143_v8  ;;  %v2247_v8 = vld [vmem:[#allocation16 + $0x7c0] sm:$0xff] }
 0x282   : > { %2498 = vmatpush.msra.mxu3 %v2189_v40  ;;  %v2171_v40 = vld [vmem:[#allocation16 + $0x560] sm:$0xff] }
 0x283   : > { %v9199_v30 = vpop.f32.mrf.mxu1  ;;  %v1777_v10 = vpop.f32.mrf.mxu0  ;;  %2465 = vmatpush.msra.mxu2 %v2141_v33 }
 0x284   : > { %2499 = vmatpush.msra.mxu3 %v2187_v9  ;;  %v1661_v24 = vadd.f32 %v9224_v12, %v9199_v30 }
 0x285   : > { %2466 = vmatpush.msra.mxu2 %v2139_v28 }
 0x286   : > { %2500 = vmatpush.msra.mxu3 %v2185_v32 }
 0x288   : > { %2501 = vmatpush.msra.mxu3 %v2183_v37 }
 0x28a   : > { %2502 = vmatpush.msra.mxu3 %v2181_v53 }
 0x28b   : > { %v9201_v49 = vpop.f32.mrf.mxu1  ;;  %v1780_v16 = vpop.f32.mrf.mxu0 }
 0x28c   : > { %2503 = vmatpush.msra.mxu3 %v2179_v56  ;;  %v1664_v37 = vadd.f32 %v9224_v12, %v9201_v49  ;;  %v2211_v56 = vld [vmem:[#allocation16 + $0x6a0] sm:$0xff] }
 0x28e   : > { %2504 = vmatpush.msra.mxu3 %v2177_v59 }
 0x290   : > { %2505 = vmatpush.msra.mxu3 %v2175_v15 }
 0x292   : > { %2506 = vmatpush.msra.mxu3 %v2173_v35 }
 0x293   : > { %v9203_v13 = vpop.f32.mrf.mxu1  ;;  %v1783_v34 = vpop.f32.mrf.mxu0 }
 0x294   : > { %2507 = vmatpush.msra.mxu3 %v2171_v40  ;;  %v2165_v40 = vld [vmem:[#allocation16 + $0x530] sm:$0xff] }
 0x29b   : > { %v9215_v62 = vpop.f32.mrf.mxu1  ;;  %v1786_v32 = vpop.f32.mrf.mxu0 }
 0x2a7   : > { %v9222_v1 = vpop.f32.mrf.mxu1 }
 0x2a8   : > { %v1789_v15 = vpop.f32.mrf.mxu0 }
 0x2ad   : > { %v1695_v46 = vpop.f32.mrf.mxu2 }
 0x2ae   : > { %v1696_v48 = vadd.f32 %v1695_v46, %v1655_v18  ;;  %v2253_v46 = vld [vmem:[#allocation16 + $0x7f0] sm:$0xff] }
 0x2af   : > { %v9226_v54 = vpop.f32.mrf.mxu1  ;;  %2580 = vmatpush.msrb.mxu1 %v2253_v46  ;;  %v2163_v46 = vld [vmem:[#allocation16 + $0x520] sm:$0xff] }
 0x2b5   : > { %v1698_v58 = vpop.f32.mrf.mxu2 }
 0x2b6   : > { %v1736_v29 = vpop.f32.mrf.mxu3  ;;  %v1699_v27 = vadd.f32 %v1698_v58, %v1658_v38  ;;  %v2213_v58 = vld [vmem:[#allocation16 + $0x6b0] sm:$0xff] }
 0x2b7   : > { %v1737_v51 = vadd.f32 %v1736_v29, %v1696_v48  ;;  %v1818_v55 = vpop.f32.mrf.mxu1  ;;  %v2251_v48 = vld [vmem:[#allocation16 + $0x7e0] sm:$0xff]  ;;  %2543 = vmatpush.msrb.mxu0 %v2213_v58  ;;  %v2129_v58 = vld [vmem:[#allocation16 + $0x410] sm:$0xff] }
 0x2b8   : > { %2581 = vmatpush.msrb.mxu1 %v2251_v48 }
 0x2b9   : > { %v1778_v43 = vadd.f32 %v1777_v10, %v1737_v51  ;;  %2544 = vmatpush.msrb.mxu0 %v2211_v56 }
 0x2bb   : > { %v1819_v21 = vadd.f32 %v1818_v55, %v1778_v43  ;;  %v2249_v55 = vld [vmem:[#allocation16 + $0x7d0] sm:$0xff] }
 0x2bc   : > { %2582 = vmatpush.msrb.mxu1 %v2249_v55  ;;  %v2237_v55 = vld [vmem:[#allocation16 + $0x770] sm:$0xff] }
 0x2bd   : > { %v1842_v41 = vmax.f32 %v1819_v21, 0.0  ;;  %v1701_v7 = vpop.f32.mrf.mxu2 }
 0x2be   : > { %v1739_v11 = vpop.f32.mrf.mxu3  ;;  %v1702_v3 = vadd.f32 %v1701_v7, %v1661_v24  ;;  %v2169_v7 = vld [vmem:[#allocation16 + $0x550] sm:$0xff]  ;;  %2583 = vmatpush.msrb.mxu1 %v2247_v8 }
 0x2bf   : > { %1871 = vst [vmem:[#allocation4 + $0x11] sm:$0xff] %v1842_v41  ;;  %v1740_v0 = vadd.f32 %v1739_v11, %v1699_v27  ;;  %v1821_v31 = vpop.f32.mrf.mxu1  ;;  %v2137_v41 = vld [vmem:[#allocation16 + $0x450] sm:$0xff]  ;;  %2508 = vmatpush.msra.mxu3 %v2169_v7  ;;  %v2159_v7 = vld [vmem:[#allocation16 + $0x500] sm:$0xff] }
 0x2c0   : > { %2467 = vmatpush.msra.mxu2 %v2137_v41  ;;  %v2133_v24 = vld [vmem:[#allocation16 + $0x430] sm:$0xff] }
 0x2c1   : > { %v1781_v6 = vadd.f32 %v1780_v16, %v1740_v0  ;;  %v2135_v0 = vld [vmem:[#allocation16 + $0x440] sm:$0xff] }
 0x2c2   : > { %2468 = vmatpush.msra.mxu2 %v2135_v0 }
 0x2c3   : > { %v1822_v26 = vadd.f32 %v1821_v31, %v1781_v6  ;;  %v2167_v31 = vld [vmem:[#allocation16 + $0x540] sm:$0xff] }
 0x2c4   : > { %2509 = vmatpush.msra.mxu3 %v2167_v31  ;;  %2469 = vmatpush.msra.mxu2 %v2133_v24 }
 0x2c5   : > { %v1843_v2 = vmax.f32 %v1822_v26, 0.0  ;;  %v1704_v39 = vpop.f32.mrf.mxu2  ;;  %v1667_v26 = vadd.f32 %v9224_v12, %v9203_v13  ;;  %v2241_v13 = vld [vmem:[#allocation16 + $0x790] sm:$0xff] }
 0x2c6   : > { %v1742_v19 = vpop.f32.mrf.mxu3  ;;  %v9234_v14 = vld [vmem:[#allocation4 + $0x10] sm:$0xff]  ;;  %v1882_v57 = vld [vmem:[#allocation4 + $0x18] sm:$0x3]  ;;  %v1705_v16 = vadd.f32 %v1704_v39, %v1664_v37  ;;  %2510 = vmatpush.msra.mxu3 %v2165_v40  ;;  %2470 = vmatpush.msra.mxu2 %v2131_v52 }
 0x2c7   : > { %1872 = vst [vmem:[#allocation4 + $0x21] sm:$0xff] %v1843_v2  ;;  %v1743_v44 = vadd.f32 %v1742_v19, %v1702_v3  ;;  %2312 = vmatmul.f32.gmra.mxu2 %v9234_v14  ;;  %2432 = vmatmul.f32.vlgmr.msra.gmra.mxu1 %v9234_v14  ;;  %v1824_v22 = vpop.f32.mrf.mxu1  ;;  %v1918_v30 = vrot.slane %v9234_v14, 1  ;;  %v1919_v63 = vrot.slane %v1882_v57, 1  ;;  %v1950_v25 = vrot.slane %v9234_v14, 2  ;;  %v2245_v3 = vld [vmem:[#allocation16 + $0x7b0] sm:$0xff]  ;;  %v2207_v2 = vld [vmem:[#allocation16 + $0x680] sm:$0xff] }
 0x2c8   : > { %v1951_v5 = vrot.slane %v1882_v57, 2  ;;  %v2243_v19 = vld [vmem:[#allocation16 + $0x7a0] sm:$0xff]  ;;  %v2205_v57 = vld [vmem:[#allocation16 + $0x670] sm:$0xff]  ;;  %2584 = vmatpush.msrb.mxu1 %v2245_v3  ;;  %2511 = vmatpush.msra.mxu3 %v2163_v46 }
 0x2c9   : > { %v1784_v9 = vadd.f32 %v1783_v34, %v1743_v44  ;;  %v9241_v10 = vsel %vm690_vm3, %v1918_v30, %v1919_v63  ;;  %v2209_v34 = vld [vmem:[#allocation16 + $0x690] sm:$0xff]  ;;  %v2203_v37 = vld [vmem:[#allocation16 + $0x660] sm:$0xff]  ;;  %2471 = vmatpush.msra.mxu2 %v2129_v58 }
 0x2ca   : > { %2353 = vmatmul.f32.gmra.mxu3 %v9241_v10  ;;  %v9245_v4 = vsel %vm715_vm4, %v1950_v25, %v1951_v5  ;;  %2545 = vmatpush.msrb.mxu0 %v2209_v34  ;;  %v2197_v34 = vld [vmem:[#allocation16 + $0x630] sm:$0xff]  ;;  %v2227_v58 = vld [vmem:[#allocation16 + $0x720] sm:$0xff] }
 0x2cb   : > { %v1825_v18 = vadd.f32 %v1824_v22, %v1784_v9  ;;  %2394 = vmatmul.f32.gmra.mxu0 %v9245_v4  ;;  %2585 = vmatpush.msrb.mxu1 %v2243_v19  ;;  %v2231_v19 = vld [vmem:[#allocation16 + $0x740] sm:$0xff] }
 0x2cc   : > { %2546 = vmatpush.msrb.mxu0 %v2207_v2  ;;  %v2195_v2 = vld [vmem:[#allocation16 + $0x620] sm:$0xff] }
 0x2cd   : > { %v1844_v29 = vmax.f32 %v1825_v18, 0.0  ;;  %v1707_v51 = vpop.f32.mrf.mxu2  ;;  %v2239_v18 = vld [vmem:[#allocation16 + $0x780] sm:$0xff]  ;;  %2586 = vmatpush.msrb.mxu1 %v2241_v13 }
 0x2ce   : > { %v1745_v42 = vpop.f32.mrf.mxu3  ;;  %v9250_v53 = vld [vmem:[#allocation4 + $0x20] sm:$0xff]  ;;  %v1884_v50 = vld [vmem:[#allocation4 + $0x28] sm:$0x3]  ;;  %v1708_v39 = vadd.f32 %v1707_v51, %v1667_v26  ;;  %2547 = vmatpush.msrb.mxu0 %v2205_v57  ;;  %v1673_v57 = vadd.f32 %v9224_v12, %v9222_v1  ;;  %v2283_v13 = vld [vmem:[#allocation16 + $0x8e0] sm:$0xff] }
 0x2cf   : > { %1873 = vst [vmem:[#allocation4 + $0x31] sm:$0xff] %v1844_v29  ;;  %v1746_v49 = vadd.f32 %v1745_v42, %v1705_v16  ;;  %2315 = vmatmul.f32.gmra.mxu2 %v9250_v53  ;;  %2435 = vmatmul.f32.gmra.mxu1 %v9250_v53  ;;  %v1827_v43 = vpop.f32.mrf.mxu1  ;;  %v1921_v38 = vrot.slane %v9250_v53, 1  ;;  %v1922_v21 = vrot.slane %v1884_v50, 1  ;;  %v1953_v27 = vrot.slane %v9250_v53, 2  ;;  %v2201_v51 = vld [vmem:[#allocation16 + $0x650] sm:$0xff] }
 0x2d0   : > { %v1954_v11 = vrot.slane %v1884_v50, 2  ;;  %v1670_v16 = vadd.f32 %v9224_v12, %v9215_v62  ;;  %v2161_v42 = vld [vmem:[#allocation16 + $0x510] sm:$0xff]  ;;  %v1792_v50 = vpop.f32.mrf.mxu0  ;;  %2548 = vmatpush.msrb.mxu0 %v2203_v37  ;;  %2587 = vmatpush.msrb.mxu1 %v2239_v18 }
 0x2d1   : > { %v1787_v23 = vadd.f32 %v1786_v32, %v1746_v49  ;;  %v9257_v59 = vsel %vm690_vm3, %v1921_v38, %v1922_v21  ;;  %2512 = vmatpush.msra.mxu3 %v2161_v42  ;;  %v2235_v38 = vld [vmem:[#allocation16 + $0x760] sm:$0xff]  ;;  %v2233_v26 = vld [vmem:[#allocation16 + $0x750] sm:$0xff] }
 0x2d2   : > { %2356 = vmatmul.f32.gmra.mxu3 %v9257_v59  ;;  %v9261_v6 = vsel %vm715_vm4, %v1953_v27, %v1954_v11  ;;  %v2127_v21 = vld [vmem:[#allocation16 + $0x400] sm:$0xff]  ;;  %2549 = vmatpush.msrb.mxu0 %v2201_v51 }
 0x2d3   : > { %v1828_v61 = vadd.f32 %v1827_v43, %v1787_v23  ;;  %2397 = vmatmul.f32.gmra.mxu0 %v9261_v6  ;;  %v2199_v43 = vld [vmem:[#allocation16 + $0x640] sm:$0xff]  ;;  %2588 = vmatpush.msrb.mxu1 %v2237_v55 }
 0x2d4   : > { %2550 = vmatpush.msrb.mxu0 %v2199_v43  ;;  %2472 = vmatpush.msra.mxu2 %v2127_v21  ;;  %v2223_v43 = vld [vmem:[#allocation16 + $0x700] sm:$0xff] }
 0x2d5   : > { %v1845_v45 = vmax.f32 %v1828_v61, 0.0  ;;  %v1710_v44 = vpop.f32.mrf.mxu2  ;;  %2589 = vmatpush.msrb.mxu1 %v2235_v38  ;;  %2513 = vmatpush.msra.mxu3 %v2159_v7  ;;  %v1676_v38 = vadd.f32 %v9224_v12, %v9226_v54  ;;  %v2024_v7 = vld [vmem:[#allocation16 + $0xc8] sm:$0xff] }
 0x2d6   : > { %v1748_v22 = vpop.f32.mrf.mxu3  ;;  %v9266_v30 = vld [vmem:[#allocation4 + $0x30] sm:$0xff]  ;;  %v1886_v63 = vld [vmem:[#allocation4 + $0x38] sm:$0x3]  ;;  %v1711_v56 = vadd.f32 %v1710_v44, %v1670_v16  ;;  %2551 = vmatpush.msrb.mxu0 %v2197_v34  ;;  %v2281_v16 = vld [vmem:[#allocation16 + $0x8d0] sm:$0xff] }
 0x2d7   : > { %1874 = vst [vmem:[#allocation4 + $0x41] sm:$0xff] %v1845_v45  ;;  %v1749_v25 = vadd.f32 %v1748_v22, %v1708_v39  ;;  %2318 = vmatmul.f32.gmra.mxu2 %v9266_v30  ;;  %2438 = vmatmul.f32.gmra.mxu1 %v9266_v30  ;;  %v1830_v33 = vpop.f32.mrf.mxu1  ;;  %v1924_v35 = vrot.slane %v9266_v30, 1  ;;  %v1925_v5 = vrot.slane %v1886_v63, 1  ;;  %v1956_v28 = vrot.slane %v9266_v30, 2  ;;  %v2285_v39 = vld [vmem:[#allocation16 + $0x8f0] sm:$0xff] }
 0x2d8   : > { %v1957_v9 = vrot.slane %v1886_v63, 2  ;;  %2590 = vmatpush.msrb.mxu1 %v2233_v26  ;;  %v2193_v22 = vld [vmem:[#allocation16 + $0x610] sm:$0xff]  ;;  %v2030_v63 = vld [vmem:[#allocation16 + $0xf8] sm:$0xff]  ;;  %2552 = vmatpush.msrb.mxu0 %v2195_v2 }
 0x2d9   : > { %v1790_v47 = vadd.f32 %v1789_v15, %v1749_v25  ;;  %v9273_v32 = vsel %vm690_vm3, %v1924_v35, %v1925_v5  ;;  %2621 = vmatpush.msrb.mxu2 %v2285_v39  ;;  %v2229_v35 = vld [vmem:[#allocation16 + $0x730] sm:$0xff]  ;;  %v2191_v5 = vld [vmem:[#allocation16 + $0x600] sm:$0xff]  ;;  %2662 = vmatpush.msrb.mxu3 %v2030_v63 }
 0x2da   : > { %2359 = vmatmul.f32.gmra.mxu3 %v9273_v32  ;;  %v9277_v48 = vsel %vm715_vm4, %v1956_v28, %v1957_v9  ;;  %2591 = vmatpush.msrb.mxu1 %v2231_v19  ;;  %v1795_v28 = vpop.f32.mrf.mxu0  ;;  %v2028_v9 = vld [vmem:[#allocation16 + $0xe8] sm:$0xff]  ;;  %v2277_v26 = vld [vmem:[#allocation16 + $0x8b0] sm:$0xff]  ;;  %v2275_v63 = vld [vmem:[#allocation16 + $0x8a0] sm:$0xff] }
 0x2db   : > { %v1831_v29 = vadd.f32 %v1830_v33, %v1790_v47  ;;  %2400 = vmatmul.f32.gmra.mxu0 %v9277_v48  ;;  %2622 = vmatpush.msrb.mxu2 %v2283_v13  ;;  %v2020_v13 = vld [vmem:[#allocation16 + $0xa8] sm:$0xff] }
 0x2dc   : > { %2553 = vmatpush.msrb.mxu0 %v2193_v22  ;;  %2592 = vmatpush.msrb.mxu1 %v2229_v35  ;;  %v2022_v22 = vld [vmem:[#allocation16 + $0xb8] sm:$0xff] }
 0x2dd   : > { %v1846_v49 = vmax.f32 %v1831_v29, 0.0  ;;  %v1713_v15 = vpop.f32.mrf.mxu2  ;;  %2663 = vmatpush.msrb.mxu3 %v2028_v9  ;;  %2623 = vmatpush.msrb.mxu2 %v2281_v16  ;;  %v2273_v9 = vld [vmem:[#allocation16 + $0x890] sm:$0xff] }
 0x2de   : > { %v1751_v27 = vpop.f32.mrf.mxu3  ;;  %v9282_v41 = vld [vmem:[#allocation4 + $0x40] sm:$0xff]  ;;  %v1888_v62 = vld [vmem:[#allocation4 + $0x48] sm:$0x3]  ;;  %v1714_v25 = vadd.f32 %v1713_v15, %v1673_v57  ;;  %2554 = vmatpush.msrb.mxu0 %v2191_v5  ;;  %2593 = vmatpush.msrb.mxu1 %v2227_v58  ;;  %v2016_v58 = vld [vmem:[#allocation16 + $0x88] sm:$0xff] }
 0x2df   : > { %1875 = vst [vmem:[#allocation4 + $0x51] sm:$0xff] %v1846_v49  ;;  %v1752_v11 = vadd.f32 %v1751_v27, %v1711_v56  ;;  %2321 = vmatmul.f32.gmra.mxu2 %v9282_v41  ;;  %2441 = vmatmul.f32.gmra.mxu1 %v9282_v41  ;;  %v1833_v0 = vpop.f32.mrf.mxu1  ;;  %v1927_v31 = vrot.slane %v9282_v41, 1  ;;  %v1928_v23 = vrot.slane %v1888_v62, 1  ;;  %v1959_v8 = vrot.slane %v9282_v41, 2  ;;  %v2026_v27 = vld [vmem:[#allocation16 + $0xd8] sm:$0xff] }
 0x2e0   : > { %v1960_v24 = vrot.slane %v1888_v62, 2  ;;  %v2279_v62 = vld [vmem:[#allocation16 + $0x8c0] sm:$0xff]  ;;  %2664 = vmatpush.msrb.mxu3 %v2026_v27  ;;  %v2094_v27 = vld [vmem:[#allocation16 + $0x2f8] sm:$0xff] }
 0x2e1   : > { %v1793_v61 = vadd.f32 %v1792_v50, %v1752_v11  ;;  %v9289_v3 = vsel %vm690_vm3, %v1927_v31, %v1928_v23  ;;  %v2225_v50 = vld [vmem:[#allocation16 + $0x710] sm:$0xff]  ;;  %2624 = vmatpush.msrb.mxu2 %v2279_v62  ;;  %v2056_v62 = vld [vmem:[#allocation16 + $0x1c8] sm:$0xff] }
 0x2e2   : > { %2362 = vmatmul.f32.gmra.mxu3 %v9289_v3  ;;  %v9293_v45 = vsel %vm715_vm4, %v1959_v8, %v1960_v24  ;;  %2594 = vmatpush.msrb.mxu1 %v2225_v50  ;;  %v1798_v8 = vpop.f32.mrf.mxu0  ;;  %v2267_v50 = vld [vmem:[#allocation16 + $0x860] sm:$0xff] }
 0x2e3   : > { %v1834_v44 = vadd.f32 %v1833_v0, %v1793_v61  ;;  %2403 = vmatmul.f32.gmra.mxu0 %v9293_v45  ;;  %2665 = vmatpush.msrb.mxu3 %v2024_v7  ;;  %v2092_v7 = vld [vmem:[#allocation16 + $0x2e8] sm:$0xff] }
 0x2e4   : > { %2595 = vmatpush.msrb.mxu1 %v2223_v43  ;;  %2625 = vmatpush.msrb.mxu2 %v2277_v26  ;;  %v2012_v43 = vld [vmem:[#allocation16 + $0x68] sm:$0xff]  ;;  %v2086_v26 = vld [vmem:[#allocation16 + $0x2b8] sm:$0xff] }
 0x2e5   : > { %v1847_v33 = vmax.f32 %v1834_v44, 0.0  ;;  %v1716_v56 = vpop.f32.mrf.mxu2  ;;  %2666 = vmatpush.msrb.mxu3 %v2022_v22  ;;  %v2259_v22 = vld [vmem:[#allocation16 + $0x820] sm:$0xff] }
 0x2e6   : > { %v1754_v40 = vpop.f32.mrf.mxu3  ;;  %v9298_v52 = vld [vmem:[#allocation4 + $0x50] sm:$0xff]  ;;  %v1890_v1 = vld [vmem:[#allocation4 + $0x58] sm:$0x3]  ;;  %v1717_v11 = vadd.f32 %v1716_v56, %v1676_v38  ;;  %2626 = vmatpush.msrb.mxu2 %v2275_v63  ;;  %v2058_v38 = vld [vmem:[#allocation16 + $0x1d8] sm:$0xff]  ;;  %2744 = vmatpush.msra.mxu1 %v2094_v27 }
 0x2e7   : > { %1876 = vst [vmem:[#allocation4 + $0x61] sm:$0xff] %v1847_v33  ;;  %v1755_v46 = vadd.f32 %v1754_v40, %v1714_v25  ;;  %2324 = vmatmul.f32.gmra.mxu2 %v9298_v52  ;;  %2444 = vmatmul.f32.gmra.mxu1 %v9298_v52  ;;  %v1930_v47 = vrot.slane %v9298_v52, 1  ;;  %v1931_v37 = vrot.slane %v1890_v1, 1  ;;  %v1962_v18 = vrot.slane %v9298_v52, 2  ;;  %v1836_v29 = vpop.f32.mrf.mxu1  ;;  %v2060_v56 = vld [vmem:[#allocation16 + $0x1e8] sm:$0xff]  ;;  %v2158_v27 = vld [vmem:[#allocation16 + $0x4f8] sm:$0xff] }
 0x2e8   : > { %v1963_v51 = vrot.slane %v1890_v1, 2  ;;  %2667 = vmatpush.msrb.mxu3 %v2020_v13  ;;  %2627 = vmatpush.msrb.mxu2 %v2273_v9  ;;  %v2004_v63 = vld [vmem:[#allocation16 + $0x28] sm:$0xff]  ;;  %v2082_v13 = vld [vmem:[#allocation16 + $0x298] sm:$0xff] }
 0x2e9   : > { %v1796_v55 = vadd.f32 %v1795_v28, %v1755_v46  ;;  %v9305_v42 = vsel %vm690_vm3, %v1930_v47, %v1931_v37  ;;  %v2018_v37 = vld [vmem:[#allocation16 + $0x98] sm:$0xff]  ;;  %2745 = vmatpush.msra.mxu1 %v2092_v7  ;;  %v2124_v7 = vld [vmem:[#allocation16 + $0x3e8] sm:$0xff] }
 0x2ea   : > { %2365 = vmatmul.f32.gmra.mxu3 %v9305_v42  ;;  %v9309_v49 = vsel %vm715_vm4, %v1962_v18, %v1963_v51  ;;  %v2271_v18 = vld [vmem:[#allocation16 + $0x880] sm:$0xff]  ;;  %v2014_v51 = vld [vmem:[#allocation16 + $0x78] sm:$0xff] }
 0x2eb   : > { %v1837_v21 = vadd.f32 %v1836_v29, %v1796_v55  ;;  %2406 = vmatmul.f32.gmra.mxu0 %v9309_v49  ;;  %2668 = vmatpush.msrb.mxu3 %v2018_v37  ;;  %v2269_v29 = vld [vmem:[#allocation16 + $0x870] sm:$0xff]  ;;  %v2062_v55 = vld [vmem:[#allocation16 + $0x1f8] sm:$0xff]  ;;  %v2076_v37 = vld [vmem:[#allocation16 + $0x268] sm:$0xff] }
 0x2ec   : > { %2628 = vmatpush.msrb.mxu2 %v2271_v18  ;;  %2703 = vmatpush.msra.mxu0 %v2062_v55  ;;  %v2002_v9 = vld [vmem:[#allocation16 + $0x18] sm:$0xff]  ;;  %v2255_v18 = vld [vmem:[#allocation16 + $0x800] sm:$0xff]  ;;  %v2036_v55 = vld [vmem:[#allocation16 + $0x128] sm:$0xff] }
 0x2ed   : > { %v1848_v0 = vmax.f32 %v1837_v21, 0.0  ;;  %2669 = vmatpush.msrb.mxu3 %v2016_v58  ;;  %v2265_v21 = vld [vmem:[#allocation16 + $0x850] sm:$0xff]  ;;  %v2038_v58 = vld [vmem:[#allocation16 + $0x138] sm:$0xff] }
 0x2ee   : > { %v1757_v31 = vpop.f32.mrf.mxu3  ;;  %v9314_v23 = vld [vmem:[#allocation4 + $0x60] sm:$0xff]  ;;  %v1892_v34 = vld [vmem:[#allocation4 + $0x68] sm:$0x3]  ;;  %2629 = vmatpush.msrb.mxu2 %v2269_v29  ;;  %2704 = vmatpush.msra.mxu0 %v2060_v56  ;;  %v2072_v56 = vld [vmem:[#allocation16 + $0x248] sm:$0xff] }
 0x2ef   : > { %1877 = vst [vmem:[#allocation4 + $0x71] sm:$0xff] %v1848_v0  ;;  %v1758_v12 = vadd.f32 %v1757_v31, %v1717_v11  ;;  %2327 = vmatmul.f32.gmra.mxu2 %v9314_v23  ;;  %2447 = vmatmul.f32.gmra.mxu1 %v9314_v23  ;;  %v1933_v54 = vrot.slane %v9314_v23, 1  ;;  %v1934_v15 = vrot.slane %v1892_v34, 1  ;;  %v1965_v24 = vrot.slane %v9314_v23, 2  ;;  %v1839_v61 = vpop.f32.mrf.mxu1  ;;  %v2010_v11 = vld [vmem:[#allocation16 + $0x58] sm:$0xff]  ;;  %v2263_v31 = vld [vmem:[#allocation16 + $0x840] sm:$0xff] }
 0x2f0   : > { %v1966_v2 = vrot.slane %v1892_v34, 2  ;;  %2670 = vmatpush.msrb.mxu3 %v2014_v51  ;;  %2630 = vmatpush.msrb.mxu2 %v2267_v50  ;;  %v2054_v0 = vld [vmem:[#allocation16 + $0x1b8] sm:$0xff]  ;;  %v2052_v34 = vld [vmem:[#allocation16 + $0x1a8] sm:$0xff] }
 0x2f1   : > { %v1799_v39 = vadd.f32 %v1798_v8, %v1758_v12  ;;  %v9321_v19 = vsel %vm690_vm3, %v1933_v54, %v1934_v15  ;;  %2705 = vmatpush.msra.mxu0 %v2058_v38  ;;  %v2090_v8 = vld [vmem:[#allocation16 + $0x2d8] sm:$0xff]  ;;  %v2008_v12 = vld [vmem:[#allocation16 + $0x48] sm:$0xff] }
 0x2f2   : > { %2368 = vmatmul.f32.gmra.mxu3 %v9321_v19  ;;  %v9325_v57 = vsel %vm715_vm4, %v1965_v24, %v1966_v2  ;;  %2631 = vmatpush.msrb.mxu2 %v2265_v21  ;;  %v2088_v54 = vld [vmem:[#allocation16 + $0x2c8] sm:$0xff]  ;;  %v2050_v15 = vld [vmem:[#allocation16 + $0x198] sm:$0xff]  ;;  %v2261_v24 = vld [vmem:[#allocation16 + $0x830] sm:$0xff] }
 0x2f3   : > { %v1840_v44 = vadd.f32 %v1839_v61, %v1799_v39  ;;  %2409 = vmatmul.f32.gmra.mxu0 %v9325_v57  ;;  %2671 = vmatpush.msrb.mxu3 %v2012_v43  ;;  %v2048_v61 = vld [vmem:[#allocation16 + $0x188] sm:$0xff]  ;;  %v2006_v39 = vld [vmem:[#allocation16 + $0x38] sm:$0xff] }
 0x2f4   : > { %2706 = vmatpush.msra.mxu0 %v2056_v62  ;;  %2632 = vmatpush.msrb.mxu2 %v2263_v31  ;;  %v2084_v2 = vld [vmem:[#allocation16 + $0x2a8] sm:$0xff]  ;;  %v2074_v29 = vld [vmem:[#allocation16 + $0x258] sm:$0xff] }
 0x2f5   : > { %v1849_v25 = vmax.f32 %v1840_v44, 0.0  ;;  %2672 = vmatpush.msrb.mxu3 %v2010_v11  ;;  %2746 = vmatpush.msra.mxu1 %v2090_v8  ;;  %v2046_v44 = vld [vmem:[#allocation16 + $0x178] sm:$0xff]  ;;  %v2000_v51 = vld [vmem:[#allocation16 + $0x8] sm:$0xff] }
 0x2f6   : > { %v9328_v33 = vld [vmem:[#allocation4 + $0x70] sm:$0xff]  ;;  %v1894_v35 = vld [vmem:[#allocation4 + $0x78] sm:$0x3]  ;;  %2707 = vmatpush.msra.mxu0 %v2054_v0  ;;  %2633 = vmatpush.msrb.mxu2 %v2261_v24  ;;  %v2126_v50 = vld [vmem:[#allocation16 + $0x3f8] sm:$0xff] }
 0x2f7   : > { %1878 = vst [vmem:[#allocation4 + $0x81] sm:$0xff] %v1849_v25  ;;  %2330 = vmatmul.f32.gmra.mxu2 %v9328_v33  ;;  %2450 = vmatmul.f32.gmra.mxu1 %v9328_v33  ;;  %v1936_v5 = vrot.slane %v9328_v33, 1  ;;  %v1937_v28 = vrot.slane %v1894_v35, 1  ;;  %v1968_v40 = vrot.slane %v9328_v33, 2  ;;  %v1969_v1 = vrot.slane %v1894_v35, 2  ;;  %v2044_v25 = vld [vmem:[#allocation16 + $0x168] sm:$0xff] }
 0x2f8   : > { %2708 = vmatpush.msra.mxu0 %v2052_v34  ;;  %2673 = vmatpush.msrb.mxu3 %v2008_v12  ;;  %v2080_v35 = vld [vmem:[#allocation16 + $0x288] sm:$0xff]  ;;  %v2034_v43 = vld [vmem:[#allocation16 + $0x118] sm:$0xff] }
 0x2f9   : > { %v9335_v46 = vsel %vm690_vm3, %v1936_v5, %v1937_v28  ;;  %v9338_v47 = vsel %vm715_vm4, %v1968_v40, %v1969_v1  ;;  %2747 = vmatpush.msra.mxu1 %v2088_v54  ;;  %2634 = vmatpush.msrb.mxu2 %v2259_v22  ;;  %v2257_v5 = vld [vmem:[#allocation16 + $0x810] sm:$0xff]  ;;  %v2042_v28 = vld [vmem:[#allocation16 + $0x158] sm:$0xff]  ;;  %v2040_v1 = vld [vmem:[#allocation16 + $0x148] sm:$0xff] }
 0x2fa   : > { %2371 = vmatmul.f32.gmra.mxu3 %v9335_v46  ;;  %2709 = vmatpush.msra.mxu0 %v2050_v15  ;;  %v2078_v40 = vld [vmem:[#allocation16 + $0x278] sm:$0xff]  ;;  %v2032_v21 = vld [vmem:[#allocation16 + $0x108] sm:$0xff] }
 0x2fb   : > { %2412 = vmatmul.f32.gmra.mxu0 %v9338_v47  ;;  %2748 = vmatpush.msra.mxu1 %v2086_v26  ;;  %v2070_v38 = vld [vmem:[#allocation16 + $0x238] sm:$0xff]  ;;  %v2068_v62 = vld [vmem:[#allocation16 + $0x228] sm:$0xff] }
 0x2fc   : > { %2710 = vmatpush.msra.mxu0 %v2048_v61  ;;  %2674 = vmatpush.msrb.mxu3 %v2006_v39  ;;  %v2156_v11 = vld [vmem:[#allocation16 + $0x4e8] sm:$0xff]  ;;  %v2066_v0 = vld [vmem:[#allocation16 + $0x218] sm:$0xff] }
 0x2fd   : > { %2749 = vmatpush.msra.mxu1 %v2084_v2  ;;  %2635 = vmatpush.msrb.mxu2 %v2257_v5  ;;  %v2122_v31 = vld [vmem:[#allocation16 + $0x3d8] sm:$0xff]  ;;  %v2064_v8 = vld [vmem:[#allocation16 + $0x208] sm:$0xff] }
 0x2fe   : > { %v9342_v16 = vld [vmem:[#allocation4 + $0x80] sm:$0xff]  ;;  %2711 = vmatpush.msra.mxu0 %v2046_v44  ;;  %2675 = vmatpush.msrb.mxu3 %v2004_v63  ;;  %v2120_v12 = vld [vmem:[#allocation16 + $0x3c8] sm:$0xff]  ;;  %v1896_v54 = vld [vmem:[#allocation4 + $0x88] sm:$0x3] }
 0x2ff   : > { %2453 = vmatmul.f32.gmra.mxu1 %v9342_v16  ;;  %2473 = vmatmul.f32.vlgmr.msra.gmra.mxu2 %v9241_v10  ;;  %v2154_v34 = vld [vmem:[#allocation16 + $0x4d8] sm:$0xff]  ;;  %v2152_v15 = vld [vmem:[#allocation16 + $0x4c8] sm:$0xff]  ;;  %v1981_v26 = vrot.slane %v9342_v16, 1  ;;  %v1982_v61 = vrot.slane %v1896_v54, 1  ;;  %v1985_v44 = vrot.slane %v9342_v16, 2  ;;  %v1986_v22 = vrot.slane %v1896_v54, 2 }
 0x300   : > { %2750 = vmatpush.msra.mxu1 %v2082_v13  ;;  %2712 = vmatpush.msra.mxu0 %v2044_v25  ;;  %v2118_v24 = vld [vmem:[#allocation16 + $0x3b8] sm:$0xff]  ;;  %v2116_v39 = vld [vmem:[#allocation16 + $0x3a8] sm:$0xff] }
 0x301   : > { %2676 = vmatpush.msrb.mxu3 %v2002_v9  ;;  %2636 = vmatpush.msrb.mxu2 %v2255_v18  ;;  %v2150_v2 = vld [vmem:[#allocation16 + $0x4b8] sm:$0xff]  ;;  %v9374_v63 = vld [vmem:[#allocation4 + $0x98] sm:$0x3]  ;;  %v9377_v13 = vsel %vm690_vm3, %v1981_v26, %v1982_v61  ;;  %v9394_v18 = vpop.f32.mrf.mxu0 }
 0x302   : > { %2514 = vmatmul.f32.vlgmr.msra.gmra.mxu3 %v9245_v4  ;;  %2751 = vmatpush.msra.mxu1 %v2080_v35  ;;  %v1992_v25 = vrot.slane %v9374_v63, 1  ;;  %v2148_v35 = vld [vmem:[#allocation16 + $0x4a8] sm:$0xff]  ;;  %v2114_v5 = vld [vmem:[#allocation16 + $0x398] sm:$0xff] }
 0x303   : > { %2555 = vmatmul.f32.vlgmr.msrb.gmra.mxu0 %v9250_v53  ;;  %2677 = vmatpush.msrb.mxu3 %v2000_v51  ;;  %v9398_v51 = vpop.f32.mrf.mxu2  ;;  %v2218_v26 = vld [vmem:[#allocation16 + $0x6d8] sm:$0xff]  ;;  %v2180_v61 = vld [vmem:[#allocation16 + $0x5a8] sm:$0xff] }
 0x304   : > { %2713 = vmatpush.msra.mxu0 %v2042_v28  ;;  %2752 = vmatpush.msra.mxu1 %v2078_v40  ;;  %v9383_v28 = vsel %vm715_vm4, %v1985_v44, %v1986_v22  ;;  %v9386_v40 = vld [vmem:[#allocation4] sm:$0xff]  ;;  %v9392_v9 = vsel %vm690_vm3, %v1915_v17, %v1992_v25 }
 0x305   : > { %2785 = vmatpush.msra.mxu2 %v2126_v50  ;;  %2826 = vmatpush.msra.mxu3 %v2158_v27  ;;  %11640 = vst [vmem:[#allocation39_spill] sm:$0xff] %v9392_v9  ;;  %v2190_v17 = vld [vmem:[#allocation16 + $0x5f8] sm:$0xff]  ;;  %v2108_v50 = vld [vmem:[#allocation16 + $0x368] sm:$0xff] }
 0x306   : > { %2714 = vmatpush.msra.mxu0 %v2040_v1  ;;  %2753 = vmatpush.msra.mxu1 %v2076_v37  ;;  %v2146_v1 = vld [vmem:[#allocation16 + $0x498] sm:$0xff]  ;;  %v2112_v37 = vld [vmem:[#allocation16 + $0x388] sm:$0xff] }
 0x307   : > { %2476 = vmatmul.f32.gmra.mxu2 %v9257_v59  ;;  %2596 = vmatmul.f32.vlgmr.msrb.gmra.mxu1 %v9257_v59  ;;  %v2102_v44 = vld [vmem:[#allocation16 + $0x338] sm:$0xff] }
 0x308   : > { %2715 = vmatpush.msra.mxu0 %v2038_v58  ;;  %2754 = vmatpush.msra.mxu1 %v2074_v29  ;;  %v2144_v58 = vld [vmem:[#allocation16 + $0x488] sm:$0xff]  ;;  %v2110_v29 = vld [vmem:[#allocation16 + $0x378] sm:$0xff] }
 0x309   : > { %2786 = vmatpush.msra.mxu2 %v2124_v7  ;;  %2827 = vmatpush.msra.mxu3 %v2156_v11  ;;  %v2222_v7 = vld [vmem:[#allocation16 + $0x6f8] sm:$0xff] }
 0x30a   : > { %2517 = vmatmul.f32.gmra.mxu3 %v9261_v6  ;;  %2716 = vmatpush.msra.mxu0 %v2036_v55  ;;  %v2178_v22 = vld [vmem:[#allocation16 + $0x598] sm:$0xff] }
 0x30b   : > { %2558 = vmatmul.f32.gmra.mxu0 %v9266_v30  ;;  %2755 = vmatpush.msra.mxu1 %v2072_v56  ;;  %v9404_v56 = vpop.f32.mrf.mxu3  ;;  %v2214_v25 = vld [vmem:[#allocation16 + $0x6b8] sm:$0xff] }
 0x30c   : > { %2717 = vmatpush.msra.mxu0 %v2034_v43  ;;  %2787 = vmatpush.msra.mxu2 %v2122_v31  ;;  %v2188_v43 = vld [vmem:[#allocation16 + $0x5e8] sm:$0xff] }
 0x30d   : > { %2756 = vmatpush.msra.mxu1 %v2070_v38  ;;  %2828 = vmatpush.msra.mxu3 %v2154_v34  ;;  %v2287_v38 = vld [vmem:[#allocation17] sm:$0x3] }
 0x30e   : > { %2718 = vmatpush.msra.mxu0 %v2032_v21  ;;  %2788 = vmatpush.msra.mxu2 %v2120_v12  ;;  %v2186_v21 = vld [vmem:[#allocation16 + $0x5d8] sm:$0xff]  ;;  %v9410_v11 = vperm.slane %v2287_v38, 0 }
 0x30f   : > { %2479 = vmatmul.f32.gmra.mxu2 %v9273_v32  ;;  %2599 = vmatmul.f32.gmra.mxu1 %v9273_v32  ;;  %v2182_v12 = vld [vmem:[#allocation16 + $0x5b8] sm:$0xff] }
 0x310   : > { %2757 = vmatpush.msra.mxu1 %v2068_v62  ;;  %2829 = vmatpush.msra.mxu3 %v2152_v15  ;;  %v2106_v62 = vld [vmem:[#allocation16 + $0x358] sm:$0xff]  ;;  %v2104_v15 = vld [vmem:[#allocation16 + $0x348] sm:$0xff] }
 0x311   : > { %2789 = vmatpush.msra.mxu2 %v2118_v24  ;;  %2867 = vmatpush.msrb.mxu0 %v2190_v17 }
 0x312   : > { %2520 = vmatmul.f32.gmra.mxu3 %v9277_v48  ;;  %2758 = vmatpush.msra.mxu1 %v2066_v0  ;;  %v2184_v0 = vld [vmem:[#allocation16 + $0x5c8] sm:$0xff] }
 0x313   : > { %2561 = vmatmul.f32.gmra.mxu0 %v9282_v41  ;;  %2830 = vmatpush.msra.mxu3 %v2150_v2 }
 0x314   : > { %2759 = vmatpush.msra.mxu1 %v2064_v8  ;;  %2790 = vmatpush.msra.mxu2 %v2116_v39  ;;  %v2220_v8 = vld [vmem:[#allocation16 + $0x6e8] sm:$0xff] }
 0x315   : > { %2831 = vmatpush.msra.mxu3 %v2148_v35  ;;  %2868 = vmatpush.msrb.mxu0 %v2188_v43  ;;  %v2136_v39 = vld [vmem:[#allocation16 + $0x448] sm:$0xff]  ;;  %v2210_v43 = vld [vmem:[#allocation16 + $0x698] sm:$0xff] }
 0x316   : > { %2791 = vmatpush.msra.mxu2 %v2114_v5  ;;  %2908 = vmatpush.msrb.mxu1 %v2222_v7  ;;  %v2098_v7 = vld [vmem:[#allocation16 + $0x318] sm:$0xff] }
 0x317   : > { %2482 = vmatmul.f32.gmra.mxu2 %v9289_v3  ;;  %2602 = vmatmul.f32.gmra.mxu1 %v9289_v3 }
 0x318   : > { %2832 = vmatpush.msra.mxu3 %v2146_v1  ;;  %2792 = vmatpush.msra.mxu2 %v2112_v37  ;;  %v2176_v37 = vld [vmem:[#allocation16 + $0x588] sm:$0xff] }
 0x319   : > { %2869 = vmatpush.msrb.mxu0 %v2186_v21  ;;  %2909 = vmatpush.msrb.mxu1 %v2220_v8  ;;  %v2206_v8 = vld [vmem:[#allocation16 + $0x678] sm:$0xff] }
 0x31a   : > { %2523 = vmatmul.f32.gmra.mxu3 %v9293_v45  ;;  %2793 = vmatpush.msra.mxu2 %v2110_v29  ;;  %v2212_v29 = vld [vmem:[#allocation16 + $0x6a8] sm:$0xff] }
 0x31b   : > { %2564 = vmatmul.f32.gmra.mxu0 %v9298_v52  ;;  %2833 = vmatpush.msra.mxu3 %v2144_v58  ;;  %v2134_v58 = vld [vmem:[#allocation16 + $0x438] sm:$0xff] }
 0x31c   : > { %2794 = vmatpush.msra.mxu2 %v2108_v50  ;;  %2870 = vmatpush.msrb.mxu0 %v2184_v0  ;;  %v2174_v50 = vld [vmem:[#allocation16 + $0x578] sm:$0xff] }
 0x31d   : > { %2834 = vmatpush.msra.mxu3 %v2142_v60  ;;  %2910 = vmatpush.msrb.mxu1 %v2218_v26  ;;  %v2100_v60 = vld [vmem:[#allocation16 + $0x328] sm:$0xff]  ;;  %v2170_v0 = vld [vmem:[#allocation16 + $0x558] sm:$0xff] }
 0x31e   : > { %2795 = vmatpush.msra.mxu2 %v2106_v62  ;;  %2871 = vmatpush.msrb.mxu0 %v2182_v12  ;;  %v2208_v62 = vld [vmem:[#allocation16 + $0x688] sm:$0xff]  ;;  %v2130_v12 = vld [vmem:[#allocation16 + $0x418] sm:$0xff] }
 0x31f   : > { %2485 = vmatmul.f32.gmra.mxu2 %v9305_v42  ;;  %2605 = vmatmul.f32.gmra.mxu1 %v9305_v42 }
 0x320   : > { %2796 = vmatpush.msra.mxu2 %v2104_v15  ;;  %2872 = vmatpush.msrb.mxu0 %v2180_v61  ;;  %v2204_v61 = vld [vmem:[#allocation16 + $0x668] sm:$0xff] }
 0x322   : > { %2526 = vmatmul.f32.gmra.mxu3 %v9309_v49  ;;  %2797 = vmatpush.msra.mxu2 %v2102_v44 }
 0x323   : > { %2567 = vmatmul.f32.gmra.mxu0 %v9314_v23 }
 0x324   : > { %2873 = vmatpush.msrb.mxu0 %v2178_v22  ;;  %2798 = vmatpush.msra.mxu2 %v2100_v60  ;;  %v2128_v22 = vld [vmem:[#allocation16 + $0x408] sm:$0xff]  ;;  %v2198_v60 = vld [vmem:[#allocation16 + $0x638] sm:$0xff] }
 0x326   : > { %2874 = vmatpush.msrb.mxu0 %v2176_v37  ;;  %2799 = vmatpush.msra.mxu2 %v2098_v7 }
 0x327   : > { %2488 = vmatmul.f32.gmra.mxu2 %v9321_v19  ;;  %2608 = vmatmul.f32.gmra.mxu1 %v9321_v19 }
 0x328   : > { %2875 = vmatpush.msrb.mxu0 %v2174_v50  ;;  %v2252_v50 = vld [vmem:[#allocation16 + $0x7e8] sm:$0xff] }
 0x32a   : > { %2529 = vmatmul.f32.gmra.mxu3 %v9325_v57 }
 0x32b   : > { %2570 = vmatmul.f32.gmra.mxu0 %v9328_v33 }
 0x32f   : > { %2491 = vmatmul.f32.gmra.mxu2 %v9335_v46  ;;  %2611 = vmatmul.f32.gmra.mxu1 %v9335_v46 }
 0x332   : > { %2532 = vmatmul.f32.gmra.mxu3 %v9338_v47 }
 0x333   : > { %2573 = vmatmul.f32.gmra.mxu0 %v9342_v16 }
 0x337   : > { %2494 = vmatmul.f32.gmra.mxu2 %v9377_v13  ;;  %2614 = vmatmul.f32.gmra.mxu1 %v9377_v13 }
 0x33a   : > { %2535 = vmatmul.f32.gmra.mxu3 %v9383_v28 }
 0x33b   : > { %2576 = vmatmul.f32.gmra.mxu0 %v9386_v40 }
 0x33f   : > { %2617 = vmatmul.f32.gmra.mxu1 %v9392_v9  ;;  %2637 = vmatmul.f32.vlgmr.msrb.gmra.mxu2 %v9261_v6 }
 0x342   : > { %2678 = vmatmul.f32.vlgmr.msrb.gmra.mxu3 %v9386_v40 }
 0x343   : > { %2719 = vmatmul.f32.vlgmr.msra.gmra.mxu0 %v9212_v20  ;;  %v2140_v20 = vld [vmem:[#allocation16 + $0x468] sm:$0xff] }
 0x344   : > { %v9402_v55 = vpop.f32.mrf.mxu1  ;;  %2835 = vmatpush.msra.mxu3 %v2140_v20  ;;  %v2132_v20 = vld [vmem:[#allocation16 + $0x428] sm:$0xff] }
 0x347   : > { %2640 = vmatmul.f32.gmra.mxu2 %v9277_v48  ;;  %2760 = vmatmul.f32.vlgmr.msra.gmra.mxu1 %v9219_v36  ;;  %v2138_v36 = vld [vmem:[#allocation16 + $0x458] sm:$0xff] }
 0x348   : > { %v9408_v27 = vpop.f32.mrf.mxu0  ;;  %2836 = vmatpush.msra.mxu3 %v2138_v36  ;;  %v2168_v36 = vld [vmem:[#allocation16 + $0x548] sm:$0xff] }
 0x34a   : > { %v2313_v31 = vpop.f32.mrf.mxu2  ;;  %2681 = vmatmul.f32.gmra.mxu3 %v9234_v14  ;;  %v2216_v14 = vld [vmem:[#allocation16 + $0x6c8] sm:$0xff] }
 0x34b   : > { %v2314_v34 = vadd.f32 %v2313_v31, %v9410_v11  ;;  %2722 = vmatmul.f32.gmra.mxu0 %v9241_v10  ;;  %2837 = vmatpush.msra.mxu3 %v2136_v39  ;;  %v2202_v39 = vld [vmem:[#allocation16 + $0x658] sm:$0xff] }
 0x34c   : > { %v9415_v54 = vpop.f32.mrf.mxu1  ;;  %2911 = vmatpush.msrb.mxu1 %v2216_v14  ;;  %v2166_v14 = vld [vmem:[#allocation16 + $0x538] sm:$0xff] }
 0x34d   : > { %v2354_v24 = vpop.f32.mrf.mxu3  ;;  %2838 = vmatpush.msra.mxu3 %v2134_v58 }
 0x34e   : > { %v9417_v2 = vadd.f32 %v2354_v24, %v2314_v34  ;;  %2912 = vmatpush.msrb.mxu1 %v2214_v25  ;;  %v2096_v24 = vld [vmem:[#allocation16 + $0x308] sm:$0xff]  ;;  %v2254_v25 = vld [vmem:[#allocation16 + $0x7f8] sm:$0xff] }
 0x34f   : > { %2643 = vmatmul.f32.gmra.mxu2 %v9293_v45  ;;  %2763 = vmatmul.f32.gmra.mxu1 %v9245_v4 }
 0x350   : > { %v9421_v35 = vpop.f32.mrf.mxu0  ;;  %2913 = vmatpush.msrb.mxu1 %v2212_v29  ;;  %2839 = vmatpush.msra.mxu3 %v2132_v20  ;;  %v2162_v29 = vld [vmem:[#allocation16 + $0x518] sm:$0xff]  ;;  %v2196_v20 = vld [vmem:[#allocation16 + $0x628] sm:$0xff] }
 0x351   : > { %2800 = vmatpush.msra.mxu2 %v2096_v24  ;;  %v2282_v24 = vld [vmem:[#allocation16 + $0x8d8] sm:$0xff] }
 0x352   : > { %v2316_v5 = vpop.f32.mrf.mxu2  ;;  %2684 = vmatmul.f32.gmra.mxu3 %v9250_v53  ;;  %v2172_v53 = vld [vmem:[#allocation16 + $0x568] sm:$0xff]  ;;  %2914 = vmatpush.msrb.mxu1 %v2210_v43 }
 0x353   : > { %v2317_v1 = vadd.f32 %v2316_v5, %v9410_v11  ;;  %2725 = vmatmul.f32.gmra.mxu0 %v9257_v59  ;;  %2840 = vmatpush.msra.mxu3 %v2130_v12  ;;  %v2164_v5 = vld [vmem:[#allocation16 + $0x528] sm:$0xff] }
 0x354   : > { %v9426_v38 = vpop.f32.mrf.mxu1  ;;  %2876 = vmatpush.msrb.mxu0 %v2172_v53  ;;  %2915 = vmatpush.msrb.mxu1 %v2208_v62  ;;  %v2160_v53 = vld [vmem:[#allocation16 + $0x508] sm:$0xff] }
 0x355   : > { %v2357_v17 = vpop.f32.mrf.mxu3  ;;  %2841 = vmatpush.msra.mxu3 %v2128_v22  ;;  %2949 = vmatpush.msrb.mxu2 %v2254_v25  ;;  %v1996_v22 = vrot.slane %v9374_v63, 2  ;;  %v2280_v25 = vld [vmem:[#allocation16 + $0x8c8] sm:$0xff] }
 0x356   : > { %v9428_v21 = vadd.f32 %v2357_v17, %v2317_v1  ;;  %2877 = vmatpush.msrb.mxu0 %v2170_v0  ;;  %2916 = vmatpush.msrb.mxu1 %v2206_v8  ;;  %v2200_v1 = vld [vmem:[#allocation16 + $0x648] sm:$0xff]  ;;  %v2286_v17 = vld [vmem:[#allocation16 + $0x8f8] sm:$0xff] }
 0x357   : > { %2646 = vmatmul.f32.gmra.mxu2 %v9309_v49  ;;  %2766 = vmatmul.f32.gmra.mxu1 %v9261_v6  ;;  %v2284_v0 = vld [vmem:[#allocation16 + $0x8e8] sm:$0xff] }
 0x358   : > { %v9435_v15 = vpop.f32.mrf.mxu0  ;;  %2878 = vmatpush.msrb.mxu0 %v2168_v36  ;;  %2917 = vmatpush.msrb.mxu1 %v2204_v61  ;;  %v2192_v8 = vld [vmem:[#allocation16 + $0x608] sm:$0xff] }
 0x359   : > { %2990 = vmatpush.msrb.mxu3 %v2286_v17  ;;  %2950 = vmatpush.msrb.mxu2 %v2252_v50  ;;  %v2244_v17 = vld [vmem:[#allocation16 + $0x7a8] sm:$0xff] }
 0x35a   : > { %v2319_v31 = vpop.f32.mrf.mxu2  ;;  %2687 = vmatmul.f32.gmra.mxu3 %v9266_v30  ;;  %2879 = vmatpush.msrb.mxu0 %v2166_v14 }
 0x35b   : > { %v2320_v34 = vadd.f32 %v2319_v31, %v9410_v11  ;;  %2728 = vmatmul.f32.gmra.mxu0 %v9273_v32  ;;  %2918 = vmatpush.msrb.mxu1 %v2202_v39  ;;  %v2250_v31 = vld [vmem:[#allocation16 + $0x7d8] sm:$0xff] }
 0x35c   : > { %v9441_v44 = vpop.f32.mrf.mxu1  ;;  %2880 = vmatpush.msrb.mxu0 %v2164_v5  ;;  %2991 = vmatpush.msrb.mxu3 %v2284_v0  ;;  %v2246_v5 = vld [vmem:[#allocation16 + $0x7b8] sm:$0xff] }
 0x35d   : > { %v2360_v26 = vpop.f32.mrf.mxu3  ;;  %2919 = vmatpush.msrb.mxu1 %v2200_v1  ;;  %2951 = vmatpush.msrb.mxu2 %v2250_v31  ;;  %v2274_v0 = vld [vmem:[#allocation16 + $0x898] sm:$0xff]  ;;  %v2240_v31 = vld [vmem:[#allocation16 + $0x788] sm:$0xff] }
 0x35e   : > { %v9437_v30 = vadd.f32 %v2360_v26, %v2320_v34  ;;  %2881 = vmatpush.msrb.mxu0 %v2162_v29  ;;  %2992 = vmatpush.msrb.mxu3 %v2282_v24  ;;  %v2248_v26 = vld [vmem:[#allocation16 + $0x7c8] sm:$0xff] }
 0x35f   : > { %2649 = vmatmul.f32.gmra.mxu2 %v9325_v57  ;;  %2769 = vmatmul.f32.gmra.mxu1 %v9277_v48  ;;  %v7780_v24 = vld [vmem:[#allocation4 + $0x10] sm:$0xff] }
 0x360   : > { %v9446_v62 = vpop.f32.mrf.mxu0  ;;  %2920 = vmatpush.msrb.mxu1 %v2198_v60  ;;  %2882 = vmatpush.msrb.mxu0 %v2160_v53 }
 0x361   : > { %2952 = vmatpush.msrb.mxu2 %v2248_v26  ;;  %2993 = vmatpush.msrb.mxu3 %v2280_v25  ;;  %v2272_v26 = vld [vmem:[#allocation16 + $0x888] sm:$0xff] }
 0x362   : > { %v2322_v37 = vpop.f32.mrf.mxu2  ;;  %2690 = vmatmul.f32.gmra.mxu3 %v9282_v41  ;;  %v2194_v41 = vld [vmem:[#allocation16 + $0x618] sm:$0xff]  ;;  %2921 = vmatpush.msrb.mxu1 %v2196_v20  ;;  %v2236_v25 = vld [vmem:[#allocation16 + $0x768] sm:$0xff] }
 0x363   : > { %v2323_v58 = vadd.f32 %v2322_v37, %v9410_v11  ;;  %2731 = vmatmul.f32.gmra.mxu0 %v9289_v3  ;;  %2953 = vmatpush.msrb.mxu2 %v2246_v5 }
 0x364   : > { %v9452_v34 = vpop.f32.mrf.mxu1  ;;  %2922 = vmatpush.msrb.mxu1 %v2194_v41 }
 0x365   : > { %v2363_v43 = vpop.f32.mrf.mxu3  ;;  %2954 = vmatpush.msrb.mxu2 %v2244_v17  ;;  %v2234_v17 = vld [vmem:[#allocation16 + $0x758] sm:$0xff] }
 0x366   : > { %v9448_v7 = vadd.f32 %v2363_v43, %v2323_v58  ;;  %2923 = vmatpush.msrb.mxu1 %v2192_v8  ;;  %v2278_v58 = vld [vmem:[#allocation16 + $0x8b8] sm:$0xff] }
 0x367   : > { %2652 = vmatmul.f32.gmra.mxu2 %v9338_v47  ;;  %2772 = vmatmul.f32.gmra.mxu1 %v9293_v45  ;;  %v2242_v43 = vld [vmem:[#allocation16 + $0x798] sm:$0xff] }
 0x368   : > { %v9461_v39 = vpop.f32.mrf.mxu0  ;;  %2994 = vmatpush.msrb.mxu3 %v2278_v58  ;;  %2955 = vmatpush.msrb.mxu2 %v2242_v43  ;;  %v2268_v58 = vld [vmem:[#allocation16 + $0x868] sm:$0xff] }
 0x369   : > { %v2232_v43 = vld [vmem:[#allocation16 + $0x748] sm:$0xff] }
 0x36a   : > { %v2325_v36 = vpop.f32.mrf.mxu2  ;;  %2693 = vmatmul.f32.gmra.mxu3 %v9298_v52  ;;  %v1995_v52 = vrot.slane %v9386_v40, 2  ;;  %2956 = vmatpush.msrb.mxu2 %v2240_v31  ;;  %v3059_v31 = vld [vmem:[%s11602_s7 + $0x60] sm:$0xff] }
 0x36b   : > { %v2326_v12 = vadd.f32 %v2325_v36, %v9410_v11  ;;  %2734 = vmatmul.f32.gmra.mxu0 %v9305_v42 }
 0x36c   : > { %v9468_v29 = vpop.f32.mrf.mxu1  ;;  %v9471_v60 = vsel %vm715_vm4, %v1995_v52, %v1996_v22  ;;  %v2270_v52 = vld [vmem:[#allocation16 + $0x878] sm:$0xff] }
 0x36d   : > { %v2366_v61 = vpop.f32.mrf.mxu3  ;;  %11641 = vst [vmem:[#allocation40_spill] sm:$0xff] %v9471_v60 }
 0x36e   : > { %v9457_v14 = vadd.f32 %v2366_v61, %v2326_v12  ;;  %v2238_v61 = vld [vmem:[#allocation16 + $0x778] sm:$0xff] }
 0x36f   : > { %2655 = vmatmul.f32.gmra.mxu2 %v9383_v28  ;;  %2775 = vmatmul.f32.gmra.mxu1 %v9309_v49 }
 0x370   : > { %v9477_v53 = vpop.f32.mrf.mxu0  ;;  %2957 = vmatpush.msrb.mxu2 %v2238_v61  ;;  %v3058_v61 = vld [vmem:[%s11602_s7 + $0x58] sm:$0xff] }
 0x372   : > { %v2328_v1 = vpop.f32.mrf.mxu2  ;;  %2696 = vmatmul.f32.gmra.mxu3 %v9314_v23  ;;  %v2276_v23 = vld [vmem:[#allocation16 + $0x8a8] sm:$0xff]  ;;  %2958 = vmatpush.msrb.mxu2 %v2236_v25 }
 0x373   : > { %v2329_v37 = vadd.f32 %v2328_v1, %v9410_v11  ;;  %2737 = vmatmul.f32.gmra.mxu0 %v9321_v19  ;;  %2995 = vmatpush.msrb.mxu3 %v2276_v23  ;;  %v7781_v1 = vld [vmem:[#allocation4 + $0x20] sm:$0xff] }
 0x374   : > { %v9482_v36 = vpop.f32.mrf.mxu1  ;;  %2959 = vmatpush.msrb.mxu2 %v2234_v17  ;;  %v2266_v23 = vld [vmem:[#allocation16 + $0x858] sm:$0xff]  ;;  %v2228_v17 = vld [vmem:[#allocation16 + $0x728] sm:$0xff] }
 0x375   : > { %v2369_v63 = vpop.f32.mrf.mxu3  ;;  %2996 = vmatpush.msrb.mxu3 %v2274_v0 }
 0x376   : > { %v9473_v50 = vadd.f32 %v2369_v63, %v2329_v37  ;;  %v3061_v63 = vld [vmem:[%s11602_s7 + $0x70] sm:$0xff]  ;;  %2960 = vmatpush.msrb.mxu2 %v2232_v43  ;;  %v7783_v43 = vld [vmem:[#allocation4 + $0x40] sm:$0xff] }
 0x377   : > { %2658 = vmatmul.f32.gmra.mxu2 %v9471_v60  ;;  %2778 = vmatmul.f32.gmra.mxu1 %v9325_v57  ;;  %v7785_v60 = vld [vmem:[#allocation4 + $0x60] sm:$0xff] }
 0x378   : > { %2997 = vmatpush.msrb.mxu3 %v2272_v26  ;;  %v9491_v22 = vpop.f32.mrf.mxu0  ;;  %v2230_v26 = vld [vmem:[#allocation16 + $0x738] sm:$0xff] }
 0x379   : > { %11643 = vst [vmem:[#allocation42_spill] sm:$0xff] %v9491_v22  ;;  %2961 = vmatpush.msrb.mxu2 %v2230_v26 }
 0x37a   : > { %v2331_v20 = vpop.f32.mrf.mxu2  ;;  %2699 = vmatmul.f32.gmra.mxu3 %v9328_v33 }
 0x37b   : > { %v2332_v41 = vadd.f32 %v2331_v20, %v9410_v11  ;;  %2740 = vmatmul.f32.gmra.mxu0 %v9335_v46  ;;  %2998 = vmatpush.msrb.mxu3 %v2270_v52  ;;  %v3060_v20 = vld [vmem:[%s11602_s7 + $0x68] sm:$0xff] }
 0x37c   : > { %v9495_v37 = vpop.f32.mrf.mxu1  ;;  %2962 = vmatpush.msrb.mxu2 %v2228_v17  ;;  %v2224_v17 = vld [vmem:[#allocation16 + $0x708] sm:$0xff] }
 0x37d   : > { %v2372_v8 = vpop.f32.mrf.mxu3  ;;  %11644 = vst [vmem:[#allocation43_spill] sm:$0xff] %v9495_v37  ;;  %2999 = vmatpush.msrb.mxu3 %v2268_v58  ;;  %v2262_v58 = vld [vmem:[#allocation16 + $0x838] sm:$0xff] }
 0x37e   : > { %v9484_v12 = vadd.f32 %v2372_v8, %v2332_v41  ;;  %v7782_v8 = vld [vmem:[#allocation4 + $0x30] sm:$0xff] }
 0x37f   : > { %2781 = vmatmul.f32.gmra.mxu1 %v9338_v47  ;;  %2801 = vmatmul.f32.vlgmr.msra.gmra.mxu2 %v7780_v24  ;;  %v2264_v24 = vld [vmem:[#allocation16 + $0x848] sm:$0xff] }
 0x380   : > { %11642 = vst [vmem:[#allocation41_spill] sm:$0xff] %v9484_v12  ;;  %3000 = vmatpush.msrb.mxu3 %v2266_v23  ;;  %v9512_v0 = vpop.f32.mrf.mxu0  ;;  %v3055_v23 = vld [vmem:[%s11602_s7 + $0x40] sm:$0xff]  ;;  %v7786_v12 = vld [vmem:[#allocation4 + $0x70] sm:$0xff] }
 0x382   : > { %v9487_v33 = vpop.f32.mrf.mxu2  ;;  %2842 = vmatmul.f32.vlgmr.msra.gmra.mxu3 %v9241_v10  ;;  %v3062_v10 = vld [vmem:[%s11602_s7 + $0x78] sm:$0xff] }
 0x383   : > { %2883 = vmatmul.f32.vlgmr.msrb.gmra.mxu0 %v9245_v4  ;;  %3001 = vmatpush.msrb.mxu3 %v2264_v24  ;;  %v3054_v24 = vld [vmem:[%s11602_s7 + $0x38] sm:$0xff] }
 0x384   : > { %3083 = vmatpush.msra.mxu0 %v3062_v10  ;;  %v9520_v52 = vpop.f32.mrf.mxu1  ;;  %v3056_v10 = vld [vmem:[%s11602_s7 + $0x48] sm:$0xff] }
 0x385   : > { %v9493_v5 = vpop.f32.mrf.mxu3  ;;  %3002 = vmatpush.msrb.mxu3 %v2262_v58 }
 0x386   : > { %3084 = vmatpush.msra.mxu0 %v3061_v63 }
 0x387   : > { %2804 = vmatmul.f32.gmra.mxu2 %v7781_v1  ;;  %2924 = vmatmul.f32.vlgmr.msrb.gmra.mxu1 %v7781_v1  ;;  %v3057_v1 = vld [vmem:[%s11602_s7 + $0x50] sm:$0xff] }
 0x388   : > { %3085 = vmatpush.msra.mxu0 %v3060_v20  ;;  %v9537_v20 = vpop.f32.mrf.mxu0 }
 0x38a   : > { %v9500_v4 = vpop.f32.mrf.mxu2  ;;  %2845 = vmatmul.f32.gmra.mxu3 %v9257_v59  ;;  %3086 = vmatpush.msra.mxu0 %v3059_v31  ;;  %v2260_v31 = vld [vmem:[#allocation16 + $0x828] sm:$0xff] }
 0x38b   : > { %2886 = vmatmul.f32.gmra.mxu0 %v9261_v6  ;;  %3003 = vmatpush.msrb.mxu3 %v2260_v31  ;;  %v7784_v31 = vld [vmem:[#allocation4 + $0x50] sm:$0xff] }
 0x38c   : > { %3087 = vmatpush.msra.mxu0 %v3058_v61  ;;  %v3053_v61 = vld [vmem:[%s11602_s7 + $0x30] sm:$0xff]  ;;  %v9549_v58 = vpop.f32.mrf.mxu1 }
 0x38d   : > { %v9510_v41 = vpop.f32.mrf.mxu3 }
 0x38e   : > { %3088 = vmatpush.msra.mxu0 %v3057_v1  ;;  %v2258_v1 = vld [vmem:[#allocation16 + $0x818] sm:$0xff] }
 0x38f   : > { %2807 = vmatmul.f32.gmra.mxu2 %v7782_v8  ;;  %2927 = vmatmul.f32.gmra.mxu1 %v7782_v8  ;;  %v2226_v8 = vld [vmem:[#allocation16 + $0x718] sm:$0xff] }
 0x390   : > { %3089 = vmatpush.msra.mxu0 %v3056_v10  ;;  %2963 = vmatpush.msrb.mxu2 %v2226_v8  ;;  %v3052_v10 = vld [vmem:[%s11602_s7 + $0x28] sm:$0xff]  ;;  %v2256_v8 = vld [vmem:[#allocation16 + $0x808] sm:$0xff] }
 0x391   : > { %3004 = vmatpush.msrb.mxu3 %v2258_v1 }
 0x392   : > { %v9522_v25 = vpop.f32.mrf.mxu2  ;;  %2848 = vmatmul.f32.gmra.mxu3 %v9273_v32  ;;  %3090 = vmatpush.msra.mxu0 %v3055_v23 }
 0x393   : > { %2889 = vmatmul.f32.gmra.mxu0 %v9277_v48  ;;  %2964 = vmatpush.msrb.mxu2 %v2224_v17  ;;  %v3049_v17 = vld [vmem:[%s11602_s7 + $0x10] sm:$0xff] }
 0x394   : > { %3091 = vmatpush.msra.mxu0 %v3054_v24  ;;  %v3050_v24 = vld [vmem:[%s11602_s7 + $0x18] sm:$0xff]  ;;  %3005 = vmatpush.msrb.mxu3 %v2256_v8  ;;  %v3047_v8 = vld [vmem:[%s11602_s7] sm:$0xff] }
 0x395   : > { %v9532_v63 = vpop.f32.mrf.mxu3 }
 0x396   : > { %3092 = vmatpush.msra.mxu0 %v3053_v61  ;;  %v9562_v61 = vpop.f32.mrf.mxu0 }
 0x397   : > { %2810 = vmatmul.f32.gmra.mxu2 %v7783_v43  ;;  %2930 = vmatmul.f32.gmra.mxu1 %v7783_v43  ;;  %v3051_v43 = vld [vmem:[%s11602_s7 + $0x20] sm:$0xff] }
 0x398   : > { %3093 = vmatpush.msra.mxu0 %v3052_v10  ;;  %v3048_v10 = vld [vmem:[%s11602_s7 + $0x8] sm:$0xff] }
 0x39a   : > { %v9542_v26 = vpop.f32.mrf.mxu2  ;;  %2851 = vmatmul.f32.gmra.mxu3 %v9289_v3  ;;  %3094 = vmatpush.msra.mxu0 %v3051_v43 }
 0x39b   : > { %2892 = vmatmul.f32.gmra.mxu0 %v9293_v45 }
 0x39c   : > { %3095 = vmatpush.msra.mxu0 %v3050_v24  ;;  %v2311_v24 = vadd.f32 %v9398_v51, %v9410_v11 }
 0x39d   : > { %v9554_v23 = vpop.f32.mrf.mxu3 }
 0x39e   : > { %3096 = vmatpush.msra.mxu0 %v3049_v17  ;;  %v2352_v9 = vadd.f32 %v9404_v56, %v2311_v24 }
 0x39f   : > { %2813 = vmatmul.f32.gmra.mxu2 %v7784_v31  ;;  %2933 = vmatmul.f32.gmra.mxu1 %v7784_v31  ;;  %v9576_v31 = vpop.f32.mrf.mxu1 }
 0x3a0   : > { %3097 = vmatpush.msra.mxu0 %v3048_v10  ;;  %v9588_v10 = vpop.f32.mrf.mxu0  ;;  %v2393_v22 = vadd.f32 %v9394_v18, %v2352_v9  ;;  %v2396_v9 = vadd.f32 %v9408_v27, %v9417_v2 }
 0x3a2   : > { %v9564_v1 = vpop.f32.mrf.mxu2  ;;  %2854 = vmatmul.f32.gmra.mxu3 %v9305_v42  ;;  %3098 = vmatpush.msra.mxu0 %v3047_v8 }
 0x3a3   : > { %2895 = vmatmul.f32.gmra.mxu0 %v9309_v49 }
 0x3a5   : > { %v9574_v43 = vpop.f32.mrf.mxu3 }
 0x3a7   : > { %2816 = vmatmul.f32.gmra.mxu2 %v7785_v60  ;;  %2936 = vmatmul.f32.gmra.mxu1 %v7785_v60  ;;  %v9593_v51 = vpop.f32.mrf.mxu1  ;;  %v2434_v60 = vadd.f32 %v9402_v55, %v2393_v22 }
 0x3a8   : > { %v9603_v24 = vpop.f32.mrf.mxu0 }
 0x3a9   : > { %v2475_v56 = vadd.f32 %v9487_v33, %v2434_v60  ;;  %v2437_v33 = vadd.f32 %v9415_v54, %v2396_v9  ;;  %v7348_v54 = vld [vmem:[%s11602_s7 + $0x178] sm:$0xff] }
 0x3aa   : > { %v9583_v17 = vpop.f32.mrf.mxu2  ;;  %2857 = vmatmul.f32.gmra.mxu3 %v9321_v19  ;;  %3388 = vmatpush.msra.mxu2 %v7348_v54 }
 0x3ab   : > { %2898 = vmatmul.f32.gmra.mxu0 %v9325_v57  ;;  %v2516_v18 = vadd.f32 %v9493_v5, %v2475_v56  ;;  %v2478_v27 = vadd.f32 %v9500_v4, %v2437_v33 }
 0x3ad   : > { %v9590_v37 = vpop.f32.mrf.mxu3  ;;  %v2557_v22 = vadd.f32 %v9512_v0, %v2516_v18  ;;  %v2519_v60 = vadd.f32 %v9510_v41, %v2478_v27  ;;  %v7346_v41 = vld [vmem:[%s11602_s7 + $0x168] sm:$0xff]  ;;  %v2402_v18 = vadd.f32 %v9435_v15, %v9437_v30  ;;  %v7379_v30 = vld [vmem:[%s11602_s7 + $0x270] sm:$0xff] }
 0x3af   : > { %2819 = vmatmul.f32.gmra.mxu2 %v7786_v12  ;;  %2939 = vmatmul.f32.gmra.mxu1 %v7786_v12  ;;  %v9610_v12 = vpop.f32.mrf.mxu1  ;;  %v2598_v0 = vadd.f32 %v9520_v52, %v2557_v22  ;;  %v2560_v52 = vadd.f32 %v9537_v20, %v2519_v60  ;;  %v7380_v20 = vld [vmem:[%s11602_s7 + $0x278] sm:$0xff] }
 0x3b0   : > { %v9625_v5 = vpop.f32.mrf.mxu0  ;;  %3692 = vmatpush.msrb.mxu0 %v7380_v20 }
 0x3b1   : > { %v2601_v22 = vadd.f32 %v9549_v58, %v2560_v52  ;;  %v7342_v58 = vld [vmem:[%s11602_s7 + $0x148] sm:$0xff] }
 0x3b2   : > { %v9595_v11 = vpop.f32.mrf.mxu2  ;;  %2860 = vmatmul.f32.gmra.mxu3 %v9335_v46  ;;  %3693 = vmatpush.msrb.mxu0 %v7379_v30  ;;  %v7335_v30 = vld [vmem:[%s11602_s7 + $0x110] sm:$0xff] }
 0x3b3   : > { %2901 = vmatmul.f32.gmra.mxu0 %v9338_v47 }
 0x3b5   : > { %v9601_v8 = vpop.f32.mrf.mxu3 }
 0x3b7   : > { %2822 = vmatmul.f32.gmra.mxu2 %v9342_v16  ;;  %2942 = vmatmul.f32.gmra.mxu1 %v9342_v16  ;;  %v2399_v16 = vadd.f32 %v9421_v35, %v9428_v21  ;;  %v9637_v21 = vpop.f32.mrf.mxu1 }
 0x3b8   : > { %v9663_v27 = vpop.f32.mrf.mxu0 }
 0x3ba   : > { %v9612_v55 = vpop.f32.mrf.mxu2  ;;  %2863 = vmatmul.f32.gmra.mxu3 %v9377_v13 }
 0x3bb   : > { %2904 = vmatmul.f32.gmra.mxu0 %v9383_v28 }
 0x3bd   : > { %v9619_v2 = vpop.f32.mrf.mxu3 }
 0x3bf   : > { %2965 = vmatmul.f32.vlgmr.msrb.gmra.mxu2 %v9257_v59  ;;  %2945 = vmatmul.f32.gmra.mxu1 %v9386_v40  ;;  %v7347_v59 = vld [vmem:[%s11602_s7 + $0x170] sm:$0xff]  ;;  %v2440_v40 = vadd.f32 %v9426_v38, %v2399_v16  ;;  %v7345_v38 = vld [vmem:[%s11602_s7 + $0x160] sm:$0xff]  ;;  %v2443_v16 = vadd.f32 %v9441_v44, %v2402_v18  ;;  %v9685_v44 = vpop.f32.mrf.mxu1 }
 0x3c0   : > { %3389 = vmatpush.msra.mxu2 %v7347_v59  ;;  %v7341_v59 = vld [vmem:[%s11602_s7 + $0x140] sm:$0xff]  ;;  %v9713_v18 = vpop.f32.mrf.mxu0 }
 0x3c1   : > { %v2481_v56 = vadd.f32 %v9522_v25, %v2440_v40  ;;  %v7344_v25 = vld [vmem:[%s11602_s7 + $0x158] sm:$0xff]  ;;  %v2484_v60 = vadd.f32 %v9542_v26, %v2443_v16  ;;  %v7377_v40 = vld [vmem:[%s11602_s7 + $0x260] sm:$0xff] }
 0x3c2   : > { %v2638_v4 = vpop.f32.mrf.mxu2  ;;  %3006 = vmatmul.f32.vlgmr.msrb.gmra.mxu3 %v9261_v6  ;;  %3390 = vmatpush.msra.mxu2 %v7346_v41  ;;  %v7340_v26 = vld [vmem:[%s11602_s7 + $0x138] sm:$0xff] }
 0x3c3   : > { %v2639_v35 = vadd.f32 %v2638_v4, %v2598_v0  ;;  %v2522_v33 = vadd.f32 %v9532_v63, %v2481_v56  ;;  %v2525_v41 = vadd.f32 %v9554_v23, %v2484_v60 }
 0x3c4   : > { %3391 = vmatpush.msra.mxu2 %v7345_v38 }
 0x3c5   : > { %v9644_v9 = vmax.f32 %v2639_v35, 0.0  ;;  %v9646_v6 = vpop.f32.mrf.mxu3  ;;  %v2563_v54 = vadd.f32 %v9562_v61, %v2522_v33  ;;  %v2405_v61 = vadd.f32 %v9446_v62, %v9448_v7  ;;  %v7376_v35 = vld [vmem:[%s11602_s7 + $0x258] sm:$0xff]  ;;  %v7375_v62 = vld [vmem:[%s11602_s7 + $0x250] sm:$0xff]  ;;  %v2566_v23 = vadd.f32 %v9588_v10, %v2525_v41  ;;  %v7337_v33 = vld [vmem:[%s11602_s7 + $0x120] sm:$0xff] }
 0x3c6   : > { %3392 = vmatpush.msra.mxu2 %v7344_v25 }
 0x3c7   : > { %2968 = vmatmul.f32.gmra.mxu2 %v9273_v32  ;;  %3099 = vmatmul.f32.vlgmr.msra.gmra.mxu0 %v9644_v9  ;;  %v7343_v32 = vld [vmem:[%s11602_s7 + $0x150] sm:$0xff]  ;;  %v2604_v52 = vadd.f32 %v9576_v31, %v2563_v54  ;;  %v2446_v7 = vadd.f32 %v9452_v34, %v2405_v61  ;;  %v7374_v34 = vld [vmem:[%s11602_s7 + $0x248] sm:$0xff]  ;;  %v9737_v10 = vpop.f32.mrf.mxu1 }
 0x3c8   : > { %3393 = vmatpush.msra.mxu2 %v7343_v32  ;;  %v7370_v54 = vld [vmem:[%s11602_s7 + $0x228] sm:$0xff]  ;;  %v9767_v60 = vpop.f32.mrf.mxu0 }
 0x3c9   : > { %v2487_v31 = vadd.f32 %v9564_v1, %v2446_v7  ;;  %v7373_v1 = vld [vmem:[%s11602_s7 + $0x240] sm:$0xff] }
 0x3ca   : > { %v2641_v15 = vpop.f32.mrf.mxu2  ;;  %3009 = vmatmul.f32.gmra.mxu3 %v9277_v48  ;;  %v7378_v48 = vld [vmem:[%s11602_s7 + $0x268] sm:$0xff]  ;;  %3394 = vmatpush.msra.mxu2 %v7342_v58 }
 0x3cb   : > { %v2642_v63 = vadd.f32 %v2641_v15, %v2601_v22  ;;  %3694 = vmatpush.msrb.mxu0 %v7378_v48  ;;  %v2408_v22 = vadd.f32 %v9461_v39, %v9457_v14  ;;  %v7336_v15 = vld [vmem:[%s11602_s7 + $0x118] sm:$0xff]  ;;  %v2528_v32 = vadd.f32 %v9574_v43, %v2487_v31  ;;  %v2607_v14 = vadd.f32 %v9593_v51, %v2566_v23  ;;  %v7371_v43 = vld [vmem:[%s11602_s7 + $0x230] sm:$0xff] }
 0x3cc   : > { %3395 = vmatpush.msra.mxu2 %v7341_v59  ;;  %v7369_v59 = vld [vmem:[%s11602_s7 + $0x220] sm:$0xff] }
 0x3cd   : > { %v9681_v0 = vmax.f32 %v2642_v63, 0.0  ;;  %v9683_v4 = vpop.f32.mrf.mxu3  ;;  %3695 = vmatpush.msrb.mxu0 %v7377_v40  ;;  %v2449_v16 = vadd.f32 %v9468_v29, %v2408_v22  ;;  %v2569_v51 = vadd.f32 %v9603_v24, %v2528_v32  ;;  %v7334_v29 = vld [vmem:[%s11602_s7 + $0x108] sm:$0xff]  ;;  %v2411_v24 = vadd.f32 %v9477_v53, %v9473_v50 }
 0x3ce   : > { %3396 = vmatpush.msra.mxu2 %v7340_v26 }
 0x3cf   : > { %2971 = vmatmul.f32.gmra.mxu2 %v9289_v3  ;;  %3102 = vmatmul.f32.gmra.mxu0 %v9681_v0  ;;  %v7339_v3 = vld [vmem:[%s11602_s7 + $0x130] sm:$0xff]  ;;  %v2490_v58 = vadd.f32 %v9583_v17, %v2449_v16  ;;  %v7333_v17 = vld [vmem:[%s11602_s7 + $0x100] sm:$0xff]  ;;  %v2610_v61 = vadd.f32 %v9610_v12, %v2569_v51  ;;  %v9781_v26 = vpop.f32.mrf.mxu1  ;;  %v2452_v53 = vadd.f32 %v9482_v36, %v2411_v24  ;;  %v7366_v36 = vld [vmem:[%s11602_s7 + $0x208] sm:$0xff] }
 0x3d0   : > { %3696 = vmatpush.msrb.mxu0 %v7376_v35  ;;  %3397 = vmatpush.msra.mxu2 %v7339_v3  ;;  %v11646_v3 = vld [vmem:[#allocation42_spill] sm:$0xff] }
 0x3d1   : > { %v2531_v40 = vadd.f32 %v9590_v37, %v2490_v58  ;;  %v2493_v37 = vadd.f32 %v9595_v11, %v2452_v53  ;;  %v9804_v11 = vpop.f32.mrf.mxu0  ;;  %v11649_v58 = vld [vmem:[#allocation40_spill] sm:$0xff] }
 0x3d2   : > { %v2644_v56 = vpop.f32.mrf.mxu2  ;;  %3012 = vmatmul.f32.gmra.mxu3 %v9293_v45  ;;  %v7338_v45 = vld [vmem:[%s11602_s7 + $0x128] sm:$0xff]  ;;  %3697 = vmatpush.msrb.mxu0 %v7375_v62 }
 0x3d3   : > { %v2645_v38 = vadd.f32 %v2644_v56, %v2604_v52  ;;  %3398 = vmatpush.msra.mxu2 %v7338_v45  ;;  %v2572_v41 = vadd.f32 %v9625_v5, %v2531_v40  ;;  %v11645_v56 = vld [vmem:[#allocation41_spill] sm:$0xff]  ;;  %v2534_v5 = vadd.f32 %v9601_v8, %v2493_v37 }
 0x3d4   : > { %3698 = vmatpush.msrb.mxu0 %v7374_v34  ;;  %v2414_v62 = vadd.f32 %v11646_v3, %v11645_v56  ;;  %v7364_v34 = vld [vmem:[%s11602_s7 + $0x1f8] sm:$0xff]  ;;  %v3073_v37 = vld [vmem:[%s11602_s7 + $0xd0] sm:$0xff] }
 0x3d5   : > { %v9720_v25 = vmax.f32 %v2645_v38, 0.0  ;;  %v9722_v20 = vpop.f32.mrf.mxu3  ;;  %3399 = vmatpush.msra.mxu2 %v7337_v33  ;;  %v2613_v7 = vadd.f32 %v9637_v21, %v2572_v41  ;;  %v7365_v38 = vld [vmem:[%s11602_s7 + $0x200] sm:$0xff]  ;;  %3429 = vmatpush.msra.mxu3 %v7364_v34  ;;  %v2575_v8 = vadd.f32 %v9663_v27, %v2534_v5  ;;  %v7358_v41 = vld [vmem:[%s11602_s7 + $0x1c8] sm:$0xff] }
 0x3d6   : > { %3699 = vmatpush.msrb.mxu0 %v7373_v1  ;;  %v3072_v5 = vld [vmem:[%s11602_s7 + $0xc8] sm:$0xff] }
 0x3d7   : > { %2974 = vmatmul.f32.gmra.mxu2 %v9305_v42  ;;  %3105 = vmatmul.f32.gmra.mxu0 %v9720_v25  ;;  %v7372_v42 = vld [vmem:[%s11602_s7 + $0x238] sm:$0xff]  ;;  %v9816_v33 = vpop.f32.mrf.mxu1  ;;  %v7406_v34 = vld [vmem:[%s11602_s7 + $0x348] sm:$0xff] }
 0x3d8   : > { %3400 = vmatpush.msra.mxu2 %v7336_v15  ;;  %3700 = vmatpush.msrb.mxu0 %v7372_v42  ;;  %v3078_v15 = vld [vmem:[%s11602_s7 + $0xf8] sm:$0xff]  ;;  %v7362_v42 = vld [vmem:[%s11602_s7 + $0x1e8] sm:$0xff] }
 0x3d9   : > { %3124 = vmatpush.msra.mxu1 %v3078_v15  ;;  %v9834_v32 = vpop.f32.mrf.mxu0  ;;  %v7355_v15 = vld [vmem:[%s11602_s7 + $0x1b0] sm:$0xff] }
 0x3da   : > { %v2647_v39 = vpop.f32.mrf.mxu2  ;;  %3015 = vmatmul.f32.gmra.mxu3 %v9309_v49  ;;  %3401 = vmatpush.msra.mxu2 %v7335_v30 }
 0x3db   : > { %v2648_v63 = vadd.f32 %v2647_v39, %v2607_v14  ;;  %3701 = vmatpush.msrb.mxu0 %v7371_v43  ;;  %v3077_v39 = vld [vmem:[%s11602_s7 + $0xf0] sm:$0xff]  ;;  %v3076_v43 = vld [vmem:[%s11602_s7 + $0xe8] sm:$0xff] }
 0x3dc   : > { %3402 = vmatpush.msra.mxu2 %v7334_v29  ;;  %3125 = vmatpush.msra.mxu1 %v3077_v39 }
 0x3dd   : > { %v9757_v48 = vmax.f32 %v2648_v63, 0.0  ;;  %v9759_v49 = vpop.f32.mrf.mxu3  ;;  %3702 = vmatpush.msrb.mxu0 %v7370_v54  ;;  %v7361_v63 = vld [vmem:[%s11602_s7 + $0x1e0] sm:$0xff]  ;;  %v7360_v54 = vld [vmem:[%s11602_s7 + $0x1d8] sm:$0xff] }
 0x3de   : > { %3403 = vmatpush.msra.mxu2 %v7333_v17  ;;  %3126 = vmatpush.msra.mxu1 %v3076_v43  ;;  %v3075_v17 = vld [vmem:[%s11602_s7 + $0xe0] sm:$0xff] }
 0x3df   : > { %2977 = vmatmul.f32.gmra.mxu2 %v9321_v19  ;;  %3108 = vmatmul.f32.gmra.mxu0 %v9757_v48  ;;  %v7368_v19 = vld [vmem:[%s11602_s7 + $0x218] sm:$0xff]  ;;  %v9848_v16 = vpop.f32.mrf.mxu1  ;;  %v7401_v43 = vld [vmem:[%s11602_s7 + $0x320] sm:$0xff] }
 0x3e0   : > { %3703 = vmatpush.msrb.mxu0 %v7369_v59  ;;  %3127 = vmatpush.msra.mxu1 %v3075_v17  ;;  %v7399_v17 = vld [vmem:[%s11602_s7 + $0x310] sm:$0xff] }
 0x3e1   : > { %v9863_v24 = vpop.f32.mrf.mxu0 }
 0x3e2   : > { %v2650_v50 = vpop.f32.mrf.mxu2  ;;  %3018 = vmatmul.f32.gmra.mxu3 %v9325_v57  ;;  %3704 = vmatpush.msrb.mxu0 %v7368_v19  ;;  %v7367_v57 = vld [vmem:[%s11602_s7 + $0x210] sm:$0xff]  ;;  %v7412_v19 = vld [vmem:[%s11602_s7 + $0x378] sm:$0xff] }
 0x3e3   : > { %v2651_v35 = vadd.f32 %v2650_v50, %v2610_v61  ;;  %v7359_v61 = vld [vmem:[%s11602_s7 + $0x1d0] sm:$0xff]  ;;  %v3074_v50 = vld [vmem:[%s11602_s7 + $0xd8] sm:$0xff]  ;;  %3996 = vmatpush.msrb.mxu2 %v7412_v19  ;;  %v7398_v19 = vld [vmem:[%s11602_s7 + $0x308] sm:$0xff] }
 0x3e4   : > { %3705 = vmatpush.msrb.mxu0 %v7367_v57  ;;  %3128 = vmatpush.msra.mxu1 %v3074_v50  ;;  %v7410_v57 = vld [vmem:[%s11602_s7 + $0x368] sm:$0xff]  ;;  %v3067_v50 = vld [vmem:[%s11602_s7 + $0xa0] sm:$0xff] }
 0x3e5   : > { %v9790_v52 = vmax.f32 %v2651_v35, 0.0  ;;  %v9792_v12 = vpop.f32.mrf.mxu3  ;;  %v7411_v35 = vld [vmem:[%s11602_s7 + $0x370] sm:$0xff] }
 0x3e6   : > { %3706 = vmatpush.msrb.mxu0 %v7366_v36  ;;  %3997 = vmatpush.msrb.mxu2 %v7411_v35  ;;  %v7357_v36 = vld [vmem:[%s11602_s7 + $0x1c0] sm:$0xff] }
 0x3e7   : > { %2980 = vmatmul.f32.gmra.mxu2 %v9335_v46  ;;  %3111 = vmatmul.f32.gmra.mxu0 %v9790_v52  ;;  %v11647_v46 = vld [vmem:[#allocation43_spill] sm:$0xff]  ;;  %v9874_v40 = vpop.f32.mrf.mxu1 }
 0x3e8   : > { %v2455_v23 = vadd.f32 %v11647_v46, %v2414_v62  ;;  %3707 = vmatpush.msrb.mxu0 %v7365_v38  ;;  %3129 = vmatpush.msra.mxu1 %v3073_v37  ;;  %v7409_v62 = vld [vmem:[%s11602_s7 + $0x360] sm:$0xff]  ;;  %v7407_v46 = vld [vmem:[%s11602_s7 + $0x350] sm:$0xff] }
 0x3e9   : > { %v9901_v3 = vpop.f32.mrf.mxu0  ;;  %3998 = vmatpush.msrb.mxu2 %v7410_v57  ;;  %v7351_v37 = vld [vmem:[%s11602_s7 + $0x190] sm:$0xff]  ;;  %v7397_v57 = vld [vmem:[%s11602_s7 + $0x300] sm:$0xff] }
 0x3ea   : > { %v2653_v45 = vpop.f32.mrf.mxu2  ;;  %3021 = vmatmul.f32.gmra.mxu3 %v9338_v47  ;;  %v2496_v21 = vadd.f32 %v9612_v55, %v2455_v23  ;;  %v7363_v47 = vld [vmem:[%s11602_s7 + $0x1f0] sm:$0xff]  ;;  %v2616_v55 = vadd.f32 %v9685_v44, %v2575_v8  ;;  %3130 = vmatpush.msra.mxu1 %v3072_v5  ;;  %v7356_v23 = vld [vmem:[%s11602_s7 + $0x1b8] sm:$0xff]  ;;  %v7350_v5 = vld [vmem:[%s11602_s7 + $0x188] sm:$0xff] }
 0x3eb   : > { %v2654_v31 = vadd.f32 %v2653_v45, %v2613_v7  ;;  %3430 = vmatpush.msra.mxu3 %v7363_v47  ;;  %3999 = vmatpush.msrb.mxu2 %v7409_v62  ;;  %v7408_v7 = vld [vmem:[%s11602_s7 + $0x358] sm:$0xff] }
 0x3ec   : > { %v2537_v27 = vadd.f32 %v9619_v2, %v2496_v21  ;;  %v7405_v21 = vld [vmem:[%s11602_s7 + $0x340] sm:$0xff]  ;;  %v3066_v62 = vld [vmem:[%s11602_s7 + $0x98] sm:$0xff] }
 0x3ed   : > { %v9820_v22 = vmax.f32 %v2654_v31, 0.0  ;;  %v9822_v1 = vpop.f32.mrf.mxu3  ;;  %3431 = vmatpush.msra.mxu3 %v7362_v42  ;;  %4000 = vmatpush.msrb.mxu2 %v7408_v7  ;;  %v3071_v31 = vld [vmem:[%s11602_s7 + $0xc0] sm:$0xff]  ;;  %v7354_v42 = vld [vmem:[%s11602_s7 + $0x1a8] sm:$0xff] }
 0x3ee   : > { %v2578_v2 = vadd.f32 %v9713_v18, %v2537_v27  ;;  %3131 = vmatpush.msra.mxu1 %v3071_v31  ;;  %v3070_v27 = vld [vmem:[%s11602_s7 + $0xb8] sm:$0xff]  ;;  %v7787_v31 = vld [vmem:[#allocation17] sm:$0x3] }
 0x3ef   : > { %2983 = vmatmul.f32.gmra.mxu2 %v9377_v13  ;;  %3114 = vmatmul.f32.gmra.mxu0 %v9820_v22  ;;  %v9917_v38 = vpop.f32.mrf.mxu1 }
 0x3f0   : > { %v2619_v18 = vadd.f32 %v9737_v10, %v2578_v2  ;;  %3432 = vmatpush.msra.mxu3 %v7361_v63  ;;  %4001 = vmatpush.msrb.mxu2 %v7407_v46  ;;  %v3069_v2 = vld [vmem:[%s11602_s7 + $0xb0] sm:$0xff] }
 0x3f1   : > { %v9940_v47 = vpop.f32.mrf.mxu0  ;;  %3132 = vmatpush.msra.mxu1 %v3070_v27  ;;  %v7349_v27 = vld [vmem:[%s11602_s7 + $0x180] sm:$0xff] }
 0x3f2   : > { %v2656_v14 = vpop.f32.mrf.mxu2  ;;  %3024 = vmatmul.f32.gmra.mxu3 %v9383_v28  ;;  %v11648_v28 = vld [vmem:[#allocation39_spill] sm:$0xff]  ;;  %4002 = vmatpush.msrb.mxu2 %v7406_v34  ;;  %v10026_v34 = vperm.slane %v7787_v31, 1 }
 0x3f3   : > { %v2657_v13 = vadd.f32 %v2656_v14, %v2616_v55  ;;  %3433 = vmatpush.msra.mxu3 %v7360_v54  ;;  %v7404_v55 = vld [vmem:[%s11602_s7 + $0x338] sm:$0xff]  ;;  %3133 = vmatpush.msra.mxu1 %v3069_v2 }
 0x3f4   : > { %4003 = vmatpush.msrb.mxu2 %v7405_v21  ;;  %v3064_v21 = vld [vmem:[%s11602_s7 + $0x88] sm:$0xff]  ;;  %v7428_v2 = vld [vmem:[%s11602_s7 + $0x3f8] sm:$0xff] }
 0x3f5   : > { %v9844_v44 = vmax.f32 %v2657_v13, 0.0  ;;  %v9846_v30 = vpop.f32.mrf.mxu3  ;;  %3434 = vmatpush.msra.mxu3 %v7359_v61  ;;  %v7403_v13 = vld [vmem:[%s11602_s7 + $0x330] sm:$0xff]  ;;  %v7352_v61 = vld [vmem:[%s11602_s7 + $0x198] sm:$0xff] }
 0x3f6   : > { %4004 = vmatpush.msrb.mxu2 %v7404_v55  ;;  %v3063_v55 = vld [vmem:[%s11602_s7 + $0x80] sm:$0xff] }
 0x3f7   : > { %2986 = vmatmul.f32.gmra.mxu2 %v11648_v28  ;;  %3117 = vmatmul.f32.gmra.mxu0 %v9844_v44  ;;  %v9959_v39 = vpop.f32.mrf.mxu1  ;;  %v7402_v28 = vld [vmem:[%s11602_s7 + $0x328] sm:$0xff] }
 0x3f8   : > { %3435 = vmatpush.msra.mxu3 %v7358_v41  ;;  %4005 = vmatpush.msrb.mxu2 %v7403_v13 }
 0x3fa   : > { %v2659_v51 = vpop.f32.mrf.mxu2  ;;  %3027 = vmatmul.f32.gmra.mxu3 %v11649_v58  ;;  %4006 = vmatpush.msrb.mxu2 %v7402_v28  ;;  %v7400_v58 = vld [vmem:[%s11602_s7 + $0x318] sm:$0xff] }
 0x3fb   : > { %v2660_v29 = vadd.f32 %v2659_v51, %v2619_v18  ;;  %3436 = vmatpush.msra.mxu3 %v7357_v36  ;;  %v7353_v18 = vld [vmem:[%s11602_s7 + $0x1a0] sm:$0xff]  ;;  %v3068_v51 = vld [vmem:[%s11602_s7 + $0xa8] sm:$0xff] }
 0x3fc   : > { %4007 = vmatpush.msrb.mxu2 %v7401_v43  ;;  %3134 = vmatpush.msra.mxu1 %v3068_v51  ;;  %v7427_v51 = vld [vmem:[%s11602_s7 + $0x3f0] sm:$0xff] }
 0x3fd   : > { %v9868_v59 = vmax.f32 %v2660_v29, 0.0  ;;  %v9870_v10 = vpop.f32.mrf.mxu3  ;;  %3437 = vmatpush.msra.mxu3 %v7356_v23  ;;  %v9983_v29 = vpop.f32.mrf.mxu0  ;;  %v3065_v23 = vld [vmem:[%s11602_s7 + $0x90] sm:$0xff] }
 0x3fe   : > { %4008 = vmatpush.msrb.mxu2 %v7400_v58  ;;  %3135 = vmatpush.msra.mxu1 %v3067_v50  ;;  %v7426_v50 = vld [vmem:[%s11602_s7 + $0x3e8] sm:$0xff] }
 0x3ff   : > { %3120 = vmatmul.f32.gmra.mxu0 %v9868_v59  ;;  %3404 = vmatmul.f32.vlgmr.msra.gmra.mxu2 %v9644_v9  ;;  %v10001_v41 = vpop.f32.mrf.mxu1 }
 0x400   : > { %3438 = vmatpush.msra.mxu3 %v7355_v15  ;;  %4009 = vmatpush.msrb.mxu2 %v7399_v17 }
 0x401   : > { %3136 = vmatpush.msra.mxu1 %v3066_v62 }
 0x402   : > { %v9885_v53 = vpop.f32.mrf.mxu2  ;;  %3439 = vmatpush.msra.mxu3 %v7354_v42  ;;  %4010 = vmatpush.msrb.mxu2 %v7398_v19  ;;  %v2680_v42 = vadd.f32 %v9646_v6, %v10026_v34  ;;  %v7396_v6 = vld [vmem:[%s11602_s7 + $0x2f8] sm:$0xff] }
 0x403   : > { %3137 = vmatpush.msra.mxu1 %v3065_v23 }
 0x404   : > { %3440 = vmatpush.msra.mxu3 %v7353_v18  ;;  %4011 = vmatpush.msrb.mxu2 %v7397_v57  ;;  %v2721_v18 = vadd.f32 %v9767_v60, %v2680_v42  ;;  %v2683_v60 = vadd.f32 %v9683_v4, %v10026_v34  ;;  %v7395_v57 = vld [vmem:[%s11602_s7 + $0x2f0] sm:$0xff] }
 0x405   : > { %v9899_v56 = vpop.f32.mrf.mxu3  ;;  %v10019_v7 = vpop.f32.mrf.mxu0  ;;  %3138 = vmatpush.msra.mxu1 %v3064_v21  ;;  %v7424_v21 = vld [vmem:[%s11602_s7 + $0x3d8] sm:$0xff] }
 0x406   : > { %3441 = vmatpush.msra.mxu3 %v7352_v61  ;;  %v2762_v61 = vadd.f32 %v9781_v26, %v2721_v18  ;;  %v2724_v62 = vadd.f32 %v9804_v11, %v2683_v60  ;;  %v7425_v26 = vld [vmem:[%s11602_s7 + $0x3e0] sm:$0xff]  ;;  %v2686_v11 = vadd.f32 %v9722_v20, %v10026_v34 }
 0x407   : > { %3407 = vmatmul.f32.gmra.mxu2 %v9681_v0  ;;  %3708 = vmatmul.f32.vlgmr.msrb.gmra.mxu0 %v9644_v9  ;;  %v10033_v15 = vpop.f32.mrf.mxu1 }
 0x408   : > { %3442 = vmatpush.msra.mxu3 %v7351_v37  ;;  %3139 = vmatpush.msra.mxu1 %v3063_v55  ;;  %v2803_v19 = vadd.f32 %v9885_v53, %v2762_v61  ;;  %v7394_v53 = vld [vmem:[%s11602_s7 + $0x2e8] sm:$0xff]  ;;  %v2765_v31 = vadd.f32 %v9816_v33, %v2724_v62  ;;  %v2727_v20 = vadd.f32 %v9834_v32, %v2686_v11  ;;  %v7423_v33 = vld [vmem:[%s11602_s7 + $0x3d0] sm:$0xff] }
 0x409   : > { %v2689_v32 = vadd.f32 %v9759_v49, %v10026_v34  ;;  %v7422_v61 = vld [vmem:[%s11602_s7 + $0x3c8] sm:$0xff] }
 0x40a   : > { %v9919_v45 = vpop.f32.mrf.mxu2  ;;  %3443 = vmatpush.msra.mxu3 %v7350_v5  ;;  %3733 = vmatpush.msrb.mxu1 %v7396_v6  ;;  %v2844_v5 = vadd.f32 %v9899_v56, %v2803_v19  ;;  %v7393_v56 = vld [vmem:[%s11602_s7 + $0x2e0] sm:$0xff] }
 0x40b   : > { %v2806_v42 = vadd.f32 %v9919_v45, %v2765_v31  ;;  %v7392_v45 = vld [vmem:[%s11602_s7 + $0x2d8] sm:$0xff]  ;;  %v2730_v49 = vadd.f32 %v9863_v24, %v2689_v32 }
 0x40c   : > { %3444 = vmatpush.msra.mxu3 %v7349_v27  ;;  %3734 = vmatpush.msrb.mxu1 %v7395_v57  ;;  %v7420_v31 = vld [vmem:[%s11602_s7 + $0x3b8] sm:$0xff] }
 0x40d   : > { %v9933_v8 = vpop.f32.mrf.mxu3  ;;  %v2884_v43 = vpop.f32.mrf.mxu0  ;;  %v2771_v24 = vadd.f32 %v9874_v40, %v2730_v49 }
 0x40e   : > { %4037 = vmatpush.msrb.mxu3 %v7428_v2  ;;  %3735 = vmatpush.msrb.mxu1 %v7394_v53  ;;  %v2885_v55 = vadd.f32 %v2884_v43, %v2844_v5  ;;  %v2847_v43 = vadd.f32 %v9933_v8, %v2806_v42  ;;  %v7389_v42 = vld [vmem:[%s11602_s7 + $0x2c0] sm:$0xff] }
 0x40f   : > { %3410 = vmatmul.f32.gmra.mxu2 %v9720_v25  ;;  %3711 = vmatmul.f32.gmra.mxu0 %v9681_v0  ;;  %v2925_v58 = vpop.f32.mrf.mxu1 }
 0x410   : > { %4038 = vmatpush.msrb.mxu3 %v7427_v51  ;;  %3736 = vmatpush.msrb.mxu1 %v7393_v56  ;;  %v2926_v18 = vadd.f32 %v2925_v58, %v2885_v55  ;;  %v7391_v58 = vld [vmem:[%s11602_s7 + $0x2d0] sm:$0xff] }
 0x412   : > { %v9951_v14 = vpop.f32.mrf.mxu2  ;;  %4039 = vmatpush.msrb.mxu3 %v7426_v50  ;;  %3737 = vmatpush.msrb.mxu1 %v7392_v45 }
 0x414   : > { %4040 = vmatpush.msrb.mxu3 %v7425_v26  ;;  %3738 = vmatpush.msrb.mxu1 %v7391_v58 }
 0x415   : > { %v9967_v63 = vpop.f32.mrf.mxu3  ;;  %v2887_v4 = vpop.f32.mrf.mxu0 }
 0x416   : > { %4041 = vmatpush.msrb.mxu3 %v7424_v21  ;;  %v2888_v50 = vadd.f32 %v2887_v4, %v2847_v43  ;;  %v7421_v4 = vld [vmem:[%s11602_s7 + $0x3c0] sm:$0xff] }
 0x417   : > { %3413 = vmatmul.f32.gmra.mxu2 %v9757_v48  ;;  %3714 = vmatmul.f32.gmra.mxu0 %v9720_v25  ;;  %v2928_v27 = vpop.f32.mrf.mxu1 }
 0x418   : > { %4042 = vmatpush.msrb.mxu3 %v7423_v33  ;;  %v2929_v53 = vadd.f32 %v2928_v27, %v2888_v50  ;;  %v7419_v33 = vld [vmem:[%s11602_s7 + $0x3b0] sm:$0xff] }
 0x41a   : > { %v9985_v54 = vpop.f32.mrf.mxu2  ;;  %4043 = vmatpush.msrb.mxu3 %v7422_v61 }
 0x41b   : > { %v2812_v27 = vadd.f32 %v9985_v54, %v2771_v24  ;;  %v7388_v54 = vld [vmem:[%s11602_s7 + $0x2b8] sm:$0xff]  ;;  %v7415_v24 = vld [vmem:[%s11602_s7 + $0x390] sm:$0xff] }
 0x41c   : > { %4044 = vmatpush.msrb.mxu3 %v7421_v4  ;;  %v7416_v4 = vld [vmem:[%s11602_s7 + $0x398] sm:$0xff] }
 0x41d   : > { %v9999_v35 = vpop.f32.mrf.mxu3  ;;  %v2890_v51 = vpop.f32.mrf.mxu0 }
 0x41e   : > { %4045 = vmatpush.msrb.mxu3 %v7420_v31  ;;  %v2853_v45 = vadd.f32 %v9999_v35, %v2812_v27  ;;  %v7414_v27 = vld [vmem:[%s11602_s7 + $0x388] sm:$0xff] }
 0x41f   : > { %3416 = vmatmul.f32.gmra.mxu2 %v9790_v52  ;;  %3717 = vmatmul.f32.gmra.mxu0 %v9757_v48  ;;  %v2931_v57 = vpop.f32.mrf.mxu1 }
 0x420   : > { %4046 = vmatpush.msrb.mxu3 %v7419_v33  ;;  %v7381_v33 = vld [vmem:[%s11602_s7 + $0x280] sm:$0xff] }
 0x422   : > { %v10014_v36 = vpop.f32.mrf.mxu2 }
 0x425   : > { %v10021_v46 = vpop.f32.mrf.mxu3  ;;  %v2893_v21 = vpop.f32.mrf.mxu0 }
 0x426   : > { %v2894_v35 = vadd.f32 %v2893_v21, %v2853_v45 }
 0x427   : > { %3419 = vmatmul.f32.gmra.mxu2 %v9820_v22  ;;  %3720 = vmatmul.f32.gmra.mxu0 %v9790_v52  ;;  %v2934_v40 = vpop.f32.mrf.mxu1 }
 0x428   : > { %v2935_v58 = vadd.f32 %v2934_v40, %v2894_v35 }
 0x42a   : > { %v10041_v13 = vpop.f32.mrf.mxu2 }
 0x42d   : > { %v10048_v28 = vpop.f32.mrf.mxu3  ;;  %v2896_v61 = vpop.f32.mrf.mxu0 }
 0x42f   : > { %3422 = vmatmul.f32.gmra.mxu2 %v9844_v44  ;;  %3723 = vmatmul.f32.gmra.mxu0 %v9820_v22 }
 0x432   : > { %v10059_v17 = vpop.f32.mrf.mxu2 }
 0x435   : > { %v10068_v37 = vpop.f32.mrf.mxu3 }
 0x437   : > { %3425 = vmatmul.f32.gmra.mxu2 %v9868_v59  ;;  %3726 = vmatmul.f32.gmra.mxu0 %v9844_v44 }
 0x43a   : > { %v10083_v23 = vpop.f32.mrf.mxu2 }
 0x43d   : > { %v10092_v2 = vpop.f32.mrf.mxu3 }
 0x43f   : > { %3729 = vmatmul.f32.gmra.mxu0 %v9868_v59  ;;  %4012 = vmatmul.f32.vlgmr.msrb.gmra.mxu2 %v9644_v9  ;;  %v2768_v9 = vadd.f32 %v9848_v16, %v2727_v20 }
 0x441   : > { %v2809_v19 = vadd.f32 %v9951_v14, %v2768_v9  ;;  %v7390_v14 = vld [vmem:[%s11602_s7 + $0x2c8] sm:$0xff] }
 0x442   : > { %v2966_v6 = vpop.f32.mrf.mxu2  ;;  %3739 = vmatpush.msrb.mxu1 %v7390_v14 }
 0x443   : > { %v2967_v60 = vadd.f32 %v2966_v6, %v2926_v18  ;;  %v2850_v26 = vadd.f32 %v9967_v63, %v2809_v19  ;;  %v7418_v6 = vld [vmem:[%s11602_s7 + $0x3a8] sm:$0xff]  ;;  %v7417_v19 = vld [vmem:[%s11602_s7 + $0x3a0] sm:$0xff] }
 0x444   : > { %3740 = vmatpush.msrb.mxu1 %v7389_v42  ;;  %4047 = vmatpush.msrb.mxu3 %v7418_v6 }
 0x445   : > { %v3007_v8 = vpop.f32.mrf.mxu3  ;;  %v2891_v63 = vadd.f32 %v2890_v51, %v2850_v26 }
 0x446   : > { %v3008_v62 = vadd.f32 %v3007_v8, %v2967_v60  ;;  %3741 = vmatpush.msrb.mxu1 %v7388_v54  ;;  %v7387_v60 = vld [vmem:[%s11602_s7 + $0x2b0] sm:$0xff]  ;;  %4048 = vmatpush.msrb.mxu3 %v7417_v19 }
 0x447   : > { %4015 = vmatmul.f32.gmra.mxu2 %v9681_v0  ;;  %v2692_v0 = vadd.f32 %v9792_v12, %v10026_v34  ;;  %v2932_v43 = vadd.f32 %v2931_v57, %v2891_v63  ;;  %v2937_v57 = vpop.f32.mrf.mxu1 }
 0x448   : > { %v10119_v16 = vmax.f32 %v3008_v62, 0.0  ;;  %3742 = vmatpush.msrb.mxu1 %v7387_v60  ;;  %4049 = vmatpush.msrb.mxu3 %v7416_v4 }
 0x449   : > { %v2733_v12 = vadd.f32 %v9901_v3, %v2692_v0 }
 0x44a   : > { %v2969_v5 = vpop.f32.mrf.mxu2  ;;  %3140 = vmatmul.f32.vlgmr.msra.gmra.mxu1 %v10119_v16  ;;  %3445 = vmatmul.f32.vlgmr.msra.gmra.mxu3 %v10119_v16 }
 0x44b   : > { %v2970_v11 = vadd.f32 %v2969_v5, %v2929_v53  ;;  %v2774_v3 = vadd.f32 %v9917_v38, %v2733_v12  ;;  %v7385_v53 = vld [vmem:[%s11602_s7 + $0x2a0] sm:$0xff]  ;;  %4050 = vmatpush.msrb.mxu3 %v7415_v24  ;;  %v7383_v12 = vld [vmem:[%s11602_s7 + $0x290] sm:$0xff] }
 0x44d   : > { %v3010_v55 = vpop.f32.mrf.mxu3  ;;  %v2815_v32 = vadd.f32 %v10014_v36, %v2774_v3  ;;  %v7386_v36 = vld [vmem:[%s11602_s7 + $0x2a8] sm:$0xff]  ;;  %4051 = vmatpush.msrb.mxu3 %v7414_v27 }
 0x44e   : > { %v3011_v56 = vadd.f32 %v3010_v55, %v2970_v11  ;;  %3743 = vmatpush.msrb.mxu1 %v7386_v36 }
 0x44f   : > { %4018 = vmatmul.f32.gmra.mxu2 %v9720_v25  ;;  %v2695_v25 = vadd.f32 %v9822_v1, %v10026_v34  ;;  %v2856_v8 = vadd.f32 %v10021_v46, %v2815_v32  ;;  %v2940_v55 = vpop.f32.mrf.mxu1 }
 0x450   : > { %v10142_v20 = vmax.f32 %v3011_v56, 0.0  ;;  %3744 = vmatpush.msrb.mxu1 %v7385_v53 }
 0x451   : > { %v2736_v1 = vadd.f32 %v9940_v47, %v2695_v25  ;;  %v2897_v46 = vadd.f32 %v2896_v61, %v2856_v8 }
 0x452   : > { %v2972_v18 = vpop.f32.mrf.mxu2  ;;  %3143 = vmatmul.f32.gmra.mxu1 %v10142_v20  ;;  %3448 = vmatmul.f32.gmra.mxu3 %v10142_v20 }
 0x453   : > { %v2973_v51 = vadd.f32 %v2972_v18, %v2932_v43  ;;  %v2777_v47 = vadd.f32 %v9959_v39, %v2736_v1  ;;  %v2899_v39 = vpop.f32.mrf.mxu0  ;;  %v2938_v31 = vadd.f32 %v2937_v57, %v2897_v46 }
 0x455   : > { %v3013_v9 = vpop.f32.mrf.mxu3  ;;  %v2818_v14 = vadd.f32 %v10041_v13, %v2777_v47  ;;  %v7384_v13 = vld [vmem:[%s11602_s7 + $0x298] sm:$0xff] }
 0x456   : > { %v3014_v50 = vadd.f32 %v3013_v9, %v2973_v51  ;;  %3745 = vmatpush.msrb.mxu1 %v7384_v13 }
 0x457   : > { %4021 = vmatmul.f32.gmra.mxu2 %v9757_v48  ;;  %v2698_v48 = vadd.f32 %v9846_v30, %v10026_v34  ;;  %v2859_v11 = vadd.f32 %v10048_v28, %v2818_v14  ;;  %v2943_v6 = vpop.f32.mrf.mxu1 }
 0x458   : > { %v10165_v38 = vmax.f32 %v3014_v50, 0.0  ;;  %3746 = vmatpush.msrb.mxu1 %v7383_v12 }
 0x459   : > { %v2739_v30 = vadd.f32 %v9983_v29, %v2698_v48  ;;  %v2900_v28 = vadd.f32 %v2899_v39, %v2859_v11 }
 0x45a   : > { %v2975_v62 = vpop.f32.mrf.mxu2  ;;  %3146 = vmatmul.f32.gmra.mxu1 %v10165_v38  ;;  %3451 = vmatmul.f32.gmra.mxu3 %v10165_v38 }
 0x45b   : > { %v2976_v49 = vadd.f32 %v2975_v62, %v2935_v58  ;;  %v2780_v29 = vadd.f32 %v10001_v41, %v2739_v30  ;;  %v7382_v41 = vld [vmem:[%s11602_s7 + $0x288] sm:$0xff]  ;;  %v2941_v45 = vadd.f32 %v2940_v55, %v2900_v28  ;;  %v2902_v43 = vpop.f32.mrf.mxu0 }
 0x45c   : > { %3747 = vmatpush.msrb.mxu1 %v7382_v41 }
 0x45d   : > { %v3016_v26 = vpop.f32.mrf.mxu3  ;;  %v2821_v42 = vadd.f32 %v10059_v17, %v2780_v29 }
 0x45e   : > { %v3017_v5 = vadd.f32 %v3016_v26, %v2976_v49  ;;  %3748 = vmatpush.msrb.mxu1 %v7381_v33 }
 0x45f   : > { %4024 = vmatmul.f32.gmra.mxu2 %v9790_v52  ;;  %v2701_v52 = vadd.f32 %v9870_v10, %v10026_v34  ;;  %v7413_v10 = vld [vmem:[%s11602_s7 + $0x380] sm:$0xff]  ;;  %v2862_v54 = vadd.f32 %v10068_v37, %v2821_v42  ;;  %v2946_v19 = vpop.f32.mrf.mxu1 }
 0x460   : > { %v10188_v0 = vmax.f32 %v3017_v5, 0.0  ;;  %4052 = vmatpush.msrb.mxu3 %v7413_v10 }
 0x461   : > { %v2742_v40 = vadd.f32 %v10019_v7, %v2701_v52  ;;  %v2903_v7 = vadd.f32 %v2902_v43, %v2862_v54 }
 0x462   : > { %v2978_v21 = vpop.f32.mrf.mxu2  ;;  %3149 = vmatmul.f32.gmra.mxu1 %v10188_v0  ;;  %3454 = vmatmul.f32.gmra.mxu3 %v10188_v0 }
 0x463   : > { %v2979_v63 = vadd.f32 %v2978_v21, %v2938_v31  ;;  %v2783_v25 = vadd.f32 %v10033_v15, %v2742_v40  ;;  %v2944_v9 = vadd.f32 %v2943_v6, %v2903_v7  ;;  %v2905_v50 = vpop.f32.mrf.mxu0 }
 0x465   : > { %v3019_v56 = vpop.f32.mrf.mxu3 }
 0x466   : > { %v3020_v34 = vadd.f32 %v3019_v56, %v2979_v63 }
 0x467   : > { %4027 = vmatmul.f32.gmra.mxu2 %v9820_v22  ;;  %v2824_v22 = vadd.f32 %v10083_v23, %v2783_v25 }
 0x468   : > { %v3040_v17 = vmax.f32 %v3020_v34, 0.0 }
 0x469   : > { %v2865_v37 = vadd.f32 %v10092_v2, %v2824_v22 }
 0x46a   : > { %v2981_v18 = vpop.f32.mrf.mxu2  ;;  %3152 = vmatmul.f32.gmra.mxu1 %v3040_v17  ;;  %3457 = vmatmul.f32.gmra.mxu3 %v3040_v17 }
 0x46b   : > { %v2982_v3 = vadd.f32 %v2981_v18, %v2941_v45  ;;  %v2906_v15 = vadd.f32 %v2905_v50, %v2865_v37 }
 0x46d   : > { %v3022_v51 = vpop.f32.mrf.mxu3  ;;  %v2947_v8 = vadd.f32 %v2946_v19, %v2906_v15 }
 0x46e   : > { %v3023_v35 = vadd.f32 %v3022_v51, %v2982_v3 }
 0x46f   : > { %4030 = vmatmul.f32.gmra.mxu2 %v9844_v44 }
 0x470   : > { %v3042_v32 = vmax.f32 %v3023_v35, 0.0 }
 0x472   : > { %v2984_v60 = vpop.f32.mrf.mxu2  ;;  %3155 = vmatmul.f32.gmra.mxu1 %v3042_v32  ;;  %3460 = vmatmul.f32.gmra.mxu3 %v3042_v32 }
 0x473   : > { %v2985_v61 = vadd.f32 %v2984_v60, %v2944_v9 }
 0x475   : > { %v3025_v1 = vpop.f32.mrf.mxu3 }
 0x476   : > { %v3026_v36 = vadd.f32 %v3025_v1, %v2985_v61 }
 0x477   : > { %4033 = vmatmul.f32.gmra.mxu2 %v9868_v59  ;;  %v10234_v59 = vld [vmem:[#allocation20] ss:$0 sm:$0xff] }
 0x478   : > { %v3044_v23 = vmax.f32 %v3026_v36, 0.0 }
 0x47a   : > { %v2987_v58 = vpop.f32.mrf.mxu2  ;;  %3158 = vmatmul.f32.gmra.mxu1 %v3044_v23  ;;  %3463 = vmatmul.f32.gmra.mxu3 %v3044_v23 }
 0x47b   : > { %v2988_v44 = vadd.f32 %v2987_v58, %v2947_v8 }
 0x47d   : > { %v3028_v57 = vpop.f32.mrf.mxu3 }
 0x47e   : > { %v3029_v2 = vadd.f32 %v3028_v57, %v2988_v44 }
 0x480   : > { %v3046_v62 = vmax.f32 %v3029_v2, 0.0 }
 0x482   : > { %3161 = vmatmul.f32.gmra.mxu1 %v3046_v62  ;;  %3466 = vmatmul.f32.gmra.mxu3 %v3046_v62  ;;  %v3405_v49 = vpop.f32.mrf.mxu2 }
 0x48a   : > { %3749 = vmatmul.f32.vlgmr.msrb.gmra.mxu1 %v10119_v16  ;;  %4053 = vmatmul.f32.vlgmr.msrb.gmra.mxu3 %v10119_v16  ;;  %v3100_v16 = vpop.f32.mrf.mxu0  ;;  %v3408_v56 = vpop.f32.mrf.mxu2 }
 0x492   : > { %3752 = vmatmul.f32.gmra.mxu1 %v10142_v20  ;;  %4056 = vmatmul.f32.gmra.mxu3 %v10142_v20  ;;  %v3101_v20 = vadd.f32 %v10234_v59, %v3100_v16  ;;  %v3103_v13 = vpop.f32.mrf.mxu0  ;;  %v3411_v60 = vpop.f32.mrf.mxu2 }
 0x493   : > { %v3104_v52 = vadd.f32 %v10234_v59, %v3103_v13 }
 0x49a   : > { %3755 = vmatmul.f32.gmra.mxu1 %v10165_v38  ;;  %4059 = vmatmul.f32.gmra.mxu3 %v10165_v38  ;;  %v10237_v38 = vld [vmem:[#allocation20 + $0x1] ss:$0 sm:$0xff]  ;;  %v3106_v18 = vpop.f32.mrf.mxu0 }
 0x49b   : > { %v3406_v53 = vadd.f32 %v10237_v38, %v3405_v49  ;;  %v3409_v34 = vadd.f32 %v10237_v38, %v3408_v56  ;;  %v3107_v22 = vadd.f32 %v10234_v59, %v3106_v18  ;;  %v3412_v1 = vadd.f32 %v10237_v38, %v3411_v60 }
 0x4a2   : > { %3758 = vmatmul.f32.gmra.mxu1 %v10188_v0  ;;  %4062 = vmatmul.f32.gmra.mxu3 %v10188_v0  ;;  %v3109_v57 = vpop.f32.mrf.mxu0 }
 0x4aa   : > { %3761 = vmatmul.f32.gmra.mxu1 %v3040_v17  ;;  %4065 = vmatmul.f32.gmra.mxu3 %v3040_v17 }
 0x4b2   : > { %3764 = vmatmul.f32.gmra.mxu1 %v3042_v32  ;;  %4068 = vmatmul.f32.gmra.mxu3 %v3042_v32 }
 0x4ba   : > { %3767 = vmatmul.f32.gmra.mxu1 %v3044_v23  ;;  %4071 = vmatmul.f32.gmra.mxu3 %v3044_v23 }
 0x4c2   : > { %3770 = vmatmul.f32.gmra.mxu1 %v3046_v62  ;;  %4074 = vmatmul.f32.gmra.mxu3 %v3046_v62 }
 0x4c7   : > { %v3141_v48 = vpop.f32.mrf.mxu1 }
 0x4c8   : > { %v3142_v47 = vadd.f32 %v3141_v48, %v3101_v20  ;;  %v3110_v20 = vadd.f32 %v10234_v59, %v3109_v57 }
 0x4ca   : > { %v3173_v4 = vrot.slane %v3142_v47, 1  ;;  %v3174_v46 = vrot.slane %v3142_v47, 2  ;;  %v3175_v14 = vrot.slane %v3142_v47, 3  ;;  %3286 = vst.msk [vmem:[#allocation5] sm:$0x1] %vm3285_vm7, %v3142_v47  ;;  %v3176_v26 = vrot.slane %v3142_v47, 4 }
 0x4cb   : > { %v3177_v5 = vrot.slane %v3142_v47, 5  ;;  %v3178_v30 = vrot.slane %v3142_v47, 6  ;;  %v3179_v0 = vrot.slane %v3142_v47, 7 }
 0x4cc   : > { %3287 = vst.msk [vmem:[#allocation5 + $0x4] sm:$0x1] %vm3285_vm7, %v3173_v4 }
 0x4cd   : > { %3288 = vst.msk [vmem:[#allocation5 + $0x8] sm:$0x1] %vm3285_vm7, %v3174_v46  ;;  %v3446_v39 = vpop.f32.mrf.mxu3 }
 0x4ce   : > { %3289 = vst.msk [vmem:[#allocation5 + $0xc] sm:$0x1] %vm3285_vm7, %v3175_v14  ;;  %v3447_v24 = vadd.f32 %v3446_v39, %v3406_v53 }
 0x4cf   : > { %3290 = vst.msk [vmem:[#allocation5 + $0x10] sm:$0x1] %vm3285_vm7, %v3176_v26  ;;  %v3144_v21 = vpop.f32.mrf.mxu1  ;;  %v3414_v26 = vpop.f32.mrf.mxu2 }
 0x4d0   : > { %3291 = vst.msk [vmem:[#allocation5 + $0x14] sm:$0x1] %vm3285_vm7, %v3177_v5  ;;  %v3478_v11 = vrot.slane %v3447_v24, 1  ;;  %v3479_v31 = vrot.slane %v3447_v24, 2  ;;  %v3480_v29 = vrot.slane %v3447_v24, 3  ;;  %v3481_v63 = vrot.slane %v3447_v24, 4 }
 0x4d1   : > { %3292 = vst.msk [vmem:[#allocation5 + $0x18] sm:$0x1] %vm3285_vm7, %v3178_v30  ;;  %v3482_v27 = vrot.slane %v3447_v24, 5  ;;  %v3145_v55 = vadd.f32 %v3144_v21, %v3104_v52  ;;  %v3483_v28 = vrot.slane %v3447_v24, 6  ;;  %v3484_v42 = vrot.slane %v3447_v24, 7  ;;  %v3112_v52 = vpop.f32.mrf.mxu0 }
 0x4d2   : > { %3293 = vst.msk [vmem:[#allocation5 + $0x1c] sm:$0x1] %vm3285_vm7, %v3179_v0  ;;  %v3415_v39 = vadd.f32 %v10237_v38, %v3414_v26 }
 0x4d3   : > { %3590 = vst.msk [vmem:[#allocation5 + $0x1] sm:$0x1] %vm3285_vm7, %v3447_v24  ;;  %v3180_v12 = vrot.slane %v3145_v55, 1  ;;  %v3181_v10 = vrot.slane %v3145_v55, 2  ;;  %v3182_v40 = vrot.slane %v3145_v55, 3  ;;  %v3183_v17 = vrot.slane %v3145_v55, 4 }
 0x4d4   : > { %3591 = vst.msk [vmem:[#allocation5 + $0x5] sm:$0x1] %vm3285_vm7, %v3478_v11  ;;  %v3184_v33 = vrot.slane %v3145_v55, 5  ;;  %v3185_v45 = vrot.slane %v3145_v55, 6  ;;  %v3186_v43 = vrot.slane %v3145_v55, 7 }
 0x4d5   : > { %3592 = vst.msk [vmem:[#allocation5 + $0x9] sm:$0x1] %vm3285_vm7, %v3479_v31  ;;  %v3449_v41 = vpop.f32.mrf.mxu3 }
 0x4d6   : > { %3593 = vst.msk [vmem:[#allocation5 + $0xd] sm:$0x1] %vm3285_vm7, %v3480_v29  ;;  %v3450_v54 = vadd.f32 %v3449_v41, %v3409_v34 }
 0x4d7   : > { %3594 = vst.msk [vmem:[#allocation5 + $0x11] sm:$0x1] %vm3285_vm7, %v3481_v63  ;;  %v3147_v7 = vpop.f32.mrf.mxu1  ;;  %v3417_v34 = vpop.f32.mrf.mxu2 }
 0x4d8   : > { %3595 = vst.msk [vmem:[#allocation5 + $0x15] sm:$0x1] %vm3285_vm7, %v3482_v27  ;;  %v3485_v25 = vrot.slane %v3450_v54, 1  ;;  %v3486_v3 = vrot.slane %v3450_v54, 2  ;;  %v3487_v51 = vrot.slane %v3450_v54, 3  ;;  %v3488_v6 = vrot.slane %v3450_v54, 4 }
 0x4d9   : > { %3596 = vst.msk [vmem:[#allocation5 + $0x19] sm:$0x1] %vm3285_vm7, %v3483_v28  ;;  %v3489_v35 = vrot.slane %v3450_v54, 5  ;;  %v3148_v32 = vadd.f32 %v3147_v7, %v3107_v22  ;;  %v3490_v37 = vrot.slane %v3450_v54, 6  ;;  %v3491_v9 = vrot.slane %v3450_v54, 7  ;;  %v3115_v22 = vpop.f32.mrf.mxu0 }
 0x4da   : > { %3597 = vst.msk [vmem:[#allocation5 + $0x1d] sm:$0x1] %vm3285_vm7, %v3484_v42 }
 0x4db   : > { %3294 = vst.msk [vmem:[#allocation5 + $0x20] sm:$0x1] %vm3285_vm7, %v3145_v55  ;;  %v3187_v61 = vrot.slane %v3148_v32, 1  ;;  %v3188_v50 = vrot.slane %v3148_v32, 2  ;;  %v3189_v19 = vrot.slane %v3148_v32, 3  ;;  %v3190_v36 = vrot.slane %v3148_v32, 4 }
 0x4dc   : > { %3295 = vst.msk [vmem:[#allocation5 + $0x24] sm:$0x1] %vm3285_vm7, %v3180_v12  ;;  %v3191_v23 = vrot.slane %v3148_v32, 5  ;;  %v3192_v58 = vrot.slane %v3148_v32, 6  ;;  %v3193_v44 = vrot.slane %v3148_v32, 7  ;;  %v3113_v55 = vadd.f32 %v10234_v59, %v3112_v52 }
 0x4dd   : > { %3296 = vst.msk [vmem:[#allocation5 + $0x28] sm:$0x1] %vm3285_vm7, %v3181_v10  ;;  %v3452_v15 = vpop.f32.mrf.mxu3 }
 0x4de   : > { %3297 = vst.msk [vmem:[#allocation5 + $0x2c] sm:$0x1] %vm3285_vm7, %v3182_v40  ;;  %v3453_v8 = vadd.f32 %v3452_v15, %v3412_v1 }
 0x4df   : > { %3298 = vst.msk [vmem:[#allocation5 + $0x30] sm:$0x1] %vm3285_vm7, %v3183_v17  ;;  %v3150_v16 = vpop.f32.mrf.mxu1  ;;  %v3420_v1 = vpop.f32.mrf.mxu2 }
 0x4e0   : > { %3299 = vst.msk [vmem:[#allocation5 + $0x34] sm:$0x1] %vm3285_vm7, %v3184_v33  ;;  %v3492_v2 = vrot.slane %v3453_v8, 1  ;;  %v3493_v62 = vrot.slane %v3453_v8, 2  ;;  %v3494_v48 = vrot.slane %v3453_v8, 3  ;;  %v3495_v47 = vrot.slane %v3453_v8, 4 }
 0x4e1   : > { %3300 = vst.msk [vmem:[#allocation5 + $0x38] sm:$0x1] %vm3285_vm7, %v3185_v45  ;;  %v3496_v49 = vrot.slane %v3453_v8, 5  ;;  %v3151_v4 = vadd.f32 %v3150_v16, %v3110_v20  ;;  %v3497_v46 = vrot.slane %v3453_v8, 6  ;;  %v3498_v14 = vrot.slane %v3453_v8, 7  ;;  %v3118_v20 = vpop.f32.mrf.mxu0 }
 0x4e2   : > { %3301 = vst.msk [vmem:[#allocation5 + $0x3c] sm:$0x1] %vm3285_vm7, %v3186_v43 }
 0x4e3   : > { %3598 = vst.msk [vmem:[#allocation5 + $0x21] sm:$0x1] %vm3285_vm7, %v3450_v54  ;;  %v3194_v53 = vrot.slane %v3151_v4, 1  ;;  %v3195_v5 = vrot.slane %v3151_v4, 2  ;;  %v3196_v0 = vrot.slane %v3151_v4, 3  ;;  %v3197_v24 = vrot.slane %v3151_v4, 4 }
 0x4e4   : > { %3599 = vst.msk [vmem:[#allocation5 + $0x25] sm:$0x1] %vm3285_vm7, %v3485_v25  ;;  %v3198_v13 = vrot.slane %v3151_v4, 5  ;;  %v3199_v31 = vrot.slane %v3151_v4, 6  ;;  %v3200_v21 = vrot.slane %v3151_v4, 7  ;;  %v3418_v54 = vadd.f32 %v10237_v38, %v3417_v34 }
 0x4e5   : > { %3600 = vst.msk [vmem:[#allocation5 + $0x29] sm:$0x1] %vm3285_vm7, %v3486_v3  ;;  %v3455_v30 = vpop.f32.mrf.mxu3 }
 0x4e6   : > { %3601 = vst.msk [vmem:[#allocation5 + $0x2d] sm:$0x1] %vm3285_vm7, %v3487_v51  ;;  %v3456_v11 = vadd.f32 %v3455_v30, %v3415_v39 }
 0x4e7   : > { %3602 = vst.msk [vmem:[#allocation5 + $0x31] sm:$0x1] %vm3285_vm7, %v3488_v6  ;;  %v3153_v27 = vpop.f32.mrf.mxu1  ;;  %v3423_v39 = vpop.f32.mrf.mxu2 }
 0x4e8   : > { %3603 = vst.msk [vmem:[#allocation5 + $0x35] sm:$0x1] %vm3285_vm7, %v3489_v35  ;;  %v3499_v29 = vrot.slane %v3456_v11, 1  ;;  %v3500_v63 = vrot.slane %v3456_v11, 2  ;;  %v3501_v28 = vrot.slane %v3456_v11, 3  ;;  %v3502_v42 = vrot.slane %v3456_v11, 4 }
 0x4e9   : > { %3604 = vst.msk [vmem:[#allocation5 + $0x39] sm:$0x1] %vm3285_vm7, %v3490_v37  ;;  %v3503_v56 = vrot.slane %v3456_v11, 5  ;;  %v3154_v12 = vadd.f32 %v3153_v27, %v3113_v55  ;;  %v3504_v10 = vrot.slane %v3456_v11, 6  ;;  %v3505_v41 = vrot.slane %v3456_v11, 7  ;;  %v3121_v55 = vpop.f32.mrf.mxu0 }
 0x4ea   : > { %3605 = vst.msk [vmem:[#allocation5 + $0x3d] sm:$0x1] %vm3285_vm7, %v3491_v9 }
 0x4eb   : > { %3302 = vst.msk [vmem:[#allocation5 + $0x40] sm:$0x1] %vm3285_vm7, %v3148_v32  ;;  %v3201_v40 = vrot.slane %v3154_v12, 1  ;;  %v3202_v17 = vrot.slane %v3154_v12, 2  ;;  %v3203_v45 = vrot.slane %v3154_v12, 3  ;;  %v3204_v43 = vrot.slane %v3154_v12, 4 }
 0x4ec   : > { %3303 = vst.msk [vmem:[#allocation5 + $0x44] sm:$0x1] %vm3285_vm7, %v3187_v61  ;;  %v3205_v18 = vrot.slane %v3154_v12, 5  ;;  %v3206_v3 = vrot.slane %v3154_v12, 6  ;;  %v3207_v7 = vrot.slane %v3154_v12, 7  ;;  %v3116_v32 = vadd.f32 %v10234_v59, %v3115_v22 }
 0x4ed   : > { %3304 = vst.msk [vmem:[#allocation5 + $0x48] sm:$0x1] %vm3285_vm7, %v3188_v50  ;;  %v3458_v33 = vpop.f32.mrf.mxu3 }
 0x4ee   : > { %3305 = vst.msk [vmem:[#allocation5 + $0x4c] sm:$0x1] %vm3285_vm7, %v3189_v19  ;;  %v3459_v25 = vadd.f32 %v3458_v33, %v3418_v54 }
 0x4ef   : > { %3306 = vst.msk [vmem:[#allocation5 + $0x50] sm:$0x1] %vm3285_vm7, %v3190_v36  ;;  %v3156_v35 = vpop.f32.mrf.mxu1  ;;  %v3426_v54 = vpop.f32.mrf.mxu2 }
 0x4f0   : > { %3307 = vst.msk [vmem:[#allocation5 + $0x54] sm:$0x1] %vm3285_vm7, %v3191_v23  ;;  %v3506_v51 = vrot.slane %v3459_v25, 1  ;;  %v3507_v6 = vrot.slane %v3459_v25, 2  ;;  %v3508_v37 = vrot.slane %v3459_v25, 3  ;;  %v3509_v9 = vrot.slane %v3459_v25, 4 }
 0x4f1   : > { %3308 = vst.msk [vmem:[#allocation5 + $0x58] sm:$0x1] %vm3285_vm7, %v3192_v58  ;;  %v3510_v60 = vrot.slane %v3459_v25, 5  ;;  %v3157_v61 = vadd.f32 %v3156_v35, %v3116_v32  ;;  %v3511_v50 = vrot.slane %v3459_v25, 6  ;;  %v3512_v15 = vrot.slane %v3459_v25, 7  ;;  %v3709_v32 = vpop.f32.mrf.mxu0 }
 0x4f2   : > { %3309 = vst.msk [vmem:[#allocation5 + $0x5c] sm:$0x1] %vm3285_vm7, %v3193_v44 }
 0x4f3   : > { %3606 = vst.msk [vmem:[#allocation5 + $0x41] sm:$0x1] %vm3285_vm7, %v3453_v8  ;;  %v3208_v19 = vrot.slane %v3157_v61, 1  ;;  %v3209_v36 = vrot.slane %v3157_v61, 2  ;;  %v3421_v8 = vadd.f32 %v10237_v38, %v3420_v1  ;;  %v3210_v58 = vrot.slane %v3157_v61, 3 }
 0x4f4   : > { %3607 = vst.msk [vmem:[#allocation5 + $0x45] sm:$0x1] %vm3285_vm7, %v3492_v2  ;;  %v3211_v44 = vrot.slane %v3157_v61, 4  ;;  %v3212_v57 = vrot.slane %v3157_v61, 5  ;;  %v3214_v16 = vrot.slane %v3157_v61, 7 }
 0x4f5   : > { %3608 = vst.msk [vmem:[#allocation5 + $0x49] sm:$0x1] %vm3285_vm7, %v3493_v62  ;;  %v3461_v23 = vpop.f32.mrf.mxu3  ;;  %v3213_v62 = vrot.slane %v3157_v61, 6 }
 0x4f6   : > { %3609 = vst.msk [vmem:[#allocation5 + $0x4d] sm:$0x1] %vm3285_vm7, %v3494_v48  ;;  %v3462_v2 = vadd.f32 %v3461_v23, %v3421_v8 }
 0x4f7   : > { %3610 = vst.msk [vmem:[#allocation5 + $0x51] sm:$0x1] %vm3285_vm7, %v3495_v47  ;;  %v4013_v8 = vpop.f32.mrf.mxu2 }
 0x4f8   : > { %3611 = vst.msk [vmem:[#allocation5 + $0x55] sm:$0x1] %vm3285_vm7, %v3496_v49  ;;  %v3513_v48 = vrot.slane %v3462_v2, 1  ;;  %v3514_v47 = vrot.slane %v3462_v2, 2  ;;  %v3159_v49 = vpop.f32.mrf.mxu1  ;;  %v3517_v26 = vrot.slane %v3462_v2, 5  ;;  %v3519_v30 = vrot.slane %v3462_v2, 7 }
 0x4f9   : > { %3612 = vst.msk [vmem:[#allocation5 + $0x59] sm:$0x1] %vm3285_vm7, %v3497_v46  ;;  %v3515_v46 = vrot.slane %v3462_v2, 3 }
 0x4fa   : > { %3613 = vst.msk [vmem:[#allocation5 + $0x5d] sm:$0x1] %vm3285_vm7, %v3498_v14  ;;  %v3516_v14 = vrot.slane %v3462_v2, 4 }
 0x4fb   : > { %3310 = vst.msk [vmem:[#allocation5 + $0x60] sm:$0x1] %vm3285_vm7, %v3151_v4  ;;  %v3119_v4 = vadd.f32 %v10234_v59, %v3118_v20 }
 0x4fc   : > { %3311 = vst.msk [vmem:[#allocation5 + $0x64] sm:$0x1] %vm3285_vm7, %v3194_v53 }
 0x4fd   : > { %3312 = vst.msk [vmem:[#allocation5 + $0x68] sm:$0x1] %vm3285_vm7, %v3195_v5  ;;  %v3160_v53 = vadd.f32 %v3159_v49, %v3119_v4  ;;  %v3518_v5 = vrot.slane %v3462_v2, 6  ;;  %v3712_v4 = vpop.f32.mrf.mxu0 }
 0x4fe   : > { %3313 = vst.msk [vmem:[#allocation5 + $0x6c] sm:$0x1] %vm3285_vm7, %v3196_v0 }
 0x4ff   : > { %3314 = vst.msk [vmem:[#allocation5 + $0x70] sm:$0x1] %vm3285_vm7, %v3197_v24  ;;  %v3215_v0 = vrot.slane %v3160_v53, 1  ;;  %v3216_v24 = vrot.slane %v3160_v53, 2  ;;  %v3219_v52 = vrot.slane %v3160_v53, 5  ;;  %v3221_v27 = vrot.slane %v3160_v53, 7 }
 0x500   : > { %3315 = vst.msk [vmem:[#allocation5 + $0x74] sm:$0x1] %vm3285_vm7, %v3198_v13  ;;  %v3464_v13 = vpop.f32.mrf.mxu3 }
 0x501   : > { %3316 = vst.msk [vmem:[#allocation5 + $0x78] sm:$0x1] %vm3285_vm7, %v3199_v31  ;;  %v3217_v31 = vrot.slane %v3160_v53, 3 }
 0x502   : > { %3317 = vst.msk [vmem:[#allocation5 + $0x7c] sm:$0x1] %vm3285_vm7, %v3200_v21  ;;  %v3218_v21 = vrot.slane %v3160_v53, 4 }
 0x503   : > { %3614 = vst.msk [vmem:[#allocation5 + $0x61] sm:$0x1] %vm3285_vm7, %v3456_v11  ;;  %v3424_v11 = vadd.f32 %v10237_v38, %v3423_v39 }
 0x504   : > { %3615 = vst.msk [vmem:[#allocation5 + $0x65] sm:$0x1] %vm3285_vm7, %v3499_v29 }
 0x505   : > { %3616 = vst.msk [vmem:[#allocation5 + $0x69] sm:$0x1] %vm3285_vm7, %v3500_v63  ;;  %v3465_v29 = vadd.f32 %v3464_v13, %v3424_v11  ;;  %v3220_v63 = vrot.slane %v3160_v53, 6  ;;  %v4016_v11 = vpop.f32.mrf.mxu2 }
 0x506   : > { %3617 = vst.msk [vmem:[#allocation5 + $0x6d] sm:$0x1] %vm3285_vm7, %v3501_v28 }
 0x507   : > { %3618 = vst.msk [vmem:[#allocation5 + $0x71] sm:$0x1] %vm3285_vm7, %v3502_v42  ;;  %v3520_v28 = vrot.slane %v3465_v29, 1  ;;  %v3521_v42 = vrot.slane %v3465_v29, 2  ;;  %v3524_v34 = vrot.slane %v3465_v29, 5  ;;  %v3526_v33 = vrot.slane %v3465_v29, 7 }
 0x508   : > { %3619 = vst.msk [vmem:[#allocation5 + $0x75] sm:$0x1] %vm3285_vm7, %v3503_v56  ;;  %v3162_v56 = vpop.f32.mrf.mxu1 }
 0x509   : > { %3620 = vst.msk [vmem:[#allocation5 + $0x79] sm:$0x1] %vm3285_vm7, %v3504_v10  ;;  %v3522_v10 = vrot.slane %v3465_v29, 3 }
 0x50a   : > { %3621 = vst.msk [vmem:[#allocation5 + $0x7d] sm:$0x1] %vm3285_vm7, %v3505_v41  ;;  %v3523_v41 = vrot.slane %v3465_v29, 4 }
 0x50b   : > { %3318 = vst.msk [vmem:[#allocation5 + $0x80] sm:$0x1] %vm3285_vm7, %v3154_v12  ;;  %v3122_v12 = vadd.f32 %v10234_v59, %v3121_v55 }
 0x50c   : > { %3319 = vst.msk [vmem:[#allocation5 + $0x84] sm:$0x1] %vm3285_vm7, %v3201_v40 }
 0x50d   : > { %3320 = vst.msk [vmem:[#allocation5 + $0x88] sm:$0x1] %vm3285_vm7, %v3202_v17  ;;  %v3163_v40 = vadd.f32 %v3162_v56, %v3122_v12  ;;  %v3525_v17 = vrot.slane %v3465_v29, 6  ;;  %v3715_v12 = vpop.f32.mrf.mxu0 }
 0x50e   : > { %3321 = vst.msk [vmem:[#allocation5 + $0x8c] sm:$0x1] %vm3285_vm7, %v3203_v45 }
 0x50f   : > { %3322 = vst.msk [vmem:[#allocation5 + $0x90] sm:$0x1] %vm3285_vm7, %v3204_v43  ;;  %v3222_v59 = vrot.slane %v3163_v40, 1  ;;  %v3223_v45 = vrot.slane %v3163_v40, 2  ;;  %v3467_v43 = vpop.f32.mrf.mxu3  ;;  %v3228_v35 = vrot.slane %v3163_v40, 7 }
 0x510   : > { %3323 = vst.msk [vmem:[#allocation5 + $0x94] sm:$0x1] %vm3285_vm7, %v3205_v18  ;;  %v3427_v18 = vadd.f32 %v10237_v38, %v3426_v54 }
 0x511   : > { %3324 = vst.msk [vmem:[#allocation5 + $0x98] sm:$0x1] %vm3285_vm7, %v3206_v3  ;;  %v3225_v3 = vrot.slane %v3163_v40, 4 }
 0x512   : > { %3325 = vst.msk [vmem:[#allocation5 + $0x9c] sm:$0x1] %vm3285_vm7, %v3207_v7  ;;  %v3226_v7 = vrot.slane %v3163_v40, 5  ;;  %v3468_v22 = vadd.f32 %v3467_v43, %v3427_v18  ;;  %v4019_v18 = vpop.f32.mrf.mxu2 }
 0x513   : > { %3622 = vst.msk [vmem:[#allocation5 + $0x81] sm:$0x1] %vm3285_vm7, %v3459_v25  ;;  %v3224_v25 = vrot.slane %v3163_v40, 3 }
 0x514   : > { %3623 = vst.msk [vmem:[#allocation5 + $0x85] sm:$0x1] %vm3285_vm7, %v3506_v51  ;;  %v3227_v51 = vrot.slane %v3163_v40, 6  ;;  %v3527_v38 = vrot.slane %v3468_v22, 1  ;;  %v3533_v23 = vrot.slane %v3468_v22, 7 }
 0x515   : > { %3624 = vst.msk [vmem:[#allocation5 + $0x89] sm:$0x1] %vm3285_vm7, %v3507_v6  ;;  %v10369_v6 = vld [vmem:[#allocation20 + $0x2] ss:$0 sm:$0xff] }
 0x516   : > { %3625 = vst.msk [vmem:[#allocation5 + $0x8d] sm:$0x1] %vm3285_vm7, %v3508_v37  ;;  %v3528_v37 = vrot.slane %v3468_v22, 2 }
 0x517   : > { %3626 = vst.msk [vmem:[#allocation5 + $0x91] sm:$0x1] %vm3285_vm7, %v3509_v9  ;;  %v3750_v9 = vpop.f32.mrf.mxu1 }
 0x518   : > { %3627 = vst.msk [vmem:[#allocation5 + $0x95] sm:$0x1] %vm3285_vm7, %v3510_v60  ;;  %v3710_v60 = vadd.f32 %v10369_v6, %v3709_v32 }
 0x519   : > { %3628 = vst.msk [vmem:[#allocation5 + $0x99] sm:$0x1] %vm3285_vm7, %v3511_v50  ;;  %v3530_v50 = vrot.slane %v3468_v22, 4 }
 0x51a   : > { %3629 = vst.msk [vmem:[#allocation5 + $0x9d] sm:$0x1] %vm3285_vm7, %v3512_v15  ;;  %v3531_v15 = vrot.slane %v3468_v22, 5  ;;  %v3751_v1 = vadd.f32 %v3750_v9, %v3710_v60  ;;  %v3718_v60 = vpop.f32.mrf.mxu0 }
 0x51b   : > { %3326 = vst.msk [vmem:[#allocation5 + $0xa0] sm:$0x1] %vm3285_vm7, %v3157_v61  ;;  %v3529_v61 = vrot.slane %v3468_v22, 3 }
 0x51c   : > { %3327 = vst.msk [vmem:[#allocation5 + $0xa4] sm:$0x1] %vm3285_vm7, %v3208_v19  ;;  %v3532_v19 = vrot.slane %v3468_v22, 6  ;;  %v3786_v20 = vrot.slane %v3751_v1, 5  ;;  %v3788_v49 = vrot.slane %v3751_v1, 7 }
 0x51d   : > { %3328 = vst.msk [vmem:[#allocation5 + $0xa8] sm:$0x1] %vm3285_vm7, %v3209_v36  ;;  %v10380_v36 = vld [vmem:[#allocation20 + $0x3] ss:$0 sm:$0xff] }
 0x51e   : > { %3329 = vst.msk [vmem:[#allocation5 + $0xac] sm:$0x1] %vm3285_vm7, %v3210_v58  ;;  %v3782_v58 = vrot.slane %v3751_v1, 1 }
 0x51f   : > { %3330 = vst.msk [vmem:[#allocation5 + $0xb0] sm:$0x1] %vm3285_vm7, %v3211_v44  ;;  %v3783_v44 = vrot.slane %v3751_v1, 2 }
 0x520   : > { %3331 = vst.msk [vmem:[#allocation5 + $0xb4] sm:$0x1] %vm3285_vm7, %v3212_v57  ;;  %v4054_v57 = vpop.f32.mrf.mxu3 }
 0x521   : > { %3332 = vst.msk [vmem:[#allocation5 + $0xb8] sm:$0x1] %vm3285_vm7, %v3213_v62  ;;  %v3784_v62 = vrot.slane %v3751_v1, 3 }
 0x522   : > { %3333 = vst.msk [vmem:[#allocation5 + $0xbc] sm:$0x1] %vm3285_vm7, %v3214_v16  ;;  %v3785_v16 = vrot.slane %v3751_v1, 4 }
 0x523   : > { %3630 = vst.msk [vmem:[#allocation5 + $0xa1] sm:$0x1] %vm3285_vm7, %v3462_v2  ;;  %v4014_v2 = vadd.f32 %v10380_v36, %v4013_v8 }
 0x524   : > { %3631 = vst.msk [vmem:[#allocation5 + $0xa5] sm:$0x1] %vm3285_vm7, %v3513_v48 }
 0x525   : > { %3632 = vst.msk [vmem:[#allocation5 + $0xa9] sm:$0x1] %vm3285_vm7, %v3514_v47  ;;  %v4055_v48 = vadd.f32 %v4054_v57, %v4014_v2  ;;  %v3787_v47 = vrot.slane %v3751_v1, 6  ;;  %v4022_v2 = vpop.f32.mrf.mxu2 }
 0x526   : > { %3633 = vst.msk [vmem:[#allocation5 + $0xad] sm:$0x1] %vm3285_vm7, %v3515_v46 }
 0x527   : > { %3634 = vst.msk [vmem:[#allocation5 + $0xb1] sm:$0x1] %vm3285_vm7, %v3516_v14  ;;  %v4086_v46 = vrot.slane %v4055_v48, 1  ;;  %v4087_v14 = vrot.slane %v4055_v48, 2  ;;  %v4090_v39 = vrot.slane %v4055_v48, 5  ;;  %v4092_v13 = vrot.slane %v4055_v48, 7 }
 0x528   : > { %3635 = vst.msk [vmem:[#allocation5 + $0xb5] sm:$0x1] %vm3285_vm7, %v3517_v26  ;;  %v3753_v26 = vpop.f32.mrf.mxu1 }
 0x529   : > { %3636 = vst.msk [vmem:[#allocation5 + $0xb9] sm:$0x1] %vm3285_vm7, %v3518_v5  ;;  %v4088_v5 = vrot.slane %v4055_v48, 3 }
 0x52a   : > { %3637 = vst.msk [vmem:[#allocation5 + $0xbd] sm:$0x1] %vm3285_vm7, %v3519_v30  ;;  %v4089_v30 = vrot.slane %v4055_v48, 4 }
 0x52b   : > { %3334 = vst.msk [vmem:[#allocation5 + $0xc0] sm:$0x1] %vm3285_vm7, %v3160_v53  ;;  %v3713_v53 = vadd.f32 %v10369_v6, %v3712_v4 }
 0x52c   : > { %3335 = vst.msk [vmem:[#allocation5 + $0xc4] sm:$0x1] %vm3285_vm7, %v3215_v0 }
 0x52d   : > { %3336 = vst.msk [vmem:[#allocation5 + $0xc8] sm:$0x1] %vm3285_vm7, %v3216_v24  ;;  %v3754_v0 = vadd.f32 %v3753_v26, %v3713_v53  ;;  %v4091_v24 = vrot.slane %v4055_v48, 6  ;;  %v3721_v53 = vpop.f32.mrf.mxu0 }
 0x52e   : > { %3337 = vst.msk [vmem:[#allocation5 + $0xcc] sm:$0x1] %vm3285_vm7, %v3217_v31 }
 0x52f   : > { %3338 = vst.msk [vmem:[#allocation5 + $0xd0] sm:$0x1] %vm3285_vm7, %v3218_v21  ;;  %v3789_v31 = vrot.slane %v3754_v0, 1  ;;  %v3790_v21 = vrot.slane %v3754_v0, 2  ;;  %v3793_v55 = vrot.slane %v3754_v0, 5  ;;  %v3795_v56 = vrot.slane %v3754_v0, 7 }
 0x530   : > { %3339 = vst.msk [vmem:[#allocation5 + $0xd4] sm:$0x1] %vm3285_vm7, %v3219_v52  ;;  %v4057_v52 = vpop.f32.mrf.mxu3 }
 0x531   : > { %3340 = vst.msk [vmem:[#allocation5 + $0xd8] sm:$0x1] %vm3285_vm7, %v3220_v63  ;;  %v3791_v63 = vrot.slane %v3754_v0, 3 }
 0x532   : > { %3341 = vst.msk [vmem:[#allocation5 + $0xdc] sm:$0x1] %vm3285_vm7, %v3221_v27  ;;  %v3792_v27 = vrot.slane %v3754_v0, 4 }
 0x533   : > { %3638 = vst.msk [vmem:[#allocation5 + $0xc1] sm:$0x1] %vm3285_vm7, %v3465_v29  ;;  %v4017_v29 = vadd.f32 %v10380_v36, %v4016_v11 }
 0x534   : > { %3639 = vst.msk [vmem:[#allocation5 + $0xc5] sm:$0x1] %vm3285_vm7, %v3520_v28 }
 0x535   : > { %3640 = vst.msk [vmem:[#allocation5 + $0xc9] sm:$0x1] %vm3285_vm7, %v3521_v42  ;;  %v4058_v28 = vadd.f32 %v4057_v52, %v4017_v29  ;;  %v3794_v42 = vrot.slane %v3754_v0, 6  ;;  %v4025_v29 = vpop.f32.mrf.mxu2 }
 0x536   : > { %3641 = vst.msk [vmem:[#allocation5 + $0xcd] sm:$0x1] %vm3285_vm7, %v3522_v10 }
 0x537   : > { %3642 = vst.msk [vmem:[#allocation5 + $0xd1] sm:$0x1] %vm3285_vm7, %v3523_v41  ;;  %v4093_v10 = vrot.slane %v4058_v28, 1  ;;  %v4094_v41 = vrot.slane %v4058_v28, 2  ;;  %v4097_v54 = vrot.slane %v4058_v28, 5  ;;  %v4099_v43 = vrot.slane %v4058_v28, 7 }
 0x538   : > { %3643 = vst.msk [vmem:[#allocation5 + $0xd5] sm:$0x1] %vm3285_vm7, %v3524_v34  ;;  %v3756_v34 = vpop.f32.mrf.mxu1 }
 0x539   : > { %3644 = vst.msk [vmem:[#allocation5 + $0xd9] sm:$0x1] %vm3285_vm7, %v3525_v17  ;;  %v4095_v17 = vrot.slane %v4058_v28, 3 }
 0x53a   : > { %3645 = vst.msk [vmem:[#allocation5 + $0xdd] sm:$0x1] %vm3285_vm7, %v3526_v33  ;;  %v4096_v33 = vrot.slane %v4058_v28, 4 }
 0x53b   : > { %3342 = vst.msk [vmem:[#allocation5 + $0xe0] sm:$0x1] %vm3285_vm7, %v3163_v40  ;;  %v3716_v40 = vadd.f32 %v10369_v6, %v3715_v12 }
 0x53c   : > { %3343 = vst.msk [vmem:[#allocation5 + $0xe4] sm:$0x1] %vm3285_vm7, %v3222_v59 }
 0x53d   : > { %3344 = vst.msk [vmem:[#allocation5 + $0xe8] sm:$0x1] %vm3285_vm7, %v3223_v45  ;;  %v3757_v59 = vadd.f32 %v3756_v34, %v3716_v40  ;;  %v4098_v45 = vrot.slane %v4058_v28, 6  ;;  %v3724_v40 = vpop.f32.mrf.mxu0 }
 0x53e   : > { %3345 = vst.msk [vmem:[#allocation5 + $0xec] sm:$0x1] %vm3285_vm7, %v3224_v25 }
 0x53f   : > { %3346 = vst.msk [vmem:[#allocation5 + $0xf0] sm:$0x1] %vm3285_vm7, %v3225_v3  ;;  %v3796_v25 = vrot.slane %v3757_v59, 1  ;;  %v3797_v3 = vrot.slane %v3757_v59, 2  ;;  %v3800_v32 = vrot.slane %v3757_v59, 5  ;;  %v3802_v9 = vrot.slane %v3757_v59, 7 }
 0x540   : > { %3347 = vst.msk [vmem:[#allocation5 + $0xf4] sm:$0x1] %vm3285_vm7, %v3226_v7  ;;  %v4060_v7 = vpop.f32.mrf.mxu3 }
 0x541   : > { %3348 = vst.msk [vmem:[#allocation5 + $0xf8] sm:$0x1] %vm3285_vm7, %v3227_v51  ;;  %v3798_v51 = vrot.slane %v3757_v59, 3 }
 0x542   : > { %3349 = vst.msk [vmem:[#allocation5 + $0xfc] sm:$0x1] %vm3285_vm7, %v3228_v35  ;;  %v3799_v35 = vrot.slane %v3757_v59, 4 }
 0x543   : > { %3646 = vst.msk [vmem:[#allocation5 + $0xe1] sm:$0x1] %vm3285_vm7, %v3468_v22  ;;  %v4020_v22 = vadd.f32 %v10380_v36, %v4019_v18 }
 0x544   : > { %3647 = vst.msk [vmem:[#allocation5 + $0xe5] sm:$0x1] %vm3285_vm7, %v3527_v38 }
 0x545   : > { %3648 = vst.msk [vmem:[#allocation5 + $0xe9] sm:$0x1] %vm3285_vm7, %v3528_v37  ;;  %v4061_v38 = vadd.f32 %v4060_v7, %v4020_v22  ;;  %v3801_v37 = vrot.slane %v3757_v59, 6  ;;  %v4028_v22 = vpop.f32.mrf.mxu2 }
 0x546   : > { %3649 = vst.msk [vmem:[#allocation5 + $0xed] sm:$0x1] %vm3285_vm7, %v3529_v61 }
 0x547   : > { %3650 = vst.msk [vmem:[#allocation5 + $0xf1] sm:$0x1] %vm3285_vm7, %v3530_v50  ;;  %v4100_v61 = vrot.slane %v4061_v38, 1  ;;  %v4101_v50 = vrot.slane %v4061_v38, 2  ;;  %v4104_v8 = vrot.slane %v4061_v38, 5  ;;  %v4106_v57 = vrot.slane %v4061_v38, 7 }
 0x548   : > { %3651 = vst.msk [vmem:[#allocation5 + $0xf5] sm:$0x1] %vm3285_vm7, %v3531_v15  ;;  %v3759_v15 = vpop.f32.mrf.mxu1 }
 0x549   : > { %3652 = vst.msk [vmem:[#allocation5 + $0xf9] sm:$0x1] %vm3285_vm7, %v3532_v19  ;;  %v4102_v19 = vrot.slane %v4061_v38, 3 }
 0x54a   : > { %3653 = vst.msk [vmem:[#allocation5 + $0xfd] sm:$0x1] %vm3285_vm7, %v3533_v23  ;;  %v4103_v23 = vrot.slane %v4061_v38, 4 }
 0x54b   : > { %3894 = vst.msk [vmem:[#allocation5 + $0x2] sm:$0x1] %vm3285_vm7, %v3751_v1  ;;  %v3719_v1 = vadd.f32 %v10369_v6, %v3718_v60 }
 0x54c   : > { %3895 = vst.msk [vmem:[#allocation5 + $0x6] sm:$0x1] %vm3285_vm7, %v3782_v58 }
 0x54d   : > { %3896 = vst.msk [vmem:[#allocation5 + $0xa] sm:$0x1] %vm3285_vm7, %v3783_v44  ;;  %v3760_v58 = vadd.f32 %v3759_v15, %v3719_v1  ;;  %v4105_v44 = vrot.slane %v4061_v38, 6  ;;  %v3727_v1 = vpop.f32.mrf.mxu0 }
 0x54e   : > { %3897 = vst.msk [vmem:[#allocation5 + $0xe] sm:$0x1] %vm3285_vm7, %v3784_v62 }
 0x54f   : > { %3898 = vst.msk [vmem:[#allocation5 + $0x12] sm:$0x1] %vm3285_vm7, %v3785_v16  ;;  %v3803_v62 = vrot.slane %v3760_v58, 1  ;;  %v3804_v16 = vrot.slane %v3760_v58, 2  ;;  %v3807_v4 = vrot.slane %v3760_v58, 5  ;;  %v3809_v26 = vrot.slane %v3760_v58, 7 }
 0x550   : > { %3899 = vst.msk [vmem:[#allocation5 + $0x16] sm:$0x1] %vm3285_vm7, %v3786_v20  ;;  %v4063_v20 = vpop.f32.mrf.mxu3 }
 0x551   : > { %3900 = vst.msk [vmem:[#allocation5 + $0x1a] sm:$0x1] %vm3285_vm7, %v3787_v47  ;;  %v3805_v47 = vrot.slane %v3760_v58, 3 }
 0x552   : > { %3901 = vst.msk [vmem:[#allocation5 + $0x1e] sm:$0x1] %vm3285_vm7, %v3788_v49  ;;  %v3806_v49 = vrot.slane %v3760_v58, 4 }
 0x553   : > { %4198 = vst.msk [vmem:[#allocation5 + $0x3] sm:$0x1] %vm3285_vm7, %v4055_v48  ;;  %v4023_v48 = vadd.f32 %v10380_v36, %v4022_v2 }
 0x554   : > { %4199 = vst.msk [vmem:[#allocation5 + $0x7] sm:$0x1] %vm3285_vm7, %v4086_v46 }
 0x555   : > { %4200 = vst.msk [vmem:[#allocation5 + $0xb] sm:$0x1] %vm3285_vm7, %v4087_v14  ;;  %v4064_v46 = vadd.f32 %v4063_v20, %v4023_v48  ;;  %v3808_v14 = vrot.slane %v3760_v58, 6  ;;  %v4031_v48 = vpop.f32.mrf.mxu2 }
 0x556   : > { %4201 = vst.msk [vmem:[#allocation5 + $0xf] sm:$0x1] %vm3285_vm7, %v4088_v5 }
 0x557   : > { %4202 = vst.msk [vmem:[#allocation5 + $0x13] sm:$0x1] %vm3285_vm7, %v4089_v30  ;;  %v4107_v5 = vrot.slane %v4064_v46, 1  ;;  %v4108_v30 = vrot.slane %v4064_v46, 2  ;;  %v4111_v11 = vrot.slane %v4064_v46, 5  ;;  %v4113_v52 = vrot.slane %v4064_v46, 7 }
 0x558   : > { %4203 = vst.msk [vmem:[#allocation5 + $0x17] sm:$0x1] %vm3285_vm7, %v4090_v39  ;;  %v3762_v39 = vpop.f32.mrf.mxu1 }
 0x559   : > { %4204 = vst.msk [vmem:[#allocation5 + $0x1b] sm:$0x1] %vm3285_vm7, %v4091_v24  ;;  %v4109_v24 = vrot.slane %v4064_v46, 3 }
 0x55a   : > { %4205 = vst.msk [vmem:[#allocation5 + $0x1f] sm:$0x1] %vm3285_vm7, %v4092_v13  ;;  %v4110_v13 = vrot.slane %v4064_v46, 4 }
 0x55b   : > { %3902 = vst.msk [vmem:[#allocation5 + $0x22] sm:$0x1] %vm3285_vm7, %v3754_v0  ;;  %v3722_v0 = vadd.f32 %v10369_v6, %v3721_v53 }
 0x55c   : > { %3903 = vst.msk [vmem:[#allocation5 + $0x26] sm:$0x1] %vm3285_vm7, %v3789_v31 }
 0x55d   : > { %3904 = vst.msk [vmem:[#allocation5 + $0x2a] sm:$0x1] %vm3285_vm7, %v3790_v21  ;;  %v3763_v31 = vadd.f32 %v3762_v39, %v3722_v0  ;;  %v4112_v21 = vrot.slane %v4064_v46, 6  ;;  %v3730_v0 = vpop.f32.mrf.mxu0 }
 0x55e   : > { %3905 = vst.msk [vmem:[#allocation5 + $0x2e] sm:$0x1] %vm3285_vm7, %v3791_v63 }
 0x55f   : > { %3906 = vst.msk [vmem:[#allocation5 + $0x32] sm:$0x1] %vm3285_vm7, %v3792_v27  ;;  %v3810_v63 = vrot.slane %v3763_v31, 1  ;;  %v3811_v27 = vrot.slane %v3763_v31, 2  ;;  %v3814_v12 = vrot.slane %v3763_v31, 5  ;;  %v3816_v34 = vrot.slane %v3763_v31, 7 }
 0x560   : > { %3907 = vst.msk [vmem:[#allocation5 + $0x36] sm:$0x1] %vm3285_vm7, %v3793_v55  ;;  %v4066_v55 = vpop.f32.mrf.mxu3 }
 0x561   : > { %3908 = vst.msk [vmem:[#allocation5 + $0x3a] sm:$0x1] %vm3285_vm7, %v3794_v42  ;;  %v3812_v42 = vrot.slane %v3763_v31, 3 }
 0x562   : > { %3909 = vst.msk [vmem:[#allocation5 + $0x3e] sm:$0x1] %vm3285_vm7, %v3795_v56  ;;  %v3813_v56 = vrot.slane %v3763_v31, 4 }
 0x563   : > { %4206 = vst.msk [vmem:[#allocation5 + $0x23] sm:$0x1] %vm3285_vm7, %v4058_v28  ;;  %v4026_v28 = vadd.f32 %v10380_v36, %v4025_v29 }
 0x564   : > { %4207 = vst.msk [vmem:[#allocation5 + $0x27] sm:$0x1] %vm3285_vm7, %v4093_v10 }
 0x565   : > { %4208 = vst.msk [vmem:[#allocation5 + $0x2b] sm:$0x1] %vm3285_vm7, %v4094_v41  ;;  %v4067_v10 = vadd.f32 %v4066_v55, %v4026_v28  ;;  %v3815_v41 = vrot.slane %v3763_v31, 6  ;;  %v4034_v28 = vpop.f32.mrf.mxu2 }
 0x566   : > { %4209 = vst.msk [vmem:[#allocation5 + $0x2f] sm:$0x1] %vm3285_vm7, %v4095_v17 }
 0x567   : > { %4210 = vst.msk [vmem:[#allocation5 + $0x33] sm:$0x1] %vm3285_vm7, %v4096_v33  ;;  %v4114_v17 = vrot.slane %v4067_v10, 1  ;;  %v4115_v33 = vrot.slane %v4067_v10, 2  ;;  %v4118_v18 = vrot.slane %v4067_v10, 5  ;;  %v4120_v7 = vrot.slane %v4067_v10, 7 }
 0x568   : > { %4211 = vst.msk [vmem:[#allocation5 + $0x37] sm:$0x1] %vm3285_vm7, %v4097_v54  ;;  %v3765_v54 = vpop.f32.mrf.mxu1 }
 0x569   : > { %4212 = vst.msk [vmem:[#allocation5 + $0x3b] sm:$0x1] %vm3285_vm7, %v4098_v45  ;;  %v4116_v45 = vrot.slane %v4067_v10, 3 }
 0x56a   : > { %4213 = vst.msk [vmem:[#allocation5 + $0x3f] sm:$0x1] %vm3285_vm7, %v4099_v43  ;;  %v4117_v43 = vrot.slane %v4067_v10, 4 }
 0x56b   : > { %3910 = vst.msk [vmem:[#allocation5 + $0x42] sm:$0x1] %vm3285_vm7, %v3757_v59  ;;  %v3725_v59 = vadd.f32 %v10369_v6, %v3724_v40 }
 0x56c   : > { %3911 = vst.msk [vmem:[#allocation5 + $0x46] sm:$0x1] %vm3285_vm7, %v3796_v25 }
 0x56d   : > { %3912 = vst.msk [vmem:[#allocation5 + $0x4a] sm:$0x1] %vm3285_vm7, %v3797_v3  ;;  %v3766_v25 = vadd.f32 %v3765_v54, %v3725_v59  ;;  %v4119_v3 = vrot.slane %v4067_v10, 6 }
 0x56e   : > { %3913 = vst.msk [vmem:[#allocation5 + $0x4e] sm:$0x1] %vm3285_vm7, %v3798_v51 }
 0x56f   : > { %3914 = vst.msk [vmem:[#allocation5 + $0x52] sm:$0x1] %vm3285_vm7, %v3799_v35  ;;  %v3817_v51 = vrot.slane %v3766_v25, 1  ;;  %v3818_v35 = vrot.slane %v3766_v25, 2  ;;  %v3821_v60 = vrot.slane %v3766_v25, 5  ;;  %v3823_v15 = vrot.slane %v3766_v25, 7 }
 0x570   : > { %3915 = vst.msk [vmem:[#allocation5 + $0x56] sm:$0x1] %vm3285_vm7, %v3800_v32  ;;  %v4069_v32 = vpop.f32.mrf.mxu3 }
 0x571   : > { %3916 = vst.msk [vmem:[#allocation5 + $0x5a] sm:$0x1] %vm3285_vm7, %v3801_v37  ;;  %v3819_v37 = vrot.slane %v3766_v25, 3 }
 0x572   : > { %3917 = vst.msk [vmem:[#allocation5 + $0x5e] sm:$0x1] %vm3285_vm7, %v3802_v9  ;;  %v3820_v9 = vrot.slane %v3766_v25, 4 }
 0x573   : > { %4214 = vst.msk [vmem:[#allocation5 + $0x43] sm:$0x1] %vm3285_vm7, %v4061_v38  ;;  %v4029_v38 = vadd.f32 %v10380_v36, %v4028_v22 }
 0x574   : > { %4215 = vst.msk [vmem:[#allocation5 + $0x47] sm:$0x1] %vm3285_vm7, %v4100_v61 }
 0x575   : > { %4216 = vst.msk [vmem:[#allocation5 + $0x4b] sm:$0x1] %vm3285_vm7, %v4101_v50  ;;  %v4070_v61 = vadd.f32 %v4069_v32, %v4029_v38  ;;  %v3822_v50 = vrot.slane %v3766_v25, 6 }
 0x576   : > { %4217 = vst.msk [vmem:[#allocation5 + $0x4f] sm:$0x1] %vm3285_vm7, %v4102_v19 }
 0x577   : > { %4218 = vst.msk [vmem:[#allocation5 + $0x53] sm:$0x1] %vm3285_vm7, %v4103_v23  ;;  %v4121_v19 = vrot.slane %v4070_v61, 1  ;;  %v4122_v23 = vrot.slane %v4070_v61, 2  ;;  %v4125_v2 = vrot.slane %v4070_v61, 5  ;;  %v4127_v20 = vrot.slane %v4070_v61, 7 }
 0x578   : > { %4219 = vst.msk [vmem:[#allocation5 + $0x57] sm:$0x1] %vm3285_vm7, %v4104_v8  ;;  %v3768_v8 = vpop.f32.mrf.mxu1 }
 0x579   : > { %4220 = vst.msk [vmem:[#allocation5 + $0x5b] sm:$0x1] %vm3285_vm7, %v4105_v44  ;;  %v4123_v44 = vrot.slane %v4070_v61, 3 }
 0x57a   : > { %4221 = vst.msk [vmem:[#allocation5 + $0x5f] sm:$0x1] %vm3285_vm7, %v4106_v57  ;;  %v4124_v57 = vrot.slane %v4070_v61, 4 }
 0x57b   : > { %3918 = vst.msk [vmem:[#allocation5 + $0x62] sm:$0x1] %vm3285_vm7, %v3760_v58  ;;  %v3728_v58 = vadd.f32 %v10369_v6, %v3727_v1 }
 0x57c   : > { %3919 = vst.msk [vmem:[#allocation5 + $0x66] sm:$0x1] %vm3285_vm7, %v3803_v62 }
 0x57d   : > { %3920 = vst.msk [vmem:[#allocation5 + $0x6a] sm:$0x1] %vm3285_vm7, %v3804_v16  ;;  %v3769_v62 = vadd.f32 %v3768_v8, %v3728_v58  ;;  %v4126_v16 = vrot.slane %v4070_v61, 6 }
 0x57e   : > { %3921 = vst.msk [vmem:[#allocation5 + $0x6e] sm:$0x1] %vm3285_vm7, %v3805_v47 }
 0x57f   : > { %3922 = vst.msk [vmem:[#allocation5 + $0x72] sm:$0x1] %vm3285_vm7, %v3806_v49  ;;  %v3824_v47 = vrot.slane %v3769_v62, 1  ;;  %v3825_v49 = vrot.slane %v3769_v62, 2  ;;  %v3828_v53 = vrot.slane %v3769_v62, 5  ;;  %v3830_v39 = vrot.slane %v3769_v62, 7 }
 0x580   : > { %3923 = vst.msk [vmem:[#allocation5 + $0x76] sm:$0x1] %vm3285_vm7, %v3807_v4  ;;  %v4072_v4 = vpop.f32.mrf.mxu3 }
 0x581   : > { %3924 = vst.msk [vmem:[#allocation5 + $0x7a] sm:$0x1] %vm3285_vm7, %v3808_v14  ;;  %v3826_v14 = vrot.slane %v3769_v62, 3 }
 0x582   : > { %3925 = vst.msk [vmem:[#allocation5 + $0x7e] sm:$0x1] %vm3285_vm7, %v3809_v26  ;;  %v3827_v26 = vrot.slane %v3769_v62, 4 }
 0x583   : > { %4222 = vst.msk [vmem:[#allocation5 + $0x63] sm:$0x1] %vm3285_vm7, %v4064_v46  ;;  %v4032_v46 = vadd.f32 %v10380_v36, %v4031_v48 }
 0x584   : > { %4223 = vst.msk [vmem:[#allocation5 + $0x67] sm:$0x1] %vm3285_vm7, %v4107_v5 }
 0x585   : > { %4224 = vst.msk [vmem:[#allocation5 + $0x6b] sm:$0x1] %vm3285_vm7, %v4108_v30  ;;  %v4073_v5 = vadd.f32 %v4072_v4, %v4032_v46  ;;  %v3829_v30 = vrot.slane %v3769_v62, 6 }
 0x586   : > { %4225 = vst.msk [vmem:[#allocation5 + $0x6f] sm:$0x1] %vm3285_vm7, %v4109_v24 }
 0x587   : > { %4226 = vst.msk [vmem:[#allocation5 + $0x73] sm:$0x1] %vm3285_vm7, %v4110_v13  ;;  %v4128_v24 = vrot.slane %v4073_v5, 1  ;;  %v4129_v13 = vrot.slane %v4073_v5, 2  ;;  %v4132_v29 = vrot.slane %v4073_v5, 5  ;;  %v4134_v55 = vrot.slane %v4073_v5, 7 }
 0x588   : > { %4227 = vst.msk [vmem:[#allocation5 + $0x77] sm:$0x1] %vm3285_vm7, %v4111_v11  ;;  %v3771_v11 = vpop.f32.mrf.mxu1 }
 0x589   : > { %4228 = vst.msk [vmem:[#allocation5 + $0x7b] sm:$0x1] %vm3285_vm7, %v4112_v21  ;;  %v4130_v21 = vrot.slane %v4073_v5, 3 }
 0x58a   : > { %4229 = vst.msk [vmem:[#allocation5 + $0x7f] sm:$0x1] %vm3285_vm7, %v4113_v52  ;;  %v4131_v52 = vrot.slane %v4073_v5, 4 }
 0x58b   : > { %3926 = vst.msk [vmem:[#allocation5 + $0x82] sm:$0x1] %vm3285_vm7, %v3763_v31  ;;  %v3731_v31 = vadd.f32 %v10369_v6, %v3730_v0 }
 0x58c   : > { %3927 = vst.msk [vmem:[#allocation5 + $0x86] sm:$0x1] %vm3285_vm7, %v3810_v63 }
 0x58d   : > { %3928 = vst.msk [vmem:[#allocation5 + $0x8a] sm:$0x1] %vm3285_vm7, %v3811_v27  ;;  %v3772_v63 = vadd.f32 %v3771_v11, %v3731_v31  ;;  %v4133_v27 = vrot.slane %v4073_v5, 6 }
 0x58e   : > { %3929 = vst.msk [vmem:[#allocation5 + $0x8e] sm:$0x1] %vm3285_vm7, %v3812_v42 }
 0x58f   : > { %3930 = vst.msk [vmem:[#allocation5 + $0x92] sm:$0x1] %vm3285_vm7, %v3813_v56  ;;  %v3831_v6 = vrot.slane %v3772_v63, 1  ;;  %v3832_v42 = vrot.slane %v3772_v63, 2  ;;  %v4075_v56 = vpop.f32.mrf.mxu3 }
 0x590   : > { %3931 = vst.msk [vmem:[#allocation5 + $0x96] sm:$0x1] %vm3285_vm7, %v3814_v12  ;;  %v4035_v12 = vadd.f32 %v10380_v36, %v4034_v28 }
 0x591   : > { %3932 = vst.msk [vmem:[#allocation5 + $0x9a] sm:$0x1] %vm3285_vm7, %v3815_v41  ;;  %v3834_v41 = vrot.slane %v3772_v63, 4 }
 0x592   : > { %3933 = vst.msk [vmem:[#allocation5 + $0x9e] sm:$0x1] %vm3285_vm7, %v3816_v34  ;;  %v3835_v34 = vrot.slane %v3772_v63, 5  ;;  %v4076_v40 = vadd.f32 %v4075_v56, %v4035_v12 }
 0x593   : > { %4230 = vst.msk [vmem:[#allocation5 + $0x83] sm:$0x1] %vm3285_vm7, %v4067_v10  ;;  %v3833_v10 = vrot.slane %v3772_v63, 3 }
 0x594   : > { %4231 = vst.msk [vmem:[#allocation5 + $0x87] sm:$0x1] %vm3285_vm7, %v4114_v17  ;;  %v3836_v17 = vrot.slane %v3772_v63, 6  ;;  %v4135_v36 = vrot.slane %v4076_v40, 1  ;;  %v4136_v54 = vrot.slane %v4076_v40, 2  ;;  %v4137_v59 = vrot.slane %v4076_v40, 3 }
 0x595   : > { %4232 = vst.msk [vmem:[#allocation5 + $0x8b] sm:$0x1] %vm3285_vm7, %v4115_v33  ;;  %v3837_v33 = vrot.slane %v3772_v63, 7 }
 0x596   : > { %4233 = vst.msk [vmem:[#allocation5 + $0x8f] sm:$0x1] %vm3285_vm7, %v4116_v45  ;;  %v4138_v45 = vrot.slane %v4076_v40, 4 }
 0x597   : > { %4234 = vst.msk [vmem:[#allocation5 + $0x93] sm:$0x1] %vm3285_vm7, %v4117_v43  ;;  %v4139_v43 = vrot.slane %v4076_v40, 5 }
 0x598   : > { %4235 = vst.msk [vmem:[#allocation5 + $0x97] sm:$0x1] %vm3285_vm7, %v4118_v18  ;;  %v4140_v18 = vrot.slane %v4076_v40, 6 }
 0x599   : > { %4236 = vst.msk [vmem:[#allocation5 + $0x9b] sm:$0x1] %vm3285_vm7, %v4119_v3  ;;  %v10531_v3 = vmov 0.0  }
 0x59a   : > { %4237 = vst.msk [vmem:[#allocation5 + $0x9f] sm:$0x1] %vm3285_vm7, %v4120_v7  ;;  %v10533_v7 = vmov 0.0  }
 0x59b   : > { %3934 = vst.msk [vmem:[#allocation5 + $0xa2] sm:$0x1] %vm3285_vm7, %v3766_v25  ;;  %v4141_v25 = vrot.slane %v4076_v40, 7 }
 0x59c   : > { %3935 = vst.msk [vmem:[#allocation5 + $0xa6] sm:$0x1] %vm3285_vm7, %v3817_v51 }
 0x59d   : > { %3936 = vst.msk [vmem:[#allocation5 + $0xaa] sm:$0x1] %vm3285_vm7, %v3818_v35 }
 0x59e   : > { %3937 = vst.msk [vmem:[#allocation5 + $0xae] sm:$0x1] %vm3285_vm7, %v3819_v37 }
 0x59f   : > { %3938 = vst.msk [vmem:[#allocation5 + $0xb2] sm:$0x1] %vm3285_vm7, %v3820_v9 }
 0x5a0   : > { %3939 = vst.msk [vmem:[#allocation5 + $0xb6] sm:$0x1] %vm3285_vm7, %v3821_v60 }
 0x5a1   : > { %3940 = vst.msk [vmem:[#allocation5 + $0xba] sm:$0x1] %vm3285_vm7, %v3822_v50 }
 0x5a2   : > { %3941 = vst.msk [vmem:[#allocation5 + $0xbe] sm:$0x1] %vm3285_vm7, %v3823_v15 }
 0x5a3   : > { %4238 = vst.msk [vmem:[#allocation5 + $0xa3] sm:$0x1] %vm3285_vm7, %v4070_v61 }
 0x5a4   : > { %4239 = vst.msk [vmem:[#allocation5 + $0xa7] sm:$0x1] %vm3285_vm7, %v4121_v19 }
 0x5a5   : > { %4240 = vst.msk [vmem:[#allocation5 + $0xab] sm:$0x1] %vm3285_vm7, %v4122_v23 }
 0x5a6   : > { %4241 = vst.msk [vmem:[#allocation5 + $0xaf] sm:$0x1] %vm3285_vm7, %v4123_v44 }
 0x5a7   : > { %4242 = vst.msk [vmem:[#allocation5 + $0xb3] sm:$0x1] %vm3285_vm7, %v4124_v57 }
 0x5a8   : > { %4243 = vst.msk [vmem:[#allocation5 + $0xb7] sm:$0x1] %vm3285_vm7, %v4125_v2 }
 0x5a9   : > { %4244 = vst.msk [vmem:[#allocation5 + $0xbb] sm:$0x1] %vm3285_vm7, %v4126_v16 }
 0x5aa   : > { %4245 = vst.msk [vmem:[#allocation5 + $0xbf] sm:$0x1] %vm3285_vm7, %v4127_v20 }
 0x5ab   : > { %3942 = vst.msk [vmem:[#allocation5 + $0xc2] sm:$0x1] %vm3285_vm7, %v3769_v62 }
 0x5ac   : > { %3943 = vst.msk [vmem:[#allocation5 + $0xc6] sm:$0x1] %vm3285_vm7, %v3824_v47 }
 0x5ad   : > { %3944 = vst.msk [vmem:[#allocation5 + $0xca] sm:$0x1] %vm3285_vm7, %v3825_v49 }
 0x5ae   : > { %3945 = vst.msk [vmem:[#allocation5 + $0xce] sm:$0x1] %vm3285_vm7, %v3826_v14 }
 0x5af   : > { %3946 = vst.msk [vmem:[#allocation5 + $0xd2] sm:$0x1] %vm3285_vm7, %v3827_v26 }
 0x5b0   : > { %3947 = vst.msk [vmem:[#allocation5 + $0xd6] sm:$0x1] %vm3285_vm7, %v3828_v53 }
 0x5b1   : > { %3948 = vst.msk [vmem:[#allocation5 + $0xda] sm:$0x1] %vm3285_vm7, %v3829_v30 }
 0x5b2   : > { %3949 = vst.msk [vmem:[#allocation5 + $0xde] sm:$0x1] %vm3285_vm7, %v3830_v39 }
 0x5b3   : > { %4246 = vst.msk [vmem:[#allocation5 + $0xc3] sm:$0x1] %vm3285_vm7, %v4073_v5 }
 0x5b4   : > { %4247 = vst.msk [vmem:[#allocation5 + $0xc7] sm:$0x1] %vm3285_vm7, %v4128_v24 }
 0x5b5   : > { %4248 = vst.msk [vmem:[#allocation5 + $0xcb] sm:$0x1] %vm3285_vm7, %v4129_v13 }
 0x5b6   : > { %4249 = vst.msk [vmem:[#allocation5 + $0xcf] sm:$0x1] %vm3285_vm7, %v4130_v21 }
 0x5b7   : > { %4250 = vst.msk [vmem:[#allocation5 + $0xd3] sm:$0x1] %vm3285_vm7, %v4131_v52 }
 0x5b8   : > { %4251 = vst.msk [vmem:[#allocation5 + $0xd7] sm:$0x1] %vm3285_vm7, %v4132_v29 }
 0x5b9   : > { %4252 = vst.msk [vmem:[#allocation5 + $0xdb] sm:$0x1] %vm3285_vm7, %v4133_v27 }
 0x5ba   : > { %4253 = vst.msk [vmem:[#allocation5 + $0xdf] sm:$0x1] %vm3285_vm7, %v4134_v55 }
 0x5bb   : > { %3950 = vst.msk [vmem:[#allocation5 + $0xe2] sm:$0x1] %vm3285_vm7, %v3772_v63 }
 0x5bc   : > { %3951 = vst.msk [vmem:[#allocation5 + $0xe6] sm:$0x1] %vm3285_vm7, %v3831_v6 }
 0x5bd   : > { %3952 = vst.msk [vmem:[#allocation5 + $0xea] sm:$0x1] %vm3285_vm7, %v3832_v42 }
 0x5be   : > { %3953 = vst.msk [vmem:[#allocation5 + $0xee] sm:$0x1] %vm3285_vm7, %v3833_v10 }
 0x5bf   : > { %3954 = vst.msk [vmem:[#allocation5 + $0xf2] sm:$0x1] %vm3285_vm7, %v3834_v41 }
 0x5c0   : > { %3955 = vst.msk [vmem:[#allocation5 + $0xf6] sm:$0x1] %vm3285_vm7, %v3835_v34 }
 0x5c1   : > { %3956 = vst.msk [vmem:[#allocation5 + $0xfa] sm:$0x1] %vm3285_vm7, %v3836_v17 }
 0x5c2   : > { %3957 = vst.msk [vmem:[#allocation5 + $0xfe] sm:$0x1] %vm3285_vm7, %v3837_v33 }
 0x5c3   : > { %4254 = vst.msk [vmem:[#allocation5 + $0xe3] sm:$0x1] %vm3285_vm7, %v4076_v40 }
 0x5c4   : > { %4255 = vst.msk [vmem:[#allocation5 + $0xe7] sm:$0x1] %vm3285_vm7, %v4135_v36 }
 0x5c5   : > { %4256 = vst.msk [vmem:[#allocation5 + $0xeb] sm:$0x1] %vm3285_vm7, %v4136_v54 }
 0x5c6   : > { %4257 = vst.msk [vmem:[#allocation5 + $0xef] sm:$0x1] %vm3285_vm7, %v4137_v59 }
 0x5c7   : > { %4258 = vst.msk [vmem:[#allocation5 + $0xf3] sm:$0x1] %vm3285_vm7, %v4138_v45 }
 0x5c8   : > { %4259 = vst.msk [vmem:[#allocation5 + $0xf7] sm:$0x1] %vm3285_vm7, %v4139_v43 }
 0x5c9   : > { %4260 = vst.msk [vmem:[#allocation5 + $0xfb] sm:$0x1] %vm3285_vm7, %v4140_v18 }
 0x5ca   : > { %4261 = vst.msk [vmem:[#allocation5 + $0xff] sm:$0x1] %vm3285_vm7, %v4141_v25 }
 0x5cb LB: >> { %v4280_v22 = vld [vmem:[#allocation19 + $0x38] sm:$0xff]  ;;  %v4279_v32 = vld [vmem:[#allocation19 + $0x30] sm:$0xff]  ;;  %v4278_v9 = vld [vmem:[#allocation19 + $0x28] sm:$0xff]  ;;  %v4282_v14 = vrot.slane %v8268_v7, 3  ;;  %s7429_s15 = sshll.u32 %s8272_s30, 2  ;;  %vm4479_vm7 = vcmask 519171   ;;  %s8272_s30 = sphi %s10535_s30, %s4267_s30   ;;  %v8268_v7 = vphi %v10533_v7, %v4476_v7   ;;  %v8264_v3 = vphi %v10531_v3, %v4452_v3  }
 0x5cc   : >> { %v4314_v51 = vld [vmem:[#allocation19 + $0x78] sm:$0xff]  ;;  %4293 = vmatpush.msra.mxu0 %v4280_v22  ;;  %v4313_v38 = vld [vmem:[#allocation19 + $0x70] sm:$0xff]  ;;  %v4312_v60 = vld [vmem:[#allocation19 + $0x68] sm:$0xff]  ;;  %s4271_s19 = scalar_lea.vmem [#allocation5], %s7429_s15  ;;  %s4478_s21 = scalar_lea.vmem [#allocation6], %s8272_s30 }
 0x5cd   : >> { %v4380_v35 = vld [vmem:[#allocation19 + $0xf8] sm:$0xff]  ;;  %4323 = vmatpush.msra.mxu1 %v4314_v51  ;;  %v4379_v37 = vld [vmem:[#allocation19 + $0xf0] sm:$0xff]  ;;  %v4378_v61 = vld [vmem:[#allocation19 + $0xe8] sm:$0xff]  ;;  %s4267_s30 = sadd.s32 1, %s8272_s30  }
 0x5ce   : >> { %4389 = vmatpush.msra.mxu3 %v4380_v35  ;;  %4294 = vmatpush.msra.mxu0 %v4279_v32  ;;  %v4277_v50 = vld [vmem:[#allocation19 + $0x20] sm:$0xff]  ;;  %v4276_v19 = vld [vmem:[#allocation19 + $0x18] sm:$0xff]  ;;  %v4346_v44 = vld [vmem:[#allocation19 + $0xb0] sm:$0xff]  ;;  %p4264_p0 = scmp.ge.s32.totalorder %s4267_s30, 64  }
 0x5cf   : >> { %4324 = vmatpush.msra.mxu1 %v4313_v38  ;;  %v4311_v15 = vld [vmem:[#allocation19 + $0x60] sm:$0xff]  ;;  %v4310_v23 = vld [vmem:[#allocation19 + $0x58] sm:$0xff]  ;;  %v4275_v57 = vld [vmem:[#allocation19 + $0x10] sm:$0xff]  ;;  %s11508_s14 = smov (%p4264_p0), 0  }
 0x5d0   : >> { %4390 = vmatpush.msra.mxu3 %v4379_v37  ;;  %4295 = vmatpush.msra.mxu0 %v4278_v9  ;;  %v4377_v1 = vld [vmem:[#allocation19 + $0xe0] sm:$0xff]  ;;  %v4347_v8 = vld [vmem:[#allocation19 + $0xb8] sm:$0xff]  ;;  %v4309_v2 = vld [vmem:[#allocation19 + $0x50] sm:$0xff] }
 0x5d1   : >> { %4325 = vmatpush.msra.mxu1 %v4312_v60  ;;  %v4376_v58 = vld [vmem:[#allocation19 + $0xd8] sm:$0xff]  ;;  %4356 = vmatpush.msra.mxu2 %v4347_v8  ;;  %v4375_v62 = vld [vmem:[#allocation19 + $0xd0] sm:$0xff]  ;;  %v4345_v16 = vld [vmem:[#allocation19 + $0xa8] sm:$0xff] }
 0x5d2   : >> { %4391 = vmatpush.msra.mxu3 %v4378_v61  ;;  %4296 = vmatpush.msra.mxu0 %v4277_v50  ;;  %v4274_v20 = vld [vmem:[#allocation19 + $0x8] sm:$0xff]  ;;  %v4344_v49 = vld [vmem:[#allocation19 + $0xa0] sm:$0xff]  ;;  %v4343_v53 = vld [vmem:[#allocation19 + $0x98] sm:$0xff] }
 0x5d3   : >> { %4326 = vmatpush.msra.mxu1 %v4311_v15  ;;  %v4308_v48 = vld [vmem:[#allocation19 + $0x48] sm:$0xff]  ;;  %4357 = vmatpush.msra.mxu2 %v4346_v44  ;;  %v4273_v4 = vld [vmem:[#allocation19] sm:$0xff]  ;;  %v4342_v5 = vld [vmem:[#allocation19 + $0x90] sm:$0xff] }
 0x5d4   : >> { %4392 = vmatpush.msra.mxu3 %v4377_v1  ;;  %4297 = vmatpush.msra.mxu0 %v4276_v19  ;;  %v4374_v47 = vld [vmem:[#allocation19 + $0xc8] sm:$0xff]  ;;  %v4307_v46 = vld [vmem:[#allocation19 + $0x40] sm:$0xff] }
 0x5d5   : >> { %4327 = vmatpush.msra.mxu1 %v4310_v23  ;;  %4358 = vmatpush.msra.mxu2 %v4345_v16  ;;  %v4373_v26 = vld [vmem:[#allocation19 + $0xc0] sm:$0xff]  ;;  %v4341_v30 = vld [vmem:[#allocation19 + $0x88] sm:$0xff] }
 0x5d6   : >> { %4393 = vmatpush.msra.mxu3 %v4376_v58  ;;  %4298 = vmatpush.msra.mxu0 %v4275_v57  ;;  %v4340_v39 = vld [vmem:[#allocation19 + $0x80] sm:$0xff]  ;;  %v4272_v0 = vld [vmem:[%s4271_s19] sm:$0xf] }
 0x5d7   : >> { %4328 = vmatpush.msra.mxu1 %v4309_v2  ;;  %4359 = vmatpush.msra.mxu2 %v4344_v49 }
 0x5d8   : >> { %4394 = vmatpush.msra.mxu3 %v4375_v62  ;;  %4299 = vmatpush.msra.mxu0 %v4274_v20 }
 0x5d9   : >> { %4329 = vmatpush.msra.mxu1 %v4308_v48  ;;  %4360 = vmatpush.msra.mxu2 %v4343_v53  ;;  %v4979_v53 = vld [vmem:[#allocation22 + $0xf8] sm:$0xff] (%p4264_p0) }
 0x5da   : >> { %4395 = vmatpush.msra.mxu3 %v4374_v47  ;;  %4300 = vmatpush.msra.mxu0 %v4273_v4 }
 0x5db   : >> { %4330 = vmatpush.msra.mxu1 %v4307_v46  ;;  %7430 = vmatmul.msk.f32.vlgmr.msra.gmra.mxu0 %vm1294_vm5, %v4282_v14 }
 0x5dc   : >> { %4396 = vmatpush.msra.mxu3 %v4373_v26  ;;  %7431 = vmatmul.msk.f32.vlgmr.msra.gmra.mxu1 %vm1294_vm5, %v4282_v14 }
 0x5dd   : >> { %7433 = vmatmul.msk.f32.vlgmr.msra.gmra.mxu3 %vm1294_vm5, %v4282_v14  ;;  %4361 = vmatpush.msra.mxu2 %v4342_v5  ;;  %v4978_v5 = vld [vmem:[#allocation22 + $0xf0] sm:$0xff] (%p4264_p0) }
 0x5de   : > { %5036 = vmatpush.msra.mxu3 (%p4264_p0), %v4979_v53  ;;  %v5849_v53 = vld [vmem:[#allocation22 + $0x188] sm:$0xff] (%p4264_p0) }
 0x5df   : >> { %4362 = vmatpush.msra.mxu2 %v4341_v30  ;;  %v4977_v30 = vld [vmem:[#allocation22 + $0xe8] sm:$0xff] (%p4264_p0) }
 0x5e0   : > { %5037 = vmatpush.msra.mxu3 (%p4264_p0), %v4977_v30  ;;  %v5407_v30 = vld [vmem:[#allocation22 + $0x108] sm:$0xff] (%p4264_p0) }
 0x5e1   : >> { %4363 = vmatpush.msra.mxu2 %v4340_v39  ;;  %v4976_v39 = vld [vmem:[#allocation22 + $0xe0] sm:$0xff] (%p4264_p0) }
 0x5e2   : >> { %7432 = vmatmul.msk.f32.vlgmr.msra.gmra.mxu2 %vm1294_vm5, %v4282_v14 }
 0x5e3   : > { %4995 = vmatpush.msra.mxu2 (%p4264_p0), %v4978_v5  ;;  %v5848_v5 = vld [vmem:[#allocation22 + $0x180] sm:$0xff] (%p4264_p0) }
 0x5e5   : > { %4996 = vmatpush.msra.mxu2 (%p4264_p0), %v4976_v39 }
 0x658   : >> { %v4302_v24 = vpop.f32.mrf.mxu0 }
 0x659   : >> { %v4305_v13 = vadd.f32 %v4302_v24, %v4272_v0  ;;  %v4332_v11 = vpop.f32.mrf.mxu1  ;;  %v4975_v24 = vld [vmem:[#allocation22 + $0xd8] sm:$0xff] (%p4264_p0) }
 0x65a   : >> { %v4336_v31 = vrot.slane %v4332_v11, 7  ;;  %v4503_v11 = vld [vmem:[#allocation22 + $0x70] sm:$0xff] (%p4264_p0)  ;;  %5038 = vmatpush.msra.mxu3 (%p4264_p0), %v4975_v24 }
 0x65b   : >> { %v7435_v21 = vmul.f32 -1.442695, %v4305_v13  ;;  %v4974_v13 = vld [vmem:[#allocation22 + $0xd0] sm:$0xff] (%p4264_p0)  ;;  %4543 = vmatpush.msra.mxu0 (%p4264_p0), %v4503_v11 }
 0x65c   : >> { %v4338_v52 = vadd.f32 %v4336_v31, %v4272_v0  ;;  %v4973_v31 = vld [vmem:[#allocation22 + $0xc8] sm:$0xff] (%p4264_p0)  ;;  %4997 = vmatpush.msra.mxu2 (%p4264_p0), %v4974_v13 }
 0x65d   : >> { %7788 = vpow2.f32 %v7435_v21  ;;  %v4502_v21 = vld [vmem:[#allocation22 + $0x68] sm:$0xff] (%p4264_p0)  ;;  %5039 = vmatpush.msra.mxu3 (%p4264_p0), %v4973_v31  ;;  %v4505_v31 = vld [vmem:[#allocation25] sm:$0x3] (%p4264_p0) }
 0x65e   : >> { %v7434_v29 = vmul.f32 -1.442695, %v4338_v52  ;;  %v4972_v52 = vld [vmem:[#allocation22 + $0xc0] sm:$0xff] (%p4264_p0) }
 0x65f   : > { %4998 = vmatpush.msra.mxu2 (%p4264_p0), %v4972_v52  ;;  %v4981_v52 = vld [vmem:[#allocation25 + $0x2] sm:$0x3] (%p4264_p0) }
 0x660   : >> { %v4398_v63 = vpop.f32.mrf.mxu3  ;;  %7790 = vpow2.f32 %v7434_v29  ;;  %v4501_v29 = vld [vmem:[#allocation22 + $0x60] sm:$0xff] (%p4264_p0) }
 0x661   : >> { %v4402_v27 = vrot.slane %v4398_v63, 5  ;;  %v4500_v63 = vld [vmem:[#allocation22 + $0x58] sm:$0xff] (%p4264_p0)  ;;  %4544 = vmatpush.msra.mxu0 (%p4264_p0), %v4501_v29  ;;  %v10654_v29 = vperm.slane (%p4264_p0), %v4505_v31, 0 }
 0x663   : >> { %v4404_v55 = vadd.f32 %v4402_v27, %v4272_v0  ;;  %v7789_v28 = vpop.eup %7788  ;;  %v4498_v27 = vld [vmem:[#allocation22 + $0x48] sm:$0xff] (%p4264_p0) }
 0x664   : >> { %v4428_v6 = vadd.f32 1.0, %v7789_v28  ;;  %v4970_v28 = vld [vmem:[#allocation22 + $0xb0] sm:$0xff] (%p4264_p0) }
 0x665   : >> { %v7436_v42 = vmul.f32 -1.442695, %v4404_v55  ;;  %v4365_v10 = vpop.f32.mrf.mxu2  ;;  %v4971_v55 = vld [vmem:[#allocation22 + $0xb8] sm:$0xff] (%p4264_p0)  ;;  %4999 = vmatpush.msra.mxu2 (%p4264_p0), %v4970_v28 }
 0x666   : >> { %v7791_v56 = vpop.eup %7790  ;;  %7792 = vrcp.f32 %v4428_v6  ;;  %v4369_v41 = vrot.slane %v4365_v10, 6  ;;  %v4440_v43 = vand.u32 2147483648, %v4428_v6  ;;  %v4438_v25 = vand.u32 2147483647, %v4428_v6  ;;  %5040 = vmatpush.msra.mxu3 (%p4264_p0), %v4971_v55  ;;  %v4495_v10 = vld [vmem:[#allocation22 + $0x30] sm:$0xff] (%p4264_p0) }
 0x667   : >> { %v4408_v12 = vadd.f32 1.0, %v7791_v56  ;;  %7794 = vpow2.f32 %v7436_v42  ;;  %vm4434_vm9 = vweird.f32 %v4428_v6  ;;  %v4496_v42 = vld [vmem:[#allocation22 + $0x38] sm:$0xff] (%p4264_p0)  ;;  %v4969_v56 = vld [vmem:[#allocation22 + $0xa8] sm:$0xff] (%p4264_p0) }
 0x668   : >> { %v4371_v34 = vadd.f32 %v4369_v41, %v4272_v0  ;;  %v4441_v9 = vor.u32 1.1754944e-38, %v4440_v43  ;;  %vm4439_vm12 = vcmp.eq.f32.partialorder %v4438_v25, 8.507059e+37  ;;  %v4504_v0 = vld [vmem:[#allocation22 + $0x78] sm:$0xff] (%p4264_p0)  ;;  %v4494_v41 = vld [vmem:[#allocation22 + $0x28] sm:$0xff] (%p4264_p0)  ;;  %5041 = vmatpush.msra.mxu3 (%p4264_p0), %v4969_v56  ;;  %v5862_v43 = vld [vmem:[#allocation22 + $0x1f0] sm:$0xff] (%p4264_p0) }
 0x669   : >> { %7796 = vrcp.f32 %v4408_v12  ;;  %v4420_v51 = vand.u32 2147483648, %v4408_v12  ;;  %v4418_v37 = vand.u32 2147483647, %v4408_v12  ;;  %vm4414_vm13 = vweird.f32 %v4408_v12  ;;  %4584 = vmatpush.msra.mxu1 (%p4264_p0), %v4504_v0  ;;  %v4490_v25 = vld [vmem:[#allocation22 + $0x8] sm:$0xff] (%p4264_p0)  ;;  %v5406_v0 = vld [vmem:[#allocation22 + $0x100] sm:$0xff] (%p4264_p0) }
 0x66a   : >> { %7798 = vtanh.f32 %v4371_v34  ;;  %v4967_v34 = vld [vmem:[#allocation22 + $0x98] sm:$0xff] (%p4264_p0) }
 0x66b   : >> { %v4421_v19 = vor.u32 1.1754944e-38, %v4420_v51  ;;  %vm4419_vm15 = vcmp.eq.f32.partialorder %v4418_v37, 8.507059e+37  ;;  %4585 = vmatpush.msra.mxu1 (%p4264_p0), %v4502_v21  ;;  %5042 = vmatpush.msra.mxu3 (%p4264_p0), %v4967_v34  ;;  %v4489_v51 = vld [vmem:[#allocation22] sm:$0xff] (%p4264_p0)  ;;  %v5859_v37 = vld [vmem:[#allocation22 + $0x1d8] sm:$0xff] (%p4264_p0)  ;;  %v10652_v21 = vperm.slane (%p4264_p0), %v4505_v31, 1 }
 0x66c   : >> { %v7793_v40 = vpop.eup %7792 }
 0x66d   : >> { %v7795_v17 = vpop.eup %7794  ;;  %v4430_v33 = vmul.f32 %v7793_v40, %v4428_v6  ;;  %vm4435_vm8 = vweird.f32 %v7793_v40  ;;  %4586 = vmatpush.msra.mxu1 (%p4264_p0), %v4500_v63  ;;  %v4497_v6 = vld [vmem:[#allocation22 + $0x40] sm:$0xff] (%p4264_p0) }
 0x66e   : >> { %v4456_v36 = vadd.f32 1.0, %v7795_v17  ;;  %vm4436_vm11 = vmor %vm4434_vm9, %vm4435_vm8  ;;  %v4493_v17 = vld [vmem:[#allocation22 + $0x20] sm:$0xff] (%p4264_p0)  ;;  %vm4641_vm8 = vcmask (%p4264_p0), 1040384   ;;  %vm4643_vm9 = vcmask (%p4264_p0), 1041409  }
 0x66f   : >> { %v7797_v54 = vpop.eup %7796  ;;  %v4431_v59 = vsub.f32 1.0, %v4430_v33  ;;  %4587 = vmatpush.msra.mxu1 (%p4264_p0), %v4498_v27  ;;  %v4492_v33 = vld [vmem:[#allocation22 + $0x18] sm:$0xff] (%p4264_p0)  ;;  %v4832_v27 = vlaneseq (%p4264_p0) }
 0x670   : >> { %v4410_v45 = vmul.f32 %v7797_v54, %v4408_v12  ;;  %7800 = vrcp.f32 %v4456_v36  ;;  %v7799_v7 = vpop.eup %7798  ;;  %vm4415_vm10 = vweird.f32 %v7797_v54  ;;  %vm4462_vm0 = vweird.f32 %v4456_v36  ;;  %v4968_v12 = vld [vmem:[#allocation22 + $0xa0] sm:$0xff] (%p4264_p0) }
 0x671   : >> { %v4432_v18 = vmul.f32 %v7793_v40, %v4431_v59  ;;  %v4446_v32 = vrot.slane %v7799_v7, 2  ;;  %vm4416_vm14 = vmor %vm4414_vm13, %vm4415_vm10  ;;  %v4468_v20 = vand.u32 2147483648, %v4456_v36  ;;  %v4466_v48 = vand.u32 2147483647, %v4456_v36  ;;  %4588 = vmatpush.msra.mxu1 (%p4264_p0), %v4496_v42  ;;  %5000 = vmatpush.msra.mxu2 (%p4264_p0), %v4968_v12 }
 0x672   : >> { %v4411_v22 = vsub.f32 1.0, %v4410_v45  ;;  %v5863_v45 = vld [vmem:[#allocation22 + $0x1f8] sm:$0xff] (%p4264_p0)  ;;  %vm4646_vm10 = vcmask (%p4264_p0), 1042434   ;;  %vm4658_vm13 = vcmask (%p4264_p0), 1046534  }
 0x673   : >> { %v4433_v35 = vadd.f32 %v7793_v40, %v4432_v18  ;;  %v4469_v4 = vor.u32 1.1754944e-38, %v4468_v20  ;;  %vm4467_vm6 = vcmp.eq.f32.partialorder %v4466_v48, 8.507059e+37  ;;  %4589 = vmatpush.msra.mxu1 (%p4264_p0), %v4494_v41  ;;  %v4491_v18 = vld [vmem:[#allocation22 + $0x10] sm:$0xff] (%p4264_p0)  ;;  %v5411_v48 = vld [vmem:[#allocation22 + $0x128] sm:$0xff] (%p4264_p0) }
 0x674   : >> { %v4412_v38 = vmul.f32 %v7797_v54, %v4411_v22  ;;  %v5421_v22 = vld [vmem:[#allocation22 + $0x178] sm:$0xff] (%p4264_p0)  ;;  %v5412_v20 = vld [vmem:[#allocation22 + $0x130] sm:$0xff] (%p4264_p0) }
 0x675   : >> { %v4437_v60 = vsel %vm4436_vm11, %v7793_v40, %v4433_v35  ;;  %v4966_v40 = vld [vmem:[#allocation22 + $0x90] sm:$0xff] (%p4264_p0)  ;;  %4590 = vmatpush.msra.mxu1 (%p4264_p0), %v4492_v33  ;;  %v5860_v35 = vld [vmem:[#allocation22 + $0x1e0] sm:$0xff] (%p4264_p0)  ;;  %vm4649_vm11 = vcmask (%p4264_p0), 1043459  }
 0x676   : >> { %v7801_v61 = vpop.eup %7800  ;;  %v4413_v50 = vadd.f32 %v7797_v54, %v4412_v38  ;;  %v4442_v15 = vsel %vm4439_vm12, %v4441_v9, %v4437_v60  ;;  %5001 = vmatpush.msra.mxu2 (%p4264_p0), %v4966_v40  ;;  %v5419_v38 = vld [vmem:[#allocation22 + $0x168] sm:$0xff] (%p4264_p0)  ;;  %v5858_v9 = vld [vmem:[#allocation22 + $0x1d0] sm:$0xff] (%p4264_p0)  ;;  %vm4655_vm12 = vcmask (%p4264_p0), 1045509  }
 0x677   : >> { %v4458_v1 = vmul.f32 %v7801_v61, %v4456_v36  ;;  %v4448_v23 = vmul.f32 %v4446_v32, %v4442_v15  ;;  %vm4463_vm1 = vweird.f32 %v7801_v61  ;;  %v4965_v36 = vld [vmem:[#allocation22 + $0x88] sm:$0xff] (%p4264_p0)  ;;  %4591 = vmatpush.msra.mxu1 (%p4264_p0), %v4490_v25  ;;  %v5420_v32 = vld [vmem:[#allocation22 + $0x170] sm:$0xff] (%p4264_p0) }
 0x678   : >> { %v4417_v8 = vsel %vm4416_vm14, %v7797_v54, %v4413_v50  ;;  %vm4464_vm4 = vmor %vm4462_vm0, %vm4463_vm1  ;;  %v4964_v54 = vld [vmem:[#allocation22 + $0x80] sm:$0xff] (%p4264_p0)  ;;  %5043 = vmatpush.msra.mxu3 (%p4264_p0), %v4965_v36  ;;  %v5417_v50 = vld [vmem:[#allocation22 + $0x158] sm:$0xff] (%p4264_p0)  ;;  %vm10663_vm14 = vcmp.lt.s32.totalorder (%p4264_p0), %v4832_v27, 256 }
 0x679   : >> { %v4459_v58 = vsub.f32 1.0, %v4458_v1  ;;  %v4422_v44 = vsel %vm4419_vm15, %v4421_v19, %v4417_v8  ;;  %v4450_v57 = vrot.slane %v4448_v23, 7  ;;  %5002 = vmatpush.msra.mxu2 (%p4264_p0), %v4964_v54  ;;  %5478 = vmatpush.msrb.mxu1 (%p4264_p0), %v5421_v22  ;;  %v5857_v15 = vld [vmem:[#allocation22 + $0x1c8] sm:$0xff] (%p4264_p0)  ;;  %v5856_v1 = vld [vmem:[#allocation22 + $0x1c0] sm:$0xff] (%p4264_p0)  ;;  %v5416_v19 = vld [vmem:[#allocation22 + $0x150] sm:$0xff] (%p4264_p0) }
 0x67a   : >> { %v4424_v2 = vmul.f32 %v8264_v3, %v4422_v44  ;;  %5920 = vmatpush.msrb.mxu3 (%p4264_p0), %v5863_v45  ;;  %v5415_v23 = vld [vmem:[#allocation22 + $0x148] sm:$0xff] (%p4264_p0)  ;;  %v5855_v8 = vld [vmem:[#allocation22 + $0x1b8] sm:$0xff] (%p4264_p0)  ;;  %v5414_v44 = vld [vmem:[#allocation22 + $0x140] sm:$0xff] (%p4264_p0) }
 0x67b   : >> { %v4460_v62 = vmul.f32 %v7801_v61, %v4459_v58  ;;  %5879 = vmatpush.msrb.mxu2 (%p4264_p0), %v5862_v43  ;;  %5479 = vmatpush.msrb.mxu1 (%p4264_p0), %v5419_v38  ;;  %v5854_v58 = vld [vmem:[#allocation22 + $0x1b0] sm:$0xff] (%p4264_p0) }
 0x67c   : >> { %v4452_v3 = vadd.f32 %v4450_v57, %v4424_v2   ;;  %v5413_v57 = vld [vmem:[#allocation22 + $0x138] sm:$0xff] (%p4264_p0)  ;;  %v5853_v2 = vld [vmem:[#allocation22 + $0x1a8] sm:$0xff] (%p4264_p0) }
 0x67d   : >> { %v4461_v16 = vadd.f32 %v7801_v61, %v4460_v62  ;;  %5880 = vmatpush.msrb.mxu2 (%p4264_p0), %v5860_v35  ;;  %5480 = vmatpush.msrb.mxu1 (%p4264_p0), %v5417_v50  ;;  %v5852_v62 = vld [vmem:[#allocation22 + $0x1a0] sm:$0xff] (%p4264_p0) }
 0x67e   : >> { %7802 = vtanh.f32 %v4452_v3  ;;  %v4499_v3 = vld [vmem:[#allocation22 + $0x50] sm:$0xff] (%p4264_p0) }
 0x67f   : >> { %v4465_v47 = vsel %vm4464_vm4, %v7801_v61, %v4461_v16  ;;  %4545 = vmatpush.msra.mxu0 (%p4264_p0), %v4499_v3  ;;  %v5418_v61 = vld [vmem:[#allocation22 + $0x160] sm:$0xff] (%p4264_p0)  ;;  %5881 = vmatpush.msrb.mxu2 (%p4264_p0), %v5858_v9  ;;  %v10656_v3 = vperm.slane (%p4264_p0), %v4981_v52, 1 }
 0x680   : >> { %v4470_v14 = vsel %vm4467_vm6, %v4469_v4, %v4465_v47  ;;  %5481 = vmatpush.msrb.mxu1 (%p4264_p0), %v5415_v23  ;;  %v5410_v47 = vld [vmem:[#allocation22 + $0x120] sm:$0xff] (%p4264_p0)  ;;  %v5850_v4 = vld [vmem:[#allocation22 + $0x190] sm:$0xff] (%p4264_p0) }
 0x681   : > { %4546 = vmatpush.msra.mxu0 (%p4264_p0), %v4497_v6  ;;  %5882 = vmatpush.msrb.mxu2 (%p4264_p0), %v5856_v1  ;;  %v10659_v6 = vperm.slane (%p4264_p0), %v4981_v52, 0 }
 0x682   : > { %5482 = vmatpush.msrb.mxu1 (%p4264_p0), %v5413_v57 }
 0x683   : > { %4547 = vmatpush.msra.mxu0 (%p4264_p0), %v4495_v10  ;;  %5883 = vmatpush.msrb.mxu2 (%p4264_p0), %v5854_v58 }
 0x684   : >> { %v7803_v49 = vpop.eup %7802  ;;  %5483 = vmatpush.msrb.mxu1 (%p4264_p0), %v5411_v48 }
 0x685   : >> { %v4474_v46 = vrot.slane %v7803_v49, 6  ;;  %4548 = vmatpush.msra.mxu0 (%p4264_p0), %v4493_v17  ;;  %5884 = vmatpush.msrb.mxu2 (%p4264_p0), %v5852_v62  ;;  %v5851_v49 = vld [vmem:[#allocation22 + $0x198] sm:$0xff] (%p4264_p0) }
 0x687   : >> { %v4476_v7 = vmul.f32 %v4474_v46, %v4470_v14   ;;  %4266 = sbr.rel (!%p4264_p0) target bundleno = 1483 (0x5cb), region = 447  ;;  %4549 = vmatpush.msra.mxu0 (%p4264_p0), %v4491_v18  ;;  %5885 = vmatpush.msrb.mxu2 (%p4264_p0), %v5850_v4  ;;  %v5409_v46 = vld [vmem:[#allocation22 + $0x118] sm:$0xff] (%p4264_p0) }
 0x688   : > { %5484 = vmatpush.msrb.mxu1 (%p4264_p0), %v5409_v46 }
 0x689   : >> { %v4477_v26 = vmax.f32 %v4476_v7, 0.0  ;;  %v5861_v7 = vld [vmem:[#allocation22 + $0x1e8] sm:$0xff] (%p4264_p0)  ;;  %4550 = vmatpush.msra.mxu0 (%p4264_p0), %v4489_v51  ;;  %5886 = vmatpush.msrb.mxu2 (%p4264_p0), %v5848_v5 }
 0x68a   : > { %5921 = vmatpush.msrb.mxu3 (%p4264_p0), %v5861_v7  ;;  %5485 = vmatpush.msrb.mxu1 (%p4264_p0), %v5407_v30 }
 0x68b   : >> { %4480 = vst.msk [vmem:[%s4478_s21 - $0x3] sm:$0x8] %vm4479_vm7, %v4477_v26  ;;  %5437 = vmatpush.msrb.mxu0 (%p4264_p0), %v5420_v32  ;;  %v5408_v26 = vld [vmem:[#allocation22 + $0x110] sm:$0xff] (%p4264_p0) }
 0x68c   : > { %5922 = vmatpush.msrb.mxu3 %v5859_v37 }
 0x68d   : > { %5438 = vmatpush.msrb.mxu0 %v5418_v61 }
 0x68e   : > { %5923 = vmatpush.msrb.mxu3 %v5857_v15 }
 0x68f   : > { %5439 = vmatpush.msrb.mxu0 %v5416_v19 }
 0x690   : > { %5924 = vmatpush.msrb.mxu3 %v5855_v8 }
 0x691   : > { %5440 = vmatpush.msrb.mxu0 %v5414_v44 }
 0x692   : > { %v10558_v59 = vld [vmem:[#allocation6] sm:$0xff]  ;;  %v10568_v60 = vld [vmem:[#allocation6 + $0x8] sm:$0xff]  ;;  %v10578_v16 = vld [vmem:[#allocation6 + $0x10] sm:$0xff]  ;;  %5925 = vmatpush.msrb.mxu3 %v5853_v2 }
 0x693   : > { %7461 = vmatmul.msk.f32.vlgmr.msra.gmra.mxu3 %vm1294_vm5, %v10558_v59  ;;  %7453 = vmatmul.msk.f32.vlgmr.msra.gmra.mxu2 %vm1294_vm5, %v10558_v59  ;;  %v4484_v14 = vld [vmem:[#allocation6 + $0x18] sm:$0xff]  ;;  %v4485_v39 = vld [vmem:[#allocation6 + $0x20] sm:$0xff]  ;;  %v4486_v24 = vld [vmem:[#allocation6 + $0x28] sm:$0xff] }
 0x694   : > { %7445 = vmatmul.msk.f32.vlgmr.msra.gmra.mxu1 %vm1294_vm5, %v10558_v59  ;;  %7437 = vmatmul.msk.f32.vlgmr.msra.gmra.mxu0 %vm1294_vm5, %v10558_v59  ;;  %v4487_v13 = vld [vmem:[#allocation6 + $0x30] sm:$0xff]  ;;  %v4488_v11 = vld [vmem:[#allocation6 + $0x38] sm:$0xff] }
 0x695   : > { %5441 = vmatpush.msrb.mxu0 %v5412_v20  ;;  %5926 = vmatpush.msrb.mxu3 %v5851_v49 }
 0x697   : > { %5442 = vmatpush.msrb.mxu0 %v5410_v47  ;;  %5927 = vmatpush.msrb.mxu3 %v5849_v53 }
 0x699   : > { %5443 = vmatpush.msrb.mxu0 %v5408_v26 }
 0x69b   : > { %7462 = vmatmul.msk.f32.gmra.mxu3 %vm1294_vm5, %v10568_v60  ;;  %7454 = vmatmul.msk.f32.gmra.mxu2 %vm1294_vm5, %v10568_v60 }
 0x69c   : > { %7446 = vmatmul.msk.f32.gmra.mxu1 %vm1294_vm5, %v10568_v60  ;;  %7438 = vmatmul.msk.f32.gmra.mxu0 %vm1294_vm5, %v10568_v60 }
 0x69d   : > { %5444 = vmatpush.msrb.mxu0 %v5406_v0 }
 0x6a3   : > { %7463 = vmatmul.msk.f32.gmra.mxu3 %vm1294_vm5, %v10578_v16  ;;  %7455 = vmatmul.msk.f32.gmra.mxu2 %vm1294_vm5, %v10578_v16 }
 0x6a4   : > { %7447 = vmatmul.msk.f32.gmra.mxu1 %vm1294_vm5, %v10578_v16  ;;  %7439 = vmatmul.msk.f32.gmra.mxu0 %vm1294_vm5, %v10578_v16 }
 0x6ab   : > { %7464 = vmatmul.msk.f32.gmra.mxu3 %vm1294_vm5, %v4484_v14  ;;  %7456 = vmatmul.msk.f32.gmra.mxu2 %vm1294_vm5, %v4484_v14 }
 0x6ac   : > { %7448 = vmatmul.msk.f32.gmra.mxu1 %vm1294_vm5, %v4484_v14  ;;  %7440 = vmatmul.msk.f32.gmra.mxu0 %vm1294_vm5, %v4484_v14 }
 0x6b3   : > { %7465 = vmatmul.msk.f32.gmra.mxu3 %vm1294_vm5, %v4485_v39  ;;  %7457 = vmatmul.msk.f32.gmra.mxu2 %vm1294_vm5, %v4485_v39 }
 0x6b4   : > { %7449 = vmatmul.msk.f32.gmra.mxu1 %vm1294_vm5, %v4485_v39  ;;  %7441 = vmatmul.msk.f32.gmra.mxu0 %vm1294_vm5, %v4485_v39 }
 0x6bb   : > { %7466 = vmatmul.msk.f32.gmra.mxu3 %vm1294_vm5, %v4486_v24  ;;  %7458 = vmatmul.msk.f32.gmra.mxu2 %vm1294_vm5, %v4486_v24 }
 0x6bc   : > { %7450 = vmatmul.msk.f32.gmra.mxu1 %vm1294_vm5, %v4486_v24  ;;  %7442 = vmatmul.msk.f32.gmra.mxu0 %vm1294_vm5, %v4486_v24 }
 0x6c3   : > { %7467 = vmatmul.msk.f32.gmra.mxu3 %vm1294_vm5, %v4487_v13  ;;  %7459 = vmatmul.msk.f32.gmra.mxu2 %vm1294_vm5, %v4487_v13 }
 0x6c4   : > { %7451 = vmatmul.msk.f32.gmra.mxu1 %vm1294_vm5, %v4487_v13  ;;  %7443 = vmatmul.msk.f32.gmra.mxu0 %vm1294_vm5, %v4487_v13 }
 0x6cb   : > { %7468 = vmatmul.msk.f32.gmra.mxu3 %vm1294_vm5, %v4488_v11  ;;  %7460 = vmatmul.msk.f32.gmra.mxu2 %vm1294_vm5, %v4488_v11 }
 0x6cc   : > { %7452 = vmatmul.msk.f32.gmra.mxu1 %vm1294_vm5, %v4488_v11  ;;  %7444 = vmatmul.msk.f32.gmra.mxu0 %vm1294_vm5, %v4488_v11 }
 0x6d3   : > { %7493 = vmatmul.msk.f32.vlgmr.msrb.gmra.mxu3 %vm1294_vm5, %v10558_v59  ;;  %7485 = vmatmul.msk.f32.vlgmr.msrb.gmra.mxu2 %vm1294_vm5, %v10558_v59 }
 0x6d4   : > { %7477 = vmatmul.msk.f32.vlgmr.msrb.gmra.mxu1 %vm1294_vm5, %v10558_v59  ;;  %7469 = vmatmul.msk.f32.vlgmr.msrb.gmra.mxu0 %vm1294_vm5, %v10558_v59 }
 0x6db   : > { %7494 = vmatmul.msk.f32.gmra.mxu3 %vm1294_vm5, %v10568_v60  ;;  %7486 = vmatmul.msk.f32.gmra.mxu2 %vm1294_vm5, %v10568_v60 }
 0x6dc   : > { %7478 = vmatmul.msk.f32.gmra.mxu1 %vm1294_vm5, %v10568_v60  ;;  %7470 = vmatmul.msk.f32.gmra.mxu0 %vm1294_vm5, %v10568_v60 }
 0x6e3   : > { %7495 = vmatmul.msk.f32.gmra.mxu3 %vm1294_vm5, %v10578_v16  ;;  %7487 = vmatmul.msk.f32.gmra.mxu2 %vm1294_vm5, %v10578_v16 }
 0x6e4   : > { %7479 = vmatmul.msk.f32.gmra.mxu1 %vm1294_vm5, %v10578_v16  ;;  %7471 = vmatmul.msk.f32.gmra.mxu0 %vm1294_vm5, %v10578_v16 }
 0x6eb   : > { %7496 = vmatmul.msk.f32.gmra.mxu3 %vm1294_vm5, %v4484_v14  ;;  %7488 = vmatmul.msk.f32.gmra.mxu2 %vm1294_vm5, %v4484_v14 }
 0x6ec   : > { %7480 = vmatmul.msk.f32.gmra.mxu1 %vm1294_vm5, %v4484_v14  ;;  %7472 = vmatmul.msk.f32.gmra.mxu0 %vm1294_vm5, %v4484_v14 }
 0x6f3   : > { %7497 = vmatmul.msk.f32.gmra.mxu3 %vm1294_vm5, %v4485_v39  ;;  %7489 = vmatmul.msk.f32.gmra.mxu2 %vm1294_vm5, %v4485_v39 }
 0x6f4   : > { %7481 = vmatmul.msk.f32.gmra.mxu1 %vm1294_vm5, %v4485_v39  ;;  %7473 = vmatmul.msk.f32.gmra.mxu0 %vm1294_vm5, %v4485_v39 }
 0x6fb   : > { %7498 = vmatmul.msk.f32.gmra.mxu3 %vm1294_vm5, %v4486_v24  ;;  %7490 = vmatmul.msk.f32.gmra.mxu2 %vm1294_vm5, %v4486_v24 }
 0x6fc   : > { %7482 = vmatmul.msk.f32.gmra.mxu1 %vm1294_vm5, %v4486_v24  ;;  %7474 = vmatmul.msk.f32.gmra.mxu0 %vm1294_vm5, %v4486_v24 }
 0x703   : > { %7499 = vmatmul.msk.f32.gmra.mxu3 %vm1294_vm5, %v4487_v13  ;;  %7491 = vmatmul.msk.f32.gmra.mxu2 %vm1294_vm5, %v4487_v13 }
 0x704   : > { %7483 = vmatmul.msk.f32.gmra.mxu1 %vm1294_vm5, %v4487_v13  ;;  %7475 = vmatmul.msk.f32.gmra.mxu0 %vm1294_vm5, %v4487_v13 }
 0x70b   : > { %7500 = vmatmul.msk.f32.gmra.mxu3 %vm1294_vm5, %v4488_v11  ;;  %7492 = vmatmul.msk.f32.gmra.mxu2 %vm1294_vm5, %v4488_v11 }
 0x70c   : > { %7484 = vmatmul.msk.f32.gmra.mxu1 %vm1294_vm5, %v4488_v11  ;;  %7476 = vmatmul.msk.f32.gmra.mxu0 %vm1294_vm5, %v4488_v11  ;;  %vm4652_vm5 = vcmask 1044484  }
 0x711   : > { %v4593_v63 = vpop.f32.mrf.mxu1  ;;  %v4552_v28 = vpop.f32.mrf.mxu0 }
 0x712   : > { %v4594_v55 = vadd.f32 %v4593_v63, %v10652_v21  ;;  %v4553_v12 = vadd.f32 %v4552_v28, %v10654_v29 }
 0x714   : > { %v4633_v42 = vrot.slane %v4594_v55, 7 }
 0x716   : > { %v5045_v56 = vpop.f32.mrf.mxu3  ;;  %v5004_v10 = vpop.f32.mrf.mxu2  ;;  %v4642_v40 = vsel %vm4641_vm8, %v4553_v12, %v4633_v42  ;;  %v4644_v17 = vsel %vm4643_vm9, %v4553_v12, %v4633_v42  ;;  %v4647_v33 = vsel %vm4646_vm10, %v4553_v12, %v4633_v42  ;;  %v4650_v36 = vsel %vm4649_vm11, %v4553_v12, %v4633_v42 }
 0x717   : > { %v5046_v41 = vadd.f32 %v5045_v56, %v10656_v3  ;;  %v4645_v59 = vrot.slane %v4644_v17, 1  ;;  %v4648_v45 = vrot.slane %v4647_v33, 2  ;;  %v5005_v43 = vadd.f32 %v5004_v10, %v10659_v6  ;;  %4836 = vst.msk [vmem:[#allocation7] ss:$4 sm:$0x3] %vm10663_vm14, %v4642_v40 }
 0x718   : > { %v4651_v18 = vrot.slane %v4650_v36, 3  ;;  %v4653_v25 = vsel %vm4652_vm5, %v4553_v12, %v4633_v42  ;;  %v4656_v7 = vsel %vm4655_vm12, %v4553_v12, %v4633_v42  ;;  %v4659_v22 = vsel %vm4658_vm13, %v4553_v12, %v4633_v42 }
 0x719   : > { %v5085_v54 = vrot.slane %v5046_v41, 7  ;;  %v4654_v51 = vrot.slane %v4653_v25, 4  ;;  %v4661_v35 = vsel %vm690_vm3, %v4633_v42, %v4553_v12  ;;  %v4657_v32 = vrot.slane %v4656_v7, 5  ;;  %4838 = vst.msk [vmem:[#allocation7 + $0x8] ss:$4 sm:$0x3] %vm10663_vm14, %v4645_v59  ;;  %v4596_v38 = vpop.f32.mrf.mxu1  ;;  %v4555_v50 = vpop.f32.mrf.mxu0 }
 0x71a   : > { %v4660_v37 = vrot.slane %v4659_v22, 6  ;;  %4840 = vst.msk [vmem:[#allocation7 + $0x10] ss:$4 sm:$0x3] %vm10663_vm14, %v4648_v45  ;;  %v4662_v60 = vrot.slane %v4661_v35, 7  ;;  %v4597_v1 = vadd.f32 %v4596_v38, %v10652_v21  ;;  %v4556_v2 = vadd.f32 %v4555_v50, %v10654_v29 }
 0x71b   : > { %v5094_v9 = vsel %vm4643_vm9, %v5005_v43, %v5085_v54  ;;  %4842 = vst.msk [vmem:[#allocation7 + $0x18] ss:$4 sm:$0x3] %vm10663_vm14, %v4651_v18  ;;  %v5096_v61 = vsel %vm4646_vm10, %v5005_v43, %v5085_v54  ;;  %v5098_v15 = vsel %vm4649_vm11, %v5005_v43, %v5085_v54  ;;  %v5093_v19 = vsel %vm4641_vm8, %v5005_v43, %v5085_v54 }
 0x71c   : > { %4844 = vst.msk [vmem:[#allocation7 + $0x20] ss:$4 sm:$0x3] %vm10663_vm14, %v4654_v51  ;;  %v5095_v23 = vrot.slane %v5094_v9, 1  ;;  %v5100_v8 = vsel %vm4652_vm5, %v5005_v43, %v5085_v54  ;;  %v5097_v58 = vrot.slane %v5096_v61, 2  ;;  %v5102_v44 = vsel %vm4655_vm12, %v5005_v43, %v5085_v54 }
 0x71d   : > { %4846 = vst.msk [vmem:[#allocation7 + $0x28] ss:$4 sm:$0x3] %vm10663_vm14, %v4657_v32  ;;  %v4634_v57 = vrot.slane %v4597_v1, 7  ;;  %v5099_v62 = vrot.slane %v5098_v15, 3  ;;  %v5104_v16 = vsel %vm4658_vm13, %v5005_v43, %v5085_v54  ;;  %v5101_v48 = vrot.slane %v5100_v8, 4 }
 0x71e   : > { %4848 = vst.msk [vmem:[#allocation7 + $0x30] ss:$4 sm:$0x3] %vm10663_vm14, %v4660_v37  ;;  %v5048_v20 = vpop.f32.mrf.mxu3  ;;  %v5106_v47 = vsel %vm690_vm3, %v5085_v54, %v5005_v43  ;;  %v5103_v49 = vrot.slane %v5102_v44, 5  ;;  %v5105_v4 = vrot.slane %v5104_v16, 6  ;;  %v5007_v5 = vpop.f32.mrf.mxu2 }
 0x71f   : > { %4850 = vst.msk [vmem:[#allocation7 + $0x38] ss:$4 sm:$0x3] %vm10663_vm14, %v4662_v60  ;;  %v5049_v46 = vadd.f32 %v5048_v20, %v10656_v3  ;;  %v4664_v14 = vsel %vm4643_vm9, %v4556_v2, %v4634_v57  ;;  %v5107_v26 = vrot.slane %v5106_v47, 7  ;;  %v4666_v53 = vsel %vm4646_vm10, %v4556_v2, %v4634_v57 }
 0x720   : > { %5278 = vst.msk [vmem:[#allocation7 + $0x1] ss:$4 sm:$0x3] %vm10663_vm14, %v5093_v19  ;;  %v4668_v30 = vsel %vm4649_vm11, %v4556_v2, %v4634_v57  ;;  %v4663_v39 = vsel %vm4641_vm8, %v4556_v2, %v4634_v57  ;;  %v4665_v0 = vrot.slane %v4664_v14, 1  ;;  %v4670_v24 = vsel %vm4652_vm5, %v4556_v2, %v4634_v57 }
 0x721   : > { %5280 = vst.msk [vmem:[#allocation7 + $0x9] ss:$4 sm:$0x3] %vm10663_vm14, %v5095_v23  ;;  %v5086_v13 = vrot.slane %v5049_v46, 7  ;;  %v4667_v11 = vrot.slane %v4666_v53, 2  ;;  %v4672_v31 = vsel %vm4655_vm12, %v4556_v2, %v4634_v57  ;;  %v5008_v52 = vadd.f32 %v5007_v5, %v10659_v6  ;;  %v4599_v55 = vpop.f32.mrf.mxu1  ;;  %v4558_v33 = vpop.f32.mrf.mxu0 }
 0x722   : > { %5282 = vst.msk [vmem:[#allocation7 + $0x11] ss:$4 sm:$0x3] %vm10663_vm14, %v5097_v58  ;;  %v4669_v63 = vrot.slane %v4668_v30, 3  ;;  %v4674_v27 = vsel %vm4658_vm13, %v4556_v2, %v4634_v57  ;;  %v4671_v28 = vrot.slane %v4670_v24, 4  ;;  %v4676_v42 = vsel %vm690_vm3, %v4634_v57, %v4556_v2 }
 0x723   : > { %5284 = vst.msk [vmem:[#allocation7 + $0x19] ss:$4 sm:$0x3] %vm10663_vm14, %v5099_v62  ;;  %v4673_v56 = vrot.slane %v4672_v31, 5  ;;  %v4675_v12 = vrot.slane %v4674_v27, 6  ;;  %v5109_v10 = vsel %vm4643_vm9, %v5008_v52, %v5086_v13  ;;  %v4600_v41 = vadd.f32 %v4599_v55, %v10652_v21 }
 0x724   : > { %5286 = vst.msk [vmem:[#allocation7 + $0x21] ss:$4 sm:$0x3] %vm10663_vm14, %v5101_v48  ;;  %v4677_v40 = vrot.slane %v4676_v42, 7  ;;  %v5111_v17 = vsel %vm4646_vm10, %v5008_v52, %v5086_v13  ;;  %v5113_v36 = vsel %vm4649_vm11, %v5008_v52, %v5086_v13  ;;  %v5108_v54 = vsel %vm4641_vm8, %v5008_v52, %v5086_v13 }
 0x725   : > { %5288 = vst.msk [vmem:[#allocation7 + $0x29] ss:$4 sm:$0x3] %vm10663_vm14, %v5103_v49  ;;  %v5110_v59 = vrot.slane %v5109_v10, 1  ;;  %v5115_v45 = vsel %vm4652_vm5, %v5008_v52, %v5086_v13  ;;  %v5112_v43 = vrot.slane %v5111_v17, 2  ;;  %v5117_v18 = vsel %vm4655_vm12, %v5008_v52, %v5086_v13 }
 0x726   : > { %5290 = vst.msk [vmem:[#allocation7 + $0x31] ss:$4 sm:$0x3] %vm10663_vm14, %v5105_v4  ;;  %v4635_v25 = vrot.slane %v4600_v41, 7  ;;  %v4559_v7 = vadd.f32 %v4558_v33, %v10654_v29  ;;  %v5114_v22 = vrot.slane %v5113_v36, 3  ;;  %v5119_v51 = vsel %vm4658_vm13, %v5008_v52, %v5086_v13  ;;  %v5051_v35 = vpop.f32.mrf.mxu3  ;;  %v5010_v1 = vpop.f32.mrf.mxu2 }
 0x727   : > { %5292 = vst.msk [vmem:[#allocation7 + $0x39] ss:$4 sm:$0x3] %vm10663_vm14, %v5107_v26  ;;  %v5116_v32 = vrot.slane %v5115_v45, 4  ;;  %v5121_v38 = vsel %vm690_vm3, %v5086_v13, %v5008_v52  ;;  %v5118_v37 = vrot.slane %v5117_v18, 5  ;;  %v5120_v9 = vrot.slane %v5119_v51, 6 }
 0x728   : > { %4852 = vst.msk [vmem:[#allocation7 + $0x40] ss:$4 sm:$0x3] %vm10663_vm14, %v4663_v39  ;;  %v5052_v60 = vadd.f32 %v5051_v35, %v10656_v3  ;;  %v4679_v61 = vsel %vm4643_vm9, %v4559_v7, %v4635_v25  ;;  %v5122_v50 = vrot.slane %v5121_v38, 7  ;;  %v4681_v15 = vsel %vm4646_vm10, %v4559_v7, %v4635_v25 }
 0x729   : > { %4854 = vst.msk [vmem:[#allocation7 + $0x48] ss:$4 sm:$0x3] %vm10663_vm14, %v4665_v0  ;;  %v4683_v19 = vsel %vm4649_vm11, %v4559_v7, %v4635_v25  ;;  %v4678_v23 = vsel %vm4641_vm8, %v4559_v7, %v4635_v25  ;;  %v4680_v8 = vrot.slane %v4679_v61, 1  ;;  %v4685_v58 = vsel %vm4652_vm5, %v4559_v7, %v4635_v25  ;;  %v4602_v48 = vpop.f32.mrf.mxu1  ;;  %v4561_v30 = vpop.f32.mrf.mxu0 }
 0x72a   : > { %4856 = vst.msk [vmem:[#allocation7 + $0x50] ss:$4 sm:$0x3] %vm10663_vm14, %v4667_v11  ;;  %v5087_v44 = vrot.slane %v5052_v60, 7  ;;  %v4682_v57 = vrot.slane %v4681_v15, 2  ;;  %v4687_v2 = vsel %vm4655_vm12, %v4559_v7, %v4635_v25  ;;  %v5011_v62 = vadd.f32 %v5010_v1, %v10659_v6 }
 0x72b   : > { %4858 = vst.msk [vmem:[#allocation7 + $0x58] ss:$4 sm:$0x3] %vm10663_vm14, %v4669_v63  ;;  %v4684_v16 = vrot.slane %v4683_v19, 3  ;;  %v4689_v20 = vsel %vm4658_vm13, %v4559_v7, %v4635_v25  ;;  %v4686_v47 = vrot.slane %v4685_v58, 4  ;;  %v4691_v49 = vsel %vm690_vm3, %v4635_v25, %v4559_v7 }
 0x72c   : > { %4860 = vst.msk [vmem:[#allocation7 + $0x60] ss:$4 sm:$0x3] %vm10663_vm14, %v4671_v28  ;;  %v4688_v4 = vrot.slane %v4687_v2, 5  ;;  %v4690_v46 = vrot.slane %v4689_v20, 6  ;;  %v5124_v14 = vsel %vm4643_vm9, %v5011_v62, %v5087_v44  ;;  %v4603_v26 = vadd.f32 %v4602_v48, %v10652_v21 }
 0x72d   : > { %4862 = vst.msk [vmem:[#allocation7 + $0x68] ss:$4 sm:$0x3] %vm10663_vm14, %v4673_v56  ;;  %v4692_v53 = vrot.slane %v4691_v49, 7  ;;  %v5126_v5 = vsel %vm4646_vm10, %v5011_v62, %v5087_v44  ;;  %v5128_v39 = vsel %vm4649_vm11, %v5011_v62, %v5087_v44  ;;  %v5123_v0 = vsel %vm4641_vm8, %v5011_v62, %v5087_v44 }
 0x72e   : > { %4864 = vst.msk [vmem:[#allocation7 + $0x70] ss:$4 sm:$0x3] %vm10663_vm14, %v4675_v12  ;;  %v5125_v24 = vrot.slane %v5124_v14, 1  ;;  %v5130_v13 = vsel %vm4652_vm5, %v5011_v62, %v5087_v44  ;;  %v5127_v11 = vrot.slane %v5126_v5, 2  ;;  %v5132_v31 = vsel %vm4655_vm12, %v5011_v62, %v5087_v44  ;;  %v5054_v28 = vpop.f32.mrf.mxu3  ;;  %v5013_v36 = vpop.f32.mrf.mxu2 }
 0x72f   : > { %4866 = vst.msk [vmem:[#allocation7 + $0x78] ss:$4 sm:$0x3] %vm10663_vm14, %v4677_v40  ;;  %v4636_v52 = vrot.slane %v4603_v26, 7  ;;  %v4562_v63 = vadd.f32 %v4561_v30, %v10654_v29  ;;  %v5129_v27 = vrot.slane %v5128_v39, 3  ;;  %v5134_v55 = vsel %vm4658_vm13, %v5011_v62, %v5087_v44 }
 0x730   : > { %5294 = vst.msk [vmem:[#allocation7 + $0x41] ss:$4 sm:$0x3] %vm10663_vm14, %v5108_v54  ;;  %v5131_v42 = vrot.slane %v5130_v13, 4  ;;  %v5136_v56 = vsel %vm690_vm3, %v5087_v44, %v5011_v62  ;;  %v5133_v12 = vrot.slane %v5132_v31, 5  ;;  %v5135_v10 = vrot.slane %v5134_v55, 6 }
 0x731   : > { %5296 = vst.msk [vmem:[#allocation7 + $0x49] ss:$4 sm:$0x3] %vm10663_vm14, %v5110_v59  ;;  %v5055_v41 = vadd.f32 %v5054_v28, %v10656_v3  ;;  %v4694_v40 = vsel %vm4643_vm9, %v4562_v63, %v4636_v52  ;;  %v5137_v17 = vrot.slane %v5136_v56, 7  ;;  %v4696_v33 = vsel %vm4646_vm10, %v4562_v63, %v4636_v52  ;;  %v4564_v19 = vpop.f32.mrf.mxu0 }
 0x732   : > { %5298 = vst.msk [vmem:[#allocation7 + $0x51] ss:$4 sm:$0x3] %vm10663_vm14, %v5112_v43  ;;  %v4698_v54 = vsel %vm4649_vm11, %v4562_v63, %v4636_v52  ;;  %v4693_v59 = vsel %vm4641_vm8, %v4562_v63, %v4636_v52  ;;  %v4695_v45 = vrot.slane %v4694_v40, 1  ;;  %v4700_v43 = vsel %vm4652_vm5, %v4562_v63, %v4636_v52 }
 0x733   : > { %5300 = vst.msk [vmem:[#allocation7 + $0x59] ss:$4 sm:$0x3] %vm10663_vm14, %v5114_v22  ;;  %v5088_v18 = vrot.slane %v5055_v41, 7  ;;  %v4697_v25 = vrot.slane %v4696_v33, 2  ;;  %v4702_v7 = vsel %vm4655_vm12, %v4562_v63, %v4636_v52  ;;  %v5014_v22 = vadd.f32 %v5013_v36, %v10659_v6 }
 0x734   : > { %5302 = vst.msk [vmem:[#allocation7 + $0x61] ss:$4 sm:$0x3] %vm10663_vm14, %v5116_v32  ;;  %v4699_v51 = vrot.slane %v4698_v54, 3  ;;  %v4704_v35 = vsel %vm4658_vm13, %v4562_v63, %v4636_v52  ;;  %v4605_v32 = vpop.f32.mrf.mxu1  ;;  %v4701_v38 = vrot.slane %v4700_v43, 4 }
 0x735   : > { %5304 = vst.msk [vmem:[#allocation7 + $0x69] ss:$4 sm:$0x3] %vm10663_vm14, %v5118_v37  ;;  %v4706_v37 = vsel %vm690_vm3, %v4636_v52, %v4562_v63  ;;  %v4705_v60 = vrot.slane %v4704_v35, 6  ;;  %v5139_v61 = vsel %vm4643_vm9, %v5014_v22, %v5088_v18  ;;  %v5141_v1 = vsel %vm4646_vm10, %v5014_v22, %v5088_v18 }
 0x736   : > { %5306 = vst.msk [vmem:[#allocation7 + $0x71] ss:$4 sm:$0x3] %vm10663_vm14, %v5120_v9  ;;  %v4703_v9 = vrot.slane %v4702_v7, 5  ;;  %v4707_v15 = vrot.slane %v4706_v37, 7  ;;  %v5140_v58 = vrot.slane %v5139_v61, 1  ;;  %v5145_v44 = vsel %vm4652_vm5, %v5014_v22, %v5088_v18  ;;  %v5016_v39 = vpop.f32.mrf.mxu2 }
 0x737   : > { %5308 = vst.msk [vmem:[#allocation7 + $0x79] ss:$4 sm:$0x3] %vm10663_vm14, %v5122_v50  ;;  %v4606_v50 = vadd.f32 %v4605_v32, %v10652_v21  ;;  %v5147_v2 = vsel %vm4655_vm12, %v5014_v22, %v5088_v18  ;;  %v5149_v48 = vsel %vm4658_vm13, %v5014_v22, %v5088_v18  ;;  %v5146_v49 = vrot.slane %v5145_v44, 4 }
 0x738   : > { %4868 = vst.msk [vmem:[#allocation7 + $0x80] ss:$4 sm:$0x3] %vm10663_vm14, %v4678_v23  ;;  %v5143_v23 = vsel %vm4649_vm11, %v5014_v22, %v5088_v18  ;;  %v5150_v14 = vrot.slane %v5149_v48, 6 }
 0x739   : > { %4870 = vst.msk [vmem:[#allocation7 + $0x88] ss:$4 sm:$0x3] %vm10663_vm14, %v4680_v8  ;;  %v5138_v8 = vsel %vm4641_vm8, %v5014_v22, %v5088_v18  ;;  %v4637_v62 = vrot.slane %v4606_v50, 7  ;;  %v5144_v20 = vrot.slane %v5143_v23, 3  ;;  %v4567_v54 = vpop.f32.mrf.mxu0 }
 0x73a   : > { %4872 = vst.msk [vmem:[#allocation7 + $0x90] ss:$4 sm:$0x3] %vm10663_vm14, %v4682_v57  ;;  %v5142_v57 = vrot.slane %v5141_v1, 2 }
 0x73b   : > { %4874 = vst.msk [vmem:[#allocation7 + $0x98] ss:$4 sm:$0x3] %vm10663_vm14, %v4684_v16  ;;  %v4565_v16 = vadd.f32 %v4564_v19, %v10654_v29 }
 0x73c   : > { %4876 = vst.msk [vmem:[#allocation7 + $0xa0] ss:$4 sm:$0x3] %vm10663_vm14, %v4686_v47  ;;  %v5057_v47 = vpop.f32.mrf.mxu3 }
 0x73d   : > { %4878 = vst.msk [vmem:[#allocation7 + $0xa8] ss:$4 sm:$0x3] %vm10663_vm14, %v4688_v4  ;;  %v5151_v4 = vsel %vm690_vm3, %v5088_v18, %v5014_v22  ;;  %v5058_v26 = vadd.f32 %v5057_v47, %v10656_v3  ;;  %v4711_v30 = vsel %vm4646_vm10, %v4565_v16, %v4637_v62  ;;  %v4717_v63 = vsel %vm4655_vm12, %v4565_v16, %v4637_v62 }
 0x73e   : > { %4880 = vst.msk [vmem:[#allocation7 + $0xb0] ss:$4 sm:$0x3] %vm10663_vm14, %v4690_v46  ;;  %v5148_v46 = vrot.slane %v5147_v2, 5  ;;  %v5152_v5 = vrot.slane %v5151_v4, 7  ;;  %v4712_v52 = vrot.slane %v4711_v30, 2  ;;  %v4719_v28 = vsel %vm4658_vm13, %v4565_v16, %v4637_v62  ;;  %v5019_v23 = vpop.f32.mrf.mxu2 }
 0x73f   : > { %4882 = vst.msk [vmem:[#allocation7 + $0xb8] ss:$4 sm:$0x3] %vm10663_vm14, %v4692_v53  ;;  %v4709_v53 = vsel %vm4643_vm9, %v4565_v16, %v4637_v62  ;;  %v5089_v31 = vrot.slane %v5058_v26, 7  ;;  %v4720_v41 = vrot.slane %v4719_v28, 6 }
 0x740   : > { %5310 = vst.msk [vmem:[#allocation7 + $0x81] ss:$4 sm:$0x3] %vm10663_vm14, %v5123_v0  ;;  %v4713_v0 = vsel %vm4649_vm11, %v4565_v16, %v4637_v62  ;;  %v4710_v13 = vrot.slane %v4709_v53, 1 }
 0x741   : > { %5312 = vst.msk [vmem:[#allocation7 + $0x89] ss:$4 sm:$0x3] %vm10663_vm14, %v5125_v24  ;;  %v4708_v24 = vsel %vm4641_vm8, %v4565_v16, %v4637_v62  ;;  %v4714_v55 = vrot.slane %v4713_v0, 3  ;;  %v4570_v0 = vpop.f32.mrf.mxu0 }
 0x742   : > { %5314 = vst.msk [vmem:[#allocation7 + $0x91] ss:$4 sm:$0x3] %vm10663_vm14, %v5127_v11  ;;  %v4715_v11 = vsel %vm4652_vm5, %v4565_v16, %v4637_v62 }
 0x743   : > { %5316 = vst.msk [vmem:[#allocation7 + $0x99] ss:$4 sm:$0x3] %vm10663_vm14, %v5129_v27  ;;  %v5017_v27 = vadd.f32 %v5016_v39, %v10659_v6  ;;  %v4716_v56 = vrot.slane %v4715_v11, 4 }
 0x744   : > { %5318 = vst.msk [vmem:[#allocation7 + $0xa1] ss:$4 sm:$0x3] %vm10663_vm14, %v5131_v42  ;;  %v4608_v42 = vpop.f32.mrf.mxu1 }
 0x745   : > { %5320 = vst.msk [vmem:[#allocation7 + $0xa9] ss:$4 sm:$0x3] %vm10663_vm14, %v5133_v12  ;;  %v4721_v12 = vsel %vm690_vm3, %v4637_v62, %v4565_v16  ;;  %v5154_v40 = vsel %vm4643_vm9, %v5017_v27, %v5089_v31  ;;  %v5156_v36 = vsel %vm4646_vm10, %v5017_v27, %v5089_v31  ;;  %v5160_v18 = vsel %vm4652_vm5, %v5017_v27, %v5089_v31 }
 0x746   : > { %5322 = vst.msk [vmem:[#allocation7 + $0xb1] ss:$4 sm:$0x3] %vm10663_vm14, %v5135_v10  ;;  %v4718_v10 = vrot.slane %v4717_v63, 5  ;;  %v4722_v33 = vrot.slane %v4721_v12, 7  ;;  %v5155_v43 = vrot.slane %v5154_v40, 1  ;;  %v5162_v7 = vsel %vm4655_vm12, %v5017_v27, %v5089_v31 }
 0x747   : > { %5324 = vst.msk [vmem:[#allocation7 + $0xb9] ss:$4 sm:$0x3] %vm10663_vm14, %v5137_v17  ;;  %v4609_v17 = vadd.f32 %v4608_v42, %v10652_v21  ;;  %v5164_v32 = vsel %vm4658_vm13, %v5017_v27, %v5089_v31  ;;  %v5161_v37 = vrot.slane %v5160_v18, 4 }
 0x748   : > { %4884 = vst.msk [vmem:[#allocation7 + $0xc0] ss:$4 sm:$0x3] %vm10663_vm14, %v4693_v59  ;;  %v5158_v59 = vsel %vm4649_vm11, %v5017_v27, %v5089_v31  ;;  %v5165_v61 = vrot.slane %v5164_v32, 6 }
 0x749   : > { %4886 = vst.msk [vmem:[#allocation7 + $0xc8] ss:$4 sm:$0x3] %vm10663_vm14, %v4695_v45  ;;  %v5153_v45 = vsel %vm4641_vm8, %v5017_v27, %v5089_v31  ;;  %v4638_v22 = vrot.slane %v4609_v17, 7  ;;  %v5159_v35 = vrot.slane %v5158_v59, 3  ;;  %v5022_v59 = vpop.f32.mrf.mxu2 }
 0x74a   : > { %4888 = vst.msk [vmem:[#allocation7 + $0xd0] ss:$4 sm:$0x3] %vm10663_vm14, %v4697_v25  ;;  %v5157_v25 = vrot.slane %v5156_v36, 2 }
 0x74b   : > { %4890 = vst.msk [vmem:[#allocation7 + $0xd8] ss:$4 sm:$0x3] %vm10663_vm14, %v4699_v51  ;;  %v4568_v51 = vadd.f32 %v4567_v54, %v10654_v29 }
 0x74c   : > { %4892 = vst.msk [vmem:[#allocation7 + $0xe0] ss:$4 sm:$0x3] %vm10663_vm14, %v4701_v38  ;;  %v5060_v38 = vpop.f32.mrf.mxu3 }
 0x74d   : > { %4894 = vst.msk [vmem:[#allocation7 + $0xe8] ss:$4 sm:$0x3] %vm10663_vm14, %v4703_v9  ;;  %v5166_v9 = vsel %vm690_vm3, %v5089_v31, %v5017_v27  ;;  %v5061_v50 = vadd.f32 %v5060_v38, %v10656_v3  ;;  %v4726_v19 = vsel %vm4646_vm10, %v4568_v51, %v4638_v22  ;;  %v4732_v16 = vsel %vm4655_vm12, %v4568_v51, %v4638_v22 }
 0x74e   : > { %4896 = vst.msk [vmem:[#allocation7 + $0xf0] ss:$4 sm:$0x3] %vm10663_vm14, %v4705_v60  ;;  %v5163_v60 = vrot.slane %v5162_v7, 5  ;;  %v5167_v1 = vrot.slane %v5166_v9, 7  ;;  %v4727_v62 = vrot.slane %v4726_v19, 2  ;;  %v4734_v47 = vsel %vm4658_vm13, %v4568_v51, %v4638_v22 }
 0x74f   : > { %4898 = vst.msk [vmem:[#allocation7 + $0xf8] ss:$4 sm:$0x3] %vm10663_vm14, %v4707_v15  ;;  %v4724_v15 = vsel %vm4643_vm9, %v4568_v51, %v4638_v22  ;;  %v5090_v2 = vrot.slane %v5061_v50, 7  ;;  %v4735_v26 = vrot.slane %v4734_v47, 6 }
 0x750   : > { %5326 = vst.msk [vmem:[#allocation7 + $0xc1] ss:$4 sm:$0x3] %vm10663_vm14, %v5138_v8  ;;  %v4728_v8 = vsel %vm4649_vm11, %v4568_v51, %v4638_v22  ;;  %v4725_v44 = vrot.slane %v4724_v15, 1 }
 0x751   : > { %5328 = vst.msk [vmem:[#allocation7 + $0xc9] ss:$4 sm:$0x3] %vm10663_vm14, %v5140_v58  ;;  %v4723_v58 = vsel %vm4641_vm8, %v4568_v51, %v4638_v22  ;;  %v4729_v48 = vrot.slane %v4728_v8, 3  ;;  %v4573_v8 = vpop.f32.mrf.mxu0 }
 0x752   : > { %5330 = vst.msk [vmem:[#allocation7 + $0xd1] ss:$4 sm:$0x3] %vm10663_vm14, %v5142_v57  ;;  %v4730_v57 = vsel %vm4652_vm5, %v4568_v51, %v4638_v22 }
 0x753   : > { %5332 = vst.msk [vmem:[#allocation7 + $0xd9] ss:$4 sm:$0x3] %vm10663_vm14, %v5144_v20  ;;  %v5020_v20 = vadd.f32 %v5019_v23, %v10659_v6  ;;  %v4731_v4 = vrot.slane %v4730_v57, 4 }
 0x754   : > { %5334 = vst.msk [vmem:[#allocation7 + $0xe1] ss:$4 sm:$0x3] %vm10663_vm14, %v5146_v49  ;;  %v4611_v49 = vpop.f32.mrf.mxu1 }
 0x755   : > { %5336 = vst.msk [vmem:[#allocation7 + $0xe9] ss:$4 sm:$0x3] %vm10663_vm14, %v5148_v46  ;;  %v4736_v46 = vsel %vm690_vm3, %v4638_v22, %v4568_v51  ;;  %v5169_v53 = vsel %vm4643_vm9, %v5020_v20, %v5090_v2  ;;  %v5171_v39 = vsel %vm4646_vm10, %v5020_v20, %v5090_v2  ;;  %v5175_v31 = vsel %vm4652_vm5, %v5020_v20, %v5090_v2 }
 0x756   : > { %5338 = vst.msk [vmem:[#allocation7 + $0xf1] ss:$4 sm:$0x3] %vm10663_vm14, %v5150_v14  ;;  %v4733_v14 = vrot.slane %v4732_v16, 5  ;;  %v4737_v30 = vrot.slane %v4736_v46, 7  ;;  %v5170_v11 = vrot.slane %v5169_v53, 1  ;;  %v5177_v63 = vsel %vm4655_vm12, %v5020_v20, %v5090_v2 }
 0x757   : > { %5340 = vst.msk [vmem:[#allocation7 + $0xf9] ss:$4 sm:$0x3] %vm10663_vm14, %v5152_v5  ;;  %v4612_v5 = vadd.f32 %v4611_v49, %v10652_v21  ;;  %v5179_v42 = vsel %vm4658_vm13, %v5020_v20, %v5090_v2  ;;  %v5176_v12 = vrot.slane %v5175_v31, 4 }
 0x758   : > { %4900 = vst.msk [vmem:[#allocation7 + $0x100] ss:$4 sm:$0x3] %vm10663_vm14, %v4708_v24  ;;  %v5173_v24 = vsel %vm4649_vm11, %v5020_v20, %v5090_v2  ;;  %v5180_v40 = vrot.slane %v5179_v42, 6 }
 0x759   : > { %4902 = vst.msk [vmem:[#allocation7 + $0x108] ss:$4 sm:$0x3] %vm10663_vm14, %v4710_v13  ;;  %v5168_v13 = vsel %vm4641_vm8, %v5020_v20, %v5090_v2  ;;  %v4639_v27 = vrot.slane %v4612_v5, 7  ;;  %v5174_v28 = vrot.slane %v5173_v24, 3  ;;  %v5025_v5 = vpop.f32.mrf.mxu2 }
 0x75a   : > { %4904 = vst.msk [vmem:[#allocation7 + $0x110] ss:$4 sm:$0x3] %vm10663_vm14, %v4712_v52  ;;  %v5172_v52 = vrot.slane %v5171_v39, 2 }
 0x75b   : > { %4906 = vst.msk [vmem:[#allocation7 + $0x118] ss:$4 sm:$0x3] %vm10663_vm14, %v4714_v55  ;;  %v4571_v55 = vadd.f32 %v4570_v0, %v10654_v29  ;;  %v5423_v0 = vld [vmem:[#allocation25 + $0x4] sm:$0x3] }
 0x75c   : > { %4908 = vst.msk [vmem:[#allocation7 + $0x120] ss:$4 sm:$0x3] %vm10663_vm14, %v4716_v56  ;;  %v5063_v56 = vpop.f32.mrf.mxu3 }
 0x75d   : > { %4910 = vst.msk [vmem:[#allocation7 + $0x128] ss:$4 sm:$0x3] %vm10663_vm14, %v4718_v10  ;;  %v5181_v10 = vsel %vm690_vm3, %v5090_v2, %v5020_v20  ;;  %v5064_v17 = vadd.f32 %v5063_v56, %v10656_v3  ;;  %v4741_v54 = vsel %vm4646_vm10, %v4571_v55, %v4639_v27  ;;  %v4747_v51 = vsel %vm4655_vm12, %v4571_v55, %v4639_v27 }
 0x75e   : > { %4912 = vst.msk [vmem:[#allocation7 + $0x130] ss:$4 sm:$0x3] %vm10663_vm14, %v4720_v41  ;;  %v5178_v41 = vrot.slane %v5177_v63, 5  ;;  %v5182_v36 = vrot.slane %v5181_v10, 7  ;;  %v4742_v22 = vrot.slane %v4741_v54, 2  ;;  %v4749_v38 = vsel %vm4658_vm13, %v4571_v55, %v4639_v27 }
 0x75f   : > { %4914 = vst.msk [vmem:[#allocation7 + $0x138] ss:$4 sm:$0x3] %vm10663_vm14, %v4722_v33  ;;  %v4739_v33 = vsel %vm4643_vm9, %v4571_v55, %v4639_v27  ;;  %v5091_v7 = vrot.slane %v5064_v17, 7  ;;  %v4750_v50 = vrot.slane %v4749_v38, 6 }
 0x760   : > { %5342 = vst.msk [vmem:[#allocation7 + $0x101] ss:$4 sm:$0x3] %vm10663_vm14, %v5153_v45  ;;  %v4743_v45 = vsel %vm4649_vm11, %v4571_v55, %v4639_v27  ;;  %v4740_v18 = vrot.slane %v4739_v33, 1 }
 0x761   : > { %5344 = vst.msk [vmem:[#allocation7 + $0x109] ss:$4 sm:$0x3] %vm10663_vm14, %v5155_v43  ;;  %v4738_v43 = vsel %vm4641_vm8, %v4571_v55, %v4639_v27  ;;  %v4744_v32 = vrot.slane %v4743_v45, 3  ;;  %v5446_v45 = vpop.f32.mrf.mxu0 }
 0x762   : > { %5346 = vst.msk [vmem:[#allocation7 + $0x111] ss:$4 sm:$0x3] %vm10663_vm14, %v5157_v25  ;;  %v4745_v25 = vsel %vm4652_vm5, %v4571_v55, %v4639_v27 }
 0x763   : > { %5348 = vst.msk [vmem:[#allocation7 + $0x119] ss:$4 sm:$0x3] %vm10663_vm14, %v5159_v35  ;;  %v5023_v35 = vadd.f32 %v5022_v59, %v10659_v6  ;;  %v4746_v9 = vrot.slane %v4745_v25, 4  ;;  %v5865_v59 = vld [vmem:[#allocation25 + $0x6] sm:$0x3] }
 0x764   : > { %5350 = vst.msk [vmem:[#allocation7 + $0x121] ss:$4 sm:$0x3] %vm10663_vm14, %v5161_v37  ;;  %v4614_v37 = vpop.f32.mrf.mxu1  ;;  %v5066_v2 = vpop.f32.mrf.mxu3 }
 0x765   : > { %5352 = vst.msk [vmem:[#allocation7 + $0x129] ss:$4 sm:$0x3] %vm10663_vm14, %v5163_v60  ;;  %v4751_v60 = vsel %vm690_vm3, %v4639_v27, %v4571_v55  ;;  %v5184_v15 = vsel %vm4643_vm9, %v5023_v35, %v5091_v7  ;;  %v5186_v23 = vsel %vm4646_vm10, %v5023_v35, %v5091_v7  ;;  %v5192_v16 = vsel %vm4655_vm12, %v5023_v35, %v5091_v7 }
 0x766   : > { %5354 = vst.msk [vmem:[#allocation7 + $0x131] ss:$4 sm:$0x3] %vm10663_vm14, %v5165_v61  ;;  %v4748_v61 = vrot.slane %v4747_v51, 5  ;;  %v4752_v19 = vrot.slane %v4751_v60, 7  ;;  %v5185_v57 = vrot.slane %v5184_v15, 1  ;;  %v5194_v49 = vsel %vm4658_vm13, %v5023_v35, %v5091_v7 }
 0x767   : > { %5356 = vst.msk [vmem:[#allocation7 + $0x139] ss:$4 sm:$0x3] %vm10663_vm14, %v5167_v1  ;;  %v4615_v1 = vadd.f32 %v4614_v37, %v10652_v21  ;;  %v5190_v21 = vsel %vm4652_vm5, %v5023_v35, %v5091_v7  ;;  %v5196_v46 = vsel %vm690_vm3, %v5091_v7, %v5023_v35  ;;  %v5195_v53 = vrot.slane %v5194_v49, 6 }
 0x768   : > { %4916 = vst.msk [vmem:[#allocation7 + $0x140] ss:$4 sm:$0x3] %vm10663_vm14, %v4723_v58  ;;  %v5188_v58 = vsel %vm4649_vm11, %v5023_v35, %v5091_v7 }
 0x769   : > { %4918 = vst.msk [vmem:[#allocation7 + $0x148] ss:$4 sm:$0x3] %vm10663_vm14, %v4725_v44  ;;  %v5183_v44 = vsel %vm4641_vm8, %v5023_v35, %v5091_v7  ;;  %v4640_v20 = vrot.slane %v4615_v1, 7  ;;  %v5189_v47 = vrot.slane %v5188_v58, 3 }
 0x76a   : > { %4920 = vst.msk [vmem:[#allocation7 + $0x150] ss:$4 sm:$0x3] %vm10663_vm14, %v4727_v62  ;;  %v5187_v62 = vrot.slane %v5186_v23, 2 }
 0x76b   : > { %4922 = vst.msk [vmem:[#allocation7 + $0x158] ss:$4 sm:$0x3] %vm10663_vm14, %v4729_v48  ;;  %v4574_v48 = vadd.f32 %v4573_v8, %v10654_v29  ;;  %v11080_v8 = vperm.slane %v5865_v59, 0 }
 0x76c   : > { %4924 = vst.msk [vmem:[#allocation7 + $0x160] ss:$4 sm:$0x3] %vm10663_vm14, %v4731_v4  ;;  %v5191_v4 = vrot.slane %v5190_v21, 4  ;;  %v5487_v56 = vpop.f32.mrf.mxu1  ;;  %v5929_v60 = vpop.f32.mrf.mxu3 }
 0x76d   : > { %4926 = vst.msk [vmem:[#allocation7 + $0x168] ss:$4 sm:$0x3] %vm10663_vm14, %v4733_v14  ;;  %v5067_v14 = vadd.f32 %v5066_v2, %v10656_v3  ;;  %v4754_v29 = vsel %vm4643_vm9, %v4574_v48, %v4640_v20  ;;  %v4756_v39 = vsel %vm4646_vm10, %v4574_v48, %v4640_v20  ;;  %v4758_v24 = vsel %vm4649_vm11, %v4574_v48, %v4640_v20 }
 0x76e   : > { %4928 = vst.msk [vmem:[#allocation7 + $0x170] ss:$4 sm:$0x3] %vm10663_vm14, %v4735_v26  ;;  %v5193_v26 = vrot.slane %v5192_v16, 5  ;;  %v4760_v31 = vsel %vm4652_vm5, %v4574_v48, %v4640_v20  ;;  %v4757_v63 = vrot.slane %v4756_v39, 2  ;;  %v4762_v27 = vsel %vm4655_vm12, %v4574_v48, %v4640_v20 }
 0x76f   : > { %4930 = vst.msk [vmem:[#allocation7 + $0x178] ss:$4 sm:$0x3] %vm10663_vm14, %v4737_v30  ;;  %v5197_v30 = vrot.slane %v5196_v46, 7  ;;  %v5092_v3 = vrot.slane %v5067_v14, 7  ;;  %v4764_v55 = vsel %vm4658_vm13, %v4574_v48, %v4640_v20  ;;  %v4759_v42 = vrot.slane %v4758_v24, 3  ;;  %v5449_v24 = vpop.f32.mrf.mxu0 }
 0x770   : > { %5358 = vst.msk [vmem:[#allocation7 + $0x141] ss:$4 sm:$0x3] %vm10663_vm14, %v5168_v13  ;;  %v4753_v13 = vsel %vm4641_vm8, %v4574_v48, %v4640_v20  ;;  %v4766_v10 = vsel %vm690_vm3, %v4640_v20, %v4574_v48 }
 0x771   : > { %5360 = vst.msk [vmem:[#allocation7 + $0x149] ss:$4 sm:$0x3] %vm10663_vm14, %v5170_v11  ;;  %v4755_v11 = vrot.slane %v4754_v29, 1  ;;  %v4767_v54 = vrot.slane %v4766_v10, 7 }
 0x772   : > { %5362 = vst.msk [vmem:[#allocation7 + $0x151] ss:$4 sm:$0x3] %vm10663_vm14, %v5172_v52  ;;  %v5026_v52 = vadd.f32 %v5025_v5, %v10659_v6  ;;  %v4763_v6 = vrot.slane %v4762_v27, 5 }
 0x773   : > { %5364 = vst.msk [vmem:[#allocation7 + $0x159] ss:$4 sm:$0x3] %vm10663_vm14, %v5174_v28  ;;  %v11037_v28 = vperm.slane %v5423_v0, 1 }
 0x774   : > { %5366 = vst.msk [vmem:[#allocation7 + $0x161] ss:$4 sm:$0x3] %vm10663_vm14, %v5176_v12  ;;  %v4761_v12 = vrot.slane %v4760_v31, 4  ;;  %v5201_v17 = vsel %vm4646_vm10, %v5026_v52, %v5092_v3  ;;  %v5207_v51 = vsel %vm4655_vm12, %v5026_v52, %v5092_v3  ;;  %v5490_v14 = vpop.f32.mrf.mxu1  ;;  %v5932_v10 = vpop.f32.mrf.mxu3 }
 0x775   : > { %5368 = vst.msk [vmem:[#allocation7 + $0x169] ss:$4 sm:$0x3] %vm10663_vm14, %v5178_v41  ;;  %v4765_v41 = vrot.slane %v4764_v55, 6  ;;  %v5488_v33 = vadd.f32 %v5487_v56, %v11037_v28  ;;  %v5202_v7 = vrot.slane %v5201_v17, 2  ;;  %v5208_v15 = vrot.slane %v5207_v51, 5 }
 0x776   : > { %5370 = vst.msk [vmem:[#allocation7 + $0x171] ss:$4 sm:$0x3] %vm10663_vm14, %v5180_v40  ;;  %v5199_v40 = vsel %vm4643_vm9, %v5026_v52, %v5092_v3  ;;  %v5491_v39 = vadd.f32 %v5490_v14, %v11037_v28 }
 0x777   : > { %5372 = vst.msk [vmem:[#allocation7 + $0x179] ss:$4 sm:$0x3] %vm10663_vm14, %v5182_v36  ;;  %v11051_v36 = vperm.slane %v5423_v0, 0  ;;  %v5200_v25 = vrot.slane %v5199_v40, 1  ;;  %v5527_v35 = vrot.slane %v5488_v33, 7 }
 0x778   : > { %4932 = vst.msk [vmem:[#allocation7 + $0x180] ss:$4 sm:$0x3] %vm10663_vm14, %v4738_v43  ;;  %v5203_v43 = vsel %vm4649_vm11, %v5026_v52, %v5092_v3  ;;  %v5528_v55 = vrot.slane %v5491_v39, 7 }
 0x779   : > { %4934 = vst.msk [vmem:[#allocation7 + $0x188] ss:$4 sm:$0x3] %vm10663_vm14, %v4740_v18  ;;  %v5198_v18 = vsel %vm4641_vm8, %v5026_v52, %v5092_v3  ;;  %v5447_v38 = vadd.f32 %v5446_v45, %v11051_v36  ;;  %v5204_v37 = vrot.slane %v5203_v43, 3 }
 0x77a   : > { %4936 = vst.msk [vmem:[#allocation7 + $0x190] ss:$4 sm:$0x3] %vm10663_vm14, %v4742_v22  ;;  %v5205_v22 = vsel %vm4652_vm5, %v5026_v52, %v5092_v3 }
 0x77b   : > { %4938 = vst.msk [vmem:[#allocation7 + $0x198] ss:$4 sm:$0x3] %vm10663_vm14, %v4744_v32  ;;  %v11065_v32 = vperm.slane %v5865_v59, 1  ;;  %v5536_v23 = vsel %vm4643_vm9, %v5447_v38, %v5527_v35  ;;  %v5540_v21 = vsel %vm4649_vm11, %v5447_v38, %v5527_v35  ;;  %v5535_v2 = vsel %vm4641_vm8, %v5447_v38, %v5527_v35 }
 0x77c   : > { %4940 = vst.msk [vmem:[#allocation7 + $0x1a0] ss:$4 sm:$0x3] %vm10663_vm14, %v4746_v9  ;;  %v5209_v9 = vsel %vm4658_vm13, %v5026_v52, %v5092_v3  ;;  %v5542_v16 = vsel %vm4652_vm5, %v5447_v38, %v5527_v35  ;;  %v5546_v46 = vsel %vm4658_vm13, %v5447_v38, %v5527_v35 }
 0x77d   : > { %4942 = vst.msk [vmem:[#allocation7 + $0x1a8] ss:$4 sm:$0x3] %vm10663_vm14, %v4748_v61  ;;  %v5206_v61 = vrot.slane %v5205_v22, 4  ;;  %v5210_v1 = vrot.slane %v5209_v9, 6  ;;  %v5547_v5 = vrot.slane %v5546_v46, 6  ;;  %v5933_v33 = vadd.f32 %v5932_v10, %v11065_v32 }
 0x77e   : > { %4944 = vst.msk [vmem:[#allocation7 + $0x1b0] ss:$4 sm:$0x3] %vm10663_vm14, %v4750_v50  ;;  %v5211_v50 = vsel %vm690_vm3, %v5092_v3, %v5026_v52 }
 0x77f   : > { %4946 = vst.msk [vmem:[#allocation7 + $0x1b8] ss:$4 sm:$0x3] %vm10663_vm14, %v4752_v19  ;;  %v5930_v19 = vadd.f32 %v5929_v60, %v11065_v32  ;;  %v5212_v58 = vrot.slane %v5211_v50, 7  ;;  %v5970_v51 = vrot.slane %v5933_v33, 7 }
 0x780   : > { %5374 = vst.msk [vmem:[#allocation7 + $0x181] ss:$4 sm:$0x3] %vm10663_vm14, %v5183_v44  ;;  %v5538_v44 = vsel %vm4646_vm10, %v5447_v38, %v5527_v35 }
 0x781   : > { %5376 = vst.msk [vmem:[#allocation7 + $0x189] ss:$4 sm:$0x3] %vm10663_vm14, %v5185_v57  ;;  %v5888_v57 = vpop.f32.mrf.mxu2  ;;  %v5969_v20 = vrot.slane %v5930_v19, 7  ;;  %v5539_v48 = vrot.slane %v5538_v44, 2 }
 0x782   : > { %5378 = vst.msk [vmem:[#allocation7 + $0x191] ss:$4 sm:$0x3] %vm10663_vm14, %v5187_v62  ;;  %v5537_v62 = vrot.slane %v5536_v23, 1  ;;  %v5889_v49 = vadd.f32 %v5888_v57, %v11080_v8 }
 0x783   : > { %5380 = vst.msk [vmem:[#allocation7 + $0x199] ss:$4 sm:$0x3] %vm10663_vm14, %v5189_v47  ;;  %v5544_v47 = vsel %vm4655_vm12, %v5447_v38, %v5527_v35 }
 0x784   : > { %5382 = vst.msk [vmem:[#allocation7 + $0x1a1] ss:$4 sm:$0x3] %vm10663_vm14, %v5191_v4  ;;  %v5541_v4 = vrot.slane %v5540_v21, 3  ;;  %v5545_v29 = vrot.slane %v5544_v47, 5  ;;  %v5980_v3 = vsel %vm4646_vm10, %v5889_v49, %v5969_v20  ;;  %v5984_v52 = vsel %vm4652_vm5, %v5889_v49, %v5969_v20  ;;  %v5452_v21 = vpop.f32.mrf.mxu0 }
 0x785   : > { %5384 = vst.msk [vmem:[#allocation7 + $0x1a9] ss:$4 sm:$0x3] %vm10663_vm14, %v5193_v26  ;;  %v5543_v26 = vrot.slane %v5542_v16, 4  ;;  %v5986_v27 = vsel %vm4655_vm12, %v5889_v49, %v5969_v20 }
 0x786   : > { %5386 = vst.msk [vmem:[#allocation7 + $0x1b1] ss:$4 sm:$0x3] %vm10663_vm14, %v5195_v53  ;;  %v5548_v53 = vsel %vm690_vm3, %v5527_v35, %v5447_v38  ;;  %v5987_v40 = vrot.slane %v5986_v27, 5 }
 0x787   : > { %5388 = vst.msk [vmem:[#allocation7 + $0x1b9] ss:$4 sm:$0x3] %vm10663_vm14, %v5197_v30  ;;  %v5978_v30 = vsel %vm4643_vm9, %v5889_v49, %v5969_v20  ;;  %v5549_v0 = vrot.slane %v5548_v53, 7 }
 0x788   : > { %4948 = vst.msk [vmem:[#allocation7 + $0x1c0] ss:$4 sm:$0x3] %vm10663_vm14, %v4753_v13  ;;  %v5982_v13 = vsel %vm4649_vm11, %v5889_v49, %v5969_v20  ;;  %v5979_v31 = vrot.slane %v5978_v30, 1 }
 0x789   : > { %4950 = vst.msk [vmem:[#allocation7 + $0x1c8] ss:$4 sm:$0x3] %vm10663_vm14, %v4755_v11  ;;  %v5977_v11 = vsel %vm4641_vm8, %v5889_v49, %v5969_v20  ;;  %v5983_v56 = vrot.slane %v5982_v13, 3  ;;  %v5891_v43 = vpop.f32.mrf.mxu2 }
 0x78a   : > { %4952 = vst.msk [vmem:[#allocation7 + $0x1d0] ss:$4 sm:$0x3] %vm10663_vm14, %v4757_v63  ;;  %v5981_v63 = vrot.slane %v5980_v3, 2 }
 0x78b   : > { %4954 = vst.msk [vmem:[#allocation7 + $0x1d8] ss:$4 sm:$0x3] %vm10663_vm14, %v4759_v42  ;;  %v5450_v42 = vadd.f32 %v5449_v24, %v11051_v36 }
 0x78c   : > { %4956 = vst.msk [vmem:[#allocation7 + $0x1e0] ss:$4 sm:$0x3] %vm10663_vm14, %v4761_v12  ;;  %v5988_v12 = vsel %vm4658_vm13, %v5889_v49, %v5969_v20 }
 0x78d   : > { %4958 = vst.msk [vmem:[#allocation7 + $0x1e8] ss:$4 sm:$0x3] %vm10663_vm14, %v4763_v6  ;;  %v5985_v6 = vrot.slane %v5984_v52, 4  ;;  %v5989_v17 = vrot.slane %v5988_v12, 6  ;;  %v5553_v45 = vsel %vm4646_vm10, %v5450_v42, %v5528_v55  ;;  %v5557_v22 = vsel %vm4652_vm5, %v5450_v42, %v5528_v55 }
 0x78e   : > { %4960 = vst.msk [vmem:[#allocation7 + $0x1f0] ss:$4 sm:$0x3] %vm10663_vm14, %v4765_v41  ;;  %v5990_v41 = vsel %vm690_vm3, %v5969_v20, %v5889_v49  ;;  %v5554_v35 = vrot.slane %v5553_v45, 2  ;;  %v5559_v38 = vsel %vm4655_vm12, %v5450_v42, %v5528_v55  ;;  %v5561_v60 = vsel %vm4658_vm13, %v5450_v42, %v5528_v55 }
 0x78f   : > { %4962 = vst.msk [vmem:[#allocation7 + $0x1f8] ss:$4 sm:$0x3] %vm10663_vm14, %v4767_v54  ;;  %v5551_v54 = vsel %vm4643_vm9, %v5450_v42, %v5528_v55  ;;  %v5991_v59 = vrot.slane %v5990_v41, 7  ;;  %v5558_v50 = vrot.slane %v5557_v22, 4  ;;  %v5562_v19 = vrot.slane %v5561_v60, 6 }
 0x790   : > { %5390 = vst.msk [vmem:[#allocation7 + $0x1c1] ss:$4 sm:$0x3] %vm10663_vm14, %v5198_v18  ;;  %v5555_v18 = vsel %vm4649_vm11, %v5450_v42, %v5528_v55 }
 0x791   : > { %5392 = vst.msk [vmem:[#allocation7 + $0x1c9] ss:$4 sm:$0x3] %vm10663_vm14, %v5200_v25  ;;  %v5550_v25 = vsel %vm4641_vm8, %v5450_v42, %v5528_v55  ;;  %v5556_v9 = vrot.slane %v5555_v18, 3  ;;  %v5894_v13 = vpop.f32.mrf.mxu2  ;;  %v5455_v18 = vpop.f32.mrf.mxu0 }
 0x792   : > { %5394 = vst.msk [vmem:[#allocation7 + $0x1d1] ss:$4 sm:$0x3] %vm10663_vm14, %v5202_v7  ;;  %v5552_v7 = vrot.slane %v5551_v54, 1 }
 0x793   : > { %5396 = vst.msk [vmem:[#allocation7 + $0x1d9] ss:$4 sm:$0x3] %vm10663_vm14, %v5204_v37  ;;  %v5892_v37 = vadd.f32 %v5891_v43, %v11080_v8 }
 0x794   : > { %5398 = vst.msk [vmem:[#allocation7 + $0x1e1] ss:$4 sm:$0x3] %vm10663_vm14, %v5206_v61  ;;  %v5493_v61 = vpop.f32.mrf.mxu1 }
 0x795   : > { %5400 = vst.msk [vmem:[#allocation7 + $0x1e9] ss:$4 sm:$0x3] %vm10663_vm14, %v5208_v15  ;;  %v5563_v15 = vsel %vm690_vm3, %v5528_v55, %v5450_v42  ;;  %v5993_v23 = vsel %vm4643_vm9, %v5892_v37, %v5970_v51  ;;  %v5995_v57 = vsel %vm4646_vm10, %v5892_v37, %v5970_v51  ;;  %v5999_v20 = vsel %vm4652_vm5, %v5892_v37, %v5970_v51 }
 0x796   : > { %5402 = vst.msk [vmem:[#allocation7 + $0x1f1] ss:$4 sm:$0x3] %vm10663_vm14, %v5210_v1  ;;  %v5560_v1 = vrot.slane %v5559_v38, 5  ;;  %v5564_v44 = vrot.slane %v5563_v15, 7  ;;  %v5994_v16 = vrot.slane %v5993_v23, 1  ;;  %v6001_v47 = vsel %vm4655_vm12, %v5892_v37, %v5970_v51 }
 0x797   : > { %5404 = vst.msk [vmem:[#allocation7 + $0x1f9] ss:$4 sm:$0x3] %vm10663_vm14, %v5212_v58  ;;  %v5494_v58 = vadd.f32 %v5493_v61, %v11037_v28  ;;  %v6003_v14 = vsel %vm4658_vm13, %v5892_v37, %v5970_v51  ;;  %v6000_v53 = vrot.slane %v5999_v20, 4 }
 0x798   : > { %5720 = vst.msk [vmem:[#allocation7 + $0x2] ss:$4 sm:$0x3] %vm10663_vm14, %v5535_v2  ;;  %v5997_v2 = vsel %vm4649_vm11, %v5892_v37, %v5970_v51  ;;  %v6004_v30 = vrot.slane %v6003_v14, 6 }
 0x799   : > { %5722 = vst.msk [vmem:[#allocation7 + $0xa] ss:$4 sm:$0x3] %vm10663_vm14, %v5537_v62  ;;  %v5992_v62 = vsel %vm4641_vm8, %v5892_v37, %v5970_v51  ;;  %v5529_v49 = vrot.slane %v5494_v58, 7  ;;  %v5998_v46 = vrot.slane %v5997_v2, 3  ;;  %v5897_v2 = vpop.f32.mrf.mxu2 }
 0x79a   : > { %5724 = vst.msk [vmem:[#allocation7 + $0x12] ss:$4 sm:$0x3] %vm10663_vm14, %v5539_v48  ;;  %v5996_v48 = vrot.slane %v5995_v57, 2 }
 0x79b   : > { %5726 = vst.msk [vmem:[#allocation7 + $0x1a] ss:$4 sm:$0x3] %vm10663_vm14, %v5541_v4  ;;  %v5453_v4 = vadd.f32 %v5452_v21, %v11051_v36 }
 0x79c   : > { %5728 = vst.msk [vmem:[#allocation7 + $0x22] ss:$4 sm:$0x3] %vm10663_vm14, %v5543_v26  ;;  %v5935_v26 = vpop.f32.mrf.mxu3 }
 0x79d   : > { %5730 = vst.msk [vmem:[#allocation7 + $0x2a] ss:$4 sm:$0x3] %vm10663_vm14, %v5545_v29  ;;  %v6005_v29 = vsel %vm690_vm3, %v5970_v51, %v5892_v37  ;;  %v5936_v39 = vadd.f32 %v5935_v26, %v11065_v32  ;;  %v5568_v24 = vsel %vm4646_vm10, %v5453_v4, %v5529_v49  ;;  %v5574_v42 = vsel %vm4655_vm12, %v5453_v4, %v5529_v49 }
 0x79e   : > { %5732 = vst.msk [vmem:[#allocation7 + $0x32] ss:$4 sm:$0x3] %vm10663_vm14, %v5547_v5  ;;  %v6002_v5 = vrot.slane %v6001_v47, 5  ;;  %v6006_v3 = vrot.slane %v6005_v29, 7  ;;  %v5569_v55 = vrot.slane %v5568_v24, 2  ;;  %v5576_v10 = vsel %vm4658_vm13, %v5453_v4, %v5529_v49 }
 0x79f   : > { %5734 = vst.msk [vmem:[#allocation7 + $0x3a] ss:$4 sm:$0x3] %vm10663_vm14, %v5549_v0  ;;  %v5566_v0 = vsel %vm4643_vm9, %v5453_v4, %v5529_v49  ;;  %v5971_v27 = vrot.slane %v5936_v39, 7  ;;  %v5577_v33 = vrot.slane %v5576_v10, 6 }
 0x7a0   : > { %6162 = vst.msk [vmem:[#allocation7 + $0x3] ss:$4 sm:$0x3] %vm10663_vm14, %v5977_v11  ;;  %v5570_v11 = vsel %vm4649_vm11, %v5453_v4, %v5529_v49  ;;  %v5567_v52 = vrot.slane %v5566_v0, 1 }
 0x7a1   : > { %6164 = vst.msk [vmem:[#allocation7 + $0xb] ss:$4 sm:$0x3] %vm10663_vm14, %v5979_v31  ;;  %v5565_v31 = vsel %vm4641_vm8, %v5453_v4, %v5529_v49  ;;  %v5571_v12 = vrot.slane %v5570_v11, 3  ;;  %v5458_v11 = vpop.f32.mrf.mxu0 }
 0x7a2   : > { %6166 = vst.msk [vmem:[#allocation7 + $0x13] ss:$4 sm:$0x3] %vm10663_vm14, %v5981_v63  ;;  %v5572_v63 = vsel %vm4652_vm5, %v5453_v4, %v5529_v49 }
 0x7a3   : > { %6168 = vst.msk [vmem:[#allocation7 + $0x1b] ss:$4 sm:$0x3] %vm10663_vm14, %v5983_v56  ;;  %v5895_v56 = vadd.f32 %v5894_v13, %v11080_v8  ;;  %v5573_v41 = vrot.slane %v5572_v63, 4 }
 0x7a4   : > { %6170 = vst.msk [vmem:[#allocation7 + $0x23] ss:$4 sm:$0x3] %vm10663_vm14, %v5985_v6  ;;  %v5496_v6 = vpop.f32.mrf.mxu1 }
 0x7a5   : > { %6172 = vst.msk [vmem:[#allocation7 + $0x2b] ss:$4 sm:$0x3] %vm10663_vm14, %v5987_v40  ;;  %v5578_v40 = vsel %vm690_vm3, %v5529_v49, %v5453_v4  ;;  %v6008_v54 = vsel %vm4643_vm9, %v5895_v56, %v5971_v27  ;;  %v6010_v43 = vsel %vm4646_vm10, %v5895_v56, %v5971_v27  ;;  %v6014_v51 = vsel %vm4652_vm5, %v5895_v56, %v5971_v27 }
 0x7a6   : > { %6174 = vst.msk [vmem:[#allocation7 + $0x33] ss:$4 sm:$0x3] %vm10663_vm14, %v5989_v17  ;;  %v5575_v17 = vrot.slane %v5574_v42, 5  ;;  %v5579_v45 = vrot.slane %v5578_v40, 7  ;;  %v6009_v22 = vrot.slane %v6008_v54, 1  ;;  %v6016_v38 = vsel %vm4655_vm12, %v5895_v56, %v5971_v27 }
 0x7a7   : > { %6176 = vst.msk [vmem:[#allocation7 + $0x3b] ss:$4 sm:$0x3] %vm10663_vm14, %v5991_v59  ;;  %v5497_v59 = vadd.f32 %v5496_v6, %v11037_v28  ;;  %v6018_v61 = vsel %vm4658_vm13, %v5895_v56, %v5971_v27  ;;  %v6015_v15 = vrot.slane %v6014_v51, 4 }
 0x7a8   : > { %5736 = vst.msk [vmem:[#allocation7 + $0x42] ss:$4 sm:$0x3] %vm10663_vm14, %v5550_v25  ;;  %v6012_v25 = vsel %vm4649_vm11, %v5895_v56, %v5971_v27  ;;  %v6019_v23 = vrot.slane %v6018_v61, 6 }
 0x7a9   : > { %5738 = vst.msk [vmem:[#allocation7 + $0x4a] ss:$4 sm:$0x3] %vm10663_vm14, %v5552_v7  ;;  %v6007_v7 = vsel %vm4641_vm8, %v5895_v56, %v5971_v27  ;;  %v5530_v37 = vrot.slane %v5497_v59, 7  ;;  %v6013_v60 = vrot.slane %v6012_v25, 3  ;;  %v5900_v25 = vpop.f32.mrf.mxu2 }
 0x7aa   : > { %5740 = vst.msk [vmem:[#allocation7 + $0x52] ss:$4 sm:$0x3] %vm10663_vm14, %v5554_v35  ;;  %v6011_v35 = vrot.slane %v6010_v43, 2 }
 0x7ab   : > { %5742 = vst.msk [vmem:[#allocation7 + $0x5a] ss:$4 sm:$0x3] %vm10663_vm14, %v5556_v9  ;;  %v5456_v9 = vadd.f32 %v5455_v18, %v11051_v36 }
 0x7ac   : > { %5744 = vst.msk [vmem:[#allocation7 + $0x62] ss:$4 sm:$0x3] %vm10663_vm14, %v5558_v50  ;;  %v5938_v50 = vpop.f32.mrf.mxu3 }
 0x7ad   : > { %5746 = vst.msk [vmem:[#allocation7 + $0x6a] ss:$4 sm:$0x3] %vm10663_vm14, %v5560_v1  ;;  %v6020_v1 = vsel %vm690_vm3, %v5971_v27, %v5895_v56  ;;  %v5939_v58 = vadd.f32 %v5938_v50, %v11065_v32  ;;  %v5583_v21 = vsel %vm4646_vm10, %v5456_v9, %v5530_v37  ;;  %v5589_v4 = vsel %vm4655_vm12, %v5456_v9, %v5530_v37 }
 0x7ae   : > { %5748 = vst.msk [vmem:[#allocation7 + $0x72] ss:$4 sm:$0x3] %vm10663_vm14, %v5562_v19  ;;  %v6017_v19 = vrot.slane %v6016_v38, 5  ;;  %v6021_v57 = vrot.slane %v6020_v1, 7  ;;  %v5584_v49 = vrot.slane %v5583_v21, 2  ;;  %v5591_v26 = vsel %vm4658_vm13, %v5456_v9, %v5530_v37 }
 0x7af   : > { %5750 = vst.msk [vmem:[#allocation7 + $0x7a] ss:$4 sm:$0x3] %vm10663_vm14, %v5564_v44  ;;  %v5581_v44 = vsel %vm4643_vm9, %v5456_v9, %v5530_v37  ;;  %v5972_v47 = vrot.slane %v5939_v58, 7  ;;  %v5592_v39 = vrot.slane %v5591_v26, 6 }
 0x7b0   : > { %6178 = vst.msk [vmem:[#allocation7 + $0x43] ss:$4 sm:$0x3] %vm10663_vm14, %v5992_v62  ;;  %v5585_v62 = vsel %vm4649_vm11, %v5456_v9, %v5530_v37  ;;  %v5582_v20 = vrot.slane %v5581_v44, 1 }
 0x7b1   : > { %6180 = vst.msk [vmem:[#allocation7 + $0x4b] ss:$4 sm:$0x3] %vm10663_vm14, %v5994_v16  ;;  %v5580_v16 = vsel %vm4641_vm8, %v5456_v9, %v5530_v37  ;;  %v5586_v14 = vrot.slane %v5585_v62, 3  ;;  %v5461_v62 = vpop.f32.mrf.mxu0 }
 0x7b2   : > { %6182 = vst.msk [vmem:[#allocation7 + $0x53] ss:$4 sm:$0x3] %vm10663_vm14, %v5996_v48  ;;  %v5587_v48 = vsel %vm4652_vm5, %v5456_v9, %v5530_v37 }
 0x7b3   : > { %6184 = vst.msk [vmem:[#allocation7 + $0x5b] ss:$4 sm:$0x3] %vm10663_vm14, %v5998_v46  ;;  %v5898_v46 = vadd.f32 %v5897_v2, %v11080_v8  ;;  %v5588_v29 = vrot.slane %v5587_v48, 4 }
 0x7b4   : > { %6186 = vst.msk [vmem:[#allocation7 + $0x63] ss:$4 sm:$0x3] %vm10663_vm14, %v6000_v53  ;;  %v5499_v53 = vpop.f32.mrf.mxu1 }
 0x7b5   : > { %6188 = vst.msk [vmem:[#allocation7 + $0x6b] ss:$4 sm:$0x3] %vm10663_vm14, %v6002_v5  ;;  %v5593_v5 = vsel %vm690_vm3, %v5530_v37, %v5456_v9  ;;  %v6023_v0 = vsel %vm4643_vm9, %v5898_v46, %v5972_v47  ;;  %v6025_v13 = vsel %vm4646_vm10, %v5898_v46, %v5972_v47  ;;  %v6029_v27 = vsel %vm4652_vm5, %v5898_v46, %v5972_v47 }
 0x7b6   : > { %6190 = vst.msk [vmem:[#allocation7 + $0x73] ss:$4 sm:$0x3] %vm10663_vm14, %v6004_v30  ;;  %v5590_v30 = vrot.slane %v5589_v4, 5  ;;  %v5594_v24 = vrot.slane %v5593_v5, 7  ;;  %v6024_v63 = vrot.slane %v6023_v0, 1  ;;  %v6031_v42 = vsel %vm4655_vm12, %v5898_v46, %v5972_v47 }
 0x7b7   : > { %6192 = vst.msk [vmem:[#allocation7 + $0x7b] ss:$4 sm:$0x3] %vm10663_vm14, %v6006_v3  ;;  %v5500_v3 = vadd.f32 %v5499_v53, %v11037_v28  ;;  %v6033_v6 = vsel %vm4658_vm13, %v5898_v46, %v5972_v47  ;;  %v6030_v40 = vrot.slane %v6029_v27, 4 }
 0x7b8   : > { %5752 = vst.msk [vmem:[#allocation7 + $0x82] ss:$4 sm:$0x3] %vm10663_vm14, %v5565_v31  ;;  %v6027_v31 = vsel %vm4649_vm11, %v5898_v46, %v5972_v47  ;;  %v6034_v54 = vrot.slane %v6033_v6, 6 }
 0x7b9   : > { %5754 = vst.msk [vmem:[#allocation7 + $0x8a] ss:$4 sm:$0x3] %vm10663_vm14, %v5567_v52  ;;  %v6022_v52 = vsel %vm4641_vm8, %v5898_v46, %v5972_v47  ;;  %v5531_v56 = vrot.slane %v5500_v3, 7  ;;  %v6028_v10 = vrot.slane %v6027_v31, 3  ;;  %v5903_v31 = vpop.f32.mrf.mxu2 }
 0x7ba   : > { %5756 = vst.msk [vmem:[#allocation7 + $0x92] ss:$4 sm:$0x3] %vm10663_vm14, %v5569_v55  ;;  %v6026_v55 = vrot.slane %v6025_v13, 2 }
 0x7bb   : > { %5758 = vst.msk [vmem:[#allocation7 + $0x9a] ss:$4 sm:$0x3] %vm10663_vm14, %v5571_v12  ;;  %v5459_v12 = vadd.f32 %v5458_v11, %v11051_v36 }
 0x7bc   : > { %5760 = vst.msk [vmem:[#allocation7 + $0xa2] ss:$4 sm:$0x3] %vm10663_vm14, %v5573_v41  ;;  %v5941_v41 = vpop.f32.mrf.mxu3 }
 0x7bd   : > { %5762 = vst.msk [vmem:[#allocation7 + $0xaa] ss:$4 sm:$0x3] %vm10663_vm14, %v5575_v17  ;;  %v6035_v17 = vsel %vm690_vm3, %v5972_v47, %v5898_v46  ;;  %v5942_v59 = vadd.f32 %v5941_v41, %v11065_v32  ;;  %v5598_v18 = vsel %vm4646_vm10, %v5459_v12, %v5531_v56  ;;  %v5604_v9 = vsel %vm4655_vm12, %v5459_v12, %v5531_v56 }
 0x7be   : > { %5764 = vst.msk [vmem:[#allocation7 + $0xb2] ss:$4 sm:$0x3] %vm10663_vm14, %v5577_v33  ;;  %v6032_v33 = vrot.slane %v6031_v42, 5  ;;  %v6036_v43 = vrot.slane %v6035_v17, 7  ;;  %v5599_v37 = vrot.slane %v5598_v18, 2  ;;  %v5606_v50 = vsel %vm4658_vm13, %v5459_v12, %v5531_v56 }
 0x7bf   : > { %5766 = vst.msk [vmem:[#allocation7 + $0xba] ss:$4 sm:$0x3] %vm10663_vm14, %v5579_v45  ;;  %v5596_v45 = vsel %vm4643_vm9, %v5459_v12, %v5531_v56  ;;  %v5973_v38 = vrot.slane %v5942_v59, 7  ;;  %v5607_v58 = vrot.slane %v5606_v50, 6 }
 0x7c0   : > { %6194 = vst.msk [vmem:[#allocation7 + $0x83] ss:$4 sm:$0x3] %vm10663_vm14, %v6007_v7  ;;  %v5600_v7 = vsel %vm4649_vm11, %v5459_v12, %v5531_v56  ;;  %v5597_v51 = vrot.slane %v5596_v45, 1 }
 0x7c1   : > { %6196 = vst.msk [vmem:[#allocation7 + $0x8b] ss:$4 sm:$0x3] %vm10663_vm14, %v6009_v22  ;;  %v5595_v22 = vsel %vm4641_vm8, %v5459_v12, %v5531_v56  ;;  %v5601_v61 = vrot.slane %v5600_v7, 3  ;;  %v5464_v7 = vpop.f32.mrf.mxu0 }
 0x7c2   : > { %6198 = vst.msk [vmem:[#allocation7 + $0x93] ss:$4 sm:$0x3] %vm10663_vm14, %v6011_v35  ;;  %v5602_v35 = vsel %vm4652_vm5, %v5459_v12, %v5531_v56 }
 0x7c3   : > { %6200 = vst.msk [vmem:[#allocation7 + $0x9b] ss:$4 sm:$0x3] %vm10663_vm14, %v6013_v60  ;;  %v5901_v60 = vadd.f32 %v5900_v25, %v11080_v8  ;;  %v5603_v1 = vrot.slane %v5602_v35, 4 }
 0x7c4   : > { %6202 = vst.msk [vmem:[#allocation7 + $0xa3] ss:$4 sm:$0x3] %vm10663_vm14, %v6015_v15  ;;  %v5502_v15 = vpop.f32.mrf.mxu1 }
 0x7c5   : > { %6204 = vst.msk [vmem:[#allocation7 + $0xab] ss:$4 sm:$0x3] %vm10663_vm14, %v6017_v19  ;;  %v5608_v19 = vsel %vm690_vm3, %v5531_v56, %v5459_v12  ;;  %v6038_v44 = vsel %vm4643_vm9, %v5901_v60, %v5973_v38  ;;  %v6040_v2 = vsel %vm4646_vm10, %v5901_v60, %v5973_v38  ;;  %v6044_v47 = vsel %vm4652_vm5, %v5901_v60, %v5973_v38 }
 0x7c6   : > { %6206 = vst.msk [vmem:[#allocation7 + $0xb3] ss:$4 sm:$0x3] %vm10663_vm14, %v6019_v23  ;;  %v5605_v23 = vrot.slane %v5604_v9, 5  ;;  %v5609_v21 = vrot.slane %v5608_v19, 7  ;;  %v6039_v48 = vrot.slane %v6038_v44, 1  ;;  %v6046_v4 = vsel %vm4655_vm12, %v5901_v60, %v5973_v38 }
 0x7c7   : > { %6208 = vst.msk [vmem:[#allocation7 + $0xbb] ss:$4 sm:$0x3] %vm10663_vm14, %v6021_v57  ;;  %v5503_v57 = vadd.f32 %v5502_v15, %v11037_v28  ;;  %v6048_v53 = vsel %vm4658_vm13, %v5901_v60, %v5973_v38  ;;  %v6045_v5 = vrot.slane %v6044_v47, 4 }
 0x7c8   : > { %5768 = vst.msk [vmem:[#allocation7 + $0xc2] ss:$4 sm:$0x3] %vm10663_vm14, %v5580_v16  ;;  %v6042_v16 = vsel %vm4649_vm11, %v5901_v60, %v5973_v38  ;;  %v6049_v0 = vrot.slane %v6048_v53, 6 }
 0x7c9   : > { %5770 = vst.msk [vmem:[#allocation7 + $0xca] ss:$4 sm:$0x3] %vm10663_vm14, %v5582_v20  ;;  %v6037_v20 = vsel %vm4641_vm8, %v5901_v60, %v5973_v38  ;;  %v5532_v46 = vrot.slane %v5503_v57, 7  ;;  %v6043_v26 = vrot.slane %v6042_v16, 3  ;;  %v5906_v16 = vpop.f32.mrf.mxu2 }
 0x7ca   : > { %5772 = vst.msk [vmem:[#allocation7 + $0xd2] ss:$4 sm:$0x3] %vm10663_vm14, %v5584_v49  ;;  %v6041_v49 = vrot.slane %v6040_v2, 2 }
 0x7cb   : > { %5774 = vst.msk [vmem:[#allocation7 + $0xda] ss:$4 sm:$0x3] %vm10663_vm14, %v5586_v14  ;;  %v5462_v14 = vadd.f32 %v5461_v62, %v11051_v36 }
 0x7cc   : > { %5776 = vst.msk [vmem:[#allocation7 + $0xe2] ss:$4 sm:$0x3] %vm10663_vm14, %v5588_v29  ;;  %v5944_v29 = vpop.f32.mrf.mxu3 }
 0x7cd   : > { %5778 = vst.msk [vmem:[#allocation7 + $0xea] ss:$4 sm:$0x3] %vm10663_vm14, %v5590_v30  ;;  %v6050_v30 = vsel %vm690_vm3, %v5973_v38, %v5901_v60  ;;  %v5945_v3 = vadd.f32 %v5944_v29, %v11065_v32  ;;  %v5613_v11 = vsel %vm4646_vm10, %v5462_v14, %v5532_v46  ;;  %v5619_v12 = vsel %vm4655_vm12, %v5462_v14, %v5532_v46 }
 0x7ce   : > { %5780 = vst.msk [vmem:[#allocation7 + $0xf2] ss:$4 sm:$0x3] %vm10663_vm14, %v5592_v39  ;;  %v6047_v39 = vrot.slane %v6046_v4, 5  ;;  %v6051_v13 = vrot.slane %v6050_v30, 7  ;;  %v5614_v56 = vrot.slane %v5613_v11, 2  ;;  %v5621_v41 = vsel %vm4658_vm13, %v5462_v14, %v5532_v46 }
 0x7cf   : > { %5782 = vst.msk [vmem:[#allocation7 + $0xfa] ss:$4 sm:$0x3] %vm10663_vm14, %v5594_v24  ;;  %v5611_v24 = vsel %vm4643_vm9, %v5462_v14, %v5532_v46  ;;  %v5974_v42 = vrot.slane %v5945_v3, 7  ;;  %v5622_v59 = vrot.slane %v5621_v41, 6 }
 0x7d0   : > { %6210 = vst.msk [vmem:[#allocation7 + $0xc3] ss:$4 sm:$0x3] %vm10663_vm14, %v6022_v52  ;;  %v5615_v52 = vsel %vm4649_vm11, %v5462_v14, %v5532_v46  ;;  %v5612_v27 = vrot.slane %v5611_v24, 1 }
 0x7d1   : > { %6212 = vst.msk [vmem:[#allocation7 + $0xcb] ss:$4 sm:$0x3] %vm10663_vm14, %v6024_v63  ;;  %v5610_v63 = vsel %vm4641_vm8, %v5462_v14, %v5532_v46  ;;  %v5616_v6 = vrot.slane %v5615_v52, 3  ;;  %v5467_v52 = vpop.f32.mrf.mxu0 }
 0x7d2   : > { %6214 = vst.msk [vmem:[#allocation7 + $0xd3] ss:$4 sm:$0x3] %vm10663_vm14, %v6026_v55  ;;  %v5617_v55 = vsel %vm4652_vm5, %v5462_v14, %v5532_v46 }
 0x7d3   : > { %6216 = vst.msk [vmem:[#allocation7 + $0xdb] ss:$4 sm:$0x3] %vm10663_vm14, %v6028_v10  ;;  %v5904_v10 = vadd.f32 %v5903_v31, %v11080_v8  ;;  %v5618_v17 = vrot.slane %v5617_v55, 4 }
 0x7d4   : > { %6218 = vst.msk [vmem:[#allocation7 + $0xe3] ss:$4 sm:$0x3] %vm10663_vm14, %v6030_v40  ;;  %v5505_v40 = vpop.f32.mrf.mxu1 }
 0x7d5   : > { %6220 = vst.msk [vmem:[#allocation7 + $0xeb] ss:$4 sm:$0x3] %vm10663_vm14, %v6032_v33  ;;  %v5623_v33 = vsel %vm690_vm3, %v5532_v46, %v5462_v14  ;;  %v6053_v45 = vsel %vm4643_vm9, %v5904_v10, %v5974_v42  ;;  %v6055_v25 = vsel %vm4646_vm10, %v5904_v10, %v5974_v42  ;;  %v6059_v38 = vsel %vm4652_vm5, %v5904_v10, %v5974_v42 }
 0x7d6   : > { %6222 = vst.msk [vmem:[#allocation7 + $0xf3] ss:$4 sm:$0x3] %vm10663_vm14, %v6034_v54  ;;  %v5620_v54 = vrot.slane %v5619_v12, 5  ;;  %v5624_v18 = vrot.slane %v5623_v33, 7  ;;  %v6054_v35 = vrot.slane %v6053_v45, 1  ;;  %v6061_v9 = vsel %vm4655_vm12, %v5904_v10, %v5974_v42 }
 0x7d7   : > { %6224 = vst.msk [vmem:[#allocation7 + $0xfb] ss:$4 sm:$0x3] %vm10663_vm14, %v6036_v43  ;;  %v5506_v43 = vadd.f32 %v5505_v40, %v11037_v28  ;;  %v6063_v15 = vsel %vm4658_vm13, %v5904_v10, %v5974_v42  ;;  %v6060_v19 = vrot.slane %v6059_v38, 4 }
 0x7d8   : > { %5784 = vst.msk [vmem:[#allocation7 + $0x102] ss:$4 sm:$0x3] %vm10663_vm14, %v5595_v22  ;;  %v6057_v22 = vsel %vm4649_vm11, %v5904_v10, %v5974_v42  ;;  %v6064_v44 = vrot.slane %v6063_v15, 6 }
 0x7d9   : > { %5786 = vst.msk [vmem:[#allocation7 + $0x10a] ss:$4 sm:$0x3] %vm10663_vm14, %v5597_v51  ;;  %v6052_v51 = vsel %vm4641_vm8, %v5904_v10, %v5974_v42  ;;  %v5533_v60 = vrot.slane %v5506_v43, 7  ;;  %v6058_v50 = vrot.slane %v6057_v22, 3 }
 0x7da   : > { %5788 = vst.msk [vmem:[#allocation7 + $0x112] ss:$4 sm:$0x3] %vm10663_vm14, %v5599_v37  ;;  %v6056_v37 = vrot.slane %v6055_v25, 2  ;;  %v5909_v25 = vpop.f32.mrf.mxu2 }
 0x7db   : > { %5790 = vst.msk [vmem:[#allocation7 + $0x11a] ss:$4 sm:$0x3] %vm10663_vm14, %v5601_v61  ;;  %v5465_v61 = vadd.f32 %v5464_v7, %v11051_v36 }
 0x7dc   : > { %5792 = vst.msk [vmem:[#allocation7 + $0x122] ss:$4 sm:$0x3] %vm10663_vm14, %v5603_v1  ;;  %v5947_v1 = vpop.f32.mrf.mxu3 }
 0x7dd   : > { %5794 = vst.msk [vmem:[#allocation7 + $0x12a] ss:$4 sm:$0x3] %vm10663_vm14, %v5605_v23  ;;  %v6065_v23 = vsel %vm690_vm3, %v5974_v42, %v5904_v10  ;;  %v5948_v57 = vadd.f32 %v5947_v1, %v11065_v32  ;;  %v5628_v62 = vsel %vm4646_vm10, %v5465_v61, %v5533_v60  ;;  %v5634_v14 = vsel %vm4655_vm12, %v5465_v61, %v5533_v60 }
 0x7de   : > { %5796 = vst.msk [vmem:[#allocation7 + $0x132] ss:$4 sm:$0x3] %vm10663_vm14, %v5607_v58  ;;  %v6062_v58 = vrot.slane %v6061_v9, 5  ;;  %v6066_v2 = vrot.slane %v6065_v23, 7  ;;  %v5629_v46 = vrot.slane %v5628_v62, 2  ;;  %v5636_v29 = vsel %vm4658_vm13, %v5465_v61, %v5533_v60 }
 0x7df   : > { %5798 = vst.msk [vmem:[#allocation7 + $0x13a] ss:$4 sm:$0x3] %vm10663_vm14, %v5609_v21  ;;  %v5626_v21 = vsel %vm4643_vm9, %v5465_v61, %v5533_v60  ;;  %v5975_v4 = vrot.slane %v5948_v57, 7  ;;  %v5637_v3 = vrot.slane %v5636_v29, 6  ;;  %v5468_v10 = vadd.f32 %v5467_v52, %v11051_v36 }
 0x7e0   : > { %6226 = vst.msk [vmem:[#allocation7 + $0x103] ss:$4 sm:$0x3] %vm10663_vm14, %v6037_v20  ;;  %v5630_v20 = vsel %vm4649_vm11, %v5465_v61, %v5533_v60  ;;  %v5627_v47 = vrot.slane %v5626_v21, 1  ;;  %v5910_v9 = vadd.f32 %v5909_v25, %v11080_v8 }
 0x7e1   : > { %6228 = vst.msk [vmem:[#allocation7 + $0x10b] ss:$4 sm:$0x3] %vm10663_vm14, %v6039_v48  ;;  %v5625_v48 = vsel %vm4641_vm8, %v5465_v61, %v5533_v60  ;;  %v5631_v53 = vrot.slane %v5630_v20, 3 }
 0x7e2   : > { %6230 = vst.msk [vmem:[#allocation7 + $0x113] ss:$4 sm:$0x3] %vm10663_vm14, %v6041_v49  ;;  %v5632_v49 = vsel %vm4652_vm5, %v5465_v61, %v5533_v60 }
 0x7e3   : > { %6232 = vst.msk [vmem:[#allocation7 + $0x11b] ss:$4 sm:$0x3] %vm10663_vm14, %v6043_v26  ;;  %v5907_v26 = vadd.f32 %v5906_v16, %v11080_v8  ;;  %v5633_v30 = vrot.slane %v5632_v49, 4 }
 0x7e4   : > { %6234 = vst.msk [vmem:[#allocation7 + $0x123] ss:$4 sm:$0x3] %vm10663_vm14, %v6045_v5  ;;  %v5508_v5 = vpop.f32.mrf.mxu1  ;;  %v5950_v40 = vpop.f32.mrf.mxu3 }
 0x7e5   : > { %6236 = vst.msk [vmem:[#allocation7 + $0x12b] ss:$4 sm:$0x3] %vm10663_vm14, %v6047_v39  ;;  %v5638_v39 = vsel %vm690_vm3, %v5533_v60, %v5465_v61  ;;  %v6068_v24 = vsel %vm4643_vm9, %v5907_v26, %v5975_v4  ;;  %v6070_v31 = vsel %vm4646_vm10, %v5907_v26, %v5975_v4  ;;  %v6078_v41 = vsel %vm4658_vm13, %v5907_v26, %v5975_v4 }
 0x7e6   : > { %6238 = vst.msk [vmem:[#allocation7 + $0x133] ss:$4 sm:$0x3] %vm10663_vm14, %v6049_v0  ;;  %v5635_v0 = vrot.slane %v5634_v14, 5  ;;  %v5639_v11 = vrot.slane %v5638_v39, 7  ;;  %v6069_v55 = vrot.slane %v6068_v24, 1  ;;  %v6080_v33 = vsel %vm690_vm3, %v5975_v4, %v5907_v26 }
 0x7e7   : > { %6240 = vst.msk [vmem:[#allocation7 + $0x13b] ss:$4 sm:$0x3] %vm10663_vm14, %v6051_v13  ;;  %v5509_v13 = vadd.f32 %v5508_v5, %v11037_v28  ;;  %v6074_v28 = vsel %vm4652_vm5, %v5907_v26, %v5975_v4  ;;  %v6071_v42 = vrot.slane %v6070_v31, 2  ;;  %v5951_v36 = vadd.f32 %v5950_v40, %v11065_v32 }
 0x7e8   : > { %5800 = vst.msk [vmem:[#allocation7 + $0x142] ss:$4 sm:$0x3] %vm10663_vm14, %v5610_v63  ;;  %v6072_v63 = vsel %vm4649_vm11, %v5907_v26, %v5975_v4  ;;  %v6081_v43 = vrot.slane %v6080_v33, 7 }
 0x7e9   : > { %5802 = vst.msk [vmem:[#allocation7 + $0x14a] ss:$4 sm:$0x3] %vm10663_vm14, %v5612_v27  ;;  %v6067_v27 = vsel %vm4641_vm8, %v5907_v26, %v5975_v4  ;;  %v5534_v12 = vrot.slane %v5509_v13, 7 }
 0x7ea   : > { %5804 = vst.msk [vmem:[#allocation7 + $0x152] ss:$4 sm:$0x3] %vm10663_vm14, %v5614_v56  ;;  %v6076_v56 = vsel %vm4655_vm12, %v5907_v26, %v5975_v4  ;;  %v11504_v26 = vmov 0.0  }
 0x7eb   : > { %5806 = vst.msk [vmem:[#allocation7 + $0x15a] ss:$4 sm:$0x3] %vm10663_vm14, %v5616_v6  ;;  %v6073_v6 = vrot.slane %v6072_v63, 3  ;;  %v5641_v45 = vsel %vm4643_vm9, %v5468_v10, %v5534_v12  ;;  %v5645_v7 = vsel %vm4649_vm11, %v5468_v10, %v5534_v12  ;;  %v5640_v22 = vsel %vm4641_vm8, %v5468_v10, %v5534_v12 }
 0x7ec   : > { %5808 = vst.msk [vmem:[#allocation7 + $0x162] ss:$4 sm:$0x3] %vm10663_vm14, %v5618_v17  ;;  %v6075_v17 = vrot.slane %v6074_v28, 4  ;;  %v5642_v32 = vrot.slane %v5641_v45, 1  ;;  %v5646_v60 = vrot.slane %v5645_v7, 3  ;;  %v5651_v61 = vsel %vm4658_vm13, %v5468_v10, %v5534_v12 }
 0x7ed   : > { %5810 = vst.msk [vmem:[#allocation7 + $0x16a] ss:$4 sm:$0x3] %vm10663_vm14, %v5620_v54  ;;  %v6077_v54 = vrot.slane %v6076_v56, 5  ;;  %v5653_v15 = vsel %vm690_vm3, %v5534_v12, %v5468_v10 }
 0x7ee   : > { %5812 = vst.msk [vmem:[#allocation7 + $0x172] ss:$4 sm:$0x3] %vm10663_vm14, %v5622_v59  ;;  %v6079_v59 = vrot.slane %v6078_v41, 6  ;;  %v5654_v23 = vrot.slane %v5653_v15, 7 }
 0x7ef   : > { %5814 = vst.msk [vmem:[#allocation7 + $0x17a] ss:$4 sm:$0x3] %vm10663_vm14, %v5624_v18  ;;  %v5643_v18 = vsel %vm4646_vm10, %v5468_v10, %v5534_v12 }
 0x7f0   : > { %6242 = vst.msk [vmem:[#allocation7 + $0x143] ss:$4 sm:$0x3] %vm10663_vm14, %v6052_v51  ;;  %v5647_v51 = vsel %vm4652_vm5, %v5468_v10, %v5534_v12  ;;  %v5644_v38 = vrot.slane %v5643_v18, 2 }
 0x7f1   : > { %6244 = vst.msk [vmem:[#allocation7 + $0x14b] ss:$4 sm:$0x3] %vm10663_vm14, %v6054_v35  ;;  %v5976_v35 = vrot.slane %v5951_v36, 7 }
 0x7f2   : > { %6246 = vst.msk [vmem:[#allocation7 + $0x153] ss:$4 sm:$0x3] %vm10663_vm14, %v6056_v37  ;;  %v5649_v37 = vsel %vm4655_vm12, %v5468_v10, %v5534_v12 }
 0x7f3   : > { %6248 = vst.msk [vmem:[#allocation7 + $0x15b] ss:$4 sm:$0x3] %vm10663_vm14, %v6058_v50  ;;  %v5648_v50 = vrot.slane %v5647_v51, 4  ;;  %v5650_v1 = vrot.slane %v5649_v37, 5  ;;  %v6083_v8 = vsel %vm4643_vm9, %v5910_v9, %v5976_v35  ;;  %v6082_v57 = vsel %vm4641_vm8, %v5910_v9, %v5976_v35 }
 0x7f4   : > { %6250 = vst.msk [vmem:[#allocation7 + $0x163] ss:$4 sm:$0x3] %vm10663_vm14, %v6060_v19  ;;  %v5652_v19 = vrot.slane %v5651_v61, 6  ;;  %v6084_v21 = vrot.slane %v6083_v8, 1  ;;  %v6091_v16 = vsel %vm4655_vm12, %v5910_v9, %v5976_v35  ;;  %v6095_v49 = vsel %vm690_vm3, %v5976_v35, %v5910_v9 }
 0x7f5   : > { %6252 = vst.msk [vmem:[#allocation7 + $0x16b] ss:$4 sm:$0x3] %vm10663_vm14, %v6062_v58  ;;  %v6085_v58 = vsel %vm4646_vm10, %v5910_v9, %v5976_v35  ;;  %v6092_v4 = vrot.slane %v6091_v16, 5  ;;  %v6096_v14 = vrot.slane %v6095_v49, 7 }
 0x7f6   : > { %6254 = vst.msk [vmem:[#allocation7 + $0x173] ss:$4 sm:$0x3] %vm10663_vm14, %v6064_v44  ;;  %v6087_v44 = vsel %vm4649_vm11, %v5910_v9, %v5976_v35  ;;  %v6086_v62 = vrot.slane %v6085_v58, 2 }
 0x7f7   : > { %6256 = vst.msk [vmem:[#allocation7 + $0x17b] ss:$4 sm:$0x3] %vm10663_vm14, %v6066_v2  ;;  %v6089_v2 = vsel %vm4652_vm5, %v5910_v9, %v5976_v35  ;;  %v6088_v20 = vrot.slane %v6087_v44, 3 }
 0x7f8   : > { %5816 = vst.msk [vmem:[#allocation7 + $0x182] ss:$4 sm:$0x3] %vm10663_vm14, %v5625_v48  ;;  %v6093_v48 = vsel %vm4658_vm13, %v5910_v9, %v5976_v35 }
 0x7f9   : > { %5818 = vst.msk [vmem:[#allocation7 + $0x18a] ss:$4 sm:$0x3] %vm10663_vm14, %v5627_v47  ;;  %v6090_v47 = vrot.slane %v6089_v2, 4 }
 0x7fa   : > { %5820 = vst.msk [vmem:[#allocation7 + $0x192] ss:$4 sm:$0x3] %vm10663_vm14, %v5629_v46  ;;  %v6094_v46 = vrot.slane %v6093_v48, 6 }
 0x7fb   : > { %5822 = vst.msk [vmem:[#allocation7 + $0x19a] ss:$4 sm:$0x3] %vm10663_vm14, %v5631_v53  ;;  %v11506_v53 = vmov 0.0  }
 0x7fc   : > { %5824 = vst.msk [vmem:[#allocation7 + $0x1a2] ss:$4 sm:$0x3] %vm10663_vm14, %v5633_v30 }
 0x7fd   : > { %5826 = vst.msk [vmem:[#allocation7 + $0x1aa] ss:$4 sm:$0x3] %vm10663_vm14, %v5635_v0 }
 0x7fe   : > { %5828 = vst.msk [vmem:[#allocation7 + $0x1b2] ss:$4 sm:$0x3] %vm10663_vm14, %v5637_v3 }
 0x7ff   : > { %5830 = vst.msk [vmem:[#allocation7 + $0x1ba] ss:$4 sm:$0x3] %vm10663_vm14, %v5639_v11 }
 0x800   : > { %6258 = vst.msk [vmem:[#allocation7 + $0x183] ss:$4 sm:$0x3] %vm10663_vm14, %v6067_v27 }
 0x801   : > { %6260 = vst.msk [vmem:[#allocation7 + $0x18b] ss:$4 sm:$0x3] %vm10663_vm14, %v6069_v55 }
 0x802   : > { %6262 = vst.msk [vmem:[#allocation7 + $0x193] ss:$4 sm:$0x3] %vm10663_vm14, %v6071_v42 }
 0x803   : > { %6264 = vst.msk [vmem:[#allocation7 + $0x19b] ss:$4 sm:$0x3] %vm10663_vm14, %v6073_v6 }
 0x804   : > { %6266 = vst.msk [vmem:[#allocation7 + $0x1a3] ss:$4 sm:$0x3] %vm10663_vm14, %v6075_v17 }
 0x805   : > { %6268 = vst.msk [vmem:[#allocation7 + $0x1ab] ss:$4 sm:$0x3] %vm10663_vm14, %v6077_v54 }
 0x806   : > { %6270 = vst.msk [vmem:[#allocation7 + $0x1b3] ss:$4 sm:$0x3] %vm10663_vm14, %v6079_v59 }
 0x807   : > { %6272 = vst.msk [vmem:[#allocation7 + $0x1bb] ss:$4 sm:$0x3] %vm10663_vm14, %v6081_v43 }
 0x808   : > { %5832 = vst.msk [vmem:[#allocation7 + $0x1c2] ss:$4 sm:$0x3] %vm10663_vm14, %v5640_v22 }
 0x809   : > { %5834 = vst.msk [vmem:[#allocation7 + $0x1ca] ss:$4 sm:$0x3] %vm10663_vm14, %v5642_v32 }
 0x80a   : > { %5836 = vst.msk [vmem:[#allocation7 + $0x1d2] ss:$4 sm:$0x3] %vm10663_vm14, %v5644_v38 }
 0x80b   : > { %5838 = vst.msk [vmem:[#allocation7 + $0x1da] ss:$4 sm:$0x3] %vm10663_vm14, %v5646_v60 }
 0x80c   : > { %5840 = vst.msk [vmem:[#allocation7 + $0x1e2] ss:$4 sm:$0x3] %vm10663_vm14, %v5648_v50 }
 0x80d   : > { %5842 = vst.msk [vmem:[#allocation7 + $0x1ea] ss:$4 sm:$0x3] %vm10663_vm14, %v5650_v1 }
 0x80e   : > { %5844 = vst.msk [vmem:[#allocation7 + $0x1f2] ss:$4 sm:$0x3] %vm10663_vm14, %v5652_v19 }
 0x80f   : > { %5846 = vst.msk [vmem:[#allocation7 + $0x1fa] ss:$4 sm:$0x3] %vm10663_vm14, %v5654_v23 }
 0x810   : > { %6274 = vst.msk [vmem:[#allocation7 + $0x1c3] ss:$4 sm:$0x3] %vm10663_vm14, %v6082_v57 }
 0x811   : > { %6276 = vst.msk [vmem:[#allocation7 + $0x1cb] ss:$4 sm:$0x3] %vm10663_vm14, %v6084_v21 }
 0x812   : > { %6278 = vst.msk [vmem:[#allocation7 + $0x1d3] ss:$4 sm:$0x3] %vm10663_vm14, %v6086_v62 }
 0x813   : > { %6280 = vst.msk [vmem:[#allocation7 + $0x1db] ss:$4 sm:$0x3] %vm10663_vm14, %v6088_v20 }
 0x814   : > { %6282 = vst.msk [vmem:[#allocation7 + $0x1e3] ss:$4 sm:$0x3] %vm10663_vm14, %v6090_v47 }
 0x815   : > { %6284 = vst.msk [vmem:[#allocation7 + $0x1eb] ss:$4 sm:$0x3] %vm10663_vm14, %v6092_v4 }
 0x816   : > { %6286 = vst.msk [vmem:[#allocation7 + $0x1f3] ss:$4 sm:$0x3] %vm10663_vm14, %v6094_v46 }
 0x817   : > { %6288 = vst.msk [vmem:[#allocation7 + $0x1fb] ss:$4 sm:$0x3] %vm10663_vm14, %v6096_v14 }
 0x818 LB: >> { %v6332_v29 = vld [vmem:[#allocation23 + $0xf8] sm:$0xff]  ;;  %v6330_v30 = vld [vmem:[#allocation23 + $0xe8] sm:$0xff]  ;;  %v6331_v24 = vld [vmem:[#allocation23 + $0xf0] sm:$0xff]  ;;  %s7515_s16 = sshll.u32 %s8284_s14, 3  ;;  %s6990_s1 = sshra.s32 %s8284_s14, 3  ;;  %s8284_s14 = sphi %s11508_s14, %s6294_s14   ;;  %v8280_v53 = vphi %v11506_v53, %v6984_v53   ;;  %v8276_v26 = vphi %v11504_v26, %v6960_v26  }
 0x819   : >> { %v6364_v5 = vld [vmem:[#allocation23 + $0x1f8] sm:$0xff]  ;;  %6410 = vmatpush.msra.mxu2 %v6332_v29  ;;  %v6362_v39 = vld [vmem:[#allocation23 + $0x1e8] sm:$0xff]  ;;  %v6363_v11 = vld [vmem:[#allocation23 + $0x1f0] sm:$0xff]  ;;  %6370 = vmatpush.msra.mxu0 %v6331_v24  ;;  %s6299_s22 = scalar_lea.vmem [#allocation7], %s7515_s16  ;;  %s6993_s23 = sand.u32 7, %s8284_s14 }
 0x81a   : >> { %6430 = vmatpush.msra.mxu3 %v6364_v5  ;;  %v6328_v0 = vld [vmem:[#allocation23 + $0xd8] sm:$0xff]  ;;  %v6326_v13 = vld [vmem:[#allocation23 + $0xc8] sm:$0xff]  ;;  %6390 = vmatpush.msra.mxu1 %v6363_v11  ;;  %v6329_v52 = vld [vmem:[#allocation23 + $0xe0] sm:$0xff]  ;;  %s7516_s27 = sshll.u32 %s6990_s1, 4  ;;  %s6294_s14 = sadd.s32 1, %s8284_s14  }
 0x81b   : >> { %v6360_v3 = vld [vmem:[#allocation23 + $0x1d8] sm:$0xff]  ;;  %6411 = vmatpush.msra.mxu2 %v6330_v30  ;;  %v6358_v31 = vld [vmem:[#allocation23 + $0x1c8] sm:$0xff]  ;;  %v6361_v63 = vld [vmem:[#allocation23 + $0x1e0] sm:$0xff]  ;;  %6371 = vmatpush.msra.mxu0 %v6329_v52  ;;  %s6996_s20 = sadd.s32 %s7516_s27, %s6993_s23  ;;  %p6291_p1 = scmp.ge.s32.totalorder %s6294_s14, 64  }
 0x81c   : >> { %6431 = vmatpush.msra.mxu3 %v6362_v39  ;;  %v6327_v27 = vld [vmem:[#allocation23 + $0xd0] sm:$0xff]  ;;  %v6324_v28 = vld [vmem:[#allocation23 + $0xb8] sm:$0xff]  ;;  %6391 = vmatpush.msra.mxu1 %v6361_v63  ;;  %v6325_v56 = vld [vmem:[#allocation23 + $0xc0] sm:$0xff]  ;;  %s6997_s17 = scalar_lea.vmem %s609_s24, %s6996_s20 [#allocation26]  ;;  %s7517_s4 = sshll.u32 (%p6291_p1), %s8399_s29, 7 }
 0x81d   : >> { %6412 = vmatpush.msra.mxu2 %v6328_v0  ;;  %v6359_v55 = vld [vmem:[#allocation23 + $0x1d0] sm:$0xff]  ;;  %v6356_v42 = vld [vmem:[#allocation23 + $0x1b8] sm:$0xff]  ;;  %v6357_v12 = vld [vmem:[#allocation23 + $0x1c0] sm:$0xff]  ;;  %6372 = vmatpush.msra.mxu0 %v6327_v27  ;;  %s7012_s9 = scalar_lea.hbm (%p6291_p1), %s11608_s13, %s7517_s4  ;;  %s7013_s30 = sshll.u32 (%p6291_p1), %s609_s24, 4  ;;  %s7014_s30 = int_to_ptr.vmem [resolvable:$true] %s7013_s30 }
 0x81e   : >> { %6432 = vmatpush.msra.mxu3 %v6360_v3  ;;  %v6322_v10 = vld [vmem:[#allocation23 + $0xa8] sm:$0xff]  ;;  %6392 = vmatpush.msra.mxu1 %v6359_v55  ;;  %v6323_v41 = vld [vmem:[#allocation23 + $0xb0] sm:$0xff]  ;;  %v6320_v17 = vld [vmem:[#allocation23 + $0x98] sm:$0xff]  ;;  %s7015_s15 = sshll.u32 (%p6291_p1), %s7012_s9, 4  ;;  %s7001_s19 = scalar_lea.sflag (%p6291_p1), [#allocation10], %s607_s3  ;;  %s7016_s15 = int_to_ptr.hbm [resolvable:$true] %s7015_s15 }
 0x81f   : >> { %6413 = vmatpush.msra.mxu2 %v6326_v13  ;;  %v6354_v6 = vld [vmem:[#allocation23 + $0x1a8] sm:$0xff]  ;;  %v6355_v40 = vld [vmem:[#allocation23 + $0x1b0] sm:$0xff]  ;;  %v6352_v33 = vld [vmem:[#allocation23 + $0x198] sm:$0xff]  ;;  %6373 = vmatpush.msra.mxu0 %v6325_v56  ;;  %s8164_s21 = sshra.s32 (%p6291_p1), %s7016_s15, 4  ;;  %s8165_s21 = int_to_ptr.hbm [resolvable:$true] %s8164_s21 }
 0x820   : >> { %6433 = vmatpush.msra.mxu3 %v6358_v31  ;;  %6393 = vmatpush.msra.mxu1 %v6357_v12  ;;  %v6321_v54 = vld [vmem:[#allocation23 + $0xa0] sm:$0xff]  ;;  %v6318_v36 = vld [vmem:[#allocation23 + $0x88] sm:$0xff]  ;;  %v6319_v43 = vld [vmem:[#allocation23 + $0x90] sm:$0xff]  ;;  %s8166_s14 = scalar_lea.hbm (%p6291_p1), %s8165_s21, 128  ;;  %p8171_p7 = scmp.lt.s32.totalorder (%p6291_p1), %s8165_s21, %s11608_s13 }
 0x821   : >> { %6414 = vmatpush.msra.mxu2 %v6324_v28  ;;  %v6353_v59 = vld [vmem:[#allocation23 + $0x1a0] sm:$0xff]  ;;  %v6350_v45 = vld [vmem:[#allocation23 + $0x188] sm:$0xff]  ;;  %6374 = vmatpush.msra.mxu0 %v6323_v41  ;;  %v6351_v18 = vld [vmem:[#allocation23 + $0x190] sm:$0xff]  ;;  %p8167_p2 = scmp.ne.s32.totalorder (%p6291_p1), %s8165_s21, %s8166_s14 }
 0x822   : >> { %6434 = vmatpush.msra.mxu3 %v6356_v42  ;;  %6394 = vmatpush.msra.mxu1 %v6355_v40  ;;  %v6316_v25 = vld [vmem:[#allocation23 + $0x78] sm:$0xff]  ;;  %v6317_v22 = vld [vmem:[#allocation23 + $0x80] sm:$0xff]  ;;  %v6314_v51 = vld [vmem:[#allocation23 + $0x68] sm:$0xff] }
 0x823   : >> { %6415 = vmatpush.msra.mxu2 %v6322_v10  ;;  %v6348_v7 = vld [vmem:[#allocation23 + $0x178] sm:$0xff]  ;;  %6375 = vmatpush.msra.mxu0 %v6321_v54  ;;  %v6349_v32 = vld [vmem:[#allocation23 + $0x180] sm:$0xff]  ;;  %v6346_v35 = vld [vmem:[#allocation23 + $0x168] sm:$0xff]  ;;  %p8168_p3 = pnand (%p6291_p1), %p8167_p2, %p8416_p5 }
 0x824   : >> { %6435 = vmatpush.msra.mxu3 %v6354_v6  ;;  %6395 = vmatpush.msra.mxu1 %v6353_v59  ;;  %v6315_v38 = vld [vmem:[#allocation23 + $0x70] sm:$0xff]  ;;  %v6312_v9 = vld [vmem:[#allocation23 + $0x58] sm:$0xff]  ;;  %v6313_v61 = vld [vmem:[#allocation23 + $0x60] sm:$0xff] }
 0x825   : >> { %6416 = vmatpush.msra.mxu2 %v6320_v17  ;;  %6376 = vmatpush.msra.mxu0 %v6319_v43  ;;  %v6347_v37 = vld [vmem:[#allocation23 + $0x170] sm:$0xff]  ;;  %v6344_v60 = vld [vmem:[#allocation23 + $0x158] sm:$0xff]  ;;  %v6345_v50 = vld [vmem:[#allocation23 + $0x160] sm:$0xff]  ;;  %p8169_p4 = pneg (%p6291_p1), %p8168_p3 }
 0x826   : >> { %6436 = vmatpush.msra.mxu3 %v6352_v33  ;;  %6396 = vmatpush.msra.mxu1 %v6351_v18  ;;  %v6310_v15 = vld [vmem:[#allocation23 + $0x48] sm:$0xff]  ;;  %v6311_v19 = vld [vmem:[#allocation23 + $0x50] sm:$0xff]  ;;  %v6308_v23 = vld [vmem:[#allocation23 + $0x38] sm:$0xff]  ;;  %v11520_v18 = vperm.slane %v8280_v53, 3 }
 0x827   : >> { %6417 = vmatpush.msra.mxu2 %v6318_v36  ;;  %6377 = vmatpush.msra.mxu0 %v6317_v22  ;;  %v6342_v1 = vld [vmem:[#allocation23 + $0x148] sm:$0xff]  ;;  %v6343_v8 = vld [vmem:[#allocation23 + $0x150] sm:$0xff]  ;;  %v6340_v58 = vld [vmem:[#allocation23 + $0x138] sm:$0xff] }
 0x828   : >> { %6437 = vmatpush.msra.mxu3 %v6350_v45  ;;  %6397 = vmatpush.msra.mxu1 %v6349_v32  ;;  %v6309_v44 = vld [vmem:[#allocation23 + $0x40] sm:$0xff]  ;;  %v6306_v21 = vld [vmem:[#allocation23 + $0x28] sm:$0xff]  ;;  %v6307_v62 = vld [vmem:[#allocation23 + $0x30] sm:$0xff] }
 0x829   : >> { %6418 = vmatpush.msra.mxu2 %v6316_v25  ;;  %6378 = vmatpush.msra.mxu0 %v6315_v38  ;;  %v6341_v57 = vld [vmem:[#allocation23 + $0x140] sm:$0xff]  ;;  %v6338_v2 = vld [vmem:[#allocation23 + $0x128] sm:$0xff]  ;;  %v6339_v16 = vld [vmem:[#allocation23 + $0x130] sm:$0xff]  ;;  %v11523_v25 = vperm.slane %v8280_v53, 7 }
 0x82a   : >> { %6438 = vmatpush.msra.mxu3 %v6348_v7  ;;  %6398 = vmatpush.msra.mxu1 %v6347_v37  ;;  %v6304_v20 = vld [vmem:[#allocation23 + $0x18] sm:$0xff]  ;;  %v6305_v47 = vld [vmem:[#allocation23 + $0x20] sm:$0xff]  ;;  %v6302_v4 = vld [vmem:[#allocation23 + $0x8] sm:$0xff] }
 0x82b   : >> { %6419 = vmatpush.msra.mxu2 %v6314_v51  ;;  %6379 = vmatpush.msra.mxu0 %v6313_v61  ;;  %v6336_v48 = vld [vmem:[#allocation23 + $0x118] sm:$0xff]  ;;  %v6337_v49 = vld [vmem:[#allocation23 + $0x120] sm:$0xff]  ;;  %v6334_v46 = vld [vmem:[#allocation23 + $0x108] sm:$0xff] }
 0x82c   : >> { %6439 = vmatpush.msra.mxu3 %v6346_v35  ;;  %6399 = vmatpush.msra.mxu1 %v6345_v50  ;;  %v6488_v14 = vld [vmem:[#allocation23 + $0x2f8] sm:$0xff]  ;;  %v6303_v5 = vld [vmem:[#allocation23 + $0x10] sm:$0xff]  ;;  %v6486_v39 = vld [vmem:[#allocation23 + $0x2e8] sm:$0xff] }
 0x82d   : >> { %6420 = vmatpush.msra.mxu2 %v6312_v9  ;;  %6380 = vmatpush.msra.mxu0 %v6311_v19  ;;  %v6520_v29 = vld [vmem:[#allocation23 + $0x3f8] sm:$0xff]  ;;  %v6335_v30 = vld [vmem:[#allocation23 + $0x110] sm:$0xff]  ;;  %v6518_v0 = vld [vmem:[#allocation23 + $0x3e8] sm:$0xff] }
 0x82e   : >> { %6440 = vmatpush.msra.mxu3 %v6344_v60  ;;  %6400 = vmatpush.msra.mxu1 %v6343_v8  ;;  %v6301_v3 = vld [vmem:[#allocation23] sm:$0xff]  ;;  %v6484_v13 = vld [vmem:[#allocation23 + $0x2d8] sm:$0xff]  ;;  %v6487_v31 = vld [vmem:[#allocation23 + $0x2f0] sm:$0xff] }
 0x82f   : >> { %6421 = vmatpush.msra.mxu2 %v6310_v15  ;;  %6381 = vmatpush.msra.mxu0 %v6309_v44  ;;  %v6333_v24 = vld [vmem:[#allocation23 + $0x100] sm:$0xff]  ;;  %v6516_v11 = vld [vmem:[#allocation23 + $0x3d8] sm:$0xff]  ;;  %v6519_v52 = vld [vmem:[#allocation23 + $0x3f0] sm:$0xff] }
 0x830   : >> { %6441 = vmatpush.msra.mxu3 %v6342_v1  ;;  %6401 = vmatpush.msra.mxu1 %v6341_v57  ;;  %v6482_v63 = vld [vmem:[#allocation23 + $0x2c8] sm:$0xff]  ;;  %v6485_v55 = vld [vmem:[#allocation23 + $0x2e0] sm:$0xff]  ;;  %v6480_v42 = vld [vmem:[#allocation23 + $0x2b8] sm:$0xff] }
 0x831   : >> { %6422 = vmatpush.msra.mxu2 %v6308_v23  ;;  %6382 = vmatpush.msra.mxu0 %v6307_v62  ;;  %v6514_v27 = vld [vmem:[#allocation23 + $0x3c8] sm:$0xff]  ;;  %v6517_v28 = vld [vmem:[#allocation23 + $0x3e0] sm:$0xff]  ;;  %v6512_v56 = vld [vmem:[#allocation23 + $0x3b8] sm:$0xff] }
 0x832   : >> { %6442 = vmatpush.msra.mxu3 %v6340_v58  ;;  %6402 = vmatpush.msra.mxu1 %v6339_v16  ;;  %v6483_v12 = vld [vmem:[#allocation23 + $0x2d0] sm:$0xff]  ;;  %v6478_v6 = vld [vmem:[#allocation23 + $0x2a8] sm:$0xff]  ;;  %v6481_v40 = vld [vmem:[#allocation23 + $0x2c0] sm:$0xff] }
 0x833   : >> { %6423 = vmatpush.msra.mxu2 %v6306_v21  ;;  %6383 = vmatpush.msra.mxu0 %v6305_v47  ;;  %v6515_v10 = vld [vmem:[#allocation23 + $0x3d0] sm:$0xff]  ;;  %v6510_v41 = vld [vmem:[#allocation23 + $0x3a8] sm:$0xff]  ;;  %v6513_v17 = vld [vmem:[#allocation23 + $0x3c0] sm:$0xff] }
 0x834   : >> { %6443 = vmatpush.msra.mxu3 %v6338_v2  ;;  %6403 = vmatpush.msra.mxu1 %v6337_v49  ;;  %v6476_v33 = vld [vmem:[#allocation23 + $0x298] sm:$0xff]  ;;  %v6479_v59 = vld [vmem:[#allocation23 + $0x2b0] sm:$0xff]  ;;  %v6474_v45 = vld [vmem:[#allocation23 + $0x288] sm:$0xff] }
 0x835   : >> { %6424 = vmatpush.msra.mxu2 %v6304_v20  ;;  %6384 = vmatpush.msra.mxu0 %v6303_v5  ;;  %v6508_v54 = vld [vmem:[#allocation23 + $0x398] sm:$0xff]  ;;  %v6511_v36 = vld [vmem:[#allocation23 + $0x3b0] sm:$0xff]  ;;  %v6506_v43 = vld [vmem:[#allocation23 + $0x388] sm:$0xff] }
 0x836   : >> { %6444 = vmatpush.msra.mxu3 %v6336_v48  ;;  %6404 = vmatpush.msra.mxu1 %v6335_v30  ;;  %v6472_v7 = vld [vmem:[#allocation23 + $0x278] sm:$0xff]  ;;  %v6477_v32 = vld [vmem:[#allocation23 + $0x2a0] sm:$0xff]  ;;  %v6470_v35 = vld [vmem:[#allocation23 + $0x268] sm:$0xff] }
 0x837   : >> { %6425 = vmatpush.msra.mxu2 %v6302_v4  ;;  %6385 = vmatpush.msra.mxu0 %v6301_v3  ;;  %v6504_v22 = vld [vmem:[#allocation23 + $0x378] sm:$0xff]  ;;  %v6509_v51 = vld [vmem:[#allocation23 + $0x3a0] sm:$0xff]  ;;  %v6502_v38 = vld [vmem:[#allocation23 + $0x368] sm:$0xff] }
 0x838   : >> { %6445 = vmatpush.msra.mxu3 %v6334_v46  ;;  %6405 = vmatpush.msra.mxu1 %v6333_v24  ;;  %v6475_v53 = vld [vmem:[#allocation23 + $0x290] sm:$0xff]  ;;  %v6468_v9 = vld [vmem:[#allocation23 + $0x258] sm:$0xff]  ;;  %v6473_v61 = vld [vmem:[#allocation23 + $0x280] sm:$0xff] }
 0x839   : >> { %6561 = vmatpush.msrb.mxu2 %v6488_v14  ;;  %6521 = vmatpush.msrb.mxu0 %v6487_v31  ;;  %v6507_v37 = vld [vmem:[#allocation23 + $0x390] sm:$0xff]  ;;  %v6500_v60 = vld [vmem:[#allocation23 + $0x358] sm:$0xff]  ;;  %v6505_v50 = vld [vmem:[#allocation23 + $0x380] sm:$0xff] }
 0x83a   : >> { %6581 = vmatpush.msrb.mxu3 %v6520_v29  ;;  %6541 = vmatpush.msrb.mxu1 %v6519_v52  ;;  %v6466_v15 = vld [vmem:[#allocation23 + $0x248] sm:$0xff]  ;;  %v6471_v19 = vld [vmem:[#allocation23 + $0x270] sm:$0xff]  ;;  %v6464_v23 = vld [vmem:[#allocation23 + $0x238] sm:$0xff] }
 0x83b   : >> { %6562 = vmatpush.msrb.mxu2 %v6486_v39  ;;  %6522 = vmatpush.msrb.mxu0 %v6485_v55  ;;  %v6498_v1 = vld [vmem:[#allocation23 + $0x348] sm:$0xff]  ;;  %v6503_v8 = vld [vmem:[#allocation23 + $0x370] sm:$0xff]  ;;  %v6496_v58 = vld [vmem:[#allocation23 + $0x338] sm:$0xff] }
 0x83c   : >> { %6582 = vmatpush.msrb.mxu3 %v6518_v0  ;;  %6542 = vmatpush.msrb.mxu1 %v6517_v28  ;;  %v6469_v44 = vld [vmem:[#allocation23 + $0x260] sm:$0xff]  ;;  %v6462_v21 = vld [vmem:[#allocation23 + $0x228] sm:$0xff]  ;;  %v6467_v62 = vld [vmem:[#allocation23 + $0x250] sm:$0xff] }
 0x83d   : >> { %6563 = vmatpush.msrb.mxu2 %v6484_v13  ;;  %6523 = vmatpush.msrb.mxu0 %v6483_v12  ;;  %v6501_v57 = vld [vmem:[#allocation23 + $0x360] sm:$0xff]  ;;  %v6494_v2 = vld [vmem:[#allocation23 + $0x328] sm:$0xff]  ;;  %v6499_v16 = vld [vmem:[#allocation23 + $0x350] sm:$0xff] }
 0x83e   : >> { %6583 = vmatpush.msrb.mxu3 %v6516_v11  ;;  %6543 = vmatpush.msrb.mxu1 %v6515_v10  ;;  %v6460_v20 = vld [vmem:[#allocation23 + $0x218] sm:$0xff]  ;;  %v6465_v47 = vld [vmem:[#allocation23 + $0x240] sm:$0xff]  ;;  %v6458_v4 = vld [vmem:[#allocation23 + $0x208] sm:$0xff] }
 0x83f   : >> { %6564 = vmatpush.msrb.mxu2 %v6482_v63  ;;  %6524 = vmatpush.msrb.mxu0 %v6481_v40  ;;  %v6492_v48 = vld [vmem:[#allocation23 + $0x318] sm:$0xff]  ;;  %v6497_v49 = vld [vmem:[#allocation23 + $0x340] sm:$0xff]  ;;  %v6490_v46 = vld [vmem:[#allocation23 + $0x308] sm:$0xff] }
 0x840   : >> { %6584 = vmatpush.msrb.mxu3 %v6514_v27  ;;  %6544 = vmatpush.msrb.mxu1 %v6513_v17  ;;  %v6640_v14 = vld [vmem:[#allocation23 + $0x4f8] sm:$0xff]  ;;  %v6463_v5 = vld [vmem:[#allocation23 + $0x230] sm:$0xff]  ;;  %v6638_v39 = vld [vmem:[#allocation23 + $0x4e8] sm:$0xff] }
 0x841   : >> { %6565 = vmatpush.msrb.mxu2 %v6480_v42  ;;  %6525 = vmatpush.msrb.mxu0 %v6479_v59  ;;  %v6672_v29 = vld [vmem:[#allocation23 + $0x5f8] sm:$0xff]  ;;  %v6495_v30 = vld [vmem:[#allocation23 + $0x330] sm:$0xff]  ;;  %v6670_v0 = vld [vmem:[#allocation23 + $0x5e8] sm:$0xff] }
 0x842   : >> { %6585 = vmatpush.msrb.mxu3 %v6512_v56  ;;  %6545 = vmatpush.msrb.mxu1 %v6511_v36  ;;  %v6461_v3 = vld [vmem:[#allocation23 + $0x220] sm:$0xff]  ;;  %v6636_v13 = vld [vmem:[#allocation23 + $0x4d8] sm:$0xff]  ;;  %v6459_v31 = vld [vmem:[#allocation23 + $0x210] sm:$0xff] }
 0x843   : >> { %6566 = vmatpush.msrb.mxu2 %v6478_v6  ;;  %6446 = vmatmul.f32.vlgmr.msra.gmra.mxu3 %v11523_v25  ;;  %v6493_v24 = vld [vmem:[#allocation23 + $0x320] sm:$0xff]  ;;  %v6668_v11 = vld [vmem:[#allocation23 + $0x5d8] sm:$0xff]  ;;  %v6491_v52 = vld [vmem:[#allocation23 + $0x310] sm:$0xff] }
 0x844   : >> { %6586 = vmatpush.msrb.mxu3 %v6510_v41  ;;  %6426 = vmatmul.f32.vlgmr.msra.gmra.mxu2 %v11520_v18  ;;  %v6634_v63 = vld [vmem:[#allocation23 + $0x4c8] sm:$0xff]  ;;  %v6457_v55 = vld [vmem:[#allocation23 + $0x200] sm:$0xff]  ;;  %v6639_v42 = vld [vmem:[#allocation23 + $0x4f0] sm:$0xff] }
 0x845   : >> { %6567 = vmatpush.msrb.mxu2 %v6476_v33  ;;  %6526 = vmatpush.msrb.mxu0 %v6477_v32  ;;  %v6666_v27 = vld [vmem:[#allocation23 + $0x5c8] sm:$0xff]  ;;  %v6489_v28 = vld [vmem:[#allocation23 + $0x300] sm:$0xff]  ;;  %v6671_v56 = vld [vmem:[#allocation23 + $0x5f0] sm:$0xff] }
 0x846   : >> { %6587 = vmatpush.msrb.mxu3 %v6508_v54  ;;  %6546 = vmatpush.msrb.mxu1 %v6509_v51  ;;  %v6632_v12 = vld [vmem:[#allocation23 + $0x4b8] sm:$0xff]  ;;  %v6637_v6 = vld [vmem:[#allocation23 + $0x4e0] sm:$0xff]  ;;  %v6630_v40 = vld [vmem:[#allocation23 + $0x4a8] sm:$0xff] }
 0x847   : >> { %6568 = vmatpush.msrb.mxu2 %v6474_v45  ;;  %6527 = vmatpush.msrb.mxu0 %v6475_v53  ;;  %v6664_v10 = vld [vmem:[#allocation23 + $0x5b8] sm:$0xff]  ;;  %v6669_v41 = vld [vmem:[#allocation23 + $0x5e0] sm:$0xff]  ;;  %v6662_v17 = vld [vmem:[#allocation23 + $0x5a8] sm:$0xff] }
 0x848   : >> { %6588 = vmatpush.msrb.mxu3 %v6506_v43  ;;  %6547 = vmatpush.msrb.mxu1 %v6507_v37  ;;  %v6635_v33 = vld [vmem:[#allocation23 + $0x4d0] sm:$0xff]  ;;  %v6628_v59 = vld [vmem:[#allocation23 + $0x498] sm:$0xff]  ;;  %v6633_v45 = vld [vmem:[#allocation23 + $0x4c0] sm:$0xff] }
 0x849   : >> { %6569 = vmatpush.msrb.mxu2 %v6472_v7  ;;  %6528 = vmatpush.msrb.mxu0 %v6473_v61  ;;  %v6667_v54 = vld [vmem:[#allocation23 + $0x5d0] sm:$0xff]  ;;  %v6660_v36 = vld [vmem:[#allocation23 + $0x598] sm:$0xff]  ;;  %v6665_v43 = vld [vmem:[#allocation23 + $0x5c0] sm:$0xff] }
 0x84a   : >> { %6589 = vmatpush.msrb.mxu3 %v6504_v22  ;;  %6548 = vmatpush.msrb.mxu1 %v6505_v50  ;;  %v6626_v7 = vld [vmem:[#allocation23 + $0x488] sm:$0xff]  ;;  %v6631_v32 = vld [vmem:[#allocation23 + $0x4b0] sm:$0xff]  ;;  %v6629_v53 = vld [vmem:[#allocation23 + $0x4a0] sm:$0xff] }
 0x84b   : >> { %6570 = vmatpush.msrb.mxu2 %v6470_v35  ;;  %6529 = vmatpush.msrb.mxu0 %v6471_v19  ;;  %v6658_v22 = vld [vmem:[#allocation23 + $0x588] sm:$0xff]  ;;  %v6663_v51 = vld [vmem:[#allocation23 + $0x5b0] sm:$0xff]  ;;  %v6624_v35 = vld [vmem:[#allocation23 + $0x478] sm:$0xff] }
 0x84c   : >> { %6590 = vmatpush.msrb.mxu3 %v6502_v38  ;;  %6549 = vmatpush.msrb.mxu1 %v6503_v8  ;;  %v6656_v38 = vld [vmem:[#allocation23 + $0x578] sm:$0xff]  ;;  %v6661_v37 = vld [vmem:[#allocation23 + $0x5a0] sm:$0xff]  ;;  %v6627_v61 = vld [vmem:[#allocation23 + $0x490] sm:$0xff] }
 0x84d   : >> { %6571 = vmatpush.msrb.mxu2 %v6468_v9  ;;  %6386 = vmatmul.f32.vlgmr.msra.gmra.mxu0 %v11520_v18  ;;  %v6622_v9 = vld [vmem:[#allocation23 + $0x468] sm:$0xff]  ;;  %v6659_v50 = vld [vmem:[#allocation23 + $0x590] sm:$0xff]  ;;  %v6625_v19 = vld [vmem:[#allocation23 + $0x480] sm:$0xff] }
 0x84e   : >> { %6591 = vmatpush.msrb.mxu3 %v6500_v60  ;;  %6406 = vmatmul.f32.vlgmr.msra.gmra.mxu1 %v11523_v25  ;;  %v6654_v60 = vld [vmem:[#allocation23 + $0x568] sm:$0xff]  ;;  %v6657_v8 = vld [vmem:[#allocation23 + $0x580] sm:$0xff] }
 0x84f   : >> { %6572 = vmatpush.msrb.mxu2 %v6466_v15  ;;  %6530 = vmatpush.msrb.mxu0 %v6469_v44  ;;  %v6620_v15 = vld [vmem:[#allocation23 + $0x458] sm:$0xff]  ;;  %v6623_v44 = vld [vmem:[#allocation23 + $0x470] sm:$0xff] }
 0x850   : >> { %6592 = vmatpush.msrb.mxu3 %v6498_v1  ;;  %6550 = vmatpush.msrb.mxu1 %v6501_v57  ;;  %v6652_v1 = vld [vmem:[#allocation23 + $0x558] sm:$0xff]  ;;  %v6655_v57 = vld [vmem:[#allocation23 + $0x570] sm:$0xff] }
 0x851   : >> { %6573 = vmatpush.msrb.mxu2 %v6464_v23  ;;  %6531 = vmatpush.msrb.mxu0 %v6467_v62  ;;  %v6618_v23 = vld [vmem:[#allocation23 + $0x448] sm:$0xff]  ;;  %v6621_v62 = vld [vmem:[#allocation23 + $0x460] sm:$0xff] }
 0x852   : >> { %6593 = vmatpush.msrb.mxu3 %v6496_v58  ;;  %6551 = vmatpush.msrb.mxu1 %v6499_v16  ;;  %v6650_v58 = vld [vmem:[#allocation23 + $0x548] sm:$0xff]  ;;  %v6653_v16 = vld [vmem:[#allocation23 + $0x560] sm:$0xff] }
 0x853   : >> { %6574 = vmatpush.msrb.mxu2 %v6462_v21  ;;  %6532 = vmatpush.msrb.mxu0 %v6465_v47  ;;  %v6616_v21 = vld [vmem:[#allocation23 + $0x438] sm:$0xff]  ;;  %v6619_v47 = vld [vmem:[#allocation23 + $0x450] sm:$0xff] }
 0x854   : >> { %6594 = vmatpush.msrb.mxu3 %v6494_v2  ;;  %6552 = vmatpush.msrb.mxu1 %v6497_v49  ;;  %v6648_v2 = vld [vmem:[#allocation23 + $0x538] sm:$0xff]  ;;  %v6651_v49 = vld [vmem:[#allocation23 + $0x550] sm:$0xff] }
 0x855   : >> { %6575 = vmatpush.msrb.mxu2 %v6460_v20  ;;  %6533 = vmatpush.msrb.mxu0 %v6463_v5  ;;  %v6614_v20 = vld [vmem:[#allocation23 + $0x428] sm:$0xff] }
 0x856   : >> { %6595 = vmatpush.msrb.mxu3 %v6492_v48  ;;  %6553 = vmatpush.msrb.mxu1 %v6495_v30  ;;  %v6646_v48 = vld [vmem:[#allocation23 + $0x528] sm:$0xff] }
 0x857   : >> { %6576 = vmatpush.msrb.mxu2 %v6458_v4  ;;  %6534 = vmatpush.msrb.mxu0 %v6461_v3  ;;  %v6612_v4 = vld [vmem:[#allocation23 + $0x418] sm:$0xff]  ;;  %v6610_v5 = vld [vmem:[#allocation23 + $0x408] sm:$0xff]  ;;  %v6615_v3 = vld [vmem:[#allocation23 + $0x430] sm:$0xff] }
 0x858   : >> { %6596 = vmatpush.msrb.mxu3 %v6490_v46  ;;  %6554 = vmatpush.msrb.mxu1 %v6493_v24  ;;  %v6644_v46 = vld [vmem:[#allocation23 + $0x518] sm:$0xff]  ;;  %v6642_v30 = vld [vmem:[#allocation23 + $0x508] sm:$0xff]  ;;  %v6647_v24 = vld [vmem:[#allocation23 + $0x530] sm:$0xff] }
 0x859   : >> { %6713 = vmatpush.msra.mxu2 %v6640_v14  ;;  %6535 = vmatpush.msrb.mxu0 %v6459_v31  ;;  %v6617_v14 = vld [vmem:[#allocation23 + $0x440] sm:$0xff] }
 0x85a   : >> { %6733 = vmatpush.msra.mxu3 %v6672_v29  ;;  %6555 = vmatpush.msrb.mxu1 %v6491_v52  ;;  %v6649_v29 = vld [vmem:[#allocation23 + $0x540] sm:$0xff] }
 0x85b   : >> { %6714 = vmatpush.msra.mxu2 %v6638_v39  ;;  %6536 = vmatpush.msrb.mxu0 %v6457_v55  ;;  %v6792_v39 = vld [vmem:[#allocation23 + $0x6f8] sm:$0xff]  ;;  %v6613_v31 = vld [vmem:[#allocation23 + $0x420] sm:$0xff]  ;;  %v6611_v55 = vld [vmem:[#allocation23 + $0x410] sm:$0xff] }
 0x85c   : >> { %6734 = vmatpush.msra.mxu3 %v6670_v0  ;;  %6556 = vmatpush.msrb.mxu1 %v6489_v28  ;;  %v6824_v0 = vld [vmem:[#allocation23 + $0x7f8] sm:$0xff]  ;;  %v6645_v52 = vld [vmem:[#allocation23 + $0x520] sm:$0xff]  ;;  %v6643_v28 = vld [vmem:[#allocation23 + $0x510] sm:$0xff] }
 0x85d   : >> { %6715 = vmatpush.msra.mxu2 %v6636_v13  ;;  %6673 = vmatpush.msra.mxu0 %v6639_v42  ;;  %v6790_v13 = vld [vmem:[#allocation23 + $0x6e8] sm:$0xff] }
 0x85e   : >> { %6735 = vmatpush.msra.mxu3 %v6668_v11  ;;  %6693 = vmatpush.msra.mxu1 %v6671_v56  ;;  %v6822_v11 = vld [vmem:[#allocation23 + $0x7e8] sm:$0xff] }
 0x85f   : >> { %6716 = vmatpush.msra.mxu2 %v6634_v63  ;;  %6674 = vmatpush.msra.mxu0 %v6637_v6  ;;  %v6788_v63 = vld [vmem:[#allocation23 + $0x6d8] sm:$0xff]  ;;  %v6786_v42 = vld [vmem:[#allocation23 + $0x6c8] sm:$0xff]  ;;  %v6791_v6 = vld [vmem:[#allocation23 + $0x6f0] sm:$0xff] }
 0x860   : >> { %6736 = vmatpush.msra.mxu3 %v6666_v27  ;;  %6694 = vmatpush.msra.mxu1 %v6669_v41  ;;  %v6820_v27 = vld [vmem:[#allocation23 + $0x7d8] sm:$0xff]  ;;  %v6818_v56 = vld [vmem:[#allocation23 + $0x7c8] sm:$0xff]  ;;  %v6823_v41 = vld [vmem:[#allocation23 + $0x7f0] sm:$0xff] }
 0x861   : >> { %6717 = vmatpush.msra.mxu2 %v6632_v12  ;;  %6675 = vmatpush.msra.mxu0 %v6635_v33  ;;  %v6609_v12 = vld [vmem:[#allocation23 + $0x400] sm:$0xff] }
 0x862   : >> { %6737 = vmatpush.msra.mxu3 %v6664_v10  ;;  %6695 = vmatpush.msra.mxu1 %v6667_v54  ;;  %v6641_v10 = vld [vmem:[#allocation23 + $0x500] sm:$0xff] }
 0x863   : >> { %6718 = vmatpush.msra.mxu2 %v6630_v40  ;;  %6597 = vmatmul.f32.vlgmr.msrb.gmra.mxu3 %v11523_v25  ;;  %v6784_v40 = vld [vmem:[#allocation23 + $0x6b8] sm:$0xff]  ;;  %v6789_v33 = vld [vmem:[#allocation23 + $0x6e0] sm:$0xff] }
 0x864   : >> { %6738 = vmatpush.msra.mxu3 %v6662_v17  ;;  %6577 = vmatmul.f32.vlgmr.msrb.gmra.mxu2 %v11520_v18  ;;  %v6816_v17 = vld [vmem:[#allocation23 + $0x7b8] sm:$0xff]  ;;  %v6821_v54 = vld [vmem:[#allocation23 + $0x7e0] sm:$0xff] }
 0x865   : >> { %6719 = vmatpush.msra.mxu2 %v6628_v59  ;;  %6676 = vmatpush.msra.mxu0 %v6633_v45  ;;  %v6782_v59 = vld [vmem:[#allocation23 + $0x6a8] sm:$0xff]  ;;  %v6787_v45 = vld [vmem:[#allocation23 + $0x6d0] sm:$0xff] }
 0x866   : >> { %6739 = vmatpush.msra.mxu3 %v6660_v36  ;;  %6696 = vmatpush.msra.mxu1 %v6665_v43  ;;  %v6814_v36 = vld [vmem:[#allocation23 + $0x7a8] sm:$0xff]  ;;  %v6819_v43 = vld [vmem:[#allocation23 + $0x7d0] sm:$0xff] }
 0x867   : >> { %6720 = vmatpush.msra.mxu2 %v6626_v7  ;;  %6677 = vmatpush.msra.mxu0 %v6631_v32  ;;  %v6780_v7 = vld [vmem:[#allocation23 + $0x698] sm:$0xff]  ;;  %v6785_v32 = vld [vmem:[#allocation23 + $0x6c0] sm:$0xff] }
 0x868   : >> { %6740 = vmatpush.msra.mxu3 %v6658_v22  ;;  %6697 = vmatpush.msra.mxu1 %v6663_v51  ;;  %v6812_v22 = vld [vmem:[#allocation23 + $0x798] sm:$0xff]  ;;  %v6817_v51 = vld [vmem:[#allocation23 + $0x7c0] sm:$0xff] }
 0x869   : >> { %6721 = vmatpush.msra.mxu2 %v6624_v35  ;;  %6678 = vmatpush.msra.mxu0 %v6629_v53  ;;  %v6778_v35 = vld [vmem:[#allocation23 + $0x688] sm:$0xff]  ;;  %v6783_v53 = vld [vmem:[#allocation23 + $0x6b0] sm:$0xff] }
 0x86a   : >> { %6741 = vmatpush.msra.mxu3 %v6656_v38  ;;  %6698 = vmatpush.msra.mxu1 %v6661_v37  ;;  %v6810_v38 = vld [vmem:[#allocation23 + $0x788] sm:$0xff]  ;;  %v6815_v37 = vld [vmem:[#allocation23 + $0x7b0] sm:$0xff] }
 0x86b   : >> { %6722 = vmatpush.msra.mxu2 %v6622_v9  ;;  %6679 = vmatpush.msra.mxu0 %v6627_v61  ;;  %v6776_v9 = vld [vmem:[#allocation23 + $0x678] sm:$0xff]  ;;  %v6781_v61 = vld [vmem:[#allocation23 + $0x6a0] sm:$0xff] }
 0x86c   : >> { %6742 = vmatpush.msra.mxu3 %v6654_v60  ;;  %6699 = vmatpush.msra.mxu1 %v6659_v50  ;;  %v6808_v60 = vld [vmem:[#allocation23 + $0x778] sm:$0xff]  ;;  %v6813_v50 = vld [vmem:[#allocation23 + $0x7a0] sm:$0xff] }
 0x86d   : >> { %6723 = vmatpush.msra.mxu2 %v6620_v15  ;;  %6537 = vmatmul.f32.vlgmr.msrb.gmra.mxu0 %v11520_v18  ;;  %v6774_v15 = vld [vmem:[#allocation23 + $0x668] sm:$0xff] }
 0x86e   : >> { %6743 = vmatpush.msra.mxu3 %v6652_v1  ;;  %6557 = vmatmul.f32.vlgmr.msrb.gmra.mxu1 %v11523_v25  ;;  %v6806_v1 = vld [vmem:[#allocation23 + $0x768] sm:$0xff] }
 0x86f   : >> { %6680 = vmatpush.msra.mxu0 %v6625_v19  ;;  %6700 = vmatpush.msra.mxu1 %v6657_v8  ;;  %v6779_v19 = vld [vmem:[#allocation23 + $0x690] sm:$0xff] }
 0x870   : >> { %6724 = vmatpush.msra.mxu2 %v6618_v23  ;;  %6744 = vmatpush.msra.mxu3 %v6650_v58  ;;  %v6811_v8 = vld [vmem:[#allocation23 + $0x790] sm:$0xff]  ;;  %v6772_v23 = vld [vmem:[#allocation23 + $0x658] sm:$0xff] }
 0x871   : >> { %6681 = vmatpush.msra.mxu0 %v6623_v44  ;;  %6701 = vmatpush.msra.mxu1 %v6655_v57  ;;  %v6804_v58 = vld [vmem:[#allocation23 + $0x758] sm:$0xff]  ;;  %v6777_v44 = vld [vmem:[#allocation23 + $0x680] sm:$0xff] }
 0x872   : >> { %6725 = vmatpush.msra.mxu2 %v6616_v21  ;;  %6745 = vmatpush.msra.mxu3 %v6648_v2  ;;  %v6809_v57 = vld [vmem:[#allocation23 + $0x780] sm:$0xff]  ;;  %v6770_v21 = vld [vmem:[#allocation23 + $0x648] sm:$0xff] }
 0x873   : >> { %6682 = vmatpush.msra.mxu0 %v6621_v62  ;;  %6702 = vmatpush.msra.mxu1 %v6653_v16  ;;  %v6802_v2 = vld [vmem:[#allocation23 + $0x748] sm:$0xff]  ;;  %v6775_v62 = vld [vmem:[#allocation23 + $0x670] sm:$0xff] }
 0x874   : >> { %6726 = vmatpush.msra.mxu2 %v6614_v20  ;;  %6746 = vmatpush.msra.mxu3 %v6646_v48  ;;  %v6807_v16 = vld [vmem:[#allocation23 + $0x770] sm:$0xff]  ;;  %v6768_v20 = vld [vmem:[#allocation23 + $0x638] sm:$0xff] }
 0x875   : >> { %6683 = vmatpush.msra.mxu0 %v6619_v47  ;;  %6703 = vmatpush.msra.mxu1 %v6651_v49  ;;  %v6800_v48 = vld [vmem:[#allocation23 + $0x738] sm:$0xff]  ;;  %v6773_v47 = vld [vmem:[#allocation23 + $0x660] sm:$0xff] }
 0x876   : >> { %6727 = vmatpush.msra.mxu2 %v6612_v4  ;;  %6747 = vmatpush.msra.mxu3 %v6644_v46  ;;  %v6805_v49 = vld [vmem:[#allocation23 + $0x760] sm:$0xff]  ;;  %v6766_v4 = vld [vmem:[#allocation23 + $0x628] sm:$0xff] }
 0x877   : >> { %6684 = vmatpush.msra.mxu0 %v6617_v14  ;;  %6704 = vmatpush.msra.mxu1 %v6649_v29  ;;  %v6798_v46 = vld [vmem:[#allocation23 + $0x728] sm:$0xff]  ;;  %v6771_v14 = vld [vmem:[#allocation23 + $0x650] sm:$0xff] }
 0x878   : >> { %6728 = vmatpush.msra.mxu2 %v6610_v5  ;;  %6748 = vmatpush.msra.mxu3 %v6642_v30  ;;  %v6803_v29 = vld [vmem:[#allocation23 + $0x750] sm:$0xff]  ;;  %v6764_v5 = vld [vmem:[#allocation23 + $0x618] sm:$0xff] }
 0x879   : >> { %6729 = vmatmul.f32.vlgmr.msra.gmra.mxu2 %v11520_v18  ;;  %6749 = vmatmul.f32.vlgmr.msra.gmra.mxu3 %v11523_v25  ;;  %v6796_v30 = vld [vmem:[#allocation23 + $0x718] sm:$0xff] }
 0x87a   : >> { %6865 = vmatpush.msrb.mxu2 %v6792_v39  ;;  %6885 = vmatpush.msrb.mxu3 %v6824_v0  ;;  %v6769_v39 = vld [vmem:[#allocation23 + $0x640] sm:$0xff] }
 0x87b   : >> { %6685 = vmatpush.msra.mxu0 %v6615_v3  ;;  %6705 = vmatpush.msra.mxu1 %v6647_v24  ;;  %v6801_v0 = vld [vmem:[#allocation23 + $0x740] sm:$0xff]  ;;  %v6762_v3 = vld [vmem:[#allocation23 + $0x608] sm:$0xff] }
 0x87c   : >> { %6866 = vmatpush.msrb.mxu2 %v6790_v13  ;;  %6886 = vmatpush.msrb.mxu3 %v6822_v11  ;;  %v6794_v24 = vld [vmem:[#allocation23 + $0x708] sm:$0xff]  ;;  %v6767_v13 = vld [vmem:[#allocation23 + $0x630] sm:$0xff] }
 0x87d   : >> { %6686 = vmatpush.msra.mxu0 %v6613_v31  ;;  %6706 = vmatpush.msra.mxu1 %v6645_v52  ;;  %v6799_v11 = vld [vmem:[#allocation23 + $0x730] sm:$0xff]  ;;  %v6765_v31 = vld [vmem:[#allocation23 + $0x620] sm:$0xff] }
 0x87e   : >> { %6867 = vmatpush.msrb.mxu2 %v6788_v63  ;;  %6887 = vmatpush.msrb.mxu3 %v6820_v27  ;;  %v6797_v52 = vld [vmem:[#allocation23 + $0x720] sm:$0xff]  ;;  %v6763_v63 = vld [vmem:[#allocation23 + $0x610] sm:$0xff] }
 0x87f   : >> { %6687 = vmatpush.msra.mxu0 %v6611_v55  ;;  %6707 = vmatpush.msra.mxu1 %v6643_v28  ;;  %v6795_v27 = vld [vmem:[#allocation23 + $0x710] sm:$0xff]  ;;  %v6761_v55 = vld [vmem:[#allocation23 + $0x600] sm:$0xff] }
 0x880   : >> { %6868 = vmatpush.msrb.mxu2 %v6786_v42  ;;  %6888 = vmatpush.msrb.mxu3 %v6818_v56  ;;  %v6793_v28 = vld [vmem:[#allocation23 + $0x700] sm:$0xff] }
 0x881   : >> { %6688 = vmatpush.msra.mxu0 %v6609_v12  ;;  %6708 = vmatpush.msra.mxu1 %v6641_v10 }
 0x882   : >> { %6689 = vmatmul.f32.vlgmr.msra.gmra.mxu0 %v11520_v18  ;;  %6709 = vmatmul.f32.vlgmr.msra.gmra.mxu1 %v11523_v25 }
 0x883   : >> { %6825 = vmatpush.msrb.mxu0 %v6791_v6  ;;  %6845 = vmatpush.msrb.mxu1 %v6823_v41 }
 0x884   : >> { %6869 = vmatpush.msrb.mxu2 %v6784_v40  ;;  %6889 = vmatpush.msrb.mxu3 %v6816_v17 }
 0x885   : >> { %6826 = vmatpush.msrb.mxu0 %v6789_v33  ;;  %6846 = vmatpush.msrb.mxu1 %v6821_v54 }
 0x886   : >> { %6870 = vmatpush.msrb.mxu2 %v6782_v59  ;;  %6890 = vmatpush.msrb.mxu3 %v6814_v36 }
 0x887   : >> { %6827 = vmatpush.msrb.mxu0 %v6787_v45  ;;  %6847 = vmatpush.msrb.mxu1 %v6819_v43 }
 0x888   : >> { %6871 = vmatpush.msrb.mxu2 %v6780_v7  ;;  %6891 = vmatpush.msrb.mxu3 %v6812_v22 }
 0x889   : >> { %6828 = vmatpush.msrb.mxu0 %v6785_v32  ;;  %6848 = vmatpush.msrb.mxu1 %v6817_v51 }
 0x88a   : >> { %6872 = vmatpush.msrb.mxu2 %v6778_v35  ;;  %6892 = vmatpush.msrb.mxu3 %v6810_v38 }
 0x88b   : >> { %6829 = vmatpush.msrb.mxu0 %v6783_v53  ;;  %6849 = vmatpush.msrb.mxu1 %v6815_v37 }
 0x88c   : >> { %6873 = vmatpush.msrb.mxu2 %v6776_v9  ;;  %6893 = vmatpush.msrb.mxu3 %v6808_v60 }
 0x88d   : >> { %6830 = vmatpush.msrb.mxu0 %v6781_v61  ;;  %6850 = vmatpush.msrb.mxu1 %v6813_v50 }
 0x88e   : >> { %6874 = vmatpush.msrb.mxu2 %v6774_v15  ;;  %6894 = vmatpush.msrb.mxu3 %v6806_v1 }
 0x88f   : >> { %6831 = vmatpush.msrb.mxu0 %v6779_v19  ;;  %6851 = vmatpush.msrb.mxu1 %v6811_v8 }
 0x890   : >> { %6875 = vmatpush.msrb.mxu2 %v6772_v23  ;;  %6895 = vmatpush.msrb.mxu3 %v6804_v58 }
 0x891   : >> { %6832 = vmatpush.msrb.mxu0 %v6777_v44  ;;  %6852 = vmatpush.msrb.mxu1 %v6809_v57 }
 0x892   : >> { %6876 = vmatpush.msrb.mxu2 %v6770_v21  ;;  %6896 = vmatpush.msrb.mxu3 %v6802_v2 }
 0x893   : >> { %6833 = vmatpush.msrb.mxu0 %v6775_v62  ;;  %6853 = vmatpush.msrb.mxu1 %v6807_v16 }
 0x894   : >> { %6877 = vmatpush.msrb.mxu2 %v6768_v20  ;;  %6897 = vmatpush.msrb.mxu3 %v6800_v48 }
 0x895   : >> { %6834 = vmatpush.msrb.mxu0 %v6773_v47  ;;  %6854 = vmatpush.msrb.mxu1 %v6805_v49 }
 0x896   : >> { %6878 = vmatpush.msrb.mxu2 %v6766_v4  ;;  %6898 = vmatpush.msrb.mxu3 %v6798_v46 }
 0x897   : >> { %6835 = vmatpush.msrb.mxu0 %v6771_v14  ;;  %6855 = vmatpush.msrb.mxu1 %v6803_v29 }
 0x898   : >> { %6879 = vmatpush.msrb.mxu2 %v6764_v5  ;;  %6899 = vmatpush.msrb.mxu3 %v6796_v30 }
 0x899   : >> { %6836 = vmatpush.msrb.mxu0 %v6769_v39  ;;  %6856 = vmatpush.msrb.mxu1 %v6801_v0 }
 0x89a   : >> { %6880 = vmatpush.msrb.mxu2 %v6762_v3  ;;  %6900 = vmatpush.msrb.mxu3 %v6794_v24 }
 0x89b   : >> { %6881 = vmatmul.f32.vlgmr.msrb.gmra.mxu2 %v11520_v18  ;;  %6901 = vmatmul.f32.vlgmr.msrb.gmra.mxu3 %v11523_v25 }
 0x89c   : >> { %6837 = vmatpush.msrb.mxu0 %v6767_v13  ;;  %6857 = vmatpush.msrb.mxu1 %v6799_v11 }
 0x89e   : >> { %6838 = vmatpush.msrb.mxu0 %v6765_v31  ;;  %6858 = vmatpush.msrb.mxu1 %v6797_v52 }
 0x8a0   : >> { %6839 = vmatpush.msrb.mxu0 %v6763_v63  ;;  %6859 = vmatpush.msrb.mxu1 %v6795_v27 }
 0x8a2   : >> { %6840 = vmatpush.msrb.mxu0 %v6761_v55  ;;  %6860 = vmatpush.msrb.mxu1 %v6793_v28 }
 0x8a3   : >> { %6841 = vmatmul.f32.vlgmr.msrb.gmra.mxu0 %v11520_v18  ;;  %6861 = vmatmul.f32.vlgmr.msrb.gmra.mxu1 %v11523_v25  ;;  %v6300_v18 = vld [vmem:[%s6299_s22] sm:$0xff]  ;;  %s8170_s22 = scalar_lea.hbm (%p6291_p1), %s11608_s13, 256 }
 0x8a4   : > { %p8172_p8 = scmp.lt.s32.totalorder (%p6291_p1), %s8170_s22, %s8166_s14 }
 0x8a6   : > { %p8173_p9 = por (%p6291_p1), %p8172_p8, %p8171_p7 }
 0x8a8   : > { %p8174_p10 = pnand (%p6291_p1), %p8173_p9, %p8169_p4 }
 0x8c6   : >> { %v6447_v56 = vpop.f32.mrf.mxu3 }
 0x8c7   : >> { %v6427_v42 = vpop.f32.mrf.mxu2 }
 0x8c8   : >> { %v6448_v54 = vadd.f32 %v6447_v56, %v6427_v42 }
 0x8ca   : >> { %v6387_v12 = vpop.f32.mrf.mxu0  ;;  %v6452_v45 = vrot.slane %v6448_v54, 4 }
 0x8cb   : >> { %v6407_v10 = vpop.f32.mrf.mxu1 }
 0x8cc   : >> { %v6408_v43 = vadd.f32 %v6407_v10, %v6387_v12 }
 0x8ce   : >> { %v6453_v25 = vsel %vm779_vm2, %v6408_v43, %v6452_v45 }
 0x8cf   : >> { %v6455_v32 = vadd.f32 %v6453_v25, %v6300_v18 }
 0x8d1   : >> { %v7504_v35 = vmul.f32 -1.442695, %v6455_v32 }
 0x8d3   : >> { %7804 = vpow2.f32 %v7504_v35 }
 0x8d9   : >> { %v7805_v53 = vpop.eup %7804 }
 0x8da   : >> { %v6935_v61 = vadd.f32 1.0, %v7805_v53 }
 0x8dc   : >> { %vm6941_vm3 = vweird.f32 %v6935_v61  ;;  %v6947_v3 = vand.u32 2147483648, %v6935_v61  ;;  %v6945_v11 = vand.u32 2147483647, %v6935_v61 }
 0x8de   : >> { %v6948_v28 = vor.u32 1.1754944e-38, %v6947_v3  ;;  %vm6946_vm7 = vcmp.eq.f32.partialorder %v6945_v11, 8.507059e+37 }
 0x8e6   : >> { %v6598_v41 = vpop.f32.mrf.mxu3 }
 0x8e7   : >> { %v6578_v6 = vpop.f32.mrf.mxu2 }
 0x8e8   : >> { %v6599_v40 = vadd.f32 %v6598_v41, %v6578_v6 }
 0x8ea   : >> { %v6538_v17 = vpop.f32.mrf.mxu0  ;;  %v6603_v59 = vrot.slane %v6599_v40, 4 }
 0x8eb   : >> { %v6558_v33 = vpop.f32.mrf.mxu1 }
 0x8ec   : >> { %v6559_v36 = vadd.f32 %v6558_v33, %v6538_v17 }
 0x8ee   : >> { %v6604_v7 = vsel %vm779_vm2, %v6559_v36, %v6603_v59 }
 0x8ef   : >> { %v6605_v22 = vrot.slane %v6604_v7, 7 }
 0x8f1   : >> { %v6607_v51 = vadd.f32 %v6605_v22, %v6300_v18 }
 0x8f3   : >> { %v7503_v38 = vmul.f32 -1.442695, %v6607_v51 }
 0x8f5   : >> { %7806 = vpow2.f32 %v7503_v38 }
 0x8f6   : >> { %7808 = vrcp.f32 %v6935_v61 }
 0x8fb   : >> { %v7807_v60 = vpop.eup %7806 }
 0x8fc   : >> { %v6730_v37 = vpop.f32.mrf.mxu2  ;;  %v6750_v9 = vpop.f32.mrf.mxu3  ;;  %v6915_v15 = vadd.f32 1.0, %v7807_v60 }
 0x8fd   : >> { %v6751_v50 = vadd.f32 %v6750_v9, %v6730_v37  ;;  %v7809_v44 = vpop.eup %7808 }
 0x8fe   : >> { %7810 = vrcp.f32 %v6915_v15  ;;  %v6937_v2 = vmul.f32 %v7809_v44, %v6935_v61  ;;  %vm6942_vm15 = vweird.f32 %v7809_v44  ;;  %vm6921_vm0 = vweird.f32 %v6915_v15 }
 0x8ff   : >> { %v6690_v1 = vpop.f32.mrf.mxu0  ;;  %v6710_v19 = vpop.f32.mrf.mxu1  ;;  %v6755_v8 = vrot.slane %v6751_v50, 4  ;;  %v6927_v52 = vand.u32 2147483648, %v6915_v15  ;;  %vm6943_vm4 = vmor %vm6941_vm3, %vm6942_vm15  ;;  %v6925_v55 = vand.u32 2147483647, %v6915_v15 }
 0x900   : >> { %v6711_v23 = vadd.f32 %v6710_v19, %v6690_v1  ;;  %v6938_v20 = vsub.f32 1.0, %v6937_v2 }
 0x901   : >> { %v6928_v10 = vor.u32 1.1754944e-38, %v6927_v52  ;;  %vm6926_vm8 = vcmp.eq.f32.partialorder %v6925_v55, 8.507059e+37 }
 0x902   : >> { %v6756_v58 = vsel %vm779_vm2, %v6711_v23, %v6755_v8  ;;  %v6939_v29 = vmul.f32 %v7809_v44, %v6938_v20 }
 0x903   : >> { %v6757_v21 = vrot.slane %v6756_v58, 6 }
 0x904   : >> { %v7811_v57 = vpop.eup %7810  ;;  %v6940_v13 = vadd.f32 %v7809_v44, %v6939_v29 }
 0x905   : >> { %v6917_v62 = vmul.f32 %v7811_v57, %v6915_v15  ;;  %v6759_v16 = vadd.f32 %v6757_v21, %v6300_v18  ;;  %vm6922_vm1 = vweird.f32 %v7811_v57 }
 0x906   : >> { %vm6923_vm6 = vmor %vm6921_vm0, %vm6922_vm1  ;;  %v6944_v56 = vsel %vm6943_vm4, %v7809_v44, %v6940_v13 }
 0x907   : >> { %v6918_v49 = vsub.f32 1.0, %v6917_v62  ;;  %7812 = vtanh.f32 %v6759_v16  ;;  %v6949_v41 = vsel %vm6946_vm7, %v6948_v28, %v6944_v56 }
 0x909   : >> { %v6919_v39 = vmul.f32 %v7811_v57, %v6918_v49 }
 0x90b   : >> { %v6920_v27 = vadd.f32 %v7811_v57, %v6919_v39 }
 0x90d   : >> { %v7813_v31 = vpop.eup %7812  ;;  %v6924_v6 = vsel %vm6923_vm6, %v7811_v57, %v6920_v27 }
 0x90e   : >> { %v7505_v12 = vrot.slane %v7813_v31, 10  ;;  %v6929_v17 = vsel %vm6926_vm8, %v6928_v10, %v6924_v6 }
 0x90f   : >> { %v6931_v54 = vmul.f32 %v8276_v26, %v6929_v17 }
 0x910   : >> { %v6956_v40 = vmul.f32 %v7505_v12, %v6949_v41 }
 0x912   : >> { %v6958_v59 = vrot.slane %v6956_v40, 7 }
 0x914   : >> { %v6960_v26 = vadd.f32 %v6958_v59, %v6931_v54  }
 0x91e   : >> { %v6882_v48 = vpop.f32.mrf.mxu2  ;;  %v6902_v47 = vpop.f32.mrf.mxu3 }
 0x91f   : >> { %v6903_v4 = vadd.f32 %v6902_v47, %v6882_v48 }
 0x920   : >> { %v6842_v46 = vpop.f32.mrf.mxu0  ;;  %v6862_v14 = vpop.f32.mrf.mxu1 }
 0x921   : >> { %v6907_v5 = vrot.slane %v6903_v4, 4  ;;  %v6863_v30 = vadd.f32 %v6862_v14, %v6842_v46 }
 0x923   : >> { %v6908_v0 = vsel %vm779_vm2, %v6863_v30, %v6907_v5 }
 0x924   : >> { %v6909_v24 = vrot.slane %v6908_v0, 5 }
 0x926   : >> { %v6911_v63 = vadd.f32 %v6909_v24, %v6300_v18 }
 0x928   : >> { %v7506_v42 = vmul.f32 -1.442695, %v6911_v63 }
 0x92a   : >> { %7814 = vpow2.f32 %v7506_v42 }
 0x930   : >> { %v7815_v33 = vpop.eup %7814 }
 0x931   : >> { %v6964_v36 = vadd.f32 1.0, %v7815_v33 }
 0x933   : >> { %7816 = vrcp.f32 %v6964_v36  ;;  %v6976_v18 = vand.u32 2147483648, %v6964_v36  ;;  %v6974_v22 = vand.u32 2147483647, %v6964_v36  ;;  %vm6970_vm10 = vweird.f32 %v6964_v36 }
 0x934   : >> { %7818 = vtanh.f32 %v6960_v26 }
 0x935   : >> { %v6977_v35 = vor.u32 1.1754944e-38, %v6976_v18  ;;  %vm6975_vm5 = vcmp.eq.f32.partialorder %v6974_v22, 8.507059e+37 }
 0x939   : >> { %v7817_v45 = vpop.eup %7816 }
 0x93a   : >> { %v6966_v43 = vmul.f32 %v7817_v45, %v6964_v36  ;;  %vm6971_vm9 = vweird.f32 %v7817_v45  ;;  %v7819_v32 = vpop.eup %7818 }
 0x93b   : >> { %vm6972_vm11 = vmor %vm6970_vm10, %vm6971_vm9  ;;  %v6982_v38 = vrot.slane %v7819_v32, 6 }
 0x93c   : >> { %v6967_v7 = vsub.f32 1.0, %v6966_v43 }
 0x93e   : >> { %v6968_v25 = vmul.f32 %v7817_v45, %v6967_v7 }
 0x940   : >> { %v6969_v51 = vadd.f32 %v7817_v45, %v6968_v25 }
 0x942   : >> { %v6973_v53 = vsel %vm6972_vm11, %v7817_v45, %v6969_v51 }
 0x943   : >> { %v6978_v37 = vsel %vm6975_vm5, %v6977_v35, %v6973_v53 }
 0x944   : >> { %v6984_v53 = vmul.f32 %v6982_v38, %v6978_v37  }
 0x946   : >> { %6986 = vst [vmem:[#allocation1] sm:$0xff] %v6984_v53 }
 0x94a   : > { %6293 = sbr.rel (!%p6291_p1) target bundleno = 2072 (0x818), region = 458 }
 0x94d   : >> { %v6988_v9 = vld [vmem:[#allocation1 + $0x3] ss:$4 sm:$0xff] }
 0x94e   : >> { %6998 = vst.msk [vmem:[%s6997_s17] ss:$8 sm:$0x3] %vm10663_vm14, %v6988_v9 }
 0x94f   : > { %8177 = shalt.err (!%p8174_p10)
}
 0x950   : > { %s8306_s3 = smov 256   ;;  %s8307_s6 = smov 16  }
 0x951   : > { %7562 = dma.vmem_to_hbm [thread:$0]  (%p8416_p5), %s7014_s30, 2048, %s7016_s15, %s7001_s19, %s8306_s3, %s8306_s3, %s8307_s6  }
 0x952 PF: > { %s11652_s24 = sld [smem:[#allocation34_spill]]  ;;  %p7624_p11 = scmp.ge.s32.totalorder %s8260_s28, 2 }
 0x954   : > { %p7599_p12 = pnand %p7624_p11, %p8420_p6 }
 0x956   : > { %p7600_p13 = pneg %p7599_p12 }
 0x958   : > { %s7030_s20 = sand.u32 1, %s11652_s24  }
 0x959   : > { %s7031_s17 = scalar_lea.sflag [#allocation10], %s7030_s20 }
 0x95a   : > { %8243 = dma.done.wait (%p7600_p13), %s7031_s17, 2048  }
 0x95b   : > { %8245 = vsyncadd (%p7600_p13), %s7031_s17, 4294965248  ;;  %s11654_s28 = sld [smem:[#allocation36_spill]]  ;;  %s11657_s25 = smov %s8252_s26 }
 0x95c   : > { %s11655_s4 = sld [smem:[#allocation35_spill]] }
 0x95d   : > { %s11656_s27 = sld [smem:[#allocation37_spill]] }
 0x961   : > { %p29_p0 = scmp.ge.s32.totalorder %s11654_s28, 4  }
 0x962   : > { %s11658_s26 = smov %s11655_s4 }
 0x963   :  { %31 = sbr.rel (!%p29_p0) target bundleno = 16 (0x10), region = 469 }
 0x968   :  { %7037 = vsyncpa [#allocation9], 1 }
 0x969   :  { %7039 = vsyncpa [#allocation9 + $0x1], 1 }
 0x96a   :  { %7040 = vsyncpa [#allocation12], 1 }
 0x96b   :  { %7041 = vsyncpa [#allocation15], 1 }
 0x96c   :  { %7042 = vsyncpa [#allocation18], 1 }
 0x96d   :  { %7043 = vsyncpa [#allocation21], 1 }
 0x96e   :  { %7044 = vsyncpa [#allocation24], 1 }
 0x96f   :  { %7045 = vsyncpa [#allocation10], 1 }
 0x970   :  { %7047 = vsyncpa [#allocation10 + $0x1], 1 }

</bundles_post_ra>
